<compile_context>
chip_gen: v7x
topology: tpu7x:2x2x1
jax: 0.10.0
libtpu: 0.0.40
codegen_flags: <defaults>
</compile_context>

<pallas_src>
import numpy as np
import jax
import jax.numpy as jnp
from jax.experimental import pallas as pl
from jax.experimental.pallas import tpu as pltpu


# ----------------------------------------------------------------------------
# Synthetic parameters in PyTorch layouts (OIHW convs, (Ci,Co,2,2) convT).
# ----------------------------------------------------------------------------
def init_torch_params(key, feature_channels, target_channels, conv_channels,
                      encode_depth=4, block_depth=2):
    enc = [conv_channels * 2 ** i for i in range(encode_depth)]
    dec = enc[::-1]
    keys = iter(jax.random.split(key, 256))

    def conv(ci, co, k):
        kw, kb = jax.random.split(next(keys))
        bound = 1.0 / float(np.sqrt(ci * k * k))
        w = jax.random.uniform(kw, (co, ci, k, k), jnp.float32, -bound, bound)
        b = jax.random.uniform(kb, (co,), jnp.float32, -bound, bound)
        return np.asarray(w), np.asarray(b)

    def convT(ci, co):
        kw, kb = jax.random.split(next(keys))
        bound = 1.0 / float(np.sqrt(ci * 4))
        w = jax.random.uniform(kw, (ci, co, 2, 2), jnp.float32, -bound, bound)
        b = jax.random.uniform(kb, (co,), jnp.float32, -bound, bound)
        return np.asarray(w), np.asarray(b)

    def block(ci, co):
        return [conv(ci if i == 0 else co, co, 3) for i in range(block_depth)]

    p = {"input": block(feature_channels, enc[0]),
         "down": [], "enc": [], "up": [], "dec": []}
    for n in range(encode_depth - 1):
        p["down"].append(conv(enc[n], enc[n + 1], 2))
        p["enc"].append(block(enc[n + 1], enc[n + 1]))
        p["up"].append(convT(dec[n], dec[n + 1]))
        p["dec"].append(block(dec[n], dec[n + 1]))
    p["output"] = conv(conv_channels, target_channels, 3)
    return p


# ----------------------------------------------------------------------------
# Weight folding: turn every layer into dense matmul operands for the layout
#   activation[n]  ==  matrix (H, C*W) with lane index = c*W + w.
# ----------------------------------------------------------------------------
def _refl(i, n):
    if i < 0:
        return -i
    if i >= n:
        return 2 * n - 2 - i
    return i


def _conv3x3_mats(w, b, Wd):
    """OIHW 3x3 conv -> per-ky-tap matrices (3, Ci*Wd, Co*Wd) with the width
    reflect-padding folded in, plus a (1, Co*Wd) bias row."""
    Co, Ci = w.shape[0], w.shape[1]
    A = np.zeros((3, Ci, Wd, Co, Wd), np.float32)
    for dy in range(3):
        for dx in range(3):
            for wo in range(Wd):
                wi = _refl(wo + dx - 1, Wd)
                A[dy, :, wi, :, wo] += w[:, :, dy, dx].T
    return A.reshape(3, Ci * Wd, Co * Wd), np.repeat(b, Wd)[None, :]


def _down_mats(w, b, Wd):
    """OIHW 2x2/stride-2 conv -> (2, Ci*Wd, Co*(Wd//2))."""
    Co, Ci = w.shape[0], w.shape[1]
    W2 = Wd // 2
    D = np.zeros((2, Ci, Wd, Co, W2), np.float32)
    for dy in range(2):
        for dx in range(2):
            for wo in range(W2):
                D[dy, :, 2 * wo + dx, :, wo] += w[:, :, dy, dx].T
    return D.reshape(2, Ci * Wd, Co * W2), np.repeat(b, W2)[None, :]


def _up_mats(w, b, Wd):
    """(Ci,Co,2,2) stride-2 transposed conv -> (2, Ci*Wd, Co*2Wd)."""
    Ci, Co = w.shape[0], w.shape[1]
    W2 = 2 * Wd
    U = np.zeros((2, Ci, Wd, Co, W2), np.float32)
    for dy in range(2):
        for dx in range(2):
            for wi in range(Wd):
                U[dy, :, wi, :, 2 * wi + dx] += w[:, :, dy, dx]
    return U.reshape(2, Ci * Wd, Co * W2), np.repeat(b, W2)[None, :]


def _shift_mats(Hh):      # row-reflect shifts for the ky = 0 / 2 conv taps
    S = np.zeros((2, Hh, Hh), np.float32)
    for h in range(Hh):
        S[0, h, _refl(h - 1, Hh)] = 1.0
        S[1, h, _refl(h + 1, Hh)] = 1.0
    return S


def _even_odd_mats(Hh):   # even/odd row selection for stride-2 downsampling
    E = np.zeros((2, Hh // 2, Hh), np.float32)
    E[0, np.arange(Hh // 2), 2 * np.arange(Hh // 2)] = 1.0
    E[1, np.arange(Hh // 2), 2 * np.arange(Hh // 2) + 1] = 1.0
    return E


def _interleave_mats(Hh):  # row interleaving for stride-2 transposed conv
    R = np.zeros((2, 2 * Hh, Hh), np.float32)
    R[0, 2 * np.arange(Hh), np.arange(Hh)] = 1.0
    R[1, 2 * np.arange(Hh) + 1, np.arange(Hh)] = 1.0
    return R


def _as_mat(a):
    return jnp.asarray(a, jnp.bfloat16)


def _as_bias(a):
    return jnp.asarray(a, jnp.float32)


def build_kernel_params(tp, H0, W0, encode_depth):
    Hs = [H0 // 2 ** i for i in range(encode_depth)]
    Ws = [W0 // 2 ** i for i in range(encode_depth)]

    P = {"input": [], "down": [], "enc": [], "up": [], "dec": [],
         "shift": {}, "even": {}, "rsel": {}}

    def need_shift(Hh):
        if Hh not in P["shift"]:
            P["shift"][Hh] = _as_mat(_shift_mats(Hh))

    def conv_entry(w, b, Wd):
        A, br = _conv3x3_mats(w, b, Wd)
        return {"A": _as_mat(A), "b": _as_bias(br)}

    need_shift(Hs[0])
    P["input"] = [conv_entry(w, b, Ws[0]) for (w, b) in tp["input"]]

    for n in range(encode_depth - 1):
        if Hs[n] not in P["even"]:
            P["even"][Hs[n]] = _as_mat(_even_odd_mats(Hs[n]))
        need_shift(Hs[n + 1])
        Dw, Db = _down_mats(*tp["down"][n], Ws[n])
        P["down"].append({"D": _as_mat(Dw), "b": _as_bias(Db)})
        P["enc"].append([conv_entry(w, b, Ws[n + 1]) for (w, b) in tp["enc"][n]])

    for n in range(encode_depth - 1):
        Hin, Win = Hs[encode_depth - 1 - n], Ws[encode_depth - 1 - n]
        Hout, Wout = Hin * 2, Win * 2
        if Hin not in P["rsel"]:
            P["rsel"][Hin] = _as_mat(_interleave_mats(Hin))
        need_shift(Hout)
        Uw, Ub = _up_mats(*tp["up"][n], Win)
        P["up"].append({"U": _as_mat(Uw), "b": _as_bias(Ub)})
        # First decoder conv: input = cat(upsampled, skip) -> split A rows so
        # the concat never has to be materialized in the kernel.
        (w0, b0), (w1, b1) = tp["dec"][n]
        A0, br0 = _conv3x3_mats(w0, b0, Wout)
        c_up = tp["up"][n][0].shape[1]            # ConvTranspose out-channels
        k_top = c_up * Wout
        P["dec"].append([
            {"At": _as_mat(A0[:, :k_top, :]), "Ab": _as_mat(A0[:, k_top:, :]),
             "b": _as_bias(br0)},
            conv_entry(w1, b1, Wout),
        ])

    wo_, bo_ = tp["output"]
    Ao, bro = _conv3x3_mats(wo_, bo_, Ws[0])
    L = Ao.shape[-1]
    Lpad = ((L + 127) // 128) * 128               # lane-dense final HBM store
    Ao = np.pad(Ao, ((0, 0), (0, 0), (0, Lpad - L)))
    bro = np.pad(bro, ((0, 0), (0, Lpad - L)))
    P["out"] = {"A": _as_mat(Ao), "b": _as_bias(bro)}
    return P, L, Lpad


# ----------------------------------------------------------------------------
# The fused Pallas forward pass.
# ----------------------------------------------------------------------------
def make_generator_forward(tp, N, H0, W0, Cin, encode_depth=4):
    P, Lout, Lpad = build_kernel_params(tp, H0, W0, encode_depth)
    leaves, treedef = jax.tree_util.tree_flatten(P)
    n_leaves = len(leaves)
    Co_final = Lout // W0

    def kernel(x_ref, *rest):
        prefs = list(rest[:n_leaves])
        o_ref = rest[n_leaves]
        p = jax.tree_util.tree_unflatten(treedef, prefs)
        bf16, f32 = jnp.bfloat16, jnp.float32

        def mm(a, bm):                       # bf16 x bf16 MXU matmul, f32 acc
            return jnp.dot(a, bm, preferred_element_type=f32)

        def conv3x3(X, cp, S, relu):
            Xb = X.astype(bf16)
            A = cp["A"]
            y = mm(Xb, A[1])
            y = y + mm(mm(S[0], Xb).astype(bf16), A[0])
            y = y + mm(mm(S[1], Xb).astype(bf16), A[2])
            y = y + cp["b"][...]
            return jnp.maximum(y, 0.0) if relu else y

        def conv3x3_cat(Xu, Xs, cp, S):      # conv over cat(upsampled, skip)
            Ub_, Sb_ = Xu.astype(bf16), Xs.astype(bf16)
            At, Ab = cp["At"], cp["Ab"]
            y = mm(Ub_, At[1]) + mm(Sb_, Ab[1])
            y = y + (mm(mm(S[0], Ub_).astype(bf16), At[0])
                     + mm(mm(S[0], Sb_).astype(bf16), Ab[0]))
            y = y + (mm(mm(S[1], Ub_).astype(bf16), At[2])
                     + mm(mm(S[1], Sb_).astype(bf16), Ab[2]))
            y = y + cp["b"][...]
            return jnp.maximum(y, 0.0)

        def down(X, dp, E):
            Xb = X.astype(bf16)
            xe = mm(E[0], Xb).astype(bf16)
            xo = mm(E[1], Xb).astype(bf16)
            return mm(xe, dp["D"][0]) + mm(xo, dp["D"][1]) + dp["b"][...]

        def up(X, up_p, R):
            Xb = X.astype(bf16)
            y0 = mm(Xb, up_p["U"][0]).astype(bf16)
            y1 = mm(Xb, up_p["U"][1]).astype(bf16)
            return mm(R[0], y0) + mm(R[1], y1) + up_p["b"][...]

        X = x_ref[0].astype(f32)             # (H0, Cin*W0) for this image
        Hc = H0
        for cp in p["input"]:
            X = conv3x3(X, cp, p["shift"][Hc], relu=True)
        skips = []
        for lvl in range(encode_depth - 1):
            skips.append(X)
            X = down(X, p["down"][lvl], p["even"][Hc])
            Hc //= 2
            for cp in p["enc"][lvl]:
                X = conv3x3(X, cp, p["shift"][Hc], relu=True)
        skips.reverse()
        for lvl in range(encode_depth - 1):
            Xu = up(X, p["up"][lvl], p["rsel"][Hc])
            Hc *= 2
            dec0, dec1 = p["dec"][lvl]
            X = conv3x3_cat(Xu, skips[lvl], dec0, p["shift"][Hc])
            X = conv3x3(X, dec1, p["shift"][Hc], relu=True)
        Y = conv3x3(X, p["out"], p["shift"][Hc], relu=False)
        o_ref[0] = Y.astype(o_ref.dtype)

    def const_spec(shape):                   # weights: one block, VMEM-resident
        nd = len(shape)
        return pl.BlockSpec(tuple(shape), lambda n, _nd=nd: (0,) * _nd)

    in_specs = [pl.BlockSpec((1, H0, Cin * W0), lambda n: (n, 0, 0))]
    in_specs += [const_spec(l.shape) for l in leaves]
    out_specs = pl.BlockSpec((1, H0, Lpad), lambda n: (n, 0, 0))

    fwd = pl.pallas_call(
        kernel,
        out_shape=jax.ShapeDtypeStruct((N, H0, Lpad), jnp.float32),
        grid=(N,),
        in_specs=in_specs,
        out_specs=out_specs,
        compiler_params=pltpu.CompilerParams(
            dimension_semantics=("parallel",)),   # v7x: one image per TensorCore
    )

    def forward(x_nchw, leaves_in):
        # NCHW -> per-image row matrices (N, H, C*W), channel-major lanes.
        xr = jnp.transpose(x_nchw, (0, 2, 1, 3)).reshape(N, H0, Cin * W0)
        y = fwd(xr, *leaves_in)
        y = y[:, :, :Lout].reshape(N, H0, Co_final, W0)
        return jnp.transpose(y, (0, 2, 1, 3))     # back to NCHW

    return forward, leaves


# ----------------------------------------------------------------------------
# Pure-JAX f32 reference (mirrors the PyTorch module) for validation.
# ----------------------------------------------------------------------------
def _ref_conv3x3(x, w, b):
    H, W = x.shape[2], x.shape[3]
    xp = jnp.pad(x, ((0, 0), (0, 0), (1, 1), (1, 1)), mode="reflect")
    y = jnp.zeros((x.shape[0], w.shape[0], H, W), jnp.float32)
    for dy in range(3):
        for dx in range(3):
            y = y + jnp.einsum("nihw,oi->nohw",
                               xp[:, :, dy:dy + H, dx:dx + W], w[:, :, dy, dx])
    return y + b[None, :, None, None]


def _ref_down(x, w, b):
    y = None
    for dy in range(2):
        for dx in range(2):
            t = jnp.einsum("nihw,oi->nohw", x[:, :, dy::2, dx::2], w[:, :, dy, dx])
            y = t if y is None else y + t
    return y + b[None, :, None, None]


def _ref_up(x, w, b):
    N, _, H, W = x.shape
    y = jnp.zeros((N, w.shape[1], 2 * H, 2 * W), jnp.float32)
    for dy in range(2):
        for dx in range(2):
            t = jnp.einsum("nihw,io->nohw", x, w[:, :, dy, dx])
            y = y.at[:, :, dy::2, dx::2].set(t)
    return y + b[None, :, None, None]


def reference_forward(tp, x):
    def blk(z, layers):
        for (w, b) in layers:
            z = jnp.maximum(_ref_conv3x3(z, w, b), 0.0)
        return z

    y = blk(x, tp["input"])
    skips = []
    for n in range(len(tp["down"])):
        skips.append(y)
        y = _ref_down(y, *tp["down"][n])
        y = blk(y, tp["enc"][n])
    skips.reverse()
    for n in range(len(tp["up"])):
        y = _ref_up(y, *tp["up"][n])
        y = jnp.concatenate([y, skips[n]], axis=1)
        y = blk(y, tp["dec"][n])
    return _ref_conv3x3(y, *tp["output"])


# ----------------------------------------------------------------------------
if __name__ == "__main__":
    key = jax.random.PRNGKey(0)
    k_param, k_x = jax.random.split(key)

    N, Cin, H, W = 2, 4, 16, 16
    target_channels, conv_channels = 2, 8
    encode_depth, block_depth = 4, 2

    tparams = init_torch_params(k_param, Cin, target_channels, conv_channels,
                                encode_depth, block_depth)
    x = jax.random.normal(k_x, (N, Cin, H, W), jnp.float32)   # NCHW like torch

    forward, leaves = make_generator_forward(tparams, N, H, W, Cin, encode_depth)
    run = jax.jit(forward)
    y = jax.block_until_ready(run(x, leaves))

    assert y.shape == (N, target_channels, H, W), y.shape
    assert bool(jnp.all(jnp.isfinite(y)))

    # Validate the fused kernel against a pure-JAX f32 reference of the net.
    y_ref = jax.block_until_ready(reference_forward(tparams, x))
    err = float(jnp.max(jnp.abs(y - y_ref)))
    scale = float(jnp.max(jnp.abs(y_ref)))
    assert err <= 0.05 * scale + 0.05, (err, scale)   # bf16-matmul tolerance

    print("KERNEL_OK")
</pallas_src>

<mosaic_0001>
module attributes {stable_mosaic.version = 11 : i64} {
  func.func @kernel(%arg0: i32, %arg1: memref<1x16x64xf32, #tpu.memory_space<vmem>>, %arg2: memref<3x128x128xbf16, #tpu.memory_space<vmem>>, %arg3: memref<3x128x128xbf16, #tpu.memory_space<vmem>>, %arg4: memref<1x128xf32, #tpu.memory_space<vmem>>, %arg5: memref<3x128x128xbf16, #tpu.memory_space<vmem>>, %arg6: memref<1x128xf32, #tpu.memory_space<vmem>>, %arg7: memref<3x128x128xbf16, #tpu.memory_space<vmem>>, %arg8: memref<3x128x128xbf16, #tpu.memory_space<vmem>>, %arg9: memref<1x128xf32, #tpu.memory_space<vmem>>, %arg10: memref<3x128x128xbf16, #tpu.memory_space<vmem>>, %arg11: memref<1x128xf32, #tpu.memory_space<vmem>>, %arg12: memref<3x128x128xbf16, #tpu.memory_space<vmem>>, %arg13: memref<3x128x128xbf16, #tpu.memory_space<vmem>>, %arg14: memref<1x128xf32, #tpu.memory_space<vmem>>, %arg15: memref<3x128x128xbf16, #tpu.memory_space<vmem>>, %arg16: memref<1x128xf32, #tpu.memory_space<vmem>>, %arg17: memref<2x128x128xbf16, #tpu.memory_space<vmem>>, %arg18: memref<1x128xf32, #tpu.memory_space<vmem>>, %arg19: memref<2x128x128xbf16, #tpu.memory_space<vmem>>, %arg20: memref<1x128xf32, #tpu.memory_space<vmem>>, %arg21: memref<2x128x128xbf16, #tpu.memory_space<vmem>>, %arg22: memref<1x128xf32, #tpu.memory_space<vmem>>, %arg23: memref<3x128x128xbf16, #tpu.memory_space<vmem>>, %arg24: memref<1x128xf32, #tpu.memory_space<vmem>>, %arg25: memref<3x128x128xbf16, #tpu.memory_space<vmem>>, %arg26: memref<1x128xf32, #tpu.memory_space<vmem>>, %arg27: memref<3x128x128xbf16, #tpu.memory_space<vmem>>, %arg28: memref<1x128xf32, #tpu.memory_space<vmem>>, %arg29: memref<3x128x128xbf16, #tpu.memory_space<vmem>>, %arg30: memref<1x128xf32, #tpu.memory_space<vmem>>, %arg31: memref<3x128x128xbf16, #tpu.memory_space<vmem>>, %arg32: memref<1x128xf32, #tpu.memory_space<vmem>>, %arg33: memref<3x128x128xbf16, #tpu.memory_space<vmem>>, %arg34: memref<1x128xf32, #tpu.memory_space<vmem>>, %arg35: memref<2x2x4xbf16, #tpu.memory_space<vmem>>, %arg36: memref<2x4x8xbf16, #tpu.memory_space<vmem>>, %arg37: memref<2x8x16xbf16, #tpu.memory_space<vmem>>, %arg38: memref<3x64x128xbf16, #tpu.memory_space<vmem>>, %arg39: memref<1x128xf32, #tpu.memory_space<vmem>>, %arg40: memref<3x128x128xbf16, #tpu.memory_space<vmem>>, %arg41: memref<1x128xf32, #tpu.memory_space<vmem>>, %arg42: memref<3x128x128xbf16, #tpu.memory_space<vmem>>, %arg43: memref<1x128xf32, #tpu.memory_space<vmem>>, %arg44: memref<2x4x2xbf16, #tpu.memory_space<vmem>>, %arg45: memref<2x8x4xbf16, #tpu.memory_space<vmem>>, %arg46: memref<2x16x8xbf16, #tpu.memory_space<vmem>>, %arg47: memref<2x2x2xbf16, #tpu.memory_space<vmem>>, %arg48: memref<2x4x4xbf16, #tpu.memory_space<vmem>>, %arg49: memref<2x8x8xbf16, #tpu.memory_space<vmem>>, %arg50: memref<2x16x16xbf16, #tpu.memory_space<vmem>>, %arg51: memref<2x128x128xbf16, #tpu.memory_space<vmem>>, %arg52: memref<1x128xf32, #tpu.memory_space<vmem>>, %arg53: memref<2x128x128xbf16, #tpu.memory_space<vmem>>, %arg54: memref<1x128xf32, #tpu.memory_space<vmem>>, %arg55: memref<2x128x128xbf16, #tpu.memory_space<vmem>>, %arg56: memref<1x128xf32, #tpu.memory_space<vmem>>, %arg57: memref<1x16x128xf32, #tpu.memory_space<vmem>>) attributes {dimension_semantics = [#tpu.dimension_semantics<parallel>], iteration_bounds = array<i64: 2>, scalar_prefetch = 0 : i64, scratch_operands = 0 : i64, tpu.core_type = #tpu.core_type<tc>, window_params = [{transform_indices = @transform_0, window_bounds = array<i64: 1, 16, 64>}, {pipeline_mode = #tpu.pipeline_mode<synchronous>, transform_indices = @transform_1, window_bounds = array<i64: 3, 128, 128>}, {pipeline_mode = #tpu.pipeline_mode<synchronous>, transform_indices = @transform_2, window_bounds = array<i64: 3, 128, 128>}, {pipeline_mode = #tpu.pipeline_mode<synchronous>, transform_indices = @transform_3, window_bounds = array<i64: 1, 128>}, {pipeline_mode = #tpu.pipeline_mode<synchronous>, transform_indices = @transform_4, window_bounds = array<i64: 3, 128, 128>}, {pipeline_mode = #tpu.pipeline_mode<synchronous>, transform_indices = @transform_5, window_bounds = array<i64: 1, 128>}, {pipeline_mode = #tpu.pipeline_mode<synchronous>, transform_indices = @transform_6, window_bounds = array<i64: 3, 128, 128>}, {pipeline_mode = #tpu.pipeline_mode<synchronous>, transform_indices = @transform_7, window_bounds = array<i64: 3, 128, 128>}, {pipeline_mode = #tpu.pipeline_mode<synchronous>, transform_indices = @transform_8, window_bounds = array<i64: 1, 128>}, {pipeline_mode = #tpu.pipeline_mode<synchronous>, transform_indices = @transform_9, window_bounds = array<i64: 3, 128, 128>}, {pipeline_mode = #tpu.pipeline_mode<synchronous>, transform_indices = @transform_10, window_bounds = array<i64: 1, 128>}, {pipeline_mode = #tpu.pipeline_mode<synchronous>, transform_indices = @transform_11, window_bounds = array<i64: 3, 128, 128>}, {pipeline_mode = #tpu.pipeline_mode<synchronous>, transform_indices = @transform_12, window_bounds = array<i64: 3, 128, 128>}, {pipeline_mode = #tpu.pipeline_mode<synchronous>, transform_indices = @transform_13, window_bounds = array<i64: 1, 128>}, {pipeline_mode = #tpu.pipeline_mode<synchronous>, transform_indices = @transform_14, window_bounds = array<i64: 3, 128, 128>}, {pipeline_mode = #tpu.pipeline_mode<synchronous>, transform_indices = @transform_15, window_bounds = array<i64: 1, 128>}, {pipeline_mode = #tpu.pipeline_mode<synchronous>, transform_indices = @transform_16, window_bounds = array<i64: 2, 128, 128>}, {pipeline_mode = #tpu.pipeline_mode<synchronous>, transform_indices = @transform_17, window_bounds = array<i64: 1, 128>}, {pipeline_mode = #tpu.pipeline_mode<synchronous>, transform_indices = @transform_18, window_bounds = array<i64: 2, 128, 128>}, {pipeline_mode = #tpu.pipeline_mode<synchronous>, transform_indices = @transform_19, window_bounds = array<i64: 1, 128>}, {pipeline_mode = #tpu.pipeline_mode<synchronous>, transform_indices = @transform_20, window_bounds = array<i64: 2, 128, 128>}, {pipeline_mode = #tpu.pipeline_mode<synchronous>, transform_indices = @transform_21, window_bounds = array<i64: 1, 128>}, {pipeline_mode = #tpu.pipeline_mode<synchronous>, transform_indices = @transform_22, window_bounds = array<i64: 3, 128, 128>}, {pipeline_mode = #tpu.pipeline_mode<synchronous>, transform_indices = @transform_23, window_bounds = array<i64: 1, 128>}, {pipeline_mode = #tpu.pipeline_mode<synchronous>, transform_indices = @transform_24, window_bounds = array<i64: 3, 128, 128>}, {pipeline_mode = #tpu.pipeline_mode<synchronous>, transform_indices = @transform_25, window_bounds = array<i64: 1, 128>}, {pipeline_mode = #tpu.pipeline_mode<synchronous>, transform_indices = @transform_26, window_bounds = array<i64: 3, 128, 128>}, {pipeline_mode = #tpu.pipeline_mode<synchronous>, transform_indices = @transform_27, window_bounds = array<i64: 1, 128>}, {pipeline_mode = #tpu.pipeline_mode<synchronous>, transform_indices = @transform_28, window_bounds = array<i64: 3, 128, 128>}, {pipeline_mode = #tpu.pipeline_mode<synchronous>, transform_indices = @transform_29, window_bounds = array<i64: 1, 128>}, {pipeline_mode = #tpu.pipeline_mode<synchronous>, transform_indices = @transform_30, window_bounds = array<i64: 3, 128, 128>}, {pipeline_mode = #tpu.pipeline_mode<synchronous>, transform_indices = @transform_31, window_bounds = array<i64: 1, 128>}, {pipeline_mode = #tpu.pipeline_mode<synchronous>, transform_indices = @transform_32, window_bounds = array<i64: 3, 128, 128>}, {pipeline_mode = #tpu.pipeline_mode<synchronous>, transform_indices = @transform_33, window_bounds = array<i64: 1, 128>}, {pipeline_mode = #tpu.pipeline_mode<synchronous>, transform_indices = @transform_34, window_bounds = array<i64: 2, 2, 4>}, {pipeline_mode = #tpu.pipeline_mode<synchronous>, transform_indices = @transform_35, window_bounds = array<i64: 2, 4, 8>}, {pipeline_mode = #tpu.pipeline_mode<synchronous>, transform_indices = @transform_36, window_bounds = array<i64: 2, 8, 16>}, {pipeline_mode = #tpu.pipeline_mode<synchronous>, transform_indices = @transform_37, window_bounds = array<i64: 3, 64, 128>}, {pipeline_mode = #tpu.pipeline_mode<synchronous>, transform_indices = @transform_38, window_bounds = array<i64: 1, 128>}, {pipeline_mode = #tpu.pipeline_mode<synchronous>, transform_indices = @transform_39, window_bounds = array<i64: 3, 128, 128>}, {pipeline_mode = #tpu.pipeline_mode<synchronous>, transform_indices = @transform_40, window_bounds = array<i64: 1, 128>}, {pipeline_mode = #tpu.pipeline_mode<synchronous>, transform_indices = @transform_41, window_bounds = array<i64: 3, 128, 128>}, {pipeline_mode = #tpu.pipeline_mode<synchronous>, transform_indices = @transform_42, window_bounds = array<i64: 1, 128>}, {pipeline_mode = #tpu.pipeline_mode<synchronous>, transform_indices = @transform_43, window_bounds = array<i64: 2, 4, 2>}, {pipeline_mode = #tpu.pipeline_mode<synchronous>, transform_indices = @transform_44, window_bounds = array<i64: 2, 8, 4>}, {pipeline_mode = #tpu.pipeline_mode<synchronous>, transform_indices = @transform_45, window_bounds = array<i64: 2, 16, 8>}, {pipeline_mode = #tpu.pipeline_mode<synchronous>, transform_indices = @transform_46, window_bounds = array<i64: 2, 2, 2>}, {pipeline_mode = #tpu.pipeline_mode<synchronous>, transform_indices = @transform_47, window_bounds = array<i64: 2, 4, 4>}, {pipeline_mode = #tpu.pipeline_mode<synchronous>, transform_indices = @transform_48, window_bounds = array<i64: 2, 8, 8>}, {pipeline_mode = #tpu.pipeline_mode<synchronous>, transform_indices = @transform_49, window_bounds = array<i64: 2, 16, 16>}, {pipeline_mode = #tpu.pipeline_mode<synchronous>, transform_indices = @transform_50, window_bounds = array<i64: 2, 128, 128>}, {pipeline_mode = #tpu.pipeline_mode<synchronous>, transform_indices = @transform_51, window_bounds = array<i64: 1, 128>}, {pipeline_mode = #tpu.pipeline_mode<synchronous>, transform_indices = @transform_52, window_bounds = array<i64: 2, 128, 128>}, {pipeline_mode = #tpu.pipeline_mode<synchronous>, transform_indices = @transform_53, window_bounds = array<i64: 1, 128>}, {pipeline_mode = #tpu.pipeline_mode<synchronous>, transform_indices = @transform_54, window_bounds = array<i64: 2, 128, 128>}, {pipeline_mode = #tpu.pipeline_mode<synchronous>, transform_indices = @transform_55, window_bounds = array<i64: 1, 128>}, {transform_indices = @transform_56, window_bounds = array<i64: 1, 16, 128>}]} {
    %c0 = arith.constant 0 : index
    %c0_0 = arith.constant 0 : index
    %c0_1 = arith.constant 0 : index
    %0 = vector.load %arg1[%c0, %c0_0, %c0_1] : memref<1x16x64xf32, #tpu.memory_space<vmem>>, vector<1x16x64xf32>
    %1 = vector.shape_cast %0 : vector<1x16x64xf32> to vector<16x64xf32>
    %2 = arith.truncf %1 : vector<16x64xf32> to vector<16x64xbf16>
    %c1 = arith.constant 1 : index
    %c0_2 = arith.constant 0 : index
    %c0_3 = arith.constant 0 : index
    %3 = vector.load %arg38[%c1, %c0_2, %c0_3] : memref<3x64x128xbf16, #tpu.memory_space<vmem>>, vector<1x64x128xbf16>
    %4 = vector.shape_cast %3 : vector<1x64x128xbf16> to vector<64x128xbf16>
    %cst = arith.constant dense<0.000000e+00> : vector<16x128xf32>
    %5 = tpu.matmul %2, %4, %cst {dimension_numbers = #tpu.dot_dimension_numbers<[1], [0], [0], [1], [0, 0, 1, 1], [], []>} : vector<16x64xbf16>, vector<64x128xbf16>, vector<16x128xf32> -> vector<16x128xf32>
    %c0_4 = arith.constant 0 : index
    %c0_5 = arith.constant 0 : index
    %c0_6 = arith.constant 0 : index
    %6 = vector.load %arg50[%c0_4, %c0_5, %c0_6] : memref<2x16x16xbf16, #tpu.memory_space<vmem>>, vector<1x16x16xbf16>
    %7 = vector.shape_cast %6 : vector<1x16x16xbf16> to vector<16x16xbf16>
    %cst_7 = arith.constant dense<0.000000e+00> : vector<16x64xf32>
    %8 = tpu.matmul %7, %2, %cst_7 {dimension_numbers = #tpu.dot_dimension_numbers<[1], [0], [0], [1], [0, 0, 1, 1], [], []>} : vector<16x16xbf16>, vector<16x64xbf16>, vector<16x64xf32> -> vector<16x64xf32>
    %9 = arith.truncf %8 : vector<16x64xf32> to vector<16x64xbf16>
    %c0_8 = arith.constant 0 : index
    %c0_9 = arith.constant 0 : index
    %c0_10 = arith.constant 0 : index
    %10 = vector.load %arg38[%c0_8, %c0_9, %c0_10] : memref<3x64x128xbf16, #tpu.memory_space<vmem>>, vector<1x64x128xbf16>
    %11 = vector.shape_cast %10 : vector<1x64x128xbf16> to vector<64x128xbf16>
    %cst_11 = arith.constant dense<0.000000e+00> : vector<16x128xf32>
    %12 = tpu.matmul %9, %11, %cst_11 {dimension_numbers = #tpu.dot_dimension_numbers<[1], [0], [0], [1], [0, 0, 1, 1], [], []>} : vector<16x64xbf16>, vector<64x128xbf16>, vector<16x128xf32> -> vector<16x128xf32>
    %13 = arith.addf %5, %12 : vector<16x128xf32>
    %c1_12 = arith.constant 1 : index
    %c0_13 = arith.constant 0 : index
    %c0_14 = arith.constant 0 : index
    %14 = vector.load %arg50[%c1_12, %c0_13, %c0_14] : memref<2x16x16xbf16, #tpu.memory_space<vmem>>, vector<1x16x16xbf16>
    %15 = vector.shape_cast %14 : vector<1x16x16xbf16> to vector<16x16xbf16>
    %cst_15 = arith.constant dense<0.000000e+00> : vector<16x64xf32>
    %16 = tpu.matmul %15, %2, %cst_15 {dimension_numbers = #tpu.dot_dimension_numbers<[1], [0], [0], [1], [0, 0, 1, 1], [], []>} : vector<16x16xbf16>, vector<16x64xbf16>, vector<16x64xf32> -> vector<16x64xf32>
    %17 = arith.truncf %16 : vector<16x64xf32> to vector<16x64xbf16>
    %c2 = arith.constant 2 : index
    %c0_16 = arith.constant 0 : index
    %c0_17 = arith.constant 0 : index
    %18 = vector.load %arg38[%c2, %c0_16, %c0_17] : memref<3x64x128xbf16, #tpu.memory_space<vmem>>, vector<1x64x128xbf16>
    %19 = vector.shape_cast %18 : vector<1x64x128xbf16> to vector<64x128xbf16>
    %cst_18 = arith.constant dense<0.000000e+00> : vector<16x128xf32>
    %20 = tpu.matmul %17, %19, %cst_18 {dimension_numbers = #tpu.dot_dimension_numbers<[1], [0], [0], [1], [0, 0, 1, 1], [], []>} : vector<16x64xbf16>, vector<64x128xbf16>, vector<16x128xf32> -> vector<16x128xf32>
    %21 = arith.addf %13, %20 : vector<16x128xf32>
    %c0_19 = arith.constant 0 : index
    %c0_20 = arith.constant 0 : index
    %22 = vector.load %arg39[%c0_19, %c0_20] : memref<1x128xf32, #tpu.memory_space<vmem>>, vector<1x128xf32>
    %23 = vector.broadcast %22 : vector<1x128xf32> to vector<16x128xf32>
    %24 = arith.addf %21, %23 : vector<16x128xf32>
    %cst_21 = arith.constant 0.000000e+00 : f32
    %25 = vector.broadcast %cst_21 : f32 to vector<16x128xf32>
    %26 = arith.maximumf %24, %25 : vector<16x128xf32>
    %27 = arith.truncf %26 : vector<16x128xf32> to vector<16x128xbf16>
    %c1_22 = arith.constant 1 : index
    %c0_23 = arith.constant 0 : index
    %c0_24 = arith.constant 0 : index
    %28 = vector.load %arg40[%c1_22, %c0_23, %c0_24] : memref<3x128x128xbf16, #tpu.memory_space<vmem>>, vector<1x128x128xbf16>
    %29 = vector.shape_cast %28 : vector<1x128x128xbf16> to vector<128x128xbf16>
    %cst_25 = arith.constant dense<0.000000e+00> : vector<16x128xf32>
    %30 = tpu.matmul %27, %29, %cst_25 {dimension_numbers = #tpu.dot_dimension_numbers<[1], [0], [0], [1], [0, 0, 1, 1], [], []>} : vector<16x128xbf16>, vector<128x128xbf16>, vector<16x128xf32> -> vector<16x128xf32>
    %c0_26 = arith.constant 0 : index
    %c0_27 = arith.constant 0 : index
    %c0_28 = arith.constant 0 : index
    %31 = vector.load %arg50[%c0_26, %c0_27, %c0_28] : memref<2x16x16xbf16, #tpu.memory_space<vmem>>, vector<1x16x16xbf16>
    %32 = vector.shape_cast %31 : vector<1x16x16xbf16> to vector<16x16xbf16>
    %cst_29 = arith.constant dense<0.000000e+00> : vector<16x128xf32>
    %33 = tpu.matmul %32, %27, %cst_29 {dimension_numbers = #tpu.dot_dimension_numbers<[1], [0], [0], [1], [0, 0, 1, 1], [], []>} : vector<16x16xbf16>, vector<16x128xbf16>, vector<16x128xf32> -> vector<16x128xf32>
    %34 = arith.truncf %33 : vector<16x128xf32> to vector<16x128xbf16>
    %c0_30 = arith.constant 0 : index
    %c0_31 = arith.constant 0 : index
    %c0_32 = arith.constant 0 : index
    %35 = vector.load %arg40[%c0_30, %c0_31, %c0_32] : memref<3x128x128xbf16, #tpu.memory_space<vmem>>, vector<1x128x128xbf16>
    %36 = vector.shape_cast %35 : vector<1x128x128xbf16> to vector<128x128xbf16>
    %cst_33 = arith.constant dense<0.000000e+00> : vector<16x128xf32>
    %37 = tpu.matmul %34, %36, %cst_33 {dimension_numbers = #tpu.dot_dimension_numbers<[1], [0], [0], [1], [0, 0, 1, 1], [], []>} : vector<16x128xbf16>, vector<128x128xbf16>, vector<16x128xf32> -> vector<16x128xf32>
    %38 = arith.addf %30, %37 : vector<16x128xf32>
    %c1_34 = arith.constant 1 : index
    %c0_35 = arith.constant 0 : index
    %c0_36 = arith.constant 0 : index
    %39 = vector.load %arg50[%c1_34, %c0_35, %c0_36] : memref<2x16x16xbf16, #tpu.memory_space<vmem>>, vector<1x16x16xbf16>
    %40 = vector.shape_cast %39 : vector<1x16x16xbf16> to vector<16x16xbf16>
    %cst_37 = arith.constant dense<0.000000e+00> : vector<16x128xf32>
    %41 = tpu.matmul %40, %27, %cst_37 {dimension_numbers = #tpu.dot_dimension_numbers<[1], [0], [0], [1], [0, 0, 1, 1], [], []>} : vector<16x16xbf16>, vector<16x128xbf16>, vector<16x128xf32> -> vector<16x128xf32>
    %42 = arith.truncf %41 : vector<16x128xf32> to vector<16x128xbf16>
    %c2_38 = arith.constant 2 : index
    %c0_39 = arith.constant 0 : index
    %c0_40 = arith.constant 0 : index
    %43 = vector.load %arg40[%c2_38, %c0_39, %c0_40] : memref<3x128x128xbf16, #tpu.memory_space<vmem>>, vector<1x128x128xbf16>
    %44 = vector.shape_cast %43 : vector<1x128x128xbf16> to vector<128x128xbf16>
    %cst_41 = arith.constant dense<0.000000e+00> : vector<16x128xf32>
    %45 = tpu.matmul %42, %44, %cst_41 {dimension_numbers = #tpu.dot_dimension_numbers<[1], [0], [0], [1], [0, 0, 1, 1], [], []>} : vector<16x128xbf16>, vector<128x128xbf16>, vector<16x128xf32> -> vector<16x128xf32>
    %46 = arith.addf %38, %45 : vector<16x128xf32>
    %c0_42 = arith.constant 0 : index
    %c0_43 = arith.constant 0 : index
    %47 = vector.load %arg41[%c0_42, %c0_43] : memref<1x128xf32, #tpu.memory_space<vmem>>, vector<1x128xf32>
    %48 = vector.broadcast %47 : vector<1x128xf32> to vector<16x128xf32>
    %49 = arith.addf %46, %48 : vector<16x128xf32>
    %cst_44 = arith.constant 0.000000e+00 : f32
    %50 = vector.broadcast %cst_44 : f32 to vector<16x128xf32>
    %51 = arith.maximumf %49, %50 : vector<16x128xf32>
    %52 = arith.truncf %51 : vector<16x128xf32> to vector<16x128xbf16>
    %c0_45 = arith.constant 0 : index
    %c0_46 = arith.constant 0 : index
    %c0_47 = arith.constant 0 : index
    %53 = vector.load %arg37[%c0_45, %c0_46, %c0_47] : memref<2x8x16xbf16, #tpu.memory_space<vmem>>, vector<1x8x16xbf16>
    %54 = vector.shape_cast %53 : vector<1x8x16xbf16> to vector<8x16xbf16>
    %cst_48 = arith.constant dense<0.000000e+00> : vector<8x128xf32>
    %55 = tpu.matmul %54, %52, %cst_48 {dimension_numbers = #tpu.dot_dimension_numbers<[1], [0], [0], [1], [0, 0, 1, 1], [], []>} : vector<8x16xbf16>, vector<16x128xbf16>, vector<8x128xf32> -> vector<8x128xf32>
    %56 = arith.truncf %55 : vector<8x128xf32> to vector<8x128xbf16>
    %c1_49 = arith.constant 1 : index
    %c0_50 = arith.constant 0 : index
    %c0_51 = arith.constant 0 : index
    %57 = vector.load %arg37[%c1_49, %c0_50, %c0_51] : memref<2x8x16xbf16, #tpu.memory_space<vmem>>, vector<1x8x16xbf16>
    %58 = vector.shape_cast %57 : vector<1x8x16xbf16> to vector<8x16xbf16>
    %cst_52 = arith.constant dense<0.000000e+00> : vector<8x128xf32>
    %59 = tpu.matmul %58, %52, %cst_52 {dimension_numbers = #tpu.dot_dimension_numbers<[1], [0], [0], [1], [0, 0, 1, 1], [], []>} : vector<8x16xbf16>, vector<16x128xbf16>, vector<8x128xf32> -> vector<8x128xf32>
    %60 = arith.truncf %59 : vector<8x128xf32> to vector<8x128xbf16>
    %c0_53 = arith.constant 0 : index
    %c0_54 = arith.constant 0 : index
    %c0_55 = arith.constant 0 : index
    %61 = vector.load %arg17[%c0_53, %c0_54, %c0_55] : memref<2x128x128xbf16, #tpu.memory_space<vmem>>, vector<1x128x128xbf16>
    %62 = vector.shape_cast %61 : vector<1x128x128xbf16> to vector<128x128xbf16>
    %cst_56 = arith.constant dense<0.000000e+00> : vector<8x128xf32>
    %63 = tpu.matmul %56, %62, %cst_56 {dimension_numbers = #tpu.dot_dimension_numbers<[1], [0], [0], [1], [0, 0, 1, 1], [], []>} : vector<8x128xbf16>, vector<128x128xbf16>, vector<8x128xf32> -> vector<8x128xf32>
    %c1_57 = arith.constant 1 : index
    %c0_58 = arith.constant 0 : index
    %c0_59 = arith.constant 0 : index
    %64 = vector.load %arg17[%c1_57, %c0_58, %c0_59] : memref<2x128x128xbf16, #tpu.memory_space<vmem>>, vector<1x128x128xbf16>
    %65 = vector.shape_cast %64 : vector<1x128x128xbf16> to vector<128x128xbf16>
    %cst_60 = arith.constant dense<0.000000e+00> : vector<8x128xf32>
    %66 = tpu.matmul %60, %65, %cst_60 {dimension_numbers = #tpu.dot_dimension_numbers<[1], [0], [0], [1], [0, 0, 1, 1], [], []>} : vector<8x128xbf16>, vector<128x128xbf16>, vector<8x128xf32> -> vector<8x128xf32>
    %67 = arith.addf %63, %66 : vector<8x128xf32>
    %c0_61 = arith.constant 0 : index
    %c0_62 = arith.constant 0 : index
    %68 = vector.load %arg18[%c0_61, %c0_62] : memref<1x128xf32, #tpu.memory_space<vmem>>, vector<1x128xf32>
    %69 = vector.broadcast %68 : vector<1x128xf32> to vector<8x128xf32>
    %70 = arith.addf %67, %69 : vector<8x128xf32>
    %71 = arith.truncf %70 : vector<8x128xf32> to vector<8x128xbf16>
    %c1_63 = arith.constant 1 : index
    %c0_64 = arith.constant 0 : index
    %c0_65 = arith.constant 0 : index
    %72 = vector.load %arg23[%c1_63, %c0_64, %c0_65] : memref<3x128x128xbf16, #tpu.memory_space<vmem>>, vector<1x128x128xbf16>
    %73 = vector.shape_cast %72 : vector<1x128x128xbf16> to vector<128x128xbf16>
    %cst_66 = arith.constant dense<0.000000e+00> : vector<8x128xf32>
    %74 = tpu.matmul %71, %73, %cst_66 {dimension_numbers = #tpu.dot_dimension_numbers<[1], [0], [0], [1], [0, 0, 1, 1], [], []>} : vector<8x128xbf16>, vector<128x128xbf16>, vector<8x128xf32> -> vector<8x128xf32>
    %c0_67 = arith.constant 0 : index
    %c0_68 = arith.constant 0 : index
    %c0_69 = arith.constant 0 : index
    %75 = vector.load %arg49[%c0_67, %c0_68, %c0_69] : memref<2x8x8xbf16, #tpu.memory_space<vmem>>, vector<1x8x8xbf16>
    %76 = vector.shape_cast %75 : vector<1x8x8xbf16> to vector<8x8xbf16>
    %cst_70 = arith.constant dense<0.000000e+00> : vector<8x128xf32>
    %77 = tpu.matmul %76, %71, %cst_70 {dimension_numbers = #tpu.dot_dimension_numbers<[1], [0], [0], [1], [0, 0, 1, 1], [], []>} : vector<8x8xbf16>, vector<8x128xbf16>, vector<8x128xf32> -> vector<8x128xf32>
    %78 = arith.truncf %77 : vector<8x128xf32> to vector<8x128xbf16>
    %c0_71 = arith.constant 0 : index
    %c0_72 = arith.constant 0 : index
    %c0_73 = arith.constant 0 : index
    %79 = vector.load %arg23[%c0_71, %c0_72, %c0_73] : memref<3x128x128xbf16, #tpu.memory_space<vmem>>, vector<1x128x128xbf16>
    %80 = vector.shape_cast %79 : vector<1x128x128xbf16> to vector<128x128xbf16>
    %cst_74 = arith.constant dense<0.000000e+00> : vector<8x128xf32>
    %81 = tpu.matmul %78, %80, %cst_74 {dimension_numbers = #tpu.dot_dimension_numbers<[1], [0], [0], [1], [0, 0, 1, 1], [], []>} : vector<8x128xbf16>, vector<128x128xbf16>, vector<8x128xf32> -> vector<8x128xf32>
    %82 = arith.addf %74, %81 : vector<8x128xf32>
    %c1_75 = arith.constant 1 : index
    %c0_76 = arith.constant 0 : index
    %c0_77 = arith.constant 0 : index
    %83 = vector.load %arg49[%c1_75, %c0_76, %c0_77] : memref<2x8x8xbf16, #tpu.memory_space<vmem>>, vector<1x8x8xbf16>
    %84 = vector.shape_cast %83 : vector<1x8x8xbf16> to vector<8x8xbf16>
    %cst_78 = arith.constant dense<0.000000e+00> : vector<8x128xf32>
    %85 = tpu.matmul %84, %71, %cst_78 {dimension_numbers = #tpu.dot_dimension_numbers<[1], [0], [0], [1], [0, 0, 1, 1], [], []>} : vector<8x8xbf16>, vector<8x128xbf16>, vector<8x128xf32> -> vector<8x128xf32>
    %86 = arith.truncf %85 : vector<8x128xf32> to vector<8x128xbf16>
    %c2_79 = arith.constant 2 : index
    %c0_80 = arith.constant 0 : index
    %c0_81 = arith.constant 0 : index
    %87 = vector.load %arg23[%c2_79, %c0_80, %c0_81] : memref<3x128x128xbf16, #tpu.memory_space<vmem>>, vector<1x128x128xbf16>
    %88 = vector.shape_cast %87 : vector<1x128x128xbf16> to vector<128x128xbf16>
    %cst_82 = arith.constant dense<0.000000e+00> : vector<8x128xf32>
    %89 = tpu.matmul %86, %88, %cst_82 {dimension_numbers = #tpu.dot_dimension_numbers<[1], [0], [0], [1], [0, 0, 1, 1], [], []>} : vector<8x128xbf16>, vector<128x128xbf16>, vector<8x128xf32> -> vector<8x128xf32>
    %90 = arith.addf %82, %89 : vector<8x128xf32>
    %c0_83 = arith.constant 0 : index
    %c0_84 = arith.constant 0 : index
    %91 = vector.load %arg24[%c0_83, %c0_84] : memref<1x128xf32, #tpu.memory_space<vmem>>, vector<1x128xf32>
    %92 = vector.broadcast %91 : vector<1x128xf32> to vector<8x128xf32>
    %93 = arith.addf %90, %92 : vector<8x128xf32>
    %cst_85 = arith.constant 0.000000e+00 : f32
    %94 = vector.broadcast %cst_85 : f32 to vector<8x128xf32>
    %95 = arith.maximumf %93, %94 : vector<8x128xf32>
    %96 = arith.truncf %95 : vector<8x128xf32> to vector<8x128xbf16>
    %c1_86 = arith.constant 1 : index
    %c0_87 = arith.constant 0 : index
    %c0_88 = arith.constant 0 : index
    %97 = vector.load %arg25[%c1_86, %c0_87, %c0_88] : memref<3x128x128xbf16, #tpu.memory_space<vmem>>, vector<1x128x128xbf16>
    %98 = vector.shape_cast %97 : vector<1x128x128xbf16> to vector<128x128xbf16>
    %cst_89 = arith.constant dense<0.000000e+00> : vector<8x128xf32>
    %99 = tpu.matmul %96, %98, %cst_89 {dimension_numbers = #tpu.dot_dimension_numbers<[1], [0], [0], [1], [0, 0, 1, 1], [], []>} : vector<8x128xbf16>, vector<128x128xbf16>, vector<8x128xf32> -> vector<8x128xf32>
    %c0_90 = arith.constant 0 : index
    %c0_91 = arith.constant 0 : index
    %c0_92 = arith.constant 0 : index
    %100 = vector.load %arg49[%c0_90, %c0_91, %c0_92] : memref<2x8x8xbf16, #tpu.memory_space<vmem>>, vector<1x8x8xbf16>
    %101 = vector.shape_cast %100 : vector<1x8x8xbf16> to vector<8x8xbf16>
    %cst_93 = arith.constant dense<0.000000e+00> : vector<8x128xf32>
    %102 = tpu.matmul %101, %96, %cst_93 {dimension_numbers = #tpu.dot_dimension_numbers<[1], [0], [0], [1], [0, 0, 1, 1], [], []>} : vector<8x8xbf16>, vector<8x128xbf16>, vector<8x128xf32> -> vector<8x128xf32>
    %103 = arith.truncf %102 : vector<8x128xf32> to vector<8x128xbf16>
    %c0_94 = arith.constant 0 : index
    %c0_95 = arith.constant 0 : index
    %c0_96 = arith.constant 0 : index
    %104 = vector.load %arg25[%c0_94, %c0_95, %c0_96] : memref<3x128x128xbf16, #tpu.memory_space<vmem>>, vector<1x128x128xbf16>
    %105 = vector.shape_cast %104 : vector<1x128x128xbf16> to vector<128x128xbf16>
    %cst_97 = arith.constant dense<0.000000e+00> : vector<8x128xf32>
    %106 = tpu.matmul %103, %105, %cst_97 {dimension_numbers = #tpu.dot_dimension_numbers<[1], [0], [0], [1], [0, 0, 1, 1], [], []>} : vector<8x128xbf16>, vector<128x128xbf16>, vector<8x128xf32> -> vector<8x128xf32>
    %107 = arith.addf %99, %106 : vector<8x128xf32>
    %c1_98 = arith.constant 1 : index
    %c0_99 = arith.constant 0 : index
    %c0_100 = arith.constant 0 : index
    %108 = vector.load %arg49[%c1_98, %c0_99, %c0_100] : memref<2x8x8xbf16, #tpu.memory_space<vmem>>, vector<1x8x8xbf16>
    %109 = vector.shape_cast %108 : vector<1x8x8xbf16> to vector<8x8xbf16>
    %cst_101 = arith.constant dense<0.000000e+00> : vector<8x128xf32>
    %110 = tpu.matmul %109, %96, %cst_101 {dimension_numbers = #tpu.dot_dimension_numbers<[1], [0], [0], [1], [0, 0, 1, 1], [], []>} : vector<8x8xbf16>, vector<8x128xbf16>, vector<8x128xf32> -> vector<8x128xf32>
    %111 = arith.truncf %110 : vector<8x128xf32> to vector<8x128xbf16>
    %c2_102 = arith.constant 2 : index
    %c0_103 = arith.constant 0 : index
    %c0_104 = arith.constant 0 : index
    %112 = vector.load %arg25[%c2_102, %c0_103, %c0_104] : memref<3x128x128xbf16, #tpu.memory_space<vmem>>, vector<1x128x128xbf16>
    %113 = vector.shape_cast %112 : vector<1x128x128xbf16> to vector<128x128xbf16>
    %cst_105 = arith.constant dense<0.000000e+00> : vector<8x128xf32>
    %114 = tpu.matmul %111, %113, %cst_105 {dimension_numbers = #tpu.dot_dimension_numbers<[1], [0], [0], [1], [0, 0, 1, 1], [], []>} : vector<8x128xbf16>, vector<128x128xbf16>, vector<8x128xf32> -> vector<8x128xf32>
    %115 = arith.addf %107, %114 : vector<8x128xf32>
    %c0_106 = arith.constant 0 : index
    %c0_107 = arith.constant 0 : index
    %116 = vector.load %arg26[%c0_106, %c0_107] : memref<1x128xf32, #tpu.memory_space<vmem>>, vector<1x128xf32>
    %117 = vector.broadcast %116 : vector<1x128xf32> to vector<8x128xf32>
    %118 = arith.addf %115, %117 : vector<8x128xf32>
    %cst_108 = arith.constant 0.000000e+00 : f32
    %119 = vector.broadcast %cst_108 : f32 to vector<8x128xf32>
    %120 = arith.maximumf %118, %119 : vector<8x128xf32>
    %121 = arith.truncf %120 : vector<8x128xf32> to vector<8x128xbf16>
    %c0_109 = arith.constant 0 : index
    %c0_110 = arith.constant 0 : index
    %c0_111 = arith.constant 0 : index
    %122 = vector.load %arg36[%c0_109, %c0_110, %c0_111] : memref<2x4x8xbf16, #tpu.memory_space<vmem>>, vector<1x4x8xbf16>
    %123 = vector.shape_cast %122 : vector<1x4x8xbf16> to vector<4x8xbf16>
    %cst_112 = arith.constant dense<0.000000e+00> : vector<4x128xf32>
    %124 = tpu.matmul %123, %121, %cst_112 {dimension_numbers = #tpu.dot_dimension_numbers<[1], [0], [0], [1], [0, 0, 1, 1], [], []>} : vector<4x8xbf16>, vector<8x128xbf16>, vector<4x128xf32> -> vector<4x128xf32>
    %125 = arith.truncf %124 : vector<4x128xf32> to vector<4x128xbf16>
    %c1_113 = arith.constant 1 : index
    %c0_114 = arith.constant 0 : index
    %c0_115 = arith.constant 0 : index
    %126 = vector.load %arg36[%c1_113, %c0_114, %c0_115] : memref<2x4x8xbf16, #tpu.memory_space<vmem>>, vector<1x4x8xbf16>
    %127 = vector.shape_cast %126 : vector<1x4x8xbf16> to vector<4x8xbf16>
    %cst_116 = arith.constant dense<0.000000e+00> : vector<4x128xf32>
    %128 = tpu.matmul %127, %121, %cst_116 {dimension_numbers = #tpu.dot_dimension_numbers<[1], [0], [0], [1], [0, 0, 1, 1], [], []>} : vector<4x8xbf16>, vector<8x128xbf16>, vector<4x128xf32> -> vector<4x128xf32>
    %129 = arith.truncf %128 : vector<4x128xf32> to vector<4x128xbf16>
    %c0_117 = arith.constant 0 : index
    %c0_118 = arith.constant 0 : index
    %c0_119 = arith.constant 0 : index
    %130 = vector.load %arg19[%c0_117, %c0_118, %c0_119] : memref<2x128x128xbf16, #tpu.memory_space<vmem>>, vector<1x128x128xbf16>
    %131 = vector.shape_cast %130 : vector<1x128x128xbf16> to vector<128x128xbf16>
    %cst_120 = arith.constant dense<0.000000e+00> : vector<4x128xf32>
    %132 = tpu.matmul %125, %131, %cst_120 {dimension_numbers = #tpu.dot_dimension_numbers<[1], [0], [0], [1], [0, 0, 1, 1], [], []>} : vector<4x128xbf16>, vector<128x128xbf16>, vector<4x128xf32> -> vector<4x128xf32>
    %c1_121 = arith.constant 1 : index
    %c0_122 = arith.constant 0 : index
    %c0_123 = arith.constant 0 : index
    %133 = vector.load %arg19[%c1_121, %c0_122, %c0_123] : memref<2x128x128xbf16, #tpu.memory_space<vmem>>, vector<1x128x128xbf16>
    %134 = vector.shape_cast %133 : vector<1x128x128xbf16> to vector<128x128xbf16>
    %cst_124 = arith.constant dense<0.000000e+00> : vector<4x128xf32>
    %135 = tpu.matmul %129, %134, %cst_124 {dimension_numbers = #tpu.dot_dimension_numbers<[1], [0], [0], [1], [0, 0, 1, 1], [], []>} : vector<4x128xbf16>, vector<128x128xbf16>, vector<4x128xf32> -> vector<4x128xf32>
    %136 = arith.addf %132, %135 : vector<4x128xf32>
    %c0_125 = arith.constant 0 : index
    %c0_126 = arith.constant 0 : index
    %137 = vector.load %arg20[%c0_125, %c0_126] : memref<1x128xf32, #tpu.memory_space<vmem>>, vector<1x128xf32>
    %138 = vector.broadcast %137 : vector<1x128xf32> to vector<4x128xf32>
    %139 = arith.addf %136, %138 : vector<4x128xf32>
    %140 = arith.truncf %139 : vector<4x128xf32> to vector<4x128xbf16>
    %c1_127 = arith.constant 1 : index
    %c0_128 = arith.constant 0 : index
    %c0_129 = arith.constant 0 : index
    %141 = vector.load %arg27[%c1_127, %c0_128, %c0_129] : memref<3x128x128xbf16, #tpu.memory_space<vmem>>, vector<1x128x128xbf16>
    %142 = vector.shape_cast %141 : vector<1x128x128xbf16> to vector<128x128xbf16>
    %cst_130 = arith.constant dense<0.000000e+00> : vector<4x128xf32>
    %143 = tpu.matmul %140, %142, %cst_130 {dimension_numbers = #tpu.dot_dimension_numbers<[1], [0], [0], [1], [0, 0, 1, 1], [], []>} : vector<4x128xbf16>, vector<128x128xbf16>, vector<4x128xf32> -> vector<4x128xf32>
    %c0_131 = arith.constant 0 : index
    %c0_132 = arith.constant 0 : index
    %c0_133 = arith.constant 0 : index
    %144 = vector.load %arg48[%c0_131, %c0_132, %c0_133] : memref<2x4x4xbf16, #tpu.memory_space<vmem>>, vector<1x4x4xbf16>
    %145 = vector.shape_cast %144 : vector<1x4x4xbf16> to vector<4x4xbf16>
    %cst_134 = arith.constant dense<0.000000e+00> : vector<4x128xf32>
    %146 = tpu.matmul %145, %140, %cst_134 {dimension_numbers = #tpu.dot_dimension_numbers<[1], [0], [0], [1], [0, 0, 1, 1], [], []>} : vector<4x4xbf16>, vector<4x128xbf16>, vector<4x128xf32> -> vector<4x128xf32>
    %147 = arith.truncf %146 : vector<4x128xf32> to vector<4x128xbf16>
    %c0_135 = arith.constant 0 : index
    %c0_136 = arith.constant 0 : index
    %c0_137 = arith.constant 0 : index
    %148 = vector.load %arg27[%c0_135, %c0_136, %c0_137] : memref<3x128x128xbf16, #tpu.memory_space<vmem>>, vector<1x128x128xbf16>
    %149 = vector.shape_cast %148 : vector<1x128x128xbf16> to vector<128x128xbf16>
    %cst_138 = arith.constant dense<0.000000e+00> : vector<4x128xf32>
    %150 = tpu.matmul %147, %149, %cst_138 {dimension_numbers = #tpu.dot_dimension_numbers<[1], [0], [0], [1], [0, 0, 1, 1], [], []>} : vector<4x128xbf16>, vector<128x128xbf16>, vector<4x128xf32> -> vector<4x128xf32>
    %151 = arith.addf %143, %150 : vector<4x128xf32>
    %c1_139 = arith.constant 1 : index
    %c0_140 = arith.constant 0 : index
    %c0_141 = arith.constant 0 : index
    %152 = vector.load %arg48[%c1_139, %c0_140, %c0_141] : memref<2x4x4xbf16, #tpu.memory_space<vmem>>, vector<1x4x4xbf16>
    %153 = vector.shape_cast %152 : vector<1x4x4xbf16> to vector<4x4xbf16>
    %cst_142 = arith.constant dense<0.000000e+00> : vector<4x128xf32>
    %154 = tpu.matmul %153, %140, %cst_142 {dimension_numbers = #tpu.dot_dimension_numbers<[1], [0], [0], [1], [0, 0, 1, 1], [], []>} : vector<4x4xbf16>, vector<4x128xbf16>, vector<4x128xf32> -> vector<4x128xf32>
    %155 = arith.truncf %154 : vector<4x128xf32> to vector<4x128xbf16>
    %c2_143 = arith.constant 2 : index
    %c0_144 = arith.constant 0 : index
    %c0_145 = arith.constant 0 : index
    %156 = vector.load %arg27[%c2_143, %c0_144, %c0_145] : memref<3x128x128xbf16, #tpu.memory_space<vmem>>, vector<1x128x128xbf16>
    %157 = vector.shape_cast %156 : vector<1x128x128xbf16> to vector<128x128xbf16>
    %cst_146 = arith.constant dense<0.000000e+00> : vector<4x128xf32>
    %158 = tpu.matmul %155, %157, %cst_146 {dimension_numbers = #tpu.dot_dimension_numbers<[1], [0], [0], [1], [0, 0, 1, 1], [], []>} : vector<4x128xbf16>, vector<128x128xbf16>, vector<4x128xf32> -> vector<4x128xf32>
    %159 = arith.addf %151, %158 : vector<4x128xf32>
    %c0_147 = arith.constant 0 : index
    %c0_148 = arith.constant 0 : index
    %160 = vector.load %arg28[%c0_147, %c0_148] : memref<1x128xf32, #tpu.memory_space<vmem>>, vector<1x128xf32>
    %161 = vector.broadcast %160 : vector<1x128xf32> to vector<4x128xf32>
    %162 = arith.addf %159, %161 : vector<4x128xf32>
    %cst_149 = arith.constant 0.000000e+00 : f32
    %163 = vector.broadcast %cst_149 : f32 to vector<4x128xf32>
    %164 = arith.maximumf %162, %163 : vector<4x128xf32>
    %165 = arith.truncf %164 : vector<4x128xf32> to vector<4x128xbf16>
    %c1_150 = arith.constant 1 : index
    %c0_151 = arith.constant 0 : index
    %c0_152 = arith.constant 0 : index
    %166 = vector.load %arg29[%c1_150, %c0_151, %c0_152] : memref<3x128x128xbf16, #tpu.memory_space<vmem>>, vector<1x128x128xbf16>
    %167 = vector.shape_cast %166 : vector<1x128x128xbf16> to vector<128x128xbf16>
    %cst_153 = arith.constant dense<0.000000e+00> : vector<4x128xf32>
    %168 = tpu.matmul %165, %167, %cst_153 {dimension_numbers = #tpu.dot_dimension_numbers<[1], [0], [0], [1], [0, 0, 1, 1], [], []>} : vector<4x128xbf16>, vector<128x128xbf16>, vector<4x128xf32> -> vector<4x128xf32>
    %c0_154 = arith.constant 0 : index
    %c0_155 = arith.constant 0 : index
    %c0_156 = arith.constant 0 : index
    %169 = vector.load %arg48[%c0_154, %c0_155, %c0_156] : memref<2x4x4xbf16, #tpu.memory_space<vmem>>, vector<1x4x4xbf16>
    %170 = vector.shape_cast %169 : vector<1x4x4xbf16> to vector<4x4xbf16>
    %cst_157 = arith.constant dense<0.000000e+00> : vector<4x128xf32>
    %171 = tpu.matmul %170, %165, %cst_157 {dimension_numbers = #tpu.dot_dimension_numbers<[1], [0], [0], [1], [0, 0, 1, 1], [], []>} : vector<4x4xbf16>, vector<4x128xbf16>, vector<4x128xf32> -> vector<4x128xf32>
    %172 = arith.truncf %171 : vector<4x128xf32> to vector<4x128xbf16>
    %c0_158 = arith.constant 0 : index
    %c0_159 = arith.constant 0 : index
    %c0_160 = arith.constant 0 : index
    %173 = vector.load %arg29[%c0_158, %c0_159, %c0_160] : memref<3x128x128xbf16, #tpu.memory_space<vmem>>, vector<1x128x128xbf16>
    %174 = vector.shape_cast %173 : vector<1x128x128xbf16> to vector<128x128xbf16>
    %cst_161 = arith.constant dense<0.000000e+00> : vector<4x128xf32>
    %175 = tpu.matmul %172, %174, %cst_161 {dimension_numbers = #tpu.dot_dimension_numbers<[1], [0], [0], [1], [0, 0, 1, 1], [], []>} : vector<4x128xbf16>, vector<128x128xbf16>, vector<4x128xf32> -> vector<4x128xf32>
    %176 = arith.addf %168, %175 : vector<4x128xf32>
    %c1_162 = arith.constant 1 : index
    %c0_163 = arith.constant 0 : index
    %c0_164 = arith.constant 0 : index
    %177 = vector.load %arg48[%c1_162, %c0_163, %c0_164] : memref<2x4x4xbf16, #tpu.memory_space<vmem>>, vector<1x4x4xbf16>
    %178 = vector.shape_cast %177 : vector<1x4x4xbf16> to vector<4x4xbf16>
    %cst_165 = arith.constant dense<0.000000e+00> : vector<4x128xf32>
    %179 = tpu.matmul %178, %165, %cst_165 {dimension_numbers = #tpu.dot_dimension_numbers<[1], [0], [0], [1], [0, 0, 1, 1], [], []>} : vector<4x4xbf16>, vector<4x128xbf16>, vector<4x128xf32> -> vector<4x128xf32>
    %180 = arith.truncf %179 : vector<4x128xf32> to vector<4x128xbf16>
    %c2_166 = arith.constant 2 : index
    %c0_167 = arith.constant 0 : index
    %c0_168 = arith.constant 0 : index
    %181 = vector.load %arg29[%c2_166, %c0_167, %c0_168] : memref<3x128x128xbf16, #tpu.memory_space<vmem>>, vector<1x128x128xbf16>
    %182 = vector.shape_cast %181 : vector<1x128x128xbf16> to vector<128x128xbf16>
    %cst_169 = arith.constant dense<0.000000e+00> : vector<4x128xf32>
    %183 = tpu.matmul %180, %182, %cst_169 {dimension_numbers = #tpu.dot_dimension_numbers<[1], [0], [0], [1], [0, 0, 1, 1], [], []>} : vector<4x128xbf16>, vector<128x128xbf16>, vector<4x128xf32> -> vector<4x128xf32>
    %184 = arith.addf %176, %183 : vector<4x128xf32>
    %c0_170 = arith.constant 0 : index
    %c0_171 = arith.constant 0 : index
    %185 = vector.load %arg30[%c0_170, %c0_171] : memref<1x128xf32, #tpu.memory_space<vmem>>, vector<1x128xf32>
    %186 = vector.broadcast %185 : vector<1x128xf32> to vector<4x128xf32>
    %187 = arith.addf %184, %186 : vector<4x128xf32>
    %cst_172 = arith.constant 0.000000e+00 : f32
    %188 = vector.broadcast %cst_172 : f32 to vector<4x128xf32>
    %189 = arith.maximumf %187, %188 : vector<4x128xf32>
    %190 = arith.truncf %189 : vector<4x128xf32> to vector<4x128xbf16>
    %c0_173 = arith.constant 0 : index
    %c0_174 = arith.constant 0 : index
    %c0_175 = arith.constant 0 : index
    %191 = vector.load %arg35[%c0_173, %c0_174, %c0_175] : memref<2x2x4xbf16, #tpu.memory_space<vmem>>, vector<1x2x4xbf16>
    %192 = vector.shape_cast %191 : vector<1x2x4xbf16> to vector<2x4xbf16>
    %cst_176 = arith.constant dense<0.000000e+00> : vector<2x128xf32>
    %193 = tpu.matmul %192, %190, %cst_176 {dimension_numbers = #tpu.dot_dimension_numbers<[1], [0], [0], [1], [0, 0, 1, 1], [], []>} : vector<2x4xbf16>, vector<4x128xbf16>, vector<2x128xf32> -> vector<2x128xf32>
    %194 = arith.truncf %193 : vector<2x128xf32> to vector<2x128xbf16>
    %c1_177 = arith.constant 1 : index
    %c0_178 = arith.constant 0 : index
    %c0_179 = arith.constant 0 : index
    %195 = vector.load %arg35[%c1_177, %c0_178, %c0_179] : memref<2x2x4xbf16, #tpu.memory_space<vmem>>, vector<1x2x4xbf16>
    %196 = vector.shape_cast %195 : vector<1x2x4xbf16> to vector<2x4xbf16>
    %cst_180 = arith.constant dense<0.000000e+00> : vector<2x128xf32>
    %197 = tpu.matmul %196, %190, %cst_180 {dimension_numbers = #tpu.dot_dimension_numbers<[1], [0], [0], [1], [0, 0, 1, 1], [], []>} : vector<2x4xbf16>, vector<4x128xbf16>, vector<2x128xf32> -> vector<2x128xf32>
    %198 = arith.truncf %197 : vector<2x128xf32> to vector<2x128xbf16>
    %c0_181 = arith.constant 0 : index
    %c0_182 = arith.constant 0 : index
    %c0_183 = arith.constant 0 : index
    %199 = vector.load %arg21[%c0_181, %c0_182, %c0_183] : memref<2x128x128xbf16, #tpu.memory_space<vmem>>, vector<1x128x128xbf16>
    %200 = vector.shape_cast %199 : vector<1x128x128xbf16> to vector<128x128xbf16>
    %cst_184 = arith.constant dense<0.000000e+00> : vector<2x128xf32>
    %201 = tpu.matmul %194, %200, %cst_184 {dimension_numbers = #tpu.dot_dimension_numbers<[1], [0], [0], [1], [0, 0, 1, 1], [], []>} : vector<2x128xbf16>, vector<128x128xbf16>, vector<2x128xf32> -> vector<2x128xf32>
    %c1_185 = arith.constant 1 : index
    %c0_186 = arith.constant 0 : index
    %c0_187 = arith.constant 0 : index
    %202 = vector.load %arg21[%c1_185, %c0_186, %c0_187] : memref<2x128x128xbf16, #tpu.memory_space<vmem>>, vector<1x128x128xbf16>
    %203 = vector.shape_cast %202 : vector<1x128x128xbf16> to vector<128x128xbf16>
    %cst_188 = arith.constant dense<0.000000e+00> : vector<2x128xf32>
    %204 = tpu.matmul %198, %203, %cst_188 {dimension_numbers = #tpu.dot_dimension_numbers<[1], [0], [0], [1], [0, 0, 1, 1], [], []>} : vector<2x128xbf16>, vector<128x128xbf16>, vector<2x128xf32> -> vector<2x128xf32>
    %205 = arith.addf %201, %204 : vector<2x128xf32>
    %c0_189 = arith.constant 0 : index
    %c0_190 = arith.constant 0 : index
    %206 = vector.load %arg22[%c0_189, %c0_190] : memref<1x128xf32, #tpu.memory_space<vmem>>, vector<1x128xf32>
    %207 = vector.broadcast %206 : vector<1x128xf32> to vector<2x128xf32>
    %208 = arith.addf %205, %207 : vector<2x128xf32>
    %209 = arith.truncf %208 : vector<2x128xf32> to vector<2x128xbf16>
    %c1_191 = arith.constant 1 : index
    %c0_192 = arith.constant 0 : index
    %c0_193 = arith.constant 0 : index
    %210 = vector.load %arg31[%c1_191, %c0_192, %c0_193] : memref<3x128x128xbf16, #tpu.memory_space<vmem>>, vector<1x128x128xbf16>
    %211 = vector.shape_cast %210 : vector<1x128x128xbf16> to vector<128x128xbf16>
    %cst_194 = arith.constant dense<0.000000e+00> : vector<2x128xf32>
    %212 = tpu.matmul %209, %211, %cst_194 {dimension_numbers = #tpu.dot_dimension_numbers<[1], [0], [0], [1], [0, 0, 1, 1], [], []>} : vector<2x128xbf16>, vector<128x128xbf16>, vector<2x128xf32> -> vector<2x128xf32>
    %c0_195 = arith.constant 0 : index
    %c0_196 = arith.constant 0 : index
    %c0_197 = arith.constant 0 : index
    %213 = vector.load %arg47[%c0_195, %c0_196, %c0_197] : memref<2x2x2xbf16, #tpu.memory_space<vmem>>, vector<1x2x2xbf16>
    %214 = vector.shape_cast %213 : vector<1x2x2xbf16> to vector<2x2xbf16>
    %cst_198 = arith.constant dense<0.000000e+00> : vector<2x128xf32>
    %215 = tpu.matmul %214, %209, %cst_198 {dimension_numbers = #tpu.dot_dimension_numbers<[1], [0], [0], [1], [0, 0, 1, 1], [], []>} : vector<2x2xbf16>, vector<2x128xbf16>, vector<2x128xf32> -> vector<2x128xf32>
    %216 = arith.truncf %215 : vector<2x128xf32> to vector<2x128xbf16>
    %c0_199 = arith.constant 0 : index
    %c0_200 = arith.constant 0 : index
    %c0_201 = arith.constant 0 : index
    %217 = vector.load %arg31[%c0_199, %c0_200, %c0_201] : memref<3x128x128xbf16, #tpu.memory_space<vmem>>, vector<1x128x128xbf16>
    %218 = vector.shape_cast %217 : vector<1x128x128xbf16> to vector<128x128xbf16>
    %cst_202 = arith.constant dense<0.000000e+00> : vector<2x128xf32>
    %219 = tpu.matmul %216, %218, %cst_202 {dimension_numbers = #tpu.dot_dimension_numbers<[1], [0], [0], [1], [0, 0, 1, 1], [], []>} : vector<2x128xbf16>, vector<128x128xbf16>, vector<2x128xf32> -> vector<2x128xf32>
    %220 = arith.addf %212, %219 : vector<2x128xf32>
    %c1_203 = arith.constant 1 : index
    %c0_204 = arith.constant 0 : index
    %c0_205 = arith.constant 0 : index
    %221 = vector.load %arg47[%c1_203, %c0_204, %c0_205] : memref<2x2x2xbf16, #tpu.memory_space<vmem>>, vector<1x2x2xbf16>
    %222 = vector.shape_cast %221 : vector<1x2x2xbf16> to vector<2x2xbf16>
    %cst_206 = arith.constant dense<0.000000e+00> : vector<2x128xf32>
    %223 = tpu.matmul %222, %209, %cst_206 {dimension_numbers = #tpu.dot_dimension_numbers<[1], [0], [0], [1], [0, 0, 1, 1], [], []>} : vector<2x2xbf16>, vector<2x128xbf16>, vector<2x128xf32> -> vector<2x128xf32>
    %224 = arith.truncf %223 : vector<2x128xf32> to vector<2x128xbf16>
    %c2_207 = arith.constant 2 : index
    %c0_208 = arith.constant 0 : index
    %c0_209 = arith.constant 0 : index
    %225 = vector.load %arg31[%c2_207, %c0_208, %c0_209] : memref<3x128x128xbf16, #tpu.memory_space<vmem>>, vector<1x128x128xbf16>
    %226 = vector.shape_cast %225 : vector<1x128x128xbf16> to vector<128x128xbf16>
    %cst_210 = arith.constant dense<0.000000e+00> : vector<2x128xf32>
    %227 = tpu.matmul %224, %226, %cst_210 {dimension_numbers = #tpu.dot_dimension_numbers<[1], [0], [0], [1], [0, 0, 1, 1], [], []>} : vector<2x128xbf16>, vector<128x128xbf16>, vector<2x128xf32> -> vector<2x128xf32>
    %228 = arith.addf %220, %227 : vector<2x128xf32>
    %c0_211 = arith.constant 0 : index
    %c0_212 = arith.constant 0 : index
    %229 = vector.load %arg32[%c0_211, %c0_212] : memref<1x128xf32, #tpu.memory_space<vmem>>, vector<1x128xf32>
    %230 = vector.broadcast %229 : vector<1x128xf32> to vector<2x128xf32>
    %231 = arith.addf %228, %230 : vector<2x128xf32>
    %cst_213 = arith.constant 0.000000e+00 : f32
    %232 = vector.broadcast %cst_213 : f32 to vector<2x128xf32>
    %233 = arith.maximumf %231, %232 : vector<2x128xf32>
    %234 = arith.truncf %233 : vector<2x128xf32> to vector<2x128xbf16>
    %c1_214 = arith.constant 1 : index
    %c0_215 = arith.constant 0 : index
    %c0_216 = arith.constant 0 : index
    %235 = vector.load %arg33[%c1_214, %c0_215, %c0_216] : memref<3x128x128xbf16, #tpu.memory_space<vmem>>, vector<1x128x128xbf16>
    %236 = vector.shape_cast %235 : vector<1x128x128xbf16> to vector<128x128xbf16>
    %cst_217 = arith.constant dense<0.000000e+00> : vector<2x128xf32>
    %237 = tpu.matmul %234, %236, %cst_217 {dimension_numbers = #tpu.dot_dimension_numbers<[1], [0], [0], [1], [0, 0, 1, 1], [], []>} : vector<2x128xbf16>, vector<128x128xbf16>, vector<2x128xf32> -> vector<2x128xf32>
    %c0_218 = arith.constant 0 : index
    %c0_219 = arith.constant 0 : index
    %c0_220 = arith.constant 0 : index
    %238 = vector.load %arg47[%c0_218, %c0_219, %c0_220] : memref<2x2x2xbf16, #tpu.memory_space<vmem>>, vector<1x2x2xbf16>
    %239 = vector.shape_cast %238 : vector<1x2x2xbf16> to vector<2x2xbf16>
    %cst_221 = arith.constant dense<0.000000e+00> : vector<2x128xf32>
    %240 = tpu.matmul %239, %234, %cst_221 {dimension_numbers = #tpu.dot_dimension_numbers<[1], [0], [0], [1], [0, 0, 1, 1], [], []>} : vector<2x2xbf16>, vector<2x128xbf16>, vector<2x128xf32> -> vector<2x128xf32>
    %241 = arith.truncf %240 : vector<2x128xf32> to vector<2x128xbf16>
    %c0_222 = arith.constant 0 : index
    %c0_223 = arith.constant 0 : index
    %c0_224 = arith.constant 0 : index
    %242 = vector.load %arg33[%c0_222, %c0_223, %c0_224] : memref<3x128x128xbf16, #tpu.memory_space<vmem>>, vector<1x128x128xbf16>
    %243 = vector.shape_cast %242 : vector<1x128x128xbf16> to vector<128x128xbf16>
    %cst_225 = arith.constant dense<0.000000e+00> : vector<2x128xf32>
    %244 = tpu.matmul %241, %243, %cst_225 {dimension_numbers = #tpu.dot_dimension_numbers<[1], [0], [0], [1], [0, 0, 1, 1], [], []>} : vector<2x128xbf16>, vector<128x128xbf16>, vector<2x128xf32> -> vector<2x128xf32>
    %245 = arith.addf %237, %244 : vector<2x128xf32>
    %c1_226 = arith.constant 1 : index
    %c0_227 = arith.constant 0 : index
    %c0_228 = arith.constant 0 : index
    %246 = vector.load %arg47[%c1_226, %c0_227, %c0_228] : memref<2x2x2xbf16, #tpu.memory_space<vmem>>, vector<1x2x2xbf16>
    %247 = vector.shape_cast %246 : vector<1x2x2xbf16> to vector<2x2xbf16>
    %cst_229 = arith.constant dense<0.000000e+00> : vector<2x128xf32>
    %248 = tpu.matmul %247, %234, %cst_229 {dimension_numbers = #tpu.dot_dimension_numbers<[1], [0], [0], [1], [0, 0, 1, 1], [], []>} : vector<2x2xbf16>, vector<2x128xbf16>, vector<2x128xf32> -> vector<2x128xf32>
    %249 = arith.truncf %248 : vector<2x128xf32> to vector<2x128xbf16>
    %c2_230 = arith.constant 2 : index
    %c0_231 = arith.constant 0 : index
    %c0_232 = arith.constant 0 : index
    %250 = vector.load %arg33[%c2_230, %c0_231, %c0_232] : memref<3x128x128xbf16, #tpu.memory_space<vmem>>, vector<1x128x128xbf16>
    %251 = vector.shape_cast %250 : vector<1x128x128xbf16> to vector<128x128xbf16>
    %cst_233 = arith.constant dense<0.000000e+00> : vector<2x128xf32>
    %252 = tpu.matmul %249, %251, %cst_233 {dimension_numbers = #tpu.dot_dimension_numbers<[1], [0], [0], [1], [0, 0, 1, 1], [], []>} : vector<2x128xbf16>, vector<128x128xbf16>, vector<2x128xf32> -> vector<2x128xf32>
    %253 = arith.addf %245, %252 : vector<2x128xf32>
    %c0_234 = arith.constant 0 : index
    %c0_235 = arith.constant 0 : index
    %254 = vector.load %arg34[%c0_234, %c0_235] : memref<1x128xf32, #tpu.memory_space<vmem>>, vector<1x128xf32>
    %255 = vector.broadcast %254 : vector<1x128xf32> to vector<2x128xf32>
    %256 = arith.addf %253, %255 : vector<2x128xf32>
    %cst_236 = arith.constant 0.000000e+00 : f32
    %257 = vector.broadcast %cst_236 : f32 to vector<2x128xf32>
    %258 = arith.maximumf %256, %257 : vector<2x128xf32>
    %259 = arith.truncf %258 : vector<2x128xf32> to vector<2x128xbf16>
    %c0_237 = arith.constant 0 : index
    %c0_238 = arith.constant 0 : index
    %c0_239 = arith.constant 0 : index
    %260 = vector.load %arg51[%c0_237, %c0_238, %c0_239] : memref<2x128x128xbf16, #tpu.memory_space<vmem>>, vector<1x128x128xbf16>
    %261 = vector.shape_cast %260 : vector<1x128x128xbf16> to vector<128x128xbf16>
    %cst_240 = arith.constant dense<0.000000e+00> : vector<2x128xf32>
    %262 = tpu.matmul %259, %261, %cst_240 {dimension_numbers = #tpu.dot_dimension_numbers<[1], [0], [0], [1], [0, 0, 1, 1], [], []>} : vector<2x128xbf16>, vector<128x128xbf16>, vector<2x128xf32> -> vector<2x128xf32>
    %263 = arith.truncf %262 : vector<2x128xf32> to vector<2x128xbf16>
    %c1_241 = arith.constant 1 : index
    %c0_242 = arith.constant 0 : index
    %c0_243 = arith.constant 0 : index
    %264 = vector.load %arg51[%c1_241, %c0_242, %c0_243] : memref<2x128x128xbf16, #tpu.memory_space<vmem>>, vector<1x128x128xbf16>
    %265 = vector.shape_cast %264 : vector<1x128x128xbf16> to vector<128x128xbf16>
    %cst_244 = arith.constant dense<0.000000e+00> : vector<2x128xf32>
    %266 = tpu.matmul %259, %265, %cst_244 {dimension_numbers = #tpu.dot_dimension_numbers<[1], [0], [0], [1], [0, 0, 1, 1], [], []>} : vector<2x128xbf16>, vector<128x128xbf16>, vector<2x128xf32> -> vector<2x128xf32>
    %267 = arith.truncf %266 : vector<2x128xf32> to vector<2x128xbf16>
    %c0_245 = arith.constant 0 : index
    %c0_246 = arith.constant 0 : index
    %c0_247 = arith.constant 0 : index
    %268 = vector.load %arg44[%c0_245, %c0_246, %c0_247] : memref<2x4x2xbf16, #tpu.memory_space<vmem>>, vector<1x4x2xbf16>
    %269 = vector.shape_cast %268 : vector<1x4x2xbf16> to vector<4x2xbf16>
    %cst_248 = arith.constant dense<0.000000e+00> : vector<4x128xf32>
    %270 = tpu.matmul %269, %263, %cst_248 {dimension_numbers = #tpu.dot_dimension_numbers<[1], [0], [0], [1], [0, 0, 1, 1], [], []>} : vector<4x2xbf16>, vector<2x128xbf16>, vector<4x128xf32> -> vector<4x128xf32>
    %c1_249 = arith.constant 1 : index
    %c0_250 = arith.constant 0 : index
    %c0_251 = arith.constant 0 : index
    %271 = vector.load %arg44[%c1_249, %c0_250, %c0_251] : memref<2x4x2xbf16, #tpu.memory_space<vmem>>, vector<1x4x2xbf16>
    %272 = vector.shape_cast %271 : vector<1x4x2xbf16> to vector<4x2xbf16>
    %cst_252 = arith.constant dense<0.000000e+00> : vector<4x128xf32>
    %273 = tpu.matmul %272, %267, %cst_252 {dimension_numbers = #tpu.dot_dimension_numbers<[1], [0], [0], [1], [0, 0, 1, 1], [], []>} : vector<4x2xbf16>, vector<2x128xbf16>, vector<4x128xf32> -> vector<4x128xf32>
    %274 = arith.addf %270, %273 : vector<4x128xf32>
    %c0_253 = arith.constant 0 : index
    %c0_254 = arith.constant 0 : index
    %275 = vector.load %arg52[%c0_253, %c0_254] : memref<1x128xf32, #tpu.memory_space<vmem>>, vector<1x128xf32>
    %276 = vector.broadcast %275 : vector<1x128xf32> to vector<4x128xf32>
    %277 = arith.addf %274, %276 : vector<4x128xf32>
    %278 = arith.truncf %277 : vector<4x128xf32> to vector<4x128xbf16>
    %279 = arith.truncf %189 : vector<4x128xf32> to vector<4x128xbf16>
    %c1_255 = arith.constant 1 : index
    %c0_256 = arith.constant 0 : index
    %c0_257 = arith.constant 0 : index
    %280 = vector.load %arg3[%c1_255, %c0_256, %c0_257] : memref<3x128x128xbf16, #tpu.memory_space<vmem>>, vector<1x128x128xbf16>
    %281 = vector.shape_cast %280 : vector<1x128x128xbf16> to vector<128x128xbf16>
    %cst_258 = arith.constant dense<0.000000e+00> : vector<4x128xf32>
    %282 = tpu.matmul %278, %281, %cst_258 {dimension_numbers = #tpu.dot_dimension_numbers<[1], [0], [0], [1], [0, 0, 1, 1], [], []>} : vector<4x128xbf16>, vector<128x128xbf16>, vector<4x128xf32> -> vector<4x128xf32>
    %c1_259 = arith.constant 1 : index
    %c0_260 = arith.constant 0 : index
    %c0_261 = arith.constant 0 : index
    %283 = vector.load %arg2[%c1_259, %c0_260, %c0_261] : memref<3x128x128xbf16, #tpu.memory_space<vmem>>, vector<1x128x128xbf16>
    %284 = vector.shape_cast %283 : vector<1x128x128xbf16> to vector<128x128xbf16>
    %cst_262 = arith.constant dense<0.000000e+00> : vector<4x128xf32>
    %285 = tpu.matmul %279, %284, %cst_262 {dimension_numbers = #tpu.dot_dimension_numbers<[1], [0], [0], [1], [0, 0, 1, 1], [], []>} : vector<4x128xbf16>, vector<128x128xbf16>, vector<4x128xf32> -> vector<4x128xf32>
    %286 = arith.addf %282, %285 : vector<4x128xf32>
    %c0_263 = arith.constant 0 : index
    %c0_264 = arith.constant 0 : index
    %c0_265 = arith.constant 0 : index
    %287 = vector.load %arg48[%c0_263, %c0_264, %c0_265] : memref<2x4x4xbf16, #tpu.memory_space<vmem>>, vector<1x4x4xbf16>
    %288 = vector.shape_cast %287 : vector<1x4x4xbf16> to vector<4x4xbf16>
    %cst_266 = arith.constant dense<0.000000e+00> : vector<4x128xf32>
    %289 = tpu.matmul %288, %278, %cst_266 {dimension_numbers = #tpu.dot_dimension_numbers<[1], [0], [0], [1], [0, 0, 1, 1], [], []>} : vector<4x4xbf16>, vector<4x128xbf16>, vector<4x128xf32> -> vector<4x128xf32>
    %290 = arith.truncf %289 : vector<4x128xf32> to vector<4x128xbf16>
    %c0_267 = arith.constant 0 : index
    %c0_268 = arith.constant 0 : index
    %c0_269 = arith.constant 0 : index
    %291 = vector.load %arg3[%c0_267, %c0_268, %c0_269] : memref<3x128x128xbf16, #tpu.memory_space<vmem>>, vector<1x128x128xbf16>
    %292 = vector.shape_cast %291 : vector<1x128x128xbf16> to vector<128x128xbf16>
    %cst_270 = arith.constant dense<0.000000e+00> : vector<4x128xf32>
    %293 = tpu.matmul %290, %292, %cst_270 {dimension_numbers = #tpu.dot_dimension_numbers<[1], [0], [0], [1], [0, 0, 1, 1], [], []>} : vector<4x128xbf16>, vector<128x128xbf16>, vector<4x128xf32> -> vector<4x128xf32>
    %c0_271 = arith.constant 0 : index
    %c0_272 = arith.constant 0 : index
    %c0_273 = arith.constant 0 : index
    %294 = vector.load %arg48[%c0_271, %c0_272, %c0_273] : memref<2x4x4xbf16, #tpu.memory_space<vmem>>, vector<1x4x4xbf16>
    %295 = vector.shape_cast %294 : vector<1x4x4xbf16> to vector<4x4xbf16>
    %cst_274 = arith.constant dense<0.000000e+00> : vector<4x128xf32>
    %296 = tpu.matmul %295, %279, %cst_274 {dimension_numbers = #tpu.dot_dimension_numbers<[1], [0], [0], [1], [0, 0, 1, 1], [], []>} : vector<4x4xbf16>, vector<4x128xbf16>, vector<4x128xf32> -> vector<4x128xf32>
    %297 = arith.truncf %296 : vector<4x128xf32> to vector<4x128xbf16>
    %c0_275 = arith.constant 0 : index
    %c0_276 = arith.constant 0 : index
    %c0_277 = arith.constant 0 : index
    %298 = vector.load %arg2[%c0_275, %c0_276, %c0_277] : memref<3x128x128xbf16, #tpu.memory_space<vmem>>, vector<1x128x128xbf16>
    %299 = vector.shape_cast %298 : vector<1x128x128xbf16> to vector<128x128xbf16>
    %cst_278 = arith.constant dense<0.000000e+00> : vector<4x128xf32>
    %300 = tpu.matmul %297, %299, %cst_278 {dimension_numbers = #tpu.dot_dimension_numbers<[1], [0], [0], [1], [0, 0, 1, 1], [], []>} : vector<4x128xbf16>, vector<128x128xbf16>, vector<4x128xf32> -> vector<4x128xf32>
    %301 = arith.addf %293, %300 : vector<4x128xf32>
    %302 = arith.addf %286, %301 : vector<4x128xf32>
    %c1_279 = arith.constant 1 : index
    %c0_280 = arith.constant 0 : index
    %c0_281 = arith.constant 0 : index
    %303 = vector.load %arg48[%c1_279, %c0_280, %c0_281] : memref<2x4x4xbf16, #tpu.memory_space<vmem>>, vector<1x4x4xbf16>
    %304 = vector.shape_cast %303 : vector<1x4x4xbf16> to vector<4x4xbf16>
    %cst_282 = arith.constant dense<0.000000e+00> : vector<4x128xf32>
    %305 = tpu.matmul %304, %278, %cst_282 {dimension_numbers = #tpu.dot_dimension_numbers<[1], [0], [0], [1], [0, 0, 1, 1], [], []>} : vector<4x4xbf16>, vector<4x128xbf16>, vector<4x128xf32> -> vector<4x128xf32>
    %306 = arith.truncf %305 : vector<4x128xf32> to vector<4x128xbf16>
    %c2_283 = arith.constant 2 : index
    %c0_284 = arith.constant 0 : index
    %c0_285 = arith.constant 0 : index
    %307 = vector.load %arg3[%c2_283, %c0_284, %c0_285] : memref<3x128x128xbf16, #tpu.memory_space<vmem>>, vector<1x128x128xbf16>
    %308 = vector.shape_cast %307 : vector<1x128x128xbf16> to vector<128x128xbf16>
    %cst_286 = arith.constant dense<0.000000e+00> : vector<4x128xf32>
    %309 = tpu.matmul %306, %308, %cst_286 {dimension_numbers = #tpu.dot_dimension_numbers<[1], [0], [0], [1], [0, 0, 1, 1], [], []>} : vector<4x128xbf16>, vector<128x128xbf16>, vector<4x128xf32> -> vector<4x128xf32>
    %c1_287 = arith.constant 1 : index
    %c0_288 = arith.constant 0 : index
    %c0_289 = arith.constant 0 : index
    %310 = vector.load %arg48[%c1_287, %c0_288, %c0_289] : memref<2x4x4xbf16, #tpu.memory_space<vmem>>, vector<1x4x4xbf16>
    %311 = vector.shape_cast %310 : vector<1x4x4xbf16> to vector<4x4xbf16>
    %cst_290 = arith.constant dense<0.000000e+00> : vector<4x128xf32>
    %312 = tpu.matmul %311, %279, %cst_290 {dimension_numbers = #tpu.dot_dimension_numbers<[1], [0], [0], [1], [0, 0, 1, 1], [], []>} : vector<4x4xbf16>, vector<4x128xbf16>, vector<4x128xf32> -> vector<4x128xf32>
    %313 = arith.truncf %312 : vector<4x128xf32> to vector<4x128xbf16>
    %c2_291 = arith.constant 2 : index
    %c0_292 = arith.constant 0 : index
    %c0_293 = arith.constant 0 : index
    %314 = vector.load %arg2[%c2_291, %c0_292, %c0_293] : memref<3x128x128xbf16, #tpu.memory_space<vmem>>, vector<1x128x128xbf16>
    %315 = vector.shape_cast %314 : vector<1x128x128xbf16> to vector<128x128xbf16>
    %cst_294 = arith.constant dense<0.000000e+00> : vector<4x128xf32>
    %316 = tpu.matmul %313, %315, %cst_294 {dimension_numbers = #tpu.dot_dimension_numbers<[1], [0], [0], [1], [0, 0, 1, 1], [], []>} : vector<4x128xbf16>, vector<128x128xbf16>, vector<4x128xf32> -> vector<4x128xf32>
    %317 = arith.addf %309, %316 : vector<4x128xf32>
    %318 = arith.addf %302, %317 : vector<4x128xf32>
    %c0_295 = arith.constant 0 : index
    %c0_296 = arith.constant 0 : index
    %319 = vector.load %arg4[%c0_295, %c0_296] : memref<1x128xf32, #tpu.memory_space<vmem>>, vector<1x128xf32>
    %320 = vector.broadcast %319 : vector<1x128xf32> to vector<4x128xf32>
    %321 = arith.addf %318, %320 : vector<4x128xf32>
    %cst_297 = arith.constant 0.000000e+00 : f32
    %322 = vector.broadcast %cst_297 : f32 to vector<4x128xf32>
    %323 = arith.maximumf %321, %322 : vector<4x128xf32>
    %324 = arith.truncf %323 : vector<4x128xf32> to vector<4x128xbf16>
    %c1_298 = arith.constant 1 : index
    %c0_299 = arith.constant 0 : index
    %c0_300 = arith.constant 0 : index
    %325 = vector.load %arg5[%c1_298, %c0_299, %c0_300] : memref<3x128x128xbf16, #tpu.memory_space<vmem>>, vector<1x128x128xbf16>
    %326 = vector.shape_cast %325 : vector<1x128x128xbf16> to vector<128x128xbf16>
    %cst_301 = arith.constant dense<0.000000e+00> : vector<4x128xf32>
    %327 = tpu.matmul %324, %326, %cst_301 {dimension_numbers = #tpu.dot_dimension_numbers<[1], [0], [0], [1], [0, 0, 1, 1], [], []>} : vector<4x128xbf16>, vector<128x128xbf16>, vector<4x128xf32> -> vector<4x128xf32>
    %c0_302 = arith.constant 0 : index
    %c0_303 = arith.constant 0 : index
    %c0_304 = arith.constant 0 : index
    %328 = vector.load %arg48[%c0_302, %c0_303, %c0_304] : memref<2x4x4xbf16, #tpu.memory_space<vmem>>, vector<1x4x4xbf16>
    %329 = vector.shape_cast %328 : vector<1x4x4xbf16> to vector<4x4xbf16>
    %cst_305 = arith.constant dense<0.000000e+00> : vector<4x128xf32>
    %330 = tpu.matmul %329, %324, %cst_305 {dimension_numbers = #tpu.dot_dimension_numbers<[1], [0], [0], [1], [0, 0, 1, 1], [], []>} : vector<4x4xbf16>, vector<4x128xbf16>, vector<4x128xf32> -> vector<4x128xf32>
    %331 = arith.truncf %330 : vector<4x128xf32> to vector<4x128xbf16>
    %c0_306 = arith.constant 0 : index
    %c0_307 = arith.constant 0 : index
    %c0_308 = arith.constant 0 : index
    %332 = vector.load %arg5[%c0_306, %c0_307, %c0_308] : memref<3x128x128xbf16, #tpu.memory_space<vmem>>, vector<1x128x128xbf16>
    %333 = vector.shape_cast %332 : vector<1x128x128xbf16> to vector<128x128xbf16>
    %cst_309 = arith.constant dense<0.000000e+00> : vector<4x128xf32>
    %334 = tpu.matmul %331, %333, %cst_309 {dimension_numbers = #tpu.dot_dimension_numbers<[1], [0], [0], [1], [0, 0, 1, 1], [], []>} : vector<4x128xbf16>, vector<128x128xbf16>, vector<4x128xf32> -> vector<4x128xf32>
    %335 = arith.addf %327, %334 : vector<4x128xf32>
    %c1_310 = arith.constant 1 : index
    %c0_311 = arith.constant 0 : index
    %c0_312 = arith.constant 0 : index
    %336 = vector.load %arg48[%c1_310, %c0_311, %c0_312] : memref<2x4x4xbf16, #tpu.memory_space<vmem>>, vector<1x4x4xbf16>
    %337 = vector.shape_cast %336 : vector<1x4x4xbf16> to vector<4x4xbf16>
    %cst_313 = arith.constant dense<0.000000e+00> : vector<4x128xf32>
    %338 = tpu.matmul %337, %324, %cst_313 {dimension_numbers = #tpu.dot_dimension_numbers<[1], [0], [0], [1], [0, 0, 1, 1], [], []>} : vector<4x4xbf16>, vector<4x128xbf16>, vector<4x128xf32> -> vector<4x128xf32>
    %339 = arith.truncf %338 : vector<4x128xf32> to vector<4x128xbf16>
    %c2_314 = arith.constant 2 : index
    %c0_315 = arith.constant 0 : index
    %c0_316 = arith.constant 0 : index
    %340 = vector.load %arg5[%c2_314, %c0_315, %c0_316] : memref<3x128x128xbf16, #tpu.memory_space<vmem>>, vector<1x128x128xbf16>
    %341 = vector.shape_cast %340 : vector<1x128x128xbf16> to vector<128x128xbf16>
    %cst_317 = arith.constant dense<0.000000e+00> : vector<4x128xf32>
    %342 = tpu.matmul %339, %341, %cst_317 {dimension_numbers = #tpu.dot_dimension_numbers<[1], [0], [0], [1], [0, 0, 1, 1], [], []>} : vector<4x128xbf16>, vector<128x128xbf16>, vector<4x128xf32> -> vector<4x128xf32>
    %343 = arith.addf %335, %342 : vector<4x128xf32>
    %c0_318 = arith.constant 0 : index
    %c0_319 = arith.constant 0 : index
    %344 = vector.load %arg6[%c0_318, %c0_319] : memref<1x128xf32, #tpu.memory_space<vmem>>, vector<1x128xf32>
    %345 = vector.broadcast %344 : vector<1x128xf32> to vector<4x128xf32>
    %346 = arith.addf %343, %345 : vector<4x128xf32>
    %cst_320 = arith.constant 0.000000e+00 : f32
    %347 = vector.broadcast %cst_320 : f32 to vector<4x128xf32>
    %348 = arith.maximumf %346, %347 : vector<4x128xf32>
    %349 = arith.truncf %348 : vector<4x128xf32> to vector<4x128xbf16>
    %c0_321 = arith.constant 0 : index
    %c0_322 = arith.constant 0 : index
    %c0_323 = arith.constant 0 : index
    %350 = vector.load %arg53[%c0_321, %c0_322, %c0_323] : memref<2x128x128xbf16, #tpu.memory_space<vmem>>, vector<1x128x128xbf16>
    %351 = vector.shape_cast %350 : vector<1x128x128xbf16> to vector<128x128xbf16>
    %cst_324 = arith.constant dense<0.000000e+00> : vector<4x128xf32>
    %352 = tpu.matmul %349, %351, %cst_324 {dimension_numbers = #tpu.dot_dimension_numbers<[1], [0], [0], [1], [0, 0, 1, 1], [], []>} : vector<4x128xbf16>, vector<128x128xbf16>, vector<4x128xf32> -> vector<4x128xf32>
    %353 = arith.truncf %352 : vector<4x128xf32> to vector<4x128xbf16>
    %c1_325 = arith.constant 1 : index
    %c0_326 = arith.constant 0 : index
    %c0_327 = arith.constant 0 : index
    %354 = vector.load %arg53[%c1_325, %c0_326, %c0_327] : memref<2x128x128xbf16, #tpu.memory_space<vmem>>, vector<1x128x128xbf16>
    %355 = vector.shape_cast %354 : vector<1x128x128xbf16> to vector<128x128xbf16>
    %cst_328 = arith.constant dense<0.000000e+00> : vector<4x128xf32>
    %356 = tpu.matmul %349, %355, %cst_328 {dimension_numbers = #tpu.dot_dimension_numbers<[1], [0], [0], [1], [0, 0, 1, 1], [], []>} : vector<4x128xbf16>, vector<128x128xbf16>, vector<4x128xf32> -> vector<4x128xf32>
    %357 = arith.truncf %356 : vector<4x128xf32> to vector<4x128xbf16>
    %c0_329 = arith.constant 0 : index
    %c0_330 = arith.constant 0 : index
    %c0_331 = arith.constant 0 : index
    %358 = vector.load %arg45[%c0_329, %c0_330, %c0_331] : memref<2x8x4xbf16, #tpu.memory_space<vmem>>, vector<1x8x4xbf16>
    %359 = vector.shape_cast %358 : vector<1x8x4xbf16> to vector<8x4xbf16>
    %cst_332 = arith.constant dense<0.000000e+00> : vector<8x128xf32>
    %360 = tpu.matmul %359, %353, %cst_332 {dimension_numbers = #tpu.dot_dimension_numbers<[1], [0], [0], [1], [0, 0, 1, 1], [], []>} : vector<8x4xbf16>, vector<4x128xbf16>, vector<8x128xf32> -> vector<8x128xf32>
    %c1_333 = arith.constant 1 : index
    %c0_334 = arith.constant 0 : index
    %c0_335 = arith.constant 0 : index
    %361 = vector.load %arg45[%c1_333, %c0_334, %c0_335] : memref<2x8x4xbf16, #tpu.memory_space<vmem>>, vector<1x8x4xbf16>
    %362 = vector.shape_cast %361 : vector<1x8x4xbf16> to vector<8x4xbf16>
    %cst_336 = arith.constant dense<0.000000e+00> : vector<8x128xf32>
    %363 = tpu.matmul %362, %357, %cst_336 {dimension_numbers = #tpu.dot_dimension_numbers<[1], [0], [0], [1], [0, 0, 1, 1], [], []>} : vector<8x4xbf16>, vector<4x128xbf16>, vector<8x128xf32> -> vector<8x128xf32>
    %364 = arith.addf %360, %363 : vector<8x128xf32>
    %c0_337 = arith.constant 0 : index
    %c0_338 = arith.constant 0 : index
    %365 = vector.load %arg54[%c0_337, %c0_338] : memref<1x128xf32, #tpu.memory_space<vmem>>, vector<1x128xf32>
    %366 = vector.broadcast %365 : vector<1x128xf32> to vector<8x128xf32>
    %367 = arith.addf %364, %366 : vector<8x128xf32>
    %368 = arith.truncf %367 : vector<8x128xf32> to vector<8x128xbf16>
    %369 = arith.truncf %120 : vector<8x128xf32> to vector<8x128xbf16>
    %c1_339 = arith.constant 1 : index
    %c0_340 = arith.constant 0 : index
    %c0_341 = arith.constant 0 : index
    %370 = vector.load %arg8[%c1_339, %c0_340, %c0_341] : memref<3x128x128xbf16, #tpu.memory_space<vmem>>, vector<1x128x128xbf16>
    %371 = vector.shape_cast %370 : vector<1x128x128xbf16> to vector<128x128xbf16>
    %cst_342 = arith.constant dense<0.000000e+00> : vector<8x128xf32>
    %372 = tpu.matmul %368, %371, %cst_342 {dimension_numbers = #tpu.dot_dimension_numbers<[1], [0], [0], [1], [0, 0, 1, 1], [], []>} : vector<8x128xbf16>, vector<128x128xbf16>, vector<8x128xf32> -> vector<8x128xf32>
    %c1_343 = arith.constant 1 : index
    %c0_344 = arith.constant 0 : index
    %c0_345 = arith.constant 0 : index
    %373 = vector.load %arg7[%c1_343, %c0_344, %c0_345] : memref<3x128x128xbf16, #tpu.memory_space<vmem>>, vector<1x128x128xbf16>
    %374 = vector.shape_cast %373 : vector<1x128x128xbf16> to vector<128x128xbf16>
    %cst_346 = arith.constant dense<0.000000e+00> : vector<8x128xf32>
    %375 = tpu.matmul %369, %374, %cst_346 {dimension_numbers = #tpu.dot_dimension_numbers<[1], [0], [0], [1], [0, 0, 1, 1], [], []>} : vector<8x128xbf16>, vector<128x128xbf16>, vector<8x128xf32> -> vector<8x128xf32>
    %376 = arith.addf %372, %375 : vector<8x128xf32>
    %c0_347 = arith.constant 0 : index
    %c0_348 = arith.constant 0 : index
    %c0_349 = arith.constant 0 : index
    %377 = vector.load %arg49[%c0_347, %c0_348, %c0_349] : memref<2x8x8xbf16, #tpu.memory_space<vmem>>, vector<1x8x8xbf16>
    %378 = vector.shape_cast %377 : vector<1x8x8xbf16> to vector<8x8xbf16>
    %cst_350 = arith.constant dense<0.000000e+00> : vector<8x128xf32>
    %379 = tpu.matmul %378, %368, %cst_350 {dimension_numbers = #tpu.dot_dimension_numbers<[1], [0], [0], [1], [0, 0, 1, 1], [], []>} : vector<8x8xbf16>, vector<8x128xbf16>, vector<8x128xf32> -> vector<8x128xf32>
    %380 = arith.truncf %379 : vector<8x128xf32> to vector<8x128xbf16>
    %c0_351 = arith.constant 0 : index
    %c0_352 = arith.constant 0 : index
    %c0_353 = arith.constant 0 : index
    %381 = vector.load %arg8[%c0_351, %c0_352, %c0_353] : memref<3x128x128xbf16, #tpu.memory_space<vmem>>, vector<1x128x128xbf16>
    %382 = vector.shape_cast %381 : vector<1x128x128xbf16> to vector<128x128xbf16>
    %cst_354 = arith.constant dense<0.000000e+00> : vector<8x128xf32>
    %383 = tpu.matmul %380, %382, %cst_354 {dimension_numbers = #tpu.dot_dimension_numbers<[1], [0], [0], [1], [0, 0, 1, 1], [], []>} : vector<8x128xbf16>, vector<128x128xbf16>, vector<8x128xf32> -> vector<8x128xf32>
    %c0_355 = arith.constant 0 : index
    %c0_356 = arith.constant 0 : index
    %c0_357 = arith.constant 0 : index
    %384 = vector.load %arg49[%c0_355, %c0_356, %c0_357] : memref<2x8x8xbf16, #tpu.memory_space<vmem>>, vector<1x8x8xbf16>
    %385 = vector.shape_cast %384 : vector<1x8x8xbf16> to vector<8x8xbf16>
    %cst_358 = arith.constant dense<0.000000e+00> : vector<8x128xf32>
    %386 = tpu.matmul %385, %369, %cst_358 {dimension_numbers = #tpu.dot_dimension_numbers<[1], [0], [0], [1], [0, 0, 1, 1], [], []>} : vector<8x8xbf16>, vector<8x128xbf16>, vector<8x128xf32> -> vector<8x128xf32>
    %387 = arith.truncf %386 : vector<8x128xf32> to vector<8x128xbf16>
    %c0_359 = arith.constant 0 : index
    %c0_360 = arith.constant 0 : index
    %c0_361 = arith.constant 0 : index
    %388 = vector.load %arg7[%c0_359, %c0_360, %c0_361] : memref<3x128x128xbf16, #tpu.memory_space<vmem>>, vector<1x128x128xbf16>
    %389 = vector.shape_cast %388 : vector<1x128x128xbf16> to vector<128x128xbf16>
    %cst_362 = arith.constant dense<0.000000e+00> : vector<8x128xf32>
    %390 = tpu.matmul %387, %389, %cst_362 {dimension_numbers = #tpu.dot_dimension_numbers<[1], [0], [0], [1], [0, 0, 1, 1], [], []>} : vector<8x128xbf16>, vector<128x128xbf16>, vector<8x128xf32> -> vector<8x128xf32>
    %391 = arith.addf %383, %390 : vector<8x128xf32>
    %392 = arith.addf %376, %391 : vector<8x128xf32>
    %c1_363 = arith.constant 1 : index
    %c0_364 = arith.constant 0 : index
    %c0_365 = arith.constant 0 : index
    %393 = vector.load %arg49[%c1_363, %c0_364, %c0_365] : memref<2x8x8xbf16, #tpu.memory_space<vmem>>, vector<1x8x8xbf16>
    %394 = vector.shape_cast %393 : vector<1x8x8xbf16> to vector<8x8xbf16>
    %cst_366 = arith.constant dense<0.000000e+00> : vector<8x128xf32>
    %395 = tpu.matmul %394, %368, %cst_366 {dimension_numbers = #tpu.dot_dimension_numbers<[1], [0], [0], [1], [0, 0, 1, 1], [], []>} : vector<8x8xbf16>, vector<8x128xbf16>, vector<8x128xf32> -> vector<8x128xf32>
    %396 = arith.truncf %395 : vector<8x128xf32> to vector<8x128xbf16>
    %c2_367 = arith.constant 2 : index
    %c0_368 = arith.constant 0 : index
    %c0_369 = arith.constant 0 : index
    %397 = vector.load %arg8[%c2_367, %c0_368, %c0_369] : memref<3x128x128xbf16, #tpu.memory_space<vmem>>, vector<1x128x128xbf16>
    %398 = vector.shape_cast %397 : vector<1x128x128xbf16> to vector<128x128xbf16>
    %cst_370 = arith.constant dense<0.000000e+00> : vector<8x128xf32>
    %399 = tpu.matmul %396, %398, %cst_370 {dimension_numbers = #tpu.dot_dimension_numbers<[1], [0], [0], [1], [0, 0, 1, 1], [], []>} : vector<8x128xbf16>, vector<128x128xbf16>, vector<8x128xf32> -> vector<8x128xf32>
    %c1_371 = arith.constant 1 : index
    %c0_372 = arith.constant 0 : index
    %c0_373 = arith.constant 0 : index
    %400 = vector.load %arg49[%c1_371, %c0_372, %c0_373] : memref<2x8x8xbf16, #tpu.memory_space<vmem>>, vector<1x8x8xbf16>
    %401 = vector.shape_cast %400 : vector<1x8x8xbf16> to vector<8x8xbf16>
    %cst_374 = arith.constant dense<0.000000e+00> : vector<8x128xf32>
    %402 = tpu.matmul %401, %369, %cst_374 {dimension_numbers = #tpu.dot_dimension_numbers<[1], [0], [0], [1], [0, 0, 1, 1], [], []>} : vector<8x8xbf16>, vector<8x128xbf16>, vector<8x128xf32> -> vector<8x128xf32>
    %403 = arith.truncf %402 : vector<8x128xf32> to vector<8x128xbf16>
    %c2_375 = arith.constant 2 : index
    %c0_376 = arith.constant 0 : index
    %c0_377 = arith.constant 0 : index
    %404 = vector.load %arg7[%c2_375, %c0_376, %c0_377] : memref<3x128x128xbf16, #tpu.memory_space<vmem>>, vector<1x128x128xbf16>
    %405 = vector.shape_cast %404 : vector<1x128x128xbf16> to vector<128x128xbf16>
    %cst_378 = arith.constant dense<0.000000e+00> : vector<8x128xf32>
    %406 = tpu.matmul %403, %405, %cst_378 {dimension_numbers = #tpu.dot_dimension_numbers<[1], [0], [0], [1], [0, 0, 1, 1], [], []>} : vector<8x128xbf16>, vector<128x128xbf16>, vector<8x128xf32> -> vector<8x128xf32>
    %407 = arith.addf %399, %406 : vector<8x128xf32>
    %408 = arith.addf %392, %407 : vector<8x128xf32>
    %c0_379 = arith.constant 0 : index
    %c0_380 = arith.constant 0 : index
    %409 = vector.load %arg9[%c0_379, %c0_380] : memref<1x128xf32, #tpu.memory_space<vmem>>, vector<1x128xf32>
    %410 = vector.broadcast %409 : vector<1x128xf32> to vector<8x128xf32>
    %411 = arith.addf %408, %410 : vector<8x128xf32>
    %cst_381 = arith.constant 0.000000e+00 : f32
    %412 = vector.broadcast %cst_381 : f32 to vector<8x128xf32>
    %413 = arith.maximumf %411, %412 : vector<8x128xf32>
    %414 = arith.truncf %413 : vector<8x128xf32> to vector<8x128xbf16>
    %c1_382 = arith.constant 1 : index
    %c0_383 = arith.constant 0 : index
    %c0_384 = arith.constant 0 : index
    %415 = vector.load %arg10[%c1_382, %c0_383, %c0_384] : memref<3x128x128xbf16, #tpu.memory_space<vmem>>, vector<1x128x128xbf16>
    %416 = vector.shape_cast %415 : vector<1x128x128xbf16> to vector<128x128xbf16>
    %cst_385 = arith.constant dense<0.000000e+00> : vector<8x128xf32>
    %417 = tpu.matmul %414, %416, %cst_385 {dimension_numbers = #tpu.dot_dimension_numbers<[1], [0], [0], [1], [0, 0, 1, 1], [], []>} : vector<8x128xbf16>, vector<128x128xbf16>, vector<8x128xf32> -> vector<8x128xf32>
    %c0_386 = arith.constant 0 : index
    %c0_387 = arith.constant 0 : index
    %c0_388 = arith.constant 0 : index
    %418 = vector.load %arg49[%c0_386, %c0_387, %c0_388] : memref<2x8x8xbf16, #tpu.memory_space<vmem>>, vector<1x8x8xbf16>
    %419 = vector.shape_cast %418 : vector<1x8x8xbf16> to vector<8x8xbf16>
    %cst_389 = arith.constant dense<0.000000e+00> : vector<8x128xf32>
    %420 = tpu.matmul %419, %414, %cst_389 {dimension_numbers = #tpu.dot_dimension_numbers<[1], [0], [0], [1], [0, 0, 1, 1], [], []>} : vector<8x8xbf16>, vector<8x128xbf16>, vector<8x128xf32> -> vector<8x128xf32>
    %421 = arith.truncf %420 : vector<8x128xf32> to vector<8x128xbf16>
    %c0_390 = arith.constant 0 : index
    %c0_391 = arith.constant 0 : index
    %c0_392 = arith.constant 0 : index
    %422 = vector.load %arg10[%c0_390, %c0_391, %c0_392] : memref<3x128x128xbf16, #tpu.memory_space<vmem>>, vector<1x128x128xbf16>
    %423 = vector.shape_cast %422 : vector<1x128x128xbf16> to vector<128x128xbf16>
    %cst_393 = arith.constant dense<0.000000e+00> : vector<8x128xf32>
    %424 = tpu.matmul %421, %423, %cst_393 {dimension_numbers = #tpu.dot_dimension_numbers<[1], [0], [0], [1], [0, 0, 1, 1], [], []>} : vector<8x128xbf16>, vector<128x128xbf16>, vector<8x128xf32> -> vector<8x128xf32>
    %425 = arith.addf %417, %424 : vector<8x128xf32>
    %c1_394 = arith.constant 1 : index
    %c0_395 = arith.constant 0 : index
    %c0_396 = arith.constant 0 : index
    %426 = vector.load %arg49[%c1_394, %c0_395, %c0_396] : memref<2x8x8xbf16, #tpu.memory_space<vmem>>, vector<1x8x8xbf16>
    %427 = vector.shape_cast %426 : vector<1x8x8xbf16> to vector<8x8xbf16>
    %cst_397 = arith.constant dense<0.000000e+00> : vector<8x128xf32>
    %428 = tpu.matmul %427, %414, %cst_397 {dimension_numbers = #tpu.dot_dimension_numbers<[1], [0], [0], [1], [0, 0, 1, 1], [], []>} : vector<8x8xbf16>, vector<8x128xbf16>, vector<8x128xf32> -> vector<8x128xf32>
    %429 = arith.truncf %428 : vector<8x128xf32> to vector<8x128xbf16>
    %c2_398 = arith.constant 2 : index
    %c0_399 = arith.constant 0 : index
    %c0_400 = arith.constant 0 : index
    %430 = vector.load %arg10[%c2_398, %c0_399, %c0_400] : memref<3x128x128xbf16, #tpu.memory_space<vmem>>, vector<1x128x128xbf16>
    %431 = vector.shape_cast %430 : vector<1x128x128xbf16> to vector<128x128xbf16>
    %cst_401 = arith.constant dense<0.000000e+00> : vector<8x128xf32>
    %432 = tpu.matmul %429, %431, %cst_401 {dimension_numbers = #tpu.dot_dimension_numbers<[1], [0], [0], [1], [0, 0, 1, 1], [], []>} : vector<8x128xbf16>, vector<128x128xbf16>, vector<8x128xf32> -> vector<8x128xf32>
    %433 = arith.addf %425, %432 : vector<8x128xf32>
    %c0_402 = arith.constant 0 : index
    %c0_403 = arith.constant 0 : index
    %434 = vector.load %arg11[%c0_402, %c0_403] : memref<1x128xf32, #tpu.memory_space<vmem>>, vector<1x128xf32>
    %435 = vector.broadcast %434 : vector<1x128xf32> to vector<8x128xf32>
    %436 = arith.addf %433, %435 : vector<8x128xf32>
    %cst_404 = arith.constant 0.000000e+00 : f32
    %437 = vector.broadcast %cst_404 : f32 to vector<8x128xf32>
    %438 = arith.maximumf %436, %437 : vector<8x128xf32>
    %439 = arith.truncf %438 : vector<8x128xf32> to vector<8x128xbf16>
    %c0_405 = arith.constant 0 : index
    %c0_406 = arith.constant 0 : index
    %c0_407 = arith.constant 0 : index
    %440 = vector.load %arg55[%c0_405, %c0_406, %c0_407] : memref<2x128x128xbf16, #tpu.memory_space<vmem>>, vector<1x128x128xbf16>
    %441 = vector.shape_cast %440 : vector<1x128x128xbf16> to vector<128x128xbf16>
    %cst_408 = arith.constant dense<0.000000e+00> : vector<8x128xf32>
    %442 = tpu.matmul %439, %441, %cst_408 {dimension_numbers = #tpu.dot_dimension_numbers<[1], [0], [0], [1], [0, 0, 1, 1], [], []>} : vector<8x128xbf16>, vector<128x128xbf16>, vector<8x128xf32> -> vector<8x128xf32>
    %443 = arith.truncf %442 : vector<8x128xf32> to vector<8x128xbf16>
    %c1_409 = arith.constant 1 : index
    %c0_410 = arith.constant 0 : index
    %c0_411 = arith.constant 0 : index
    %444 = vector.load %arg55[%c1_409, %c0_410, %c0_411] : memref<2x128x128xbf16, #tpu.memory_space<vmem>>, vector<1x128x128xbf16>
    %445 = vector.shape_cast %444 : vector<1x128x128xbf16> to vector<128x128xbf16>
    %cst_412 = arith.constant dense<0.000000e+00> : vector<8x128xf32>
    %446 = tpu.matmul %439, %445, %cst_412 {dimension_numbers = #tpu.dot_dimension_numbers<[1], [0], [0], [1], [0, 0, 1, 1], [], []>} : vector<8x128xbf16>, vector<128x128xbf16>, vector<8x128xf32> -> vector<8x128xf32>
    %447 = arith.truncf %446 : vector<8x128xf32> to vector<8x128xbf16>
    %c0_413 = arith.constant 0 : index
    %c0_414 = arith.constant 0 : index
    %c0_415 = arith.constant 0 : index
    %448 = vector.load %arg46[%c0_413, %c0_414, %c0_415] : memref<2x16x8xbf16, #tpu.memory_space<vmem>>, vector<1x16x8xbf16>
    %449 = vector.shape_cast %448 : vector<1x16x8xbf16> to vector<16x8xbf16>
    %cst_416 = arith.constant dense<0.000000e+00> : vector<16x128xf32>
    %450 = tpu.matmul %449, %443, %cst_416 {dimension_numbers = #tpu.dot_dimension_numbers<[1], [0], [0], [1], [0, 0, 1, 1], [], []>} : vector<16x8xbf16>, vector<8x128xbf16>, vector<16x128xf32> -> vector<16x128xf32>
    %c1_417 = arith.constant 1 : index
    %c0_418 = arith.constant 0 : index
    %c0_419 = arith.constant 0 : index
    %451 = vector.load %arg46[%c1_417, %c0_418, %c0_419] : memref<2x16x8xbf16, #tpu.memory_space<vmem>>, vector<1x16x8xbf16>
    %452 = vector.shape_cast %451 : vector<1x16x8xbf16> to vector<16x8xbf16>
    %cst_420 = arith.constant dense<0.000000e+00> : vector<16x128xf32>
    %453 = tpu.matmul %452, %447, %cst_420 {dimension_numbers = #tpu.dot_dimension_numbers<[1], [0], [0], [1], [0, 0, 1, 1], [], []>} : vector<16x8xbf16>, vector<8x128xbf16>, vector<16x128xf32> -> vector<16x128xf32>
    %454 = arith.addf %450, %453 : vector<16x128xf32>
    %c0_421 = arith.constant 0 : index
    %c0_422 = arith.constant 0 : index
    %455 = vector.load %arg56[%c0_421, %c0_422] : memref<1x128xf32, #tpu.memory_space<vmem>>, vector<1x128xf32>
    %456 = vector.broadcast %455 : vector<1x128xf32> to vector<16x128xf32>
    %457 = arith.addf %454, %456 : vector<16x128xf32>
    %458 = arith.truncf %457 : vector<16x128xf32> to vector<16x128xbf16>
    %459 = arith.truncf %51 : vector<16x128xf32> to vector<16x128xbf16>
    %c1_423 = arith.constant 1 : index
    %c0_424 = arith.constant 0 : index
    %c0_425 = arith.constant 0 : index
    %460 = vector.load %arg13[%c1_423, %c0_424, %c0_425] : memref<3x128x128xbf16, #tpu.memory_space<vmem>>, vector<1x128x128xbf16>
    %461 = vector.shape_cast %460 : vector<1x128x128xbf16> to vector<128x128xbf16>
    %cst_426 = arith.constant dense<0.000000e+00> : vector<16x128xf32>
    %462 = tpu.matmul %458, %461, %cst_426 {dimension_numbers = #tpu.dot_dimension_numbers<[1], [0], [0], [1], [0, 0, 1, 1], [], []>} : vector<16x128xbf16>, vector<128x128xbf16>, vector<16x128xf32> -> vector<16x128xf32>
    %c1_427 = arith.constant 1 : index
    %c0_428 = arith.constant 0 : index
    %c0_429 = arith.constant 0 : index
    %463 = vector.load %arg12[%c1_427, %c0_428, %c0_429] : memref<3x128x128xbf16, #tpu.memory_space<vmem>>, vector<1x128x128xbf16>
    %464 = vector.shape_cast %463 : vector<1x128x128xbf16> to vector<128x128xbf16>
    %cst_430 = arith.constant dense<0.000000e+00> : vector<16x128xf32>
    %465 = tpu.matmul %459, %464, %cst_430 {dimension_numbers = #tpu.dot_dimension_numbers<[1], [0], [0], [1], [0, 0, 1, 1], [], []>} : vector<16x128xbf16>, vector<128x128xbf16>, vector<16x128xf32> -> vector<16x128xf32>
    %466 = arith.addf %462, %465 : vector<16x128xf32>
    %c0_431 = arith.constant 0 : index
    %c0_432 = arith.constant 0 : index
    %c0_433 = arith.constant 0 : index
    %467 = vector.load %arg50[%c0_431, %c0_432, %c0_433] : memref<2x16x16xbf16, #tpu.memory_space<vmem>>, vector<1x16x16xbf16>
    %468 = vector.shape_cast %467 : vector<1x16x16xbf16> to vector<16x16xbf16>
    %cst_434 = arith.constant dense<0.000000e+00> : vector<16x128xf32>
    %469 = tpu.matmul %468, %458, %cst_434 {dimension_numbers = #tpu.dot_dimension_numbers<[1], [0], [0], [1], [0, 0, 1, 1], [], []>} : vector<16x16xbf16>, vector<16x128xbf16>, vector<16x128xf32> -> vector<16x128xf32>
    %470 = arith.truncf %469 : vector<16x128xf32> to vector<16x128xbf16>
    %c0_435 = arith.constant 0 : index
    %c0_436 = arith.constant 0 : index
    %c0_437 = arith.constant 0 : index
    %471 = vector.load %arg13[%c0_435, %c0_436, %c0_437] : memref<3x128x128xbf16, #tpu.memory_space<vmem>>, vector<1x128x128xbf16>
    %472 = vector.shape_cast %471 : vector<1x128x128xbf16> to vector<128x128xbf16>
    %cst_438 = arith.constant dense<0.000000e+00> : vector<16x128xf32>
    %473 = tpu.matmul %470, %472, %cst_438 {dimension_numbers = #tpu.dot_dimension_numbers<[1], [0], [0], [1], [0, 0, 1, 1], [], []>} : vector<16x128xbf16>, vector<128x128xbf16>, vector<16x128xf32> -> vector<16x128xf32>
    %c0_439 = arith.constant 0 : index
    %c0_440 = arith.constant 0 : index
    %c0_441 = arith.constant 0 : index
    %474 = vector.load %arg50[%c0_439, %c0_440, %c0_441] : memref<2x16x16xbf16, #tpu.memory_space<vmem>>, vector<1x16x16xbf16>
    %475 = vector.shape_cast %474 : vector<1x16x16xbf16> to vector<16x16xbf16>
    %cst_442 = arith.constant dense<0.000000e+00> : vector<16x128xf32>
    %476 = tpu.matmul %475, %459, %cst_442 {dimension_numbers = #tpu.dot_dimension_numbers<[1], [0], [0], [1], [0, 0, 1, 1], [], []>} : vector<16x16xbf16>, vector<16x128xbf16>, vector<16x128xf32> -> vector<16x128xf32>
    %477 = arith.truncf %476 : vector<16x128xf32> to vector<16x128xbf16>
    %c0_443 = arith.constant 0 : index
    %c0_444 = arith.constant 0 : index
    %c0_445 = arith.constant 0 : index
    %478 = vector.load %arg12[%c0_443, %c0_444, %c0_445] : memref<3x128x128xbf16, #tpu.memory_space<vmem>>, vector<1x128x128xbf16>
    %479 = vector.shape_cast %478 : vector<1x128x128xbf16> to vector<128x128xbf16>
    %cst_446 = arith.constant dense<0.000000e+00> : vector<16x128xf32>
    %480 = tpu.matmul %477, %479, %cst_446 {dimension_numbers = #tpu.dot_dimension_numbers<[1], [0], [0], [1], [0, 0, 1, 1], [], []>} : vector<16x128xbf16>, vector<128x128xbf16>, vector<16x128xf32> -> vector<16x128xf32>
    %481 = arith.addf %473, %480 : vector<16x128xf32>
    %482 = arith.addf %466, %481 : vector<16x128xf32>
    %c1_447 = arith.constant 1 : index
    %c0_448 = arith.constant 0 : index
    %c0_449 = arith.constant 0 : index
    %483 = vector.load %arg50[%c1_447, %c0_448, %c0_449] : memref<2x16x16xbf16, #tpu.memory_space<vmem>>, vector<1x16x16xbf16>
    %484 = vector.shape_cast %483 : vector<1x16x16xbf16> to vector<16x16xbf16>
    %cst_450 = arith.constant dense<0.000000e+00> : vector<16x128xf32>
    %485 = tpu.matmul %484, %458, %cst_450 {dimension_numbers = #tpu.dot_dimension_numbers<[1], [0], [0], [1], [0, 0, 1, 1], [], []>} : vector<16x16xbf16>, vector<16x128xbf16>, vector<16x128xf32> -> vector<16x128xf32>
    %486 = arith.truncf %485 : vector<16x128xf32> to vector<16x128xbf16>
    %c2_451 = arith.constant 2 : index
    %c0_452 = arith.constant 0 : index
    %c0_453 = arith.constant 0 : index
    %487 = vector.load %arg13[%c2_451, %c0_452, %c0_453] : memref<3x128x128xbf16, #tpu.memory_space<vmem>>, vector<1x128x128xbf16>
    %488 = vector.shape_cast %487 : vector<1x128x128xbf16> to vector<128x128xbf16>
    %cst_454 = arith.constant dense<0.000000e+00> : vector<16x128xf32>
    %489 = tpu.matmul %486, %488, %cst_454 {dimension_numbers = #tpu.dot_dimension_numbers<[1], [0], [0], [1], [0, 0, 1, 1], [], []>} : vector<16x128xbf16>, vector<128x128xbf16>, vector<16x128xf32> -> vector<16x128xf32>
    %c1_455 = arith.constant 1 : index
    %c0_456 = arith.constant 0 : index
    %c0_457 = arith.constant 0 : index
    %490 = vector.load %arg50[%c1_455, %c0_456, %c0_457] : memref<2x16x16xbf16, #tpu.memory_space<vmem>>, vector<1x16x16xbf16>
    %491 = vector.shape_cast %490 : vector<1x16x16xbf16> to vector<16x16xbf16>
    %cst_458 = arith.constant dense<0.000000e+00> : vector<16x128xf32>
    %492 = tpu.matmul %491, %459, %cst_458 {dimension_numbers = #tpu.dot_dimension_numbers<[1], [0], [0], [1], [0, 0, 1, 1], [], []>} : vector<16x16xbf16>, vector<16x128xbf16>, vector<16x128xf32> -> vector<16x128xf32>
    %493 = arith.truncf %492 : vector<16x128xf32> to vector<16x128xbf16>
    %c2_459 = arith.constant 2 : index
    %c0_460 = arith.constant 0 : index
    %c0_461 = arith.constant 0 : index
    %494 = vector.load %arg12[%c2_459, %c0_460, %c0_461] : memref<3x128x128xbf16, #tpu.memory_space<vmem>>, vector<1x128x128xbf16>
    %495 = vector.shape_cast %494 : vector<1x128x128xbf16> to vector<128x128xbf16>
    %cst_462 = arith.constant dense<0.000000e+00> : vector<16x128xf32>
    %496 = tpu.matmul %493, %495, %cst_462 {dimension_numbers = #tpu.dot_dimension_numbers<[1], [0], [0], [1], [0, 0, 1, 1], [], []>} : vector<16x128xbf16>, vector<128x128xbf16>, vector<16x128xf32> -> vector<16x128xf32>
    %497 = arith.addf %489, %496 : vector<16x128xf32>
    %498 = arith.addf %482, %497 : vector<16x128xf32>
    %c0_463 = arith.constant 0 : index
    %c0_464 = arith.constant 0 : index
    %499 = vector.load %arg14[%c0_463, %c0_464] : memref<1x128xf32, #tpu.memory_space<vmem>>, vector<1x128xf32>
    %500 = vector.broadcast %499 : vector<1x128xf32> to vector<16x128xf32>
    %501 = arith.addf %498, %500 : vector<16x128xf32>
    %cst_465 = arith.constant 0.000000e+00 : f32
    %502 = vector.broadcast %cst_465 : f32 to vector<16x128xf32>
    %503 = arith.maximumf %501, %502 : vector<16x128xf32>
    %504 = arith.truncf %503 : vector<16x128xf32> to vector<16x128xbf16>
    %c1_466 = arith.constant 1 : index
    %c0_467 = arith.constant 0 : index
    %c0_468 = arith.constant 0 : index
    %505 = vector.load %arg15[%c1_466, %c0_467, %c0_468] : memref<3x128x128xbf16, #tpu.memory_space<vmem>>, vector<1x128x128xbf16>
    %506 = vector.shape_cast %505 : vector<1x128x128xbf16> to vector<128x128xbf16>
    %cst_469 = arith.constant dense<0.000000e+00> : vector<16x128xf32>
    %507 = tpu.matmul %504, %506, %cst_469 {dimension_numbers = #tpu.dot_dimension_numbers<[1], [0], [0], [1], [0, 0, 1, 1], [], []>} : vector<16x128xbf16>, vector<128x128xbf16>, vector<16x128xf32> -> vector<16x128xf32>
    %c0_470 = arith.constant 0 : index
    %c0_471 = arith.constant 0 : index
    %c0_472 = arith.constant 0 : index
    %508 = vector.load %arg50[%c0_470, %c0_471, %c0_472] : memref<2x16x16xbf16, #tpu.memory_space<vmem>>, vector<1x16x16xbf16>
    %509 = vector.shape_cast %508 : vector<1x16x16xbf16> to vector<16x16xbf16>
    %cst_473 = arith.constant dense<0.000000e+00> : vector<16x128xf32>
    %510 = tpu.matmul %509, %504, %cst_473 {dimension_numbers = #tpu.dot_dimension_numbers<[1], [0], [0], [1], [0, 0, 1, 1], [], []>} : vector<16x16xbf16>, vector<16x128xbf16>, vector<16x128xf32> -> vector<16x128xf32>
    %511 = arith.truncf %510 : vector<16x128xf32> to vector<16x128xbf16>
    %c0_474 = arith.constant 0 : index
    %c0_475 = arith.constant 0 : index
    %c0_476 = arith.constant 0 : index
    %512 = vector.load %arg15[%c0_474, %c0_475, %c0_476] : memref<3x128x128xbf16, #tpu.memory_space<vmem>>, vector<1x128x128xbf16>
    %513 = vector.shape_cast %512 : vector<1x128x128xbf16> to vector<128x128xbf16>
    %cst_477 = arith.constant dense<0.000000e+00> : vector<16x128xf32>
    %514 = tpu.matmul %511, %513, %cst_477 {dimension_numbers = #tpu.dot_dimension_numbers<[1], [0], [0], [1], [0, 0, 1, 1], [], []>} : vector<16x128xbf16>, vector<128x128xbf16>, vector<16x128xf32> -> vector<16x128xf32>
    %515 = arith.addf %507, %514 : vector<16x128xf32>
    %c1_478 = arith.constant 1 : index
    %c0_479 = arith.constant 0 : index
    %c0_480 = arith.constant 0 : index
    %516 = vector.load %arg50[%c1_478, %c0_479, %c0_480] : memref<2x16x16xbf16, #tpu.memory_space<vmem>>, vector<1x16x16xbf16>
    %517 = vector.shape_cast %516 : vector<1x16x16xbf16> to vector<16x16xbf16>
    %cst_481 = arith.constant dense<0.000000e+00> : vector<16x128xf32>
    %518 = tpu.matmul %517, %504, %cst_481 {dimension_numbers = #tpu.dot_dimension_numbers<[1], [0], [0], [1], [0, 0, 1, 1], [], []>} : vector<16x16xbf16>, vector<16x128xbf16>, vector<16x128xf32> -> vector<16x128xf32>
    %519 = arith.truncf %518 : vector<16x128xf32> to vector<16x128xbf16>
    %c2_482 = arith.constant 2 : index
    %c0_483 = arith.constant 0 : index
    %c0_484 = arith.constant 0 : index
    %520 = vector.load %arg15[%c2_482, %c0_483, %c0_484] : memref<3x128x128xbf16, #tpu.memory_space<vmem>>, vector<1x128x128xbf16>
    %521 = vector.shape_cast %520 : vector<1x128x128xbf16> to vector<128x128xbf16>
    %cst_485 = arith.constant dense<0.000000e+00> : vector<16x128xf32>
    %522 = tpu.matmul %519, %521, %cst_485 {dimension_numbers = #tpu.dot_dimension_numbers<[1], [0], [0], [1], [0, 0, 1, 1], [], []>} : vector<16x128xbf16>, vector<128x128xbf16>, vector<16x128xf32> -> vector<16x128xf32>
    %523 = arith.addf %515, %522 : vector<16x128xf32>
    %c0_486 = arith.constant 0 : index
    %c0_487 = arith.constant 0 : index
    %524 = vector.load %arg16[%c0_486, %c0_487] : memref<1x128xf32, #tpu.memory_space<vmem>>, vector<1x128xf32>
    %525 = vector.broadcast %524 : vector<1x128xf32> to vector<16x128xf32>
    %526 = arith.addf %523, %525 : vector<16x128xf32>
    %cst_488 = arith.constant 0.000000e+00 : f32
    %527 = vector.broadcast %cst_488 : f32 to vector<16x128xf32>
    %528 = arith.maximumf %526, %527 : vector<16x128xf32>
    %529 = arith.truncf %528 : vector<16x128xf32> to vector<16x128xbf16>
    %c1_489 = arith.constant 1 : index
    %c0_490 = arith.constant 0 : index
    %c0_491 = arith.constant 0 : index
    %530 = vector.load %arg42[%c1_489, %c0_490, %c0_491] : memref<3x128x128xbf16, #tpu.memory_space<vmem>>, vector<1x128x128xbf16>
    %531 = vector.shape_cast %530 : vector<1x128x128xbf16> to vector<128x128xbf16>
    %cst_492 = arith.constant dense<0.000000e+00> : vector<16x128xf32>
    %532 = tpu.matmul %529, %531, %cst_492 {dimension_numbers = #tpu.dot_dimension_numbers<[1], [0], [0], [1], [0, 0, 1, 1], [], []>} : vector<16x128xbf16>, vector<128x128xbf16>, vector<16x128xf32> -> vector<16x128xf32>
    %c0_493 = arith.constant 0 : index
    %c0_494 = arith.constant 0 : index
    %c0_495 = arith.constant 0 : index
    %533 = vector.load %arg50[%c0_493, %c0_494, %c0_495] : memref<2x16x16xbf16, #tpu.memory_space<vmem>>, vector<1x16x16xbf16>
    %534 = vector.shape_cast %533 : vector<1x16x16xbf16> to vector<16x16xbf16>
    %cst_496 = arith.constant dense<0.000000e+00> : vector<16x128xf32>
    %535 = tpu.matmul %534, %529, %cst_496 {dimension_numbers = #tpu.dot_dimension_numbers<[1], [0], [0], [1], [0, 0, 1, 1], [], []>} : vector<16x16xbf16>, vector<16x128xbf16>, vector<16x128xf32> -> vector<16x128xf32>
    %536 = arith.truncf %535 : vector<16x128xf32> to vector<16x128xbf16>
    %c0_497 = arith.constant 0 : index
    %c0_498 = arith.constant 0 : index
    %c0_499 = arith.constant 0 : index
    %537 = vector.load %arg42[%c0_497, %c0_498, %c0_499] : memref<3x128x128xbf16, #tpu.memory_space<vmem>>, vector<1x128x128xbf16>
    %538 = vector.shape_cast %537 : vector<1x128x128xbf16> to vector<128x128xbf16>
    %cst_500 = arith.constant dense<0.000000e+00> : vector<16x128xf32>
    %539 = tpu.matmul %536, %538, %cst_500 {dimension_numbers = #tpu.dot_dimension_numbers<[1], [0], [0], [1], [0, 0, 1, 1], [], []>} : vector<16x128xbf16>, vector<128x128xbf16>, vector<16x128xf32> -> vector<16x128xf32>
    %540 = arith.addf %532, %539 : vector<16x128xf32>
    %c1_501 = arith.constant 1 : index
    %c0_502 = arith.constant 0 : index
    %c0_503 = arith.constant 0 : index
    %541 = vector.load %arg50[%c1_501, %c0_502, %c0_503] : memref<2x16x16xbf16, #tpu.memory_space<vmem>>, vector<1x16x16xbf16>
    %542 = vector.shape_cast %541 : vector<1x16x16xbf16> to vector<16x16xbf16>
    %cst_504 = arith.constant dense<0.000000e+00> : vector<16x128xf32>
    %543 = tpu.matmul %542, %529, %cst_504 {dimension_numbers = #tpu.dot_dimension_numbers<[1], [0], [0], [1], [0, 0, 1, 1], [], []>} : vector<16x16xbf16>, vector<16x128xbf16>, vector<16x128xf32> -> vector<16x128xf32>
    %544 = arith.truncf %543 : vector<16x128xf32> to vector<16x128xbf16>
    %c2_505 = arith.constant 2 : index
    %c0_506 = arith.constant 0 : index
    %c0_507 = arith.constant 0 : index
    %545 = vector.load %arg42[%c2_505, %c0_506, %c0_507] : memref<3x128x128xbf16, #tpu.memory_space<vmem>>, vector<1x128x128xbf16>
    %546 = vector.shape_cast %545 : vector<1x128x128xbf16> to vector<128x128xbf16>
    %cst_508 = arith.constant dense<0.000000e+00> : vector<16x128xf32>
    %547 = tpu.matmul %544, %546, %cst_508 {dimension_numbers = #tpu.dot_dimension_numbers<[1], [0], [0], [1], [0, 0, 1, 1], [], []>} : vector<16x128xbf16>, vector<128x128xbf16>, vector<16x128xf32> -> vector<16x128xf32>
    %548 = arith.addf %540, %547 : vector<16x128xf32>
    %c0_509 = arith.constant 0 : index
    %c0_510 = arith.constant 0 : index
    %549 = vector.load %arg43[%c0_509, %c0_510] : memref<1x128xf32, #tpu.memory_space<vmem>>, vector<1x128xf32>
    %550 = vector.broadcast %549 : vector<1x128xf32> to vector<16x128xf32>
    %551 = arith.addf %548, %550 : vector<16x128xf32>
    %c0_511 = arith.constant 0 : index
    %c0_512 = arith.constant 0 : index
    %c0_513 = arith.constant 0 : index
    %552 = vector.load %arg57[%c0_511, %c0_512, %c0_513] : memref<1x16x128xf32, #tpu.memory_space<vmem>>, vector<1x16x128xf32>
    %553 = vector.shape_cast %552 : vector<1x16x128xf32> to vector<16x128xf32>
    %554 = vector.shape_cast %551 : vector<16x128xf32> to vector<1x16x128xf32>
    tpu.vector_store %arg57[%c0_511, %c0_512, %c0_513], %554 {strides = array<i32>} : memref<1x16x128xf32, #tpu.memory_space<vmem>>, vector<1x16x128xf32>,
    return
  }
  func.func @transform_0(%arg0: i32) -> (i32, i32, i32) {
    %c0_i32 = arith.constant 0 : i32
    %c0_i32_0 = arith.constant 0 : i32
    %c0_i32_1 = arith.constant 0 : i32
    return %arg0, %c0_i32, %c0_i32_0 : i32, i32, i32
  }
  func.func @transform_1(%arg0: i32) -> (i32, i32, i32) {
    %c0_i32 = arith.constant 0 : i32
    %c0_i32_0 = arith.constant 0 : i32
    %c0_i32_1 = arith.constant 0 : i32
    %c0_i32_2 = arith.constant 0 : i32
    return %c0_i32, %c0_i32_0, %c0_i32_1 : i32, i32, i32
  }
  func.func @transform_2(%arg0: i32) -> (i32, i32, i32) {
    %c0_i32 = arith.constant 0 : i32
    %c0_i32_0 = arith.constant 0 : i32
    %c0_i32_1 = arith.constant 0 : i32
    %c0_i32_2 = arith.constant 0 : i32
    return %c0_i32, %c0_i32_0, %c0_i32_1 : i32, i32, i32
  }
  func.func @transform_3(%arg0: i32) -> (i32, i32) {
    %c0_i32 = arith.constant 0 : i32
    %c0_i32_0 = arith.constant 0 : i32
    %c0_i32_1 = arith.constant 0 : i32
    return %c0_i32, %c0_i32_0 : i32, i32
  }
  func.func @transform_4(%arg0: i32) -> (i32, i32, i32) {
    %c0_i32 = arith.constant 0 : i32
    %c0_i32_0 = arith.constant 0 : i32
    %c0_i32_1 = arith.constant 0 : i32
    %c0_i32_2 = arith.constant 0 : i32
    return %c0_i32, %c0_i32_0, %c0_i32_1 : i32, i32, i32
  }
  func.func @transform_5(%arg0: i32) -> (i32, i32) {
    %c0_i32 = arith.constant 0 : i32
    %c0_i32_0 = arith.constant 0 : i32
    %c0_i32_1 = arith.constant 0 : i32
    return %c0_i32, %c0_i32_0 : i32, i32
  }
  func.func @transform_6(%arg0: i32) -> (i32, i32, i32) {
    %c0_i32 = arith.constant 0 : i32
    %c0_i32_0 = arith.constant 0 : i32
    %c0_i32_1 = arith.constant 0 : i32
    %c0_i32_2 = arith.constant 0 : i32
    return %c0_i32, %c0_i32_0, %c0_i32_1 : i32, i32, i32
  }
  func.func @transform_7(%arg0: i32) -> (i32, i32, i32) {
    %c0_i32 = arith.constant 0 : i32
    %c0_i32_0 = arith.constant 0 : i32
    %c0_i32_1 = arith.constant 0 : i32
    %c0_i32_2 = arith.constant 0 : i32
    return %c0_i32, %c0_i32_0, %c0_i32_1 : i32, i32, i32
  }
  func.func @transform_8(%arg0: i32) -> (i32, i32) {
    %c0_i32 = arith.constant 0 : i32
    %c0_i32_0 = arith.constant 0 : i32
    %c0_i32_1 = arith.constant 0 : i32
    return %c0_i32, %c0_i32_0 : i32, i32
  }
  func.func @transform_9(%arg0: i32) -> (i32, i32, i32) {
    %c0_i32 = arith.constant 0 : i32
    %c0_i32_0 = arith.constant 0 : i32
    %c0_i32_1 = arith.constant 0 : i32
    %c0_i32_2 = arith.constant 0 : i32
    return %c0_i32, %c0_i32_0, %c0_i32_1 : i32, i32, i32
  }
  func.func @transform_10(%arg0: i32) -> (i32, i32) {
    %c0_i32 = arith.constant 0 : i32
    %c0_i32_0 = arith.constant 0 : i32
    %c0_i32_1 = arith.constant 0 : i32
    return %c0_i32, %c0_i32_0 : i32, i32
  }
  func.func @transform_11(%arg0: i32) -> (i32, i32, i32) {
    %c0_i32 = arith.constant 0 : i32
    %c0_i32_0 = arith.constant 0 : i32
    %c0_i32_1 = arith.constant 0 : i32
    %c0_i32_2 = arith.constant 0 : i32
    return %c0_i32, %c0_i32_0, %c0_i32_1 : i32, i32, i32
  }
  func.func @transform_12(%arg0: i32) -> (i32, i32, i32) {
    %c0_i32 = arith.constant 0 : i32
    %c0_i32_0 = arith.constant 0 : i32
    %c0_i32_1 = arith.constant 0 : i32
    %c0_i32_2 = arith.constant 0 : i32
    return %c0_i32, %c0_i32_0, %c0_i32_1 : i32, i32, i32
  }
  func.func @transform_13(%arg0: i32) -> (i32, i32) {
    %c0_i32 = arith.constant 0 : i32
    %c0_i32_0 = arith.constant 0 : i32
    %c0_i32_1 = arith.constant 0 : i32
    return %c0_i32, %c0_i32_0 : i32, i32
  }
  func.func @transform_14(%arg0: i32) -> (i32, i32, i32) {
    %c0_i32 = arith.constant 0 : i32
    %c0_i32_0 = arith.constant 0 : i32
    %c0_i32_1 = arith.constant 0 : i32
    %c0_i32_2 = arith.constant 0 : i32
    return %c0_i32, %c0_i32_0, %c0_i32_1 : i32, i32, i32
  }
  func.func @transform_15(%arg0: i32) -> (i32, i32) {
    %c0_i32 = arith.constant 0 : i32
    %c0_i32_0 = arith.constant 0 : i32
    %c0_i32_1 = arith.constant 0 : i32
    return %c0_i32, %c0_i32_0 : i32, i32
  }
  func.func @transform_16(%arg0: i32) -> (i32, i32, i32) {
    %c0_i32 = arith.constant 0 : i32
    %c0_i32_0 = arith.constant 0 : i32
    %c0_i32_1 = arith.constant 0 : i32
    %c0_i32_2 = arith.constant 0 : i32
    return %c0_i32, %c0_i32_0, %c0_i32_1 : i32, i32, i32
  }
  func.func @transform_17(%arg0: i32) -> (i32, i32) {
    %c0_i32 = arith.constant 0 : i32
    %c0_i32_0 = arith.constant 0 : i32
    %c0_i32_1 = arith.constant 0 : i32
    return %c0_i32, %c0_i32_0 : i32, i32
  }
  func.func @transform_18(%arg0: i32) -> (i32, i32, i32) {
    %c0_i32 = arith.constant 0 : i32
    %c0_i32_0 = arith.constant 0 : i32
    %c0_i32_1 = arith.constant 0 : i32
    %c0_i32_2 = arith.constant 0 : i32
    return %c0_i32, %c0_i32_0, %c0_i32_1 : i32, i32, i32
  }
  func.func @transform_19(%arg0: i32) -> (i32, i32) {
    %c0_i32 = arith.constant 0 : i32
    %c0_i32_0 = arith.constant 0 : i32
    %c0_i32_1 = arith.constant 0 : i32
    return %c0_i32, %c0_i32_0 : i32, i32
  }
  func.func @transform_20(%arg0: i32) -> (i32, i32, i32) {
    %c0_i32 = arith.constant 0 : i32
    %c0_i32_0 = arith.constant 0 : i32
    %c0_i32_1 = arith.constant 0 : i32
    %c0_i32_2 = arith.constant 0 : i32
    return %c0_i32, %c0_i32_0, %c0_i32_1 : i32, i32, i32
  }
  func.func @transform_21(%arg0: i32) -> (i32, i32) {
    %c0_i32 = arith.constant 0 : i32
    %c0_i32_0 = arith.constant 0 : i32
    %c0_i32_1 = arith.constant 0 : i32
    return %c0_i32, %c0_i32_0 : i32, i32
  }
  func.func @transform_22(%arg0: i32) -> (i32, i32, i32) {
    %c0_i32 = arith.constant 0 : i32
    %c0_i32_0 = arith.constant 0 : i32
    %c0_i32_1 = arith.constant 0 : i32
    %c0_i32_2 = arith.constant 0 : i32
    return %c0_i32, %c0_i32_0, %c0_i32_1 : i32, i32, i32
  }
  func.func @transform_23(%arg0: i32) -> (i32, i32) {
    %c0_i32 = arith.constant 0 : i32
    %c0_i32_0 = arith.constant 0 : i32
    %c0_i32_1 = arith.constant 0 : i32
    return %c0_i32, %c0_i32_0 : i32, i32
  }
  func.func @transform_24(%arg0: i32) -> (i32, i32, i32) {
    %c0_i32 = arith.constant 0 : i32
    %c0_i32_0 = arith.constant 0 : i32
    %c0_i32_1 = arith.constant 0 : i32
    %c0_i32_2 = arith.constant 0 : i32
    return %c0_i32, %c0_i32_0, %c0_i32_1 : i32, i32, i32
  }
  func.func @transform_25(%arg0: i32) -> (i32, i32) {
    %c0_i32 = arith.constant 0 : i32
    %c0_i32_0 = arith.constant 0 : i32
    %c0_i32_1 = arith.constant 0 : i32
    return %c0_i32, %c0_i32_0 : i32, i32
  }
  func.func @transform_26(%arg0: i32) -> (i32, i32, i32) {
    %c0_i32 = arith.constant 0 : i32
    %c0_i32_0 = arith.constant 0 : i32
    %c0_i32_1 = arith.constant 0 : i32
    %c0_i32_2 = arith.constant 0 : i32
    return %c0_i32, %c0_i32_0, %c0_i32_1 : i32, i32, i32
  }
  func.func @transform_27(%arg0: i32) -> (i32, i32) {
    %c0_i32 = arith.constant 0 : i32
    %c0_i32_0 = arith.constant 0 : i32
    %c0_i32_1 = arith.constant 0 : i32
    return %c0_i32, %c0_i32_0 : i32, i32
  }
  func.func @transform_28(%arg0: i32) -> (i32, i32, i32) {
    %c0_i32 = arith.constant 0 : i32
    %c0_i32_0 = arith.constant 0 : i32
    %c0_i32_1 = arith.constant 0 : i32
    %c0_i32_2 = arith.constant 0 : i32
    return %c0_i32, %c0_i32_0, %c0_i32_1 : i32, i32, i32
  }
  func.func @transform_29(%arg0: i32) -> (i32, i32) {
    %c0_i32 = arith.constant 0 : i32
    %c0_i32_0 = arith.constant 0 : i32
    %c0_i32_1 = arith.constant 0 : i32
    return %c0_i32, %c0_i32_0 : i32, i32
  }
  func.func @transform_30(%arg0: i32) -> (i32, i32, i32) {
    %c0_i32 = arith.constant 0 : i32
    %c0_i32_0 = arith.constant 0 : i32
    %c0_i32_1 = arith.constant 0 : i32
    %c0_i32_2 = arith.constant 0 : i32
    return %c0_i32, %c0_i32_0, %c0_i32_1 : i32, i32, i32
  }
  func.func @transform_31(%arg0: i32) -> (i32, i32) {
    %c0_i32 = arith.constant 0 : i32
    %c0_i32_0 = arith.constant 0 : i32
    %c0_i32_1 = arith.constant 0 : i32
    return %c0_i32, %c0_i32_0 : i32, i32
  }
  func.func @transform_32(%arg0: i32) -> (i32, i32, i32) {
    %c0_i32 = arith.constant 0 : i32
    %c0_i32_0 = arith.constant 0 : i32
    %c0_i32_1 = arith.constant 0 : i32
    %c0_i32_2 = arith.constant 0 : i32
    return %c0_i32, %c0_i32_0, %c0_i32_1 : i32, i32, i32
  }
  func.func @transform_33(%arg0: i32) -> (i32, i32) {
    %c0_i32 = arith.constant 0 : i32
    %c0_i32_0 = arith.constant 0 : i32
    %c0_i32_1 = arith.constant 0 : i32
    return %c0_i32, %c0_i32_0 : i32, i32
  }
  func.func @transform_34(%arg0: i32) -> (i32, i32, i32) {
    %c0_i32 = arith.constant 0 : i32
    %c0_i32_0 = arith.constant 0 : i32
    %c0_i32_1 = arith.constant 0 : i32
    %c0_i32_2 = arith.constant 0 : i32
    return %c0_i32, %c0_i32_0, %c0_i32_1 : i32, i32, i32
  }
  func.func @transform_35(%arg0: i32) -> (i32, i32, i32) {
    %c0_i32 = arith.constant 0 : i32
    %c0_i32_0 = arith.constant 0 : i32
    %c0_i32_1 = arith.constant 0 : i32
    %c0_i32_2 = arith.constant 0 : i32
    return %c0_i32, %c0_i32_0, %c0_i32_1 : i32, i32, i32
  }
  func.func @transform_36(%arg0: i32) -> (i32, i32, i32) {
    %c0_i32 = arith.constant 0 : i32
    %c0_i32_0 = arith.constant 0 : i32
    %c0_i32_1 = arith.constant 0 : i32
    %c0_i32_2 = arith.constant 0 : i32
    return %c0_i32, %c0_i32_0, %c0_i32_1 : i32, i32, i32
  }
  func.func @transform_37(%arg0: i32) -> (i32, i32, i32) {
    %c0_i32 = arith.constant 0 : i32
    %c0_i32_0 = arith.constant 0 : i32
    %c0_i32_1 = arith.constant 0 : i32
    %c0_i32_2 = arith.constant 0 : i32
    return %c0_i32, %c0_i32_0, %c0_i32_1 : i32, i32, i32
  }
  func.func @transform_38(%arg0: i32) -> (i32, i32) {
    %c0_i32 = arith.constant 0 : i32
    %c0_i32_0 = arith.constant 0 : i32
    %c0_i32_1 = arith.constant 0 : i32
    return %c0_i32, %c0_i32_0 : i32, i32
  }
  func.func @transform_39(%arg0: i32) -> (i32, i32, i32) {
    %c0_i32 = arith.constant 0 : i32
    %c0_i32_0 = arith.constant 0 : i32
    %c0_i32_1 = arith.constant 0 : i32
    %c0_i32_2 = arith.constant 0 : i32
    return %c0_i32, %c0_i32_0, %c0_i32_1 : i32, i32, i32
  }
  func.func @transform_40(%arg0: i32) -> (i32, i32) {
    %c0_i32 = arith.constant 0 : i32
    %c0_i32_0 = arith.constant 0 : i32
    %c0_i32_1 = arith.constant 0 : i32
    return %c0_i32, %c0_i32_0 : i32, i32
  }
  func.func @transform_41(%arg0: i32) -> (i32, i32, i32) {
    %c0_i32 = arith.constant 0 : i32
    %c0_i32_0 = arith.constant 0 : i32
    %c0_i32_1 = arith.constant 0 : i32
    %c0_i32_2 = arith.constant 0 : i32
    return %c0_i32, %c0_i32_0, %c0_i32_1 : i32, i32, i32
  }
  func.func @transform_42(%arg0: i32) -> (i32, i32) {
    %c0_i32 = arith.constant 0 : i32
    %c0_i32_0 = arith.constant 0 : i32
    %c0_i32_1 = arith.constant 0 : i32
    return %c0_i32, %c0_i32_0 : i32, i32
  }
  func.func @transform_43(%arg0: i32) -> (i32, i32, i32) {
    %c0_i32 = arith.constant 0 : i32
    %c0_i32_0 = arith.constant 0 : i32
    %c0_i32_1 = arith.constant 0 : i32
    %c0_i32_2 = arith.constant 0 : i32
    return %c0_i32, %c0_i32_0, %c0_i32_1 : i32, i32, i32
  }
  func.func @transform_44(%arg0: i32) -> (i32, i32, i32) {
    %c0_i32 = arith.constant 0 : i32
    %c0_i32_0 = arith.constant 0 : i32
    %c0_i32_1 = arith.constant 0 : i32
    %c0_i32_2 = arith.constant 0 : i32
    return %c0_i32, %c0_i32_0, %c0_i32_1 : i32, i32, i32
  }
  func.func @transform_45(%arg0: i32) -> (i32, i32, i32) {
    %c0_i32 = arith.constant 0 : i32
    %c0_i32_0 = arith.constant 0 : i32
    %c0_i32_1 = arith.constant 0 : i32
    %c0_i32_2 = arith.constant 0 : i32
    return %c0_i32, %c0_i32_0, %c0_i32_1 : i32, i32, i32
  }
  func.func @transform_46(%arg0: i32) -> (i32, i32, i32) {
    %c0_i32 = arith.constant 0 : i32
    %c0_i32_0 = arith.constant 0 : i32
    %c0_i32_1 = arith.constant 0 : i32
    %c0_i32_2 = arith.constant 0 : i32
    return %c0_i32, %c0_i32_0, %c0_i32_1 : i32, i32, i32
  }
  func.func @transform_47(%arg0: i32) -> (i32, i32, i32) {
    %c0_i32 = arith.constant 0 : i32
    %c0_i32_0 = arith.constant 0 : i32
    %c0_i32_1 = arith.constant 0 : i32
    %c0_i32_2 = arith.constant 0 : i32
    return %c0_i32, %c0_i32_0, %c0_i32_1 : i32, i32, i32
  }
  func.func @transform_48(%arg0: i32) -> (i32, i32, i32) {
    %c0_i32 = arith.constant 0 : i32
    %c0_i32_0 = arith.constant 0 : i32
    %c0_i32_1 = arith.constant 0 : i32
    %c0_i32_2 = arith.constant 0 : i32
    return %c0_i32, %c0_i32_0, %c0_i32_1 : i32, i32, i32
  }
  func.func @transform_49(%arg0: i32) -> (i32, i32, i32) {
    %c0_i32 = arith.constant 0 : i32
    %c0_i32_0 = arith.constant 0 : i32
    %c0_i32_1 = arith.constant 0 : i32
    %c0_i32_2 = arith.constant 0 : i32
    return %c0_i32, %c0_i32_0, %c0_i32_1 : i32, i32, i32
  }
  func.func @transform_50(%arg0: i32) -> (i32, i32, i32) {
    %c0_i32 = arith.constant 0 : i32
    %c0_i32_0 = arith.constant 0 : i32
    %c0_i32_1 = arith.constant 0 : i32
    %c0_i32_2 = arith.constant 0 : i32
    return %c0_i32, %c0_i32_0, %c0_i32_1 : i32, i32, i32
  }
  func.func @transform_51(%arg0: i32) -> (i32, i32) {
    %c0_i32 = arith.constant 0 : i32
    %c0_i32_0 = arith.constant 0 : i32
    %c0_i32_1 = arith.constant 0 : i32
    return %c0_i32, %c0_i32_0 : i32, i32
  }
  func.func @transform_52(%arg0: i32) -> (i32, i32, i32) {
    %c0_i32 = arith.constant 0 : i32
    %c0_i32_0 = arith.constant 0 : i32
    %c0_i32_1 = arith.constant 0 : i32
    %c0_i32_2 = arith.constant 0 : i32
    return %c0_i32, %c0_i32_0, %c0_i32_1 : i32, i32, i32
  }
  func.func @transform_53(%arg0: i32) -> (i32, i32) {
    %c0_i32 = arith.constant 0 : i32
    %c0_i32_0 = arith.constant 0 : i32
    %c0_i32_1 = arith.constant 0 : i32
    return %c0_i32, %c0_i32_0 : i32, i32
  }
  func.func @transform_54(%arg0: i32) -> (i32, i32, i32) {
    %c0_i32 = arith.constant 0 : i32
    %c0_i32_0 = arith.constant 0 : i32
    %c0_i32_1 = arith.constant 0 : i32
    %c0_i32_2 = arith.constant 0 : i32
    return %c0_i32, %c0_i32_0, %c0_i32_1 : i32, i32, i32
  }
  func.func @transform_55(%arg0: i32) -> (i32, i32) {
    %c0_i32 = arith.constant 0 : i32
    %c0_i32_0 = arith.constant 0 : i32
    %c0_i32_1 = arith.constant 0 : i32
    return %c0_i32, %c0_i32_0 : i32, i32
  }
  func.func @transform_56(%arg0: i32) -> (i32, i32, i32) {
    %c0_i32 = arith.constant 0 : i32
    %c0_i32_0 = arith.constant 0 : i32
    %c0_i32_1 = arith.constant 0 : i32
    return %arg0, %c0_i32, %c0_i32_0 : i32, i32, i32
  }
}

</mosaic_0001>

<bundles_post_ra>
// kernel: forward.1
= control target key start
LH: loop header
LB: loop body
LE: loop exit
PB: predicated region body
PF: predicated region fallthrough
CT: control target
= control target key end

     0   :  { %s17123_s6 = smov 1   ;;  %s17124_s10 = smov 2   ;;  %s19304_s0 = inlined_call_operand.smem [shape: u32[57], index: -1, kind: input, shape index: {}] }
   0x1   :  { %s17237_s5 = sld [smem:[%s19304_s0]]   ;;  %s17125_s14 = smov 3  }
   0x2   :  { %s17242_s9 = sld [smem:[%s19304_s0 + %s17123_s6]]   ;;  %s17126_s18 = smov 4  }
   0x3   :  { %s17247_s13 = sld [smem:[%s19304_s0 + %s17124_s10]]   ;;  %s17127_s22 = smov 5  }
   0x4   :  { %s17252_s17 = sld [smem:[%s19304_s0 + %s17125_s14]]   ;;  %s17128_s26 = smov 6  }
   0x5   :  { %s17257_s21 = sld [smem:[%s19304_s0 + %s17126_s18]]   ;;  %s17129_s30 = smov 7  }
   0x6   :  { %s17262_s25 = sld [smem:[%s19304_s0 + %s17127_s22]]   ;;  %s17130_s4 = smov 8  }
   0x7   :  { %19367 = sst [smem:[#allocation88_spill]] %s17237_s5  ;;  %s17131_s10 = smov 9  }
   0x8   :  { %19368 = sst [smem:[#allocation89_spill]] %s17242_s9  ;;  %s17132_s15 = smov 10  }
   0x9   :  { %19369 = sst [smem:[#allocation90_spill]] %s17247_s13  ;;  %s17133_s20 = smov 11  }
   0xa   :  { %19370 = sst [smem:[#allocation91_spill]] %s17252_s17  ;;  %s17135_s1 = smov 13  }
   0xb   :  { %s17267_s29 = sld [smem:[%s19304_s0 + %s17128_s26]]   ;;  %s17134_s26 = smov 12  }
   0xc   :  { %19371 = sst [smem:[#allocation92_spill]] %s17262_s25  ;;  %s17136_s7 = smov 14  }
   0xd   :  { %s17272_s3 = sld [smem:[%s19304_s0 + %s17129_s30]]   ;;  %s17138_s22 = smov 16  }
   0xe   :  { %s17277_s8 = sld [smem:[%s19304_s0 + %s17130_s4]]   ;;  %s17139_s28 = smov 17  }
   0xf   :  { %s17282_s14 = sld [smem:[%s19304_s0 + %s17131_s10]]  }
  0x10   :  { %s17287_s19 = sld [smem:[%s19304_s0 + %s17132_s15]]   ;;  %s17137_s15 = smov 15  }
  0x11   :  { %s17292_s24 = sld [smem:[%s19304_s0 + %s17133_s20]]  }
  0x12   :  { %s17297_s30 = sld [smem:[%s19304_s0 + %s17134_s26]]  }
  0x13   :  { %19372 = sst [smem:[#allocation93_spill]] %s17272_s3 }
  0x14   :  { %19373 = sst [smem:[#allocation94_spill]] %s17277_s8 }
  0x15   :  { %19374 = sst [smem:[#allocation95_spill]] %s17282_s14 }
  0x16   :  { %s17302_s6 = sld [smem:[%s19304_s0 + %s17135_s1]]  }
  0x17   :  { %19375 = sst [smem:[#allocation96_spill]] %s17292_s24 }
  0x18   :  { %19376 = sst [smem:[#allocation97_spill]] %s17297_s30 }
  0x19   :  { %s17307_s12 = sld [smem:[%s19304_s0 + %s17136_s7]]   ;;  %s17140_s7 = smov 18  }
  0x1a   :  { %s17312_s20 = sld [smem:[%s19304_s0 + %s17137_s15]]   ;;  %s17141_s15 = smov 19  }
  0x1b   :  { %s17317_s27 = sld [smem:[%s19304_s0 + %s17138_s22]]   ;;  %s17142_s22 = smov 20  }
  0x1c   :  { %19377 = sst [smem:[#allocation98_spill]] %s17302_s6 }
  0x1d   :  { %s17322_s4 = sld [smem:[%s19304_s0 + %s17139_s28]]   ;;  %s17143_s28 = smov 21  }
  0x1e   :  { %s17327_s6 = sld [smem:[%s19304_s0 + %s17140_s7]]   ;;  %s17144_s7 = smov 22  }
  0x1f   :  { %19378 = sst [smem:[#allocation99_spill]] %s17307_s12 }
  0x20   :  { %19379 = sst [smem:[#allocation100_spill]] %s17312_s20 }
  0x21   :  { %19380 = sst [smem:[#allocation101_spill]] %s17317_s27 }
  0x22   :  { %s17332_s20 = sld [smem:[%s19304_s0 + %s17141_s15]]   ;;  %s17145_s15 = smov 23  }
  0x23   :  { %19381 = sst [smem:[#allocation102_spill]] %s17322_s4 }
  0x24   :  { %19382 = sst [smem:[#allocation103_spill]] %s17327_s6 }
  0x25   :  { %s17337_s24 = sld [smem:[%s19304_s0 + %s17142_s22]]   ;;  %s17146_s22 = smov 24  }
  0x26   :  { %s17342_s9 = sld [smem:[%s19304_s0 + %s17143_s28]]   ;;  %s17147_s28 = smov 25  }
  0x27   :  { %s17347_s13 = sld [smem:[%s19304_s0 + %s17144_s7]]   ;;  %s17148_s7 = smov 26  }
  0x28   :  { %19383 = sst [smem:[#allocation104_spill]] %s17332_s20 }
  0x29   :  { %s17352_s20 = sld [smem:[%s19304_s0 + %s17145_s15]]   ;;  %s17149_s15 = smov 27  }
  0x2a   :  { %s17357_s4 = sld [smem:[%s19304_s0 + %s17146_s22]]   ;;  %s17150_s22 = smov 28  }
  0x2b   :  { %19384 = sst [smem:[#allocation105_spill]] %s17337_s24 }
  0x2c   :  { %19385 = sst [smem:[#allocation106_spill]] %s17342_s9 }
  0x2d   :  { %19386 = sst [smem:[#allocation107_spill]] %s17347_s13 }
  0x2e   :  { %s17362_s9 = sld [smem:[%s19304_s0 + %s17147_s28]]   ;;  %s17151_s28 = smov 29  }
  0x2f   :  { %19387 = sst [smem:[#allocation108_spill]] %s17352_s20 }
  0x30   :  { %19388 = sst [smem:[#allocation109_spill]] %s17357_s4 }
  0x31   :  { %s17367_s5 = sld [smem:[%s19304_s0 + %s17148_s7]]   ;;  %s17152_s7 = smov 30  }
  0x32   :  { %s17372_s20 = sld [smem:[%s19304_s0 + %s17149_s15]]   ;;  %s17153_s15 = smov 31  }
  0x33   :  { %s17377_s4 = sld [smem:[%s19304_s0 + %s17150_s22]]   ;;  %s17154_s22 = smov 32  }
  0x34   :  { %19389 = sst [smem:[#allocation110_spill]] %s17362_s9 }
  0x35   :  { %s17382_s24 = sld [smem:[%s19304_s0 + %s17151_s28]]   ;;  %s17155_s28 = smov 33  }
  0x36   :  { %s17392_s27 = sld [smem:[%s19304_s0 + %s17153_s15]]   ;;  %s17157_s15 = smov 35  }
  0x37   :  { %19390 = sst [smem:[#allocation111_spill]] %s17367_s5 }
  0x38   :  { %s17387_s5 = sld [smem:[%s19304_s0 + %s17152_s7]]   ;;  %s17156_s7 = smov 34  }
  0x39   :  { %19391 = sst [smem:[#allocation112_spill]] %s17377_s4 }
  0x3a   :  { %s17397_s4 = sld [smem:[%s19304_s0 + %s17154_s22]]   ;;  %s17158_s22 = smov 36  }
  0x3b   :  { %s17402_s30 = sld [smem:[%s19304_s0 + %s17155_s28]]   ;;  %s17159_s28 = smov 37  }
  0x3c   :  { %s17412_s14 = sld [smem:[%s19304_s0 + %s17157_s15]]   ;;  %s17161_s15 = smov 39  }
  0x3d   :  { %s17422_s3 = sld [smem:[%s19304_s0 + %s17159_s28]]   ;;  %s17163_s28 = smov 41  }
  0x3e   :  { %19392 = sst [smem:[#allocation113_spill]] %s17387_s5 }
  0x3f   :  { %s17407_s5 = sld [smem:[%s19304_s0 + %s17156_s7]]   ;;  %s17160_s7 = smov 38  }
  0x40   :  { %19393 = sst [smem:[#allocation114_spill]] %s17397_s4 }
  0x41   :  { %s17417_s4 = sld [smem:[%s19304_s0 + %s17158_s22]]   ;;  %s17162_s22 = smov 40  }
  0x42   :  { %19395 = sst [smem:[#allocation116_spill]] %s17412_s14 }
  0x43   :  { %19397 = sst [smem:[#allocation118_spill]] %s17422_s3 }
  0x44   :  { %s17432_s14 = sld [smem:[%s19304_s0 + %s17161_s15]]   ;;  %s17165_s15 = smov 43  }
  0x45   :  { %19394 = sst [smem:[#allocation115_spill]] %s17407_s5 }
  0x46   :  { %s17427_s5 = sld [smem:[%s19304_s0 + %s17160_s7]]   ;;  %s17164_s7 = smov 42  }
  0x47   :  { %19396 = sst [smem:[#allocation117_spill]] %s17417_s4 }
  0x48   :  { %s17437_s25 = sld [smem:[%s19304_s0 + %s17162_s22]]   ;;  %s17166_s22 = smov 44  }
  0x49   :  { %s17442_s3 = sld [smem:[%s19304_s0 + %s17163_s28]]   ;;  %s17167_s28 = smov 45  }
  0x4a   :  { %19399 = sst [smem:[#allocation120_spill]] %s17432_s14 }
  0x4b   :  { %s17447_s17 = sld [smem:[%s19304_s0 + %s17164_s7]]   ;;  %s17168_s7 = smov 46  }
  0x4c   :  { %19398 = sst [smem:[#allocation119_spill]] %s17427_s5 }
  0x4d   :  { %s17452_s14 = sld [smem:[%s19304_s0 + %s17165_s15]]   ;;  %s17169_s15 = smov 47  }
  0x4e   :  { %19400 = sst [smem:[#allocation121_spill]] %s17437_s25 }
  0x4f   :  { %19401 = sst [smem:[#allocation122_spill]] %s17442_s3 }
  0x50   :  { %s17457_s25 = sld [smem:[%s19304_s0 + %s17166_s22]]   ;;  %s17170_s22 = smov 48  }
  0x51   :  { %19402 = sst [smem:[#allocation123_spill]] %s17447_s17 }
  0x52   :  { %s17462_s3 = sld [smem:[%s19304_s0 + %s17167_s28]]   ;;  %s17171_s28 = smov 49  }
  0x53   :  { %19403 = sst [smem:[#allocation124_spill]] %s17452_s14 }
  0x54   :  { %s17467_s17 = sld [smem:[%s19304_s0 + %s17168_s7]]   ;;  %s17172_s7 = smov 50  }
  0x55   :  { %s17472_s14 = sld [smem:[%s19304_s0 + %s17169_s15]]   ;;  %s17173_s15 = smov 51  }
  0x56   :  { %19404 = sst [smem:[#allocation125_spill]] %s17457_s25 }
  0x57   :  { %s17477_s25 = sld [smem:[%s19304_s0 + %s17170_s22]]   ;;  %s17174_s22 = smov 52  }
  0x58   :  { %19405 = sst [smem:[#allocation126_spill]] %s17462_s3 }
  0x59   :  { %s17482_s3 = sld [smem:[%s19304_s0 + %s17171_s28]]   ;;  %s17175_s28 = smov 53  }
  0x5a   :  { %19406 = sst [smem:[#allocation127_spill]] %s17467_s17 }
  0x5b   :  { %19407 = sst [smem:[#allocation128_spill]] %s17472_s14 }
  0x5c   :  { %s17487_s17 = sld [smem:[%s19304_s0 + %s17172_s7]]   ;;  %s17176_s7 = smov 54  }
  0x5d   :  { %19408 = sst [smem:[#allocation129_spill]] %s17477_s25 }
  0x5e   :  { %s17492_s14 = sld [smem:[%s19304_s0 + %s17173_s15]]   ;;  %s17177_s15 = smov 55  }
  0x5f   :  { %19409 = sst [smem:[#allocation130_spill]] %s17482_s3 }
  0x60   :  { %s17497_s25 = sld [smem:[%s19304_s0 + %s17174_s22]]   ;;  %s17178_s22 = smov 56  }
  0x61   :  { %s17502_s3 = sld [smem:[%s19304_s0 + %s17175_s28]]  }
  0x62   :  { %19410 = sst [smem:[#allocation131_spill]] %s17487_s17 }
  0x63   :  { %s17507_s17 = sld [smem:[%s19304_s0 + %s17176_s7]]  }
  0x64   :  { %19411 = sst [smem:[#allocation132_spill]] %s17492_s14 }
  0x65   :  { %s17512_s14 = sld [smem:[%s19304_s0 + %s17177_s15]]  }
  0x66   :  { %19412 = sst [smem:[#allocation133_spill]] %s17497_s25 }
  0x67   :  { %19413 = sst [smem:[#allocation134_spill]] %s17502_s3 }
  0x68   :  { %s17517_s25 = sld [smem:[%s19304_s0 + %s17178_s22]]  }
  0x69   :  { %118 = vsyncpa [#allocation3], 0 }
  0x6a   :  { %119 = vsyncpa [#allocation5], 0 }
  0x6b   :  { %120 = vsyncpa [#allocation8], 0 }
  0x6c   :  { %121 = vsyncpa [#allocation11], 0 }
  0x6d   :  { %122 = vsyncpa [#allocation14], 0 }
  0x6e   :  { %123 = vsyncpa [#allocation17], 0 }
  0x6f   :  { %124 = vsyncpa [#allocation20], 0 }
  0x70   :  { %125 = vsyncpa [#allocation23], 0 }
  0x71   :  { %126 = vsyncpa [#allocation26], 0 }
  0x72   :  { %127 = vsyncpa [#allocation29], 0 }
  0x73   :  { %128 = vsyncpa [#allocation32], 0 }
  0x74   :  { %129 = vsyncpa [#allocation35], 0 }
  0x75   :  { %130 = vsyncpa [#allocation38], 0 }
  0x76   :  { %131 = vsyncpa [#allocation41], 0 }
  0x77   :  { %132 = vsyncpa [#allocation44], 0 }
  0x78   :  { %133 = vsyncpa [#allocation47], 0 }
  0x79   :  { %134 = vsyncpa [#allocation50], 0 }
  0x7a   :  { %135 = vsyncpa [#allocation53], 0 }
  0x7b   :  { %136 = vsyncpa [#allocation56], 0 }
  0x7c   :  { %137 = vsyncpa [#allocation59], 0 }
  0x7d   :  { %138 = vsyncpa [#allocation62], 0 }
  0x7e   :  { %139 = vsyncpa [#allocation65], 0  ;;  %s17519_s0 = smov 0  }
  0x7f LB: > { %s19414_s13 = sld [smem:[#allocation107_spill]]  ;;  %s19416_s3 = sld [smem:[#allocation134_spill]]  ;;  %s17121_s0 = sphi %s17519_s0, %s145_s0  }
  0x80   : > { %s19415_s12 = sld [smem:[#allocation99_spill]]  ;;  %s19417_s9 = sld [smem:[#allocation110_spill]] }
  0x81   : > { %s19418_s8 = sld [smem:[#allocation94_spill]]  ;;  %s19419_s6 = sld [smem:[#allocation103_spill]] }
  0x82   : > { %s19420_s5 = sld [smem:[#allocation119_spill]]  ;;  %s19421_s4 = sld [smem:[#allocation117_spill]] }
  0x83   : > { %s17525_s28 = sadd.s32 4294967295, %s17121_s0   ;;  %p11991_p0 = scmp.ge.s32.totalorder %s17121_s0, 1 }
  0x84   : > { %p1357_p1 = scmp.lt.s32.totalorder %s17121_s0, 3 }
  0x86   : > { %p17529_p2 = pnand %p11991_p0, %p1357_p1 }
  0x87   : > { %p15209_p3 = scmp.eq.s32.totalorder (!%p17529_p2), %s17525_s28, 0  ;;  %s17179_s2 = smov (!%p17529_p2), [#allocation4]  }
  0x88   : > { %1361 = sbr.rel (%p17529_p2) target bundleno = 1161 (0x489), region = 12  ;;  %s1386_s7 = sshll.u32 (!%p17529_p2), %s17179_s2, 4  ;;  %s1387_s7 = int_to_ptr.vmem [resolvable:$true] %s1386_s7 }
  0x89   : > { %s15935_s10 = scalar_lea.hbm (!%p17529_p2), %s17257_s21, 3072 }
  0x8a   : > { %p15936_p4 = scmp.ne.s32.totalorder (!%p17529_p2), %s17257_s21, %s15935_s10  ;;  %p15941_p7 = scmp.lt.u32.totalorder (!%p17529_p2), %s15935_s10, %s17257_s21 }
  0x8c   : > { %p15937_p5 = pnand (!%p17529_p2), %p15936_p4, %p15209_p3 }
  0x8e   : > { %p15938_p6 = pneg (!%p17529_p2), %p15937_p5 }
  0x90   : > { %p15943_p8 = pnand %p15941_p7, %p15938_p6 }
  0x92   : > { %15946 = shalt.err (!%p15943_p8)
}
  0x93   : > { %s15947_s11 = scalar_lea.vmem %s1387_s7, 3072  ;;  %p15954_p12 = scmp.lt.s32.totalorder %s1387_s7, %s1387_s7 }
  0x94   : > { %p15948_p9 = scmp.ne.s32.totalorder %s1387_s7, %s15947_s11  ;;  %p15955_p13 = scmp.lt.s32.totalorder %s15947_s11, %s15947_s11 }
  0x96   : > { %p15949_p10 = pnand %p15948_p9, %p15209_p3  ;;  %p15956_p0 = por %p15955_p13, %p15954_p12 }
  0x98   : > { %p15950_p11 = pneg %p15949_p10 }
  0x9a   : > { %p15957_p1 = pnand %p15956_p0, %p15950_p11 }
  0x9c   : > { %15960 = shalt.err (!%p15957_p1)
}
  0x9d   : > { %s19337_s15 = smov 64   ;;  %s19339_s16 = smov 4  }
  0x9e   : > { %15044 = dma.hbm_to_vmem [thread:$0]  (%p15209_p3), %s17257_s21, 3072, %s1387_s7, [#allocation5], %s19337_s15, %s19337_s15, %s19339_s16  }
  0x9f   : > { %s17182_s18 = smov [#allocation7]   ;;  %s17183_s23 = smov [#allocation10]  }
  0xa0   : > { %s1410_s22 = sshll.u32 %s17182_s18, 4  ;;  %s1437_s26 = sshll.u32 %s17183_s23, 4  ;;  %s1411_s22 = int_to_ptr.vmem [resolvable:$true] %s1410_s22  ;;  %s17549_s26 = int_to_ptr.vmem [resolvable:$true] %s1437_s26 }
  0xa1   : > { %s15961_s2 = scalar_lea.hbm %s17267_s29, 3072 }
  0xa2   : > { %p15962_p4 = scmp.ne.s32.totalorder %s17267_s29, %s15961_s2  ;;  %p15967_p7 = scmp.lt.u32.totalorder %s15961_s2, %s17267_s29 }
  0xa4   : > { %p15963_p5 = pnand %p15962_p4, %p15209_p3 }
  0xa6   : > { %p15964_p6 = pneg %p15963_p5 }
  0xa8   : > { %p15969_p8 = pnand %p15967_p7, %p15964_p6 }
  0xaa   : > { %15972 = shalt.err (!%p15969_p8)
}
  0xab   : > { %s15973_s10 = scalar_lea.vmem %s1411_s22, 3072  ;;  %p15980_p12 = scmp.lt.s32.totalorder %s1411_s22, %s1411_s22 }
  0xac   : > { %p15974_p9 = scmp.ne.s32.totalorder %s1411_s22, %s15973_s10  ;;  %p15981_p13 = scmp.lt.s32.totalorder %s15973_s10, %s15973_s10 }
  0xae   : > { %p15975_p10 = pnand %p15974_p9, %p15209_p3  ;;  %p15982_p0 = por %p15981_p13, %p15980_p12 }
  0xb0   : > { %p15976_p11 = pneg %p15975_p10 }
  0xb2   : > { %p15983_p1 = pnand %p15982_p0, %p15976_p11 }
  0xb4   : > { %15986 = shalt.err (!%p15983_p1)
}
  0xb5   : > { %15048 = dma.hbm_to_vmem [thread:$0]  (%p15209_p3), %s17267_s29, 3072, %s1411_s22, [#allocation8], %s19337_s15, %s19337_s15, %s19339_s16  }
  0xb6   : > { %s15987_s7 = scalar_lea.hbm %s19418_s8, 16 }
  0xb7   : > { %p15988_p4 = scmp.ne.s32.totalorder %s19418_s8, %s15987_s7  ;;  %p15993_p7 = scmp.lt.u32.totalorder %s15987_s7, %s19418_s8 }
  0xb9   : > { %p15989_p5 = pnand %p15988_p4, %p15209_p3 }
  0xbb   : > { %p15990_p6 = pneg %p15989_p5 }
  0xbd   : > { %p15995_p8 = pnand %p15993_p7, %p15990_p6 }
  0xbf   : > { %15998 = shalt.err (!%p15995_p8)
}
  0xc0   : > { %s15999_s11 = scalar_lea.vmem %s17549_s26, 16  ;;  %s16005_s18 = scalar_lea.vmem %s17549_s26, 32 }
  0xc1   : > { %p16000_p9 = scmp.ne.s32.totalorder %s17549_s26, %s15999_s11  ;;  %p16006_p12 = scmp.lt.s32.totalorder %s17549_s26, %s17549_s26 }
  0xc2   : > { %p16007_p13 = scmp.lt.s32.totalorder %s16005_s18, %s15999_s11 }
  0xc3   : > { %p16001_p10 = pnand %p16000_p9, %p15209_p3 }
  0xc4   : > { %p16008_p0 = por %p16007_p13, %p16006_p12 }
  0xc5   : > { %p16002_p11 = pneg %p16001_p10 }
  0xc7   : > { %p16009_p1 = pnand %p16008_p0, %p16002_p11 }
  0xc9   : > { %16012 = shalt.err (!%p16009_p1)
}
  0xca   : > { %15052 = dma.hbm_to_vmem [thread:$0]  (%p15209_p3), %s19418_s8, 16, %s17549_s26, [#allocation11]  }
  0xcb   : > { %s17184_s22 = smov [#allocation13]   ;;  %s17185_s2 = smov [#allocation16]  }
  0xcc   : > { %s1461_s23 = sshll.u32 %s17184_s22, 4  ;;  %s1490_s10 = sshll.u32 %s17185_s2, 4  ;;  %s1462_s23 = int_to_ptr.vmem [resolvable:$true] %s1461_s23  ;;  %s17580_s10 = int_to_ptr.vmem [resolvable:$true] %s1490_s10 }
  0xcd   : > { %s16013_s7 = scalar_lea.hbm %s17287_s19, 16 }
  0xce   : > { %p16014_p4 = scmp.ne.s32.totalorder %s17287_s19, %s16013_s7  ;;  %p16019_p7 = scmp.lt.u32.totalorder %s16013_s7, %s17287_s19 }
  0xd0   : > { %p16015_p5 = pnand %p16014_p4, %p15209_p3 }
  0xd2   : > { %p16016_p6 = pneg %p16015_p5 }
  0xd4   : > { %p16021_p8 = pnand %p16019_p7, %p16016_p6 }
  0xd6   : > { %16024 = shalt.err (!%p16021_p8)
}
  0xd7   : > { %s16025_s11 = scalar_lea.vmem %s1462_s23, 16  ;;  %s16031_s26 = scalar_lea.vmem %s1462_s23, 32 }
  0xd8   : > { %p16026_p9 = scmp.ne.s32.totalorder %s1462_s23, %s16025_s11  ;;  %p16032_p12 = scmp.lt.s32.totalorder %s1462_s23, %s1462_s23 }
  0xd9   : > { %p16033_p13 = scmp.lt.s32.totalorder %s16031_s26, %s16025_s11 }
  0xda   : > { %p16027_p10 = pnand %p16026_p9, %p15209_p3 }
  0xdb   : > { %p16034_p0 = por %p16033_p13, %p16032_p12 }
  0xdc   : > { %p16028_p11 = pneg %p16027_p10 }
  0xde   : > { %p16035_p1 = pnand %p16034_p0, %p16028_p11 }
  0xe0   : > { %16038 = shalt.err (!%p16035_p1)
}
  0xe1   : > { %15056 = dma.hbm_to_vmem [thread:$0]  (%p15209_p3), %s17287_s19, 16, %s1462_s23, [#allocation14]  }
  0xe2   : > { %s16039_s18 = scalar_lea.hbm %s19415_s12, 3072 }
  0xe3   : > { %p16040_p4 = scmp.ne.s32.totalorder %s19415_s12, %s16039_s18  ;;  %p16045_p7 = scmp.lt.u32.totalorder %s16039_s18, %s19415_s12 }
  0xe5   : > { %p16041_p5 = pnand %p16040_p4, %p15209_p3 }
  0xe7   : > { %p16042_p6 = pneg %p16041_p5 }
  0xe9   : > { %p16047_p8 = pnand %p16045_p7, %p16042_p6 }
  0xeb   : > { %16050 = shalt.err (!%p16047_p8)
}
  0xec   : > { %s16051_s22 = scalar_lea.vmem %s17580_s10, 3072  ;;  %p16058_p12 = scmp.lt.s32.totalorder %s17580_s10, %s17580_s10 }
  0xed   : > { %p16052_p9 = scmp.ne.s32.totalorder %s17580_s10, %s16051_s22  ;;  %p16059_p13 = scmp.lt.s32.totalorder %s16051_s22, %s16051_s22 }
  0xef   : > { %p16053_p10 = pnand %p16052_p9, %p15209_p3  ;;  %p16060_p0 = por %p16059_p13, %p16058_p12 }
  0xf1   : > { %p16054_p11 = pneg %p16053_p10 }
  0xf3   : > { %p16061_p1 = pnand %p16060_p0, %p16054_p11 }
  0xf5   : > { %16064 = shalt.err (!%p16061_p1)
}
  0xf6   : > { %15060 = dma.hbm_to_vmem [thread:$0]  (%p15209_p3), %s19415_s12, 3072, %s17580_s10, [#allocation17], %s19337_s15, %s19337_s15, %s19339_s16  }
  0xf7   : > { %s17186_s23 = smov [#allocation19]   ;;  %s17187_s7 = smov [#allocation22]  }
  0xf8   : > { %s1522_s2 = sshll.u32 %s17186_s23, 4  ;;  %s1554_s11 = sshll.u32 %s17187_s7, 4  ;;  %s1523_s2 = int_to_ptr.vmem [resolvable:$true] %s1522_s2  ;;  %s17610_s11 = int_to_ptr.vmem [resolvable:$true] %s1554_s11 }
  0xf9   : > { %s16065_s26 = scalar_lea.hbm %s19419_s6, 2048 }
  0xfa   : > { %p16066_p4 = scmp.ne.s32.totalorder %s19419_s6, %s16065_s26  ;;  %p16071_p7 = scmp.lt.u32.totalorder %s16065_s26, %s19419_s6 }
  0xfc   : > { %p16067_p5 = pnand %p16066_p4, %p15209_p3 }
  0xfe   : > { %p16068_p6 = pneg %p16067_p5 }
 0x100   : > { %p16073_p8 = pnand %p16071_p7, %p16068_p6 }
 0x102   : > { %16076 = shalt.err (!%p16073_p8)
}
 0x103   : > { %s16077_s18 = scalar_lea.vmem %s1523_s2, 2048  ;;  %p16084_p12 = scmp.lt.s32.totalorder %s1523_s2, %s1523_s2 }
 0x104   : > { %p16078_p9 = scmp.ne.s32.totalorder %s1523_s2, %s16077_s18  ;;  %p16085_p13 = scmp.lt.s32.totalorder %s16077_s18, %s16077_s18 }
 0x106   : > { %p16079_p10 = pnand %p16078_p9, %p15209_p3  ;;  %p16086_p0 = por %p16085_p13, %p16084_p12 }
 0x108   : > { %p16080_p11 = pneg %p16079_p10 }
 0x10a   : > { %p16087_p1 = pnand %p16086_p0, %p16080_p11 }
 0x10c   : > { %16090 = shalt.err (!%p16087_p1)
}
 0x10d   : > { %15064 = dma.hbm_to_vmem [thread:$0]  (%p15209_p3), %s19419_s6, 2048, %s1523_s2, [#allocation20], %s19337_s15, %s19337_s15, %s19339_s16  }
 0x10e   : > { %s16091_s10 = scalar_lea.hbm %s19414_s13, 3072 }
 0x10f   : > { %p16092_p4 = scmp.ne.s32.totalorder %s19414_s13, %s16091_s10  ;;  %p16097_p7 = scmp.lt.u32.totalorder %s16091_s10, %s19414_s13 }
 0x111   : > { %p16093_p5 = pnand %p16092_p4, %p15209_p3 }
 0x113   : > { %p16094_p6 = pneg %p16093_p5 }
 0x115   : > { %p16099_p8 = pnand %p16097_p7, %p16094_p6 }
 0x117   : > { %16102 = shalt.err (!%p16099_p8)
}
 0x118   : > { %s16103_s22 = scalar_lea.vmem %s17610_s11, 3072  ;;  %p16110_p12 = scmp.lt.s32.totalorder %s17610_s11, %s17610_s11 }
 0x119   : > { %p16104_p9 = scmp.ne.s32.totalorder %s17610_s11, %s16103_s22  ;;  %p16111_p13 = scmp.lt.s32.totalorder %s16103_s22, %s16103_s22 }
 0x11b   : > { %p16105_p10 = pnand %p16104_p9, %p15209_p3  ;;  %p16112_p0 = por %p16111_p13, %p16110_p12 }
 0x11d   : > { %p16106_p11 = pneg %p16105_p10 }
 0x11f   : > { %p16113_p1 = pnand %p16112_p0, %p16106_p11 }
 0x121   : > { %16116 = shalt.err (!%p16113_p1)
}
 0x122   : > { %15068 = dma.hbm_to_vmem [thread:$0]  (%p15209_p3), %s19414_s13, 3072, %s17610_s11, [#allocation23], %s19337_s15, %s19337_s15, %s19339_s16  }
 0x123   : > { %s17188_s23 = smov [#allocation25]   ;;  %s17189_s7 = smov [#allocation28]  }
 0x124   : > { %s1584_s2 = sshll.u32 %s17188_s23, 4  ;;  %s1608_s26 = sshll.u32 %s17189_s7, 4  ;;  %s1585_s2 = int_to_ptr.vmem [resolvable:$true] %s1584_s2  ;;  %s17643_s26 = int_to_ptr.vmem [resolvable:$true] %s1608_s26 }
 0x125   : > { %s16117_s18 = scalar_lea.hbm %s19417_s9, 16 }
 0x126   : > { %p16118_p4 = scmp.ne.s32.totalorder %s19417_s9, %s16117_s18  ;;  %p16123_p7 = scmp.lt.u32.totalorder %s16117_s18, %s19417_s9 }
 0x128   : > { %p16119_p5 = pnand %p16118_p4, %p15209_p3 }
 0x12a   : > { %p16120_p6 = pneg %p16119_p5 }
 0x12c   : > { %p16125_p8 = pnand %p16123_p7, %p16120_p6 }
 0x12e   : > { %16128 = shalt.err (!%p16125_p8)
}
 0x12f   : > { %s16129_s10 = scalar_lea.vmem %s1585_s2, 16  ;;  %s16135_s11 = scalar_lea.vmem %s1585_s2, 32 }
 0x130   : > { %p16130_p9 = scmp.ne.s32.totalorder %s1585_s2, %s16129_s10  ;;  %p16136_p12 = scmp.lt.s32.totalorder %s1585_s2, %s1585_s2 }
 0x131   : > { %p16137_p13 = scmp.lt.s32.totalorder %s16135_s11, %s16129_s10 }
 0x132   : > { %p16131_p10 = pnand %p16130_p9, %p15209_p3 }
 0x133   : > { %p16138_p0 = por %p16137_p13, %p16136_p12 }
 0x134   : > { %p16132_p11 = pneg %p16131_p10 }
 0x136   : > { %p16139_p1 = pnand %p16138_p0, %p16132_p11 }
 0x138   : > { %16142 = shalt.err (!%p16139_p1)
}
 0x139   : > { %15072 = dma.hbm_to_vmem [thread:$0]  (%p15209_p3), %s19417_s9, 16, %s1585_s2, [#allocation26]  }
 0x13a   : > { %s16143_s22 = scalar_lea.hbm %s17372_s20, 16 }
 0x13b   : > { %p16144_p4 = scmp.ne.s32.totalorder %s17372_s20, %s16143_s22  ;;  %p16149_p7 = scmp.lt.u32.totalorder %s16143_s22, %s17372_s20 }
 0x13d   : > { %p16145_p5 = pnand %p16144_p4, %p15209_p3 }
 0x13f   : > { %p16146_p6 = pneg %p16145_p5 }
 0x141   : > { %p16151_p8 = pnand %p16149_p7, %p16146_p6 }
 0x143   : > { %16154 = shalt.err (!%p16151_p8)
}
 0x144   : > { %s16155_s23 = scalar_lea.vmem %s17643_s26, 16  ;;  %s16161_s7 = scalar_lea.vmem %s17643_s26, 32 }
 0x145   : > { %p16156_p9 = scmp.ne.s32.totalorder %s17643_s26, %s16155_s23  ;;  %p16162_p12 = scmp.lt.s32.totalorder %s17643_s26, %s17643_s26 }
 0x146   : > { %p16163_p13 = scmp.lt.s32.totalorder %s16161_s7, %s16155_s23 }
 0x147   : > { %p16157_p10 = pnand %p16156_p9, %p15209_p3 }
 0x148   : > { %p16164_p0 = por %p16163_p13, %p16162_p12 }
 0x149   : > { %p16158_p11 = pneg %p16157_p10 }
 0x14b   : > { %p16165_p1 = pnand %p16164_p0, %p16158_p11 }
 0x14d   : > { %16168 = shalt.err (!%p16165_p1)
}
 0x14e   : > { %15076 = dma.hbm_to_vmem [thread:$0]  (%p15209_p3), %s17372_s20, 16, %s17643_s26, [#allocation29]  }
 0x14f   : > { %s17190_s2 = smov [#allocation31]   ;;  %s17191_s10 = smov [#allocation34]  }
 0x150   : > { %s1632_s18 = sshll.u32 %s17190_s2, 4  ;;  %s1656_s11 = sshll.u32 %s17191_s10, 4  ;;  %s1633_s18 = int_to_ptr.vmem [resolvable:$true] %s1632_s18  ;;  %s17671_s11 = int_to_ptr.vmem [resolvable:$true] %s1656_s11 }
 0x151   : > { %s16169_s22 = scalar_lea.hbm %s17382_s24, 16 }
 0x152   : > { %p16170_p4 = scmp.ne.s32.totalorder %s17382_s24, %s16169_s22  ;;  %p16175_p7 = scmp.lt.u32.totalorder %s16169_s22, %s17382_s24 }
 0x154   : > { %p16171_p5 = pnand %p16170_p4, %p15209_p3 }
 0x156   : > { %p16172_p6 = pneg %p16171_p5 }
 0x158   : > { %p16177_p8 = pnand %p16175_p7, %p16172_p6 }
 0x15a   : > { %16180 = shalt.err (!%p16177_p8)
}
 0x15b   : > { %s16181_s23 = scalar_lea.vmem %s1633_s18, 16  ;;  %s16187_s26 = scalar_lea.vmem %s1633_s18, 32 }
 0x15c   : > { %p16182_p9 = scmp.ne.s32.totalorder %s1633_s18, %s16181_s23  ;;  %p16188_p12 = scmp.lt.s32.totalorder %s1633_s18, %s1633_s18 }
 0x15d   : > { %p16189_p13 = scmp.lt.s32.totalorder %s16187_s26, %s16181_s23 }
 0x15e   : > { %p16183_p10 = pnand %p16182_p9, %p15209_p3 }
 0x15f   : > { %p16190_p0 = por %p16189_p13, %p16188_p12 }
 0x160   : > { %p16184_p11 = pneg %p16183_p10 }
 0x162   : > { %p16191_p1 = pnand %p16190_p0, %p16184_p11 }
 0x164   : > { %16194 = shalt.err (!%p16191_p1)
}
 0x165   : > { %15080 = dma.hbm_to_vmem [thread:$0]  (%p15209_p3), %s17382_s24, 16, %s1633_s18, [#allocation32]  }
 0x166   : > { %s16195_s7 = scalar_lea.hbm %s17392_s27, 16 }
 0x167   : > { %p16196_p4 = scmp.ne.s32.totalorder %s17392_s27, %s16195_s7  ;;  %p16201_p7 = scmp.lt.u32.totalorder %s16195_s7, %s17392_s27 }
 0x169   : > { %p16197_p5 = pnand %p16196_p4, %p15209_p3 }
 0x16b   : > { %p16198_p6 = pneg %p16197_p5 }
 0x16d   : > { %p16203_p8 = pnand %p16201_p7, %p16198_p6 }
 0x16f   : > { %16206 = shalt.err (!%p16203_p8)
}
 0x170   : > { %s16207_s2 = scalar_lea.vmem %s17671_s11, 16  ;;  %s16213_s10 = scalar_lea.vmem %s17671_s11, 32 }
 0x171   : > { %p16208_p9 = scmp.ne.s32.totalorder %s17671_s11, %s16207_s2  ;;  %p16214_p12 = scmp.lt.s32.totalorder %s17671_s11, %s17671_s11 }
 0x172   : > { %p16215_p13 = scmp.lt.s32.totalorder %s16213_s10, %s16207_s2 }
 0x173   : > { %p16209_p10 = pnand %p16208_p9, %p15209_p3 }
 0x174   : > { %p16216_p0 = por %p16215_p13, %p16214_p12 }
 0x175   : > { %p16210_p11 = pneg %p16209_p10 }
 0x177   : > { %p16217_p1 = pnand %p16216_p0, %p16210_p11 }
 0x179   : > { %16220 = shalt.err (!%p16217_p1)
}
 0x17a   : > { %15084 = dma.hbm_to_vmem [thread:$0]  (%p15209_p3), %s17392_s27, 16, %s17671_s11, [#allocation35]  }
 0x17b   : > { %s17192_s18 = smov [#allocation37]   ;;  %s17193_s23 = smov [#allocation40]  }
 0x17c   : > { %s1680_s22 = sshll.u32 %s17192_s18, 4  ;;  %s1706_s26 = sshll.u32 %s17193_s23, 4  ;;  %s1681_s22 = int_to_ptr.vmem [resolvable:$true] %s1680_s22  ;;  %s17699_s26 = int_to_ptr.vmem [resolvable:$true] %s1706_s26 }
 0x17d   : > { %s16221_s7 = scalar_lea.hbm %s17402_s30, 16 }
 0x17e   : > { %p16222_p4 = scmp.ne.s32.totalorder %s17402_s30, %s16221_s7  ;;  %p16227_p7 = scmp.lt.u32.totalorder %s16221_s7, %s17402_s30 }
 0x180   : > { %p16223_p5 = pnand %p16222_p4, %p15209_p3 }
 0x182   : > { %p16224_p6 = pneg %p16223_p5 }
 0x184   : > { %p16229_p8 = pnand %p16227_p7, %p16224_p6 }
 0x186   : > { %16232 = shalt.err (!%p16229_p8)
}
 0x187   : > { %s16233_s2 = scalar_lea.vmem %s1681_s22, 16  ;;  %s16239_s11 = scalar_lea.vmem %s1681_s22, 32 }
 0x188   : > { %p16234_p9 = scmp.ne.s32.totalorder %s1681_s22, %s16233_s2  ;;  %p16240_p12 = scmp.lt.s32.totalorder %s1681_s22, %s1681_s22 }
 0x189   : > { %p16241_p13 = scmp.lt.s32.totalorder %s16239_s11, %s16233_s2 }
 0x18a   : > { %p16235_p10 = pnand %p16234_p9, %p15209_p3 }
 0x18b   : > { %p16242_p0 = por %p16241_p13, %p16240_p12 }
 0x18c   : > { %p16236_p11 = pneg %p16235_p10 }
 0x18e   : > { %p16243_p1 = pnand %p16242_p0, %p16236_p11 }
 0x190   : > { %16246 = shalt.err (!%p16243_p1)
}
 0x191   : > { %15088 = dma.hbm_to_vmem [thread:$0]  (%p15209_p3), %s17402_s30, 16, %s1681_s22, [#allocation38]  }
 0x192   : > { %s16247_s10 = scalar_lea.hbm %s19421_s4, 128 }
 0x193   : > { %p16248_p4 = scmp.ne.s32.totalorder %s19421_s4, %s16247_s10  ;;  %p16253_p7 = scmp.lt.u32.totalorder %s16247_s10, %s19421_s4 }
 0x195   : > { %p16249_p5 = pnand %p16248_p4, %p15209_p3 }
 0x197   : > { %p16250_p6 = pneg %p16249_p5 }
 0x199   : > { %p16255_p8 = pnand %p16253_p7, %p16250_p6 }
 0x19b   : > { %16258 = shalt.err (!%p16255_p8)
}
 0x19c   : > { %s16259_s18 = scalar_lea.vmem %s17699_s26, 128  ;;  %p16266_p12 = scmp.lt.s32.totalorder %s17699_s26, %s17699_s26 }
 0x19d   : > { %p16260_p9 = scmp.ne.s32.totalorder %s17699_s26, %s16259_s18  ;;  %p16267_p13 = scmp.lt.s32.totalorder %s16259_s18, %s16259_s18 }
 0x19f   : > { %p16261_p10 = pnand %p16260_p9, %p15209_p3  ;;  %p16268_p0 = por %p16267_p13, %p16266_p12 }
 0x1a1   : > { %p16262_p11 = pneg %p16261_p10 }
 0x1a3   : > { %p16269_p1 = pnand %p16268_p0, %p16262_p11 }
 0x1a5   : > { %16272 = shalt.err (!%p16269_p1)
}
 0x1a6   : > { %15092 = dma.hbm_to_vmem [thread:$0]  (%p15209_p3), %s19421_s4, 128, %s17699_s26, [#allocation41], %s19337_s15, %s19337_s15, %s19339_s16  }
 0x1a7   : > { %s17194_s22 = smov [#allocation43]   ;;  %s17195_s7 = smov [#allocation46]  }
 0x1a8   : > { %s1733_s23 = sshll.u32 %s17194_s22, 4  ;;  %s1757_s2 = sshll.u32 %s17195_s7, 4  ;;  %s1734_s23 = int_to_ptr.vmem [resolvable:$true] %s1733_s23  ;;  %s17729_s2 = int_to_ptr.vmem [resolvable:$true] %s1757_s2 }
 0x1a9   : > { %s16273_s11 = scalar_lea.hbm %s19420_s5, 16 }
 0x1aa   : > { %p16274_p4 = scmp.ne.s32.totalorder %s19420_s5, %s16273_s11  ;;  %p16279_p7 = scmp.lt.u32.totalorder %s16273_s11, %s19420_s5 }
 0x1ac   : > { %p16275_p5 = pnand %p16274_p4, %p15209_p3 }
 0x1ae   : > { %p16276_p6 = pneg %p16275_p5 }
 0x1b0   : > { %p16281_p8 = pnand %p16279_p7, %p16276_p6 }
 0x1b2   : > { %16284 = shalt.err (!%p16281_p8)
}
 0x1b3   : > { %s16285_s10 = scalar_lea.vmem %s1734_s23, 16  ;;  %s16291_s26 = scalar_lea.vmem %s1734_s23, 32 }
 0x1b4   : > { %p16286_p9 = scmp.ne.s32.totalorder %s1734_s23, %s16285_s10  ;;  %p16292_p12 = scmp.lt.s32.totalorder %s1734_s23, %s1734_s23 }
 0x1b5   : > { %p16293_p13 = scmp.lt.s32.totalorder %s16291_s26, %s16285_s10 }
 0x1b6   : > { %p16287_p10 = pnand %p16286_p9, %p15209_p3 }
 0x1b7   : > { %p16294_p0 = por %p16293_p13, %p16292_p12 }
 0x1b8   : > { %p16288_p11 = pneg %p16287_p10 }
 0x1ba   : > { %p16295_p1 = pnand %p16294_p0, %p16288_p11 }
 0x1bc   : > { %16298 = shalt.err (!%p16295_p1)
}
 0x1bd   : > { %s19423_s18 = sld [smem:[#allocation121_spill]] }
 0x1be   : > { %15096 = dma.hbm_to_vmem [thread:$0]  (%p15209_p3), %s19420_s5, 16, %s1734_s23, [#allocation44]  }
 0x1c3   : > { %s16299_s22 = scalar_lea.hbm %s19423_s18, 16 }
 0x1c4   : > { %p16300_p4 = scmp.ne.s32.totalorder %s19423_s18, %s16299_s22  ;;  %p16305_p7 = scmp.lt.u32.totalorder %s16299_s22, %s19423_s18 }
 0x1c6   : > { %p16301_p5 = pnand %p16300_p4, %p15209_p3 }
 0x1c8   : > { %p16302_p6 = pneg %p16301_p5 }
 0x1ca   : > { %p16307_p8 = pnand %p16305_p7, %p16302_p6 }
 0x1cc   : > { %16310 = shalt.err (!%p16307_p8)
}
 0x1cd   : > { %s16311_s7 = scalar_lea.vmem %s17729_s2, 16  ;;  %s16317_s11 = scalar_lea.vmem %s17729_s2, 32 }
 0x1ce   : > { %p16312_p9 = scmp.ne.s32.totalorder %s17729_s2, %s16311_s7  ;;  %p16318_p12 = scmp.lt.s32.totalorder %s17729_s2, %s17729_s2 }
 0x1cf   : > { %p16319_p13 = scmp.lt.s32.totalorder %s16317_s11, %s16311_s7 }
 0x1d0   : > { %p16313_p10 = pnand %p16312_p9, %p15209_p3 }
 0x1d1   : > { %p16320_p0 = por %p16319_p13, %p16318_p12 }
 0x1d2   : > { %p16314_p11 = pneg %p16313_p10 }
 0x1d4   : > { %p16321_p1 = pnand %p16320_p0, %p16314_p11 }
 0x1d6   : > { %16324 = shalt.err (!%p16321_p1)
}
 0x1d7   : > { %s19424_s23 = sld [smem:[#allocation123_spill]]  ;;  %s17196_s10 = smov [#allocation49]  }
 0x1d8   : > { %15100 = dma.hbm_to_vmem [thread:$0]  (%p15209_p3), %s19423_s18, 16, %s17729_s2, [#allocation47]  }
 0x1d9   : > { %s1781_s26 = sshll.u32 %s17196_s10, 4  ;;  %s1782_s26 = int_to_ptr.vmem [resolvable:$true] %s1781_s26 }
 0x1dd   : > { %s16325_s22 = scalar_lea.hbm %s19424_s23, 16 }
 0x1de   : > { %p16326_p4 = scmp.ne.s32.totalorder %s19424_s23, %s16325_s22  ;;  %p16331_p7 = scmp.lt.u32.totalorder %s16325_s22, %s19424_s23 }
 0x1e0   : > { %p16327_p5 = pnand %p16326_p4, %p15209_p3 }
 0x1e2   : > { %p16328_p6 = pneg %p16327_p5 }
 0x1e4   : > { %p16333_p8 = pnand %p16331_p7, %p16328_p6 }
 0x1e6   : > { %16336 = shalt.err (!%p16333_p8)
}
 0x1e7   : > { %s16337_s7 = scalar_lea.vmem %s1782_s26, 16  ;;  %s16343_s11 = scalar_lea.vmem %s1782_s26, 32 }
 0x1e8   : > { %p16338_p9 = scmp.ne.s32.totalorder %s1782_s26, %s16337_s7  ;;  %p16344_p12 = scmp.lt.s32.totalorder %s1782_s26, %s1782_s26 }
 0x1e9   : > { %p16345_p13 = scmp.lt.s32.totalorder %s16343_s11, %s16337_s7 }
 0x1ea   : > { %p16339_p10 = pnand %p16338_p9, %p15209_p3 }
 0x1eb   : > { %p16346_p0 = por %p16345_p13, %p16344_p12 }
 0x1ec   : > { %p16340_p11 = pneg %p16339_p10 }
 0x1ee   : > { %p16347_p1 = pnand %p16346_p0, %p16340_p11 }
 0x1f0   : > { %16350 = shalt.err (!%p16347_p1)
}
 0x1f1   : > { %s19425_s2 = sld [smem:[#allocation128_spill]]  ;;  %s17197_s10 = smov [#allocation52]  }
 0x1f2   : > { %15104 = dma.hbm_to_vmem [thread:$0]  (%p15209_p3), %s19424_s23, 16, %s1782_s26, [#allocation50]  }
 0x1f3   : > { %s1813_s22 = sshll.u32 %s17197_s10, 4  ;;  %s17198_s15 = smov [#allocation55]   ;;  %s1814_s22 = int_to_ptr.vmem [resolvable:$true] %s1813_s22 }
 0x1f4   : > { %s1839_s16 = sshll.u32 %s17198_s15, 4  ;;  %s1840_s16 = int_to_ptr.vmem [resolvable:$true] %s1839_s16 }
 0x1f7   : > { %s16351_s4 = scalar_lea.hbm %s19425_s2, 64 }
 0x1f8   : > { %p16352_p4 = scmp.ne.s32.totalorder %s19425_s2, %s16351_s4  ;;  %p16357_p7 = scmp.lt.u32.totalorder %s16351_s4, %s19425_s2 }
 0x1fa   : > { %p16353_p5 = pnand %p16352_p4, %p15209_p3 }
 0x1fc   : > { %p16354_p6 = pneg %p16353_p5 }
 0x1fe   : > { %p16359_p8 = pnand %p16357_p7, %p16354_p6 }
 0x200   : > { %16362 = shalt.err (!%p16359_p8)
}
 0x201   : > { %s16363_s7 = scalar_lea.vmem %s1814_s22, 64  ;;  %p16370_p12 = scmp.lt.s32.totalorder %s1814_s22, %s1814_s22 }
 0x202   : > { %p16364_p9 = scmp.ne.s32.totalorder %s1814_s22, %s16363_s7  ;;  %p16371_p13 = scmp.lt.s32.totalorder %s16363_s7, %s16363_s7 }
 0x204   : > { %p16365_p10 = pnand %p16364_p9, %p15209_p3  ;;  %p16372_p0 = por %p16371_p13, %p16370_p12 }
 0x206   : > { %p16366_p11 = pneg %p16365_p10 }
 0x208   : > { %p16373_p1 = pnand %p16372_p0, %p16366_p11 }
 0x20a   : > { %16376 = shalt.err (!%p16373_p1)
}
 0x20b   : > { %s19342_s15 = smov 32   ;;  %s19426_s26 = sld [smem:[#allocation130_spill]] }
 0x20c   : > { %s19343_s4 = smov 2  }
 0x20d   : > { %15108 = dma.hbm_to_vmem [thread:$0]  (%p15209_p3), %s19425_s2, 64, %s1814_s22, [#allocation53], %s19342_s15, %s19342_s15, %s19343_s4  }
 0x211   : > { %s16377_s11 = scalar_lea.hbm %s19426_s26, 256 }
 0x212   : > { %p16378_p4 = scmp.ne.s32.totalorder %s19426_s26, %s16377_s11  ;;  %p16383_p7 = scmp.lt.u32.totalorder %s16377_s11, %s19426_s26 }
 0x214   : > { %p16379_p5 = pnand %p16378_p4, %p15209_p3 }
 0x216   : > { %p16380_p6 = pneg %p16379_p5 }
 0x218   : > { %p16385_p8 = pnand %p16383_p7, %p16380_p6 }
 0x21a   : > { %16388 = shalt.err (!%p16385_p8)
}
 0x21b   : > { %s16389_s10 = scalar_lea.vmem %s1840_s16, 256  ;;  %p16396_p12 = scmp.lt.s32.totalorder %s1840_s16, %s1840_s16 }
 0x21c   : > { %p16390_p9 = scmp.ne.s32.totalorder %s1840_s16, %s16389_s10  ;;  %p16397_p13 = scmp.lt.s32.totalorder %s16389_s10, %s16389_s10 }
 0x21e   : > { %p16391_p10 = pnand %p16390_p9, %p15209_p3  ;;  %p16398_p0 = por %p16397_p13, %p16396_p12 }
 0x220   : > { %p16392_p11 = pneg %p16391_p10 }
 0x222   : > { %p16399_p1 = pnand %p16398_p0, %p16392_p11 }
 0x224   : > { %16402 = shalt.err (!%p16399_p1)
}
 0x225   : > { %s19427_s22 = smov 4   ;;  %s19428_s7 = smov 64  }
 0x226   : > { %s19429_s11 = sld [smem:[#allocation132_spill]]  ;;  %s17201_s15 = smov [#allocation58]  }
 0x227   : > { %15112 = dma.hbm_to_vmem [thread:$0]  (%p15209_p3), %s19426_s26, 256, %s1840_s16, [#allocation56], %s19428_s7, %s19428_s7, %s19427_s22  }
 0x228   : > { %s1866_s4 = sshll.u32 %s17201_s15, 4  ;;  %s17202_s2 = smov [#allocation61]   ;;  %s1867_s4 = int_to_ptr.vmem [resolvable:$true] %s1866_s4 }
 0x229   : > { %s1890_s5 = sshll.u32 %s17202_s2, 4  ;;  %s1891_s5 = int_to_ptr.vmem [resolvable:$true] %s1890_s5 }
 0x22c   : > { %s16403_s10 = scalar_lea.hbm %s19429_s11, 16 }
 0x22d   : > { %p16404_p4 = scmp.ne.s32.totalorder %s19429_s11, %s16403_s10  ;;  %p16409_p7 = scmp.lt.u32.totalorder %s16403_s10, %s19429_s11 }
 0x22f   : > { %p16405_p5 = pnand %p16404_p4, %p15209_p3 }
 0x231   : > { %p16406_p6 = pneg %p16405_p5 }
 0x233   : > { %p16411_p8 = pnand %p16409_p7, %p16406_p6 }
 0x235   : > { %16414 = shalt.err (!%p16411_p8)
}
 0x236   : > { %s16415_s6 = scalar_lea.vmem %s1867_s4, 16  ;;  %s16421_s16 = scalar_lea.vmem %s1867_s4, 32 }
 0x237   : > { %p16416_p9 = scmp.ne.s32.totalorder %s1867_s4, %s16415_s6  ;;  %p16422_p12 = scmp.lt.s32.totalorder %s1867_s4, %s1867_s4 }
 0x238   : > { %p16423_p13 = scmp.lt.s32.totalorder %s16421_s16, %s16415_s6 }
 0x239   : > { %p16417_p10 = pnand %p16416_p9, %p15209_p3 }
 0x23a   : > { %p16424_p0 = por %p16423_p13, %p16422_p12 }
 0x23b   : > { %p16418_p11 = pneg %p16417_p10 }
 0x23d   : > { %p16425_p1 = pnand %p16424_p0, %p16418_p11 }
 0x23f   : > { %16428 = shalt.err (!%p16425_p1)
}
 0x240   : > { %15116 = dma.hbm_to_vmem [thread:$0]  (%p15209_p3), %s19429_s11, 16, %s1867_s4, [#allocation59]  }
 0x241   : > { %s16429_s2 = scalar_lea.hbm %s19416_s3, 16 }
 0x242   : > { %p16430_p4 = scmp.ne.s32.totalorder %s19416_s3, %s16429_s2  ;;  %p16435_p7 = scmp.lt.u32.totalorder %s16429_s2, %s19416_s3 }
 0x244   : > { %p16431_p5 = pnand %p16430_p4, %p15209_p3 }
 0x246   : > { %p16432_p6 = pneg %p16431_p5 }
 0x248   : > { %p16437_p8 = pnand %p16435_p7, %p16432_p6 }
 0x24a   : > { %16440 = shalt.err (!%p16437_p8)
}
 0x24b   : > { %s16441_s6 = scalar_lea.vmem %s1891_s5, 16  ;;  %s16447_s15 = scalar_lea.vmem %s1891_s5, 32 }
 0x24c   : > { %p16442_p9 = scmp.ne.s32.totalorder %s1891_s5, %s16441_s6  ;;  %p16448_p12 = scmp.lt.s32.totalorder %s1891_s5, %s1891_s5 }
 0x24d   : > { %p16449_p13 = scmp.lt.s32.totalorder %s16447_s15, %s16441_s6 }
 0x24e   : > { %p16443_p10 = pnand %p16442_p9, %p15209_p3 }
 0x24f   : > { %p16450_p0 = por %p16449_p13, %p16448_p12 }
 0x250   : > { %p16444_p11 = pneg %p16443_p10 }
 0x252   : > { %p16451_p1 = pnand %p16450_p0, %p16444_p11 }
 0x254   : > { %16454 = shalt.err (!%p16451_p1)
}
 0x255   : > { %s19430_s4 = sld [smem:[#allocation91_spill]]  ;;  %s17203_s10 = smov [#allocation2]  }
 0x256   : > { %15120 = dma.hbm_to_vmem [thread:$0]  (%p15209_p3), %s19416_s3, 16, %s1891_s5, [#allocation62]  }
 0x257   : > { %s1376_s16 = sshll.u32 %s17203_s10, 4  ;;  %s17204_s2 = smov [#allocation6]   ;;  %s1377_s16 = int_to_ptr.vmem [resolvable:$true] %s1376_s16 }
 0x258   : > { %s1400_s8 = sshll.u32 %s17204_s2, 4  ;;  %s17813_s8 = int_to_ptr.vmem [resolvable:$true] %s1400_s8 }
 0x25b   : > { %s16455_s9 = scalar_lea.hbm %s19430_s4, 16 }
 0x25c   : > { %p16456_p4 = scmp.ne.s32.totalorder %s19430_s4, %s16455_s9  ;;  %p16461_p7 = scmp.lt.u32.totalorder %s16455_s9, %s19430_s4 }
 0x25e   : > { %p16457_p5 = pnand %p16456_p4, %p15209_p3 }
 0x260   : > { %p16458_p6 = pneg %p16457_p5 }
 0x262   : > { %p16463_p8 = pnand %p16461_p7, %p16458_p6 }
 0x264   : > { %16466 = shalt.err (!%p16463_p8)
}
 0x265   : > { %s16467_s6 = scalar_lea.vmem %s1377_s16, 16  ;;  %s16473_s5 = scalar_lea.vmem %s1377_s16, 32 }
 0x266   : > { %p16468_p9 = scmp.ne.s32.totalorder %s1377_s16, %s16467_s6  ;;  %p16474_p12 = scmp.lt.s32.totalorder %s1377_s16, %s1377_s16 }
 0x267   : > { %p16475_p13 = scmp.lt.s32.totalorder %s16473_s5, %s16467_s6 }
 0x268   : > { %p16469_p10 = pnand %p16468_p9, %p15209_p3 }
 0x269   : > { %p16476_p0 = por %p16475_p13, %p16474_p12 }
 0x26a   : > { %p16470_p11 = pneg %p16469_p10 }
 0x26c   : > { %p16477_p1 = pnand %p16476_p0, %p16470_p11 }
 0x26e   : > { %16480 = shalt.err (!%p16477_p1)
}
 0x26f   : > { %s19431_s15 = sld [smem:[#allocation92_spill]] }
 0x270   : > { %15042 = dma.hbm_to_vmem [thread:$0]  (%p15209_p3), %s19430_s4, 16, %s1377_s16, [#allocation3]  }
 0x275   : > { %s16481_s9 = scalar_lea.hbm %s19431_s15, 16 }
 0x276   : > { %p16482_p4 = scmp.ne.s32.totalorder %s19431_s15, %s16481_s9  ;;  %p16487_p7 = scmp.lt.u32.totalorder %s16481_s9, %s19431_s15 }
 0x278   : > { %p16483_p5 = pnand %p16482_p4, %p15209_p3 }
 0x27a   : > { %p16484_p6 = pneg %p16483_p5 }
 0x27c   : > { %p16489_p8 = pnand %p16487_p7, %p16484_p6 }
 0x27e   : > { %16492 = shalt.err (!%p16489_p8)
}
 0x27f   : > { %s16493_s10 = scalar_lea.vmem %s17813_s8, 16  ;;  %s16499_s2 = scalar_lea.vmem %s17813_s8, 32 }
 0x280   : > { %p16494_p9 = scmp.ne.s32.totalorder %s17813_s8, %s16493_s10  ;;  %p16500_p12 = scmp.lt.s32.totalorder %s17813_s8, %s17813_s8 }
 0x281   : > { %p16501_p13 = scmp.lt.s32.totalorder %s16499_s2, %s16493_s10 }
 0x282   : > { %p16495_p10 = pnand %p16494_p9, %p15209_p3 }
 0x283   : > { %p16502_p0 = por %p16501_p13, %p16500_p12 }
 0x284   : > { %p16496_p11 = pneg %p16495_p10 }
 0x286   : > { %p16503_p1 = pnand %p16502_p0, %p16496_p11 }
 0x288   : > { %16506 = shalt.err (!%p16503_p1)
}
 0x289   : > { %s19432_s16 = sld [smem:[#allocation93_spill]]  ;;  %s17205_s6 = smov [#allocation9]  }
 0x28a   : > { %15046 = dma.hbm_to_vmem [thread:$0]  (%p15209_p3), %s19431_s15, 16, %s17813_s8, [#allocation5]  }
 0x28b   : > { %s1423_s5 = sshll.u32 %s17205_s6, 4  ;;  %s17206_s9 = smov [#allocation12]   ;;  %s1424_s5 = int_to_ptr.vmem [resolvable:$true] %s1423_s5 }
 0x28c   : > { %s1447_s3 = sshll.u32 %s17206_s9, 4  ;;  %s17841_s3 = int_to_ptr.vmem [resolvable:$true] %s1447_s3 }
 0x28f   : > { %s16507_s10 = scalar_lea.hbm %s19432_s16, 3072 }
 0x290   : > { %p16508_p4 = scmp.ne.s32.totalorder %s19432_s16, %s16507_s10  ;;  %p16513_p7 = scmp.lt.u32.totalorder %s16507_s10, %s19432_s16 }
 0x292   : > { %p16509_p5 = pnand %p16508_p4, %p15209_p3 }
 0x294   : > { %p16510_p6 = pneg %p16509_p5 }
 0x296   : > { %p16515_p8 = pnand %p16513_p7, %p16510_p6 }
 0x298   : > { %16518 = shalt.err (!%p16515_p8)
}
 0x299   : > { %s16519_s2 = scalar_lea.vmem %s1424_s5, 3072  ;;  %p16526_p12 = scmp.lt.s32.totalorder %s1424_s5, %s1424_s5 }
 0x29a   : > { %p16520_p9 = scmp.ne.s32.totalorder %s1424_s5, %s16519_s2  ;;  %p16527_p13 = scmp.lt.s32.totalorder %s16519_s2, %s16519_s2 }
 0x29c   : > { %p16521_p10 = pnand %p16520_p9, %p15209_p3  ;;  %p16528_p0 = por %p16527_p13, %p16526_p12 }
 0x29e   : > { %p16522_p11 = pneg %p16521_p10 }
 0x2a0   : > { %p16529_p1 = pnand %p16528_p0, %p16522_p11 }
 0x2a2   : > { %16532 = shalt.err (!%p16529_p1)
}
 0x2a3   : > { %s19433_s8 = sld [smem:[#allocation95_spill]] }
 0x2a4   : > { %15050 = dma.hbm_to_vmem [thread:$0]  (%p15209_p3), %s19432_s16, 3072, %s1424_s5, [#allocation8], %s19428_s7, %s19428_s7, %s19427_s22  }
 0x2a9   : > { %s16533_s6 = scalar_lea.hbm %s19433_s8, 3072 }
 0x2aa   : > { %p16534_p4 = scmp.ne.s32.totalorder %s19433_s8, %s16533_s6  ;;  %p16539_p7 = scmp.lt.u32.totalorder %s16533_s6, %s19433_s8 }
 0x2ac   : > { %p16535_p5 = pnand %p16534_p4, %p15209_p3 }
 0x2ae   : > { %p16536_p6 = pneg %p16535_p5 }
 0x2b0   : > { %p16541_p8 = pnand %p16539_p7, %p16536_p6 }
 0x2b2   : > { %16544 = shalt.err (!%p16541_p8)
}
 0x2b3   : > { %s16545_s9 = scalar_lea.vmem %s17841_s3, 3072  ;;  %p16552_p12 = scmp.lt.s32.totalorder %s17841_s3, %s17841_s3 }
 0x2b4   : > { %p16546_p9 = scmp.ne.s32.totalorder %s17841_s3, %s16545_s9  ;;  %p16553_p13 = scmp.lt.s32.totalorder %s16545_s9, %s16545_s9 }
 0x2b6   : > { %p16547_p10 = pnand %p16546_p9, %p15209_p3  ;;  %p16554_p0 = por %p16553_p13, %p16552_p12 }
 0x2b8   : > { %p16548_p11 = pneg %p16547_p10 }
 0x2ba   : > { %p16555_p1 = pnand %p16554_p0, %p16548_p11 }
 0x2bc   : > { %16558 = shalt.err (!%p16555_p1)
}
 0x2bd   : > { %s19434_s5 = sld [smem:[#allocation97_spill]]  ;;  %s17207_s10 = smov [#allocation15]  }
 0x2be   : > { %15054 = dma.hbm_to_vmem [thread:$0]  (%p15209_p3), %s19433_s8, 3072, %s17841_s3, [#allocation11], %s19428_s7, %s19428_s7, %s19427_s22  }
 0x2bf   : > { %s1474_s2 = sshll.u32 %s17207_s10, 4  ;;  %s17208_s6 = smov [#allocation18]   ;;  %s1475_s2 = int_to_ptr.vmem [resolvable:$true] %s1474_s2 }
 0x2c0   : > { %s1506_s4 = sshll.u32 %s17208_s6, 4  ;;  %s17874_s4 = int_to_ptr.vmem [resolvable:$true] %s1506_s4 }
 0x2c3   : > { %s16559_s9 = scalar_lea.hbm %s19434_s5, 3072 }
 0x2c4   : > { %p16560_p4 = scmp.ne.s32.totalorder %s19434_s5, %s16559_s9  ;;  %p16565_p7 = scmp.lt.u32.totalorder %s16559_s9, %s19434_s5 }
 0x2c6   : > { %p16561_p5 = pnand %p16560_p4, %p15209_p3 }
 0x2c8   : > { %p16562_p6 = pneg %p16561_p5 }
 0x2ca   : > { %p16567_p8 = pnand %p16565_p7, %p16562_p6 }
 0x2cc   : > { %16570 = shalt.err (!%p16567_p8)
}
 0x2cd   : > { %s16571_s11 = scalar_lea.vmem %s1475_s2, 3072  ;;  %p16578_p12 = scmp.lt.s32.totalorder %s1475_s2, %s1475_s2 }
 0x2ce   : > { %p16572_p9 = scmp.ne.s32.totalorder %s1475_s2, %s16571_s11  ;;  %p16579_p13 = scmp.lt.s32.totalorder %s16571_s11, %s16571_s11 }
 0x2d0   : > { %p16573_p10 = pnand %p16572_p9, %p15209_p3  ;;  %p16580_p0 = por %p16579_p13, %p16578_p12 }
 0x2d2   : > { %p16574_p11 = pneg %p16573_p10 }
 0x2d4   : > { %p16581_p1 = pnand %p16580_p0, %p16574_p11 }
 0x2d6   : > { %16584 = shalt.err (!%p16581_p1)
}
 0x2d7   : > { %s19435_s3 = sld [smem:[#allocation101_spill]] }
 0x2d8   : > { %15058 = dma.hbm_to_vmem [thread:$0]  (%p15209_p3), %s19434_s5, 3072, %s1475_s2, [#allocation14], %s19428_s7, %s19428_s7, %s19427_s22  }
 0x2dd   : > { %s16585_s10 = scalar_lea.hbm %s19435_s3, 2048 }
 0x2de   : > { %p16586_p4 = scmp.ne.s32.totalorder %s19435_s3, %s16585_s10  ;;  %p16591_p7 = scmp.lt.u32.totalorder %s16585_s10, %s19435_s3 }
 0x2e0   : > { %p16587_p5 = pnand %p16586_p4, %p15209_p3 }
 0x2e2   : > { %p16588_p6 = pneg %p16587_p5 }
 0x2e4   : > { %p16593_p8 = pnand %p16591_p7, %p16588_p6 }
 0x2e6   : > { %16596 = shalt.err (!%p16593_p8)
}
 0x2e7   : > { %s16597_s11 = scalar_lea.vmem %s17874_s4, 2048  ;;  %p16604_p12 = scmp.lt.s32.totalorder %s17874_s4, %s17874_s4 }
 0x2e8   : > { %p16598_p9 = scmp.ne.s32.totalorder %s17874_s4, %s16597_s11  ;;  %p16605_p13 = scmp.lt.s32.totalorder %s16597_s11, %s16597_s11 }
 0x2ea   : > { %p16599_p10 = pnand %p16598_p9, %p15209_p3  ;;  %p16606_p0 = por %p16605_p13, %p16604_p12 }
 0x2ec   : > { %p16600_p11 = pneg %p16599_p10 }
 0x2ee   : > { %p16607_p1 = pnand %p16606_p0, %p16600_p11 }
 0x2f0   : > { %16610 = shalt.err (!%p16607_p1)
}
 0x2f1   : > { %s19436_s2 = sld [smem:[#allocation105_spill]]  ;;  %s17209_s6 = smov [#allocation21]  }
 0x2f2   : > { %15062 = dma.hbm_to_vmem [thread:$0]  (%p15209_p3), %s19435_s3, 2048, %s17874_s4, [#allocation17], %s19428_s7, %s19428_s7, %s19427_s22  }
 0x2f3   : > { %s1538_s9 = sshll.u32 %s17209_s6, 4  ;;  %s17210_s10 = smov [#allocation24]   ;;  %s1539_s9 = int_to_ptr.vmem [resolvable:$true] %s1538_s9 }
 0x2f4   : > { %s1570_s5 = sshll.u32 %s17210_s10, 4  ;;  %s17907_s5 = int_to_ptr.vmem [resolvable:$true] %s1570_s5 }
 0x2f7   : > { %s16611_s11 = scalar_lea.hbm %s19436_s2, 2048 }
 0x2f8   : > { %p16612_p4 = scmp.ne.s32.totalorder %s19436_s2, %s16611_s11  ;;  %p16617_p7 = scmp.lt.u32.totalorder %s16611_s11, %s19436_s2 }
 0x2fa   : > { %p16613_p5 = pnand %p16612_p4, %p15209_p3 }
 0x2fc   : > { %p16614_p6 = pneg %p16613_p5 }
 0x2fe   : > { %p16619_p8 = pnand %p16617_p7, %p16614_p6 }
 0x300   : > { %16622 = shalt.err (!%p16619_p8)
}
 0x301   : > { %s16623_s8 = scalar_lea.vmem %s1539_s9, 2048  ;;  %p16630_p12 = scmp.lt.s32.totalorder %s1539_s9, %s1539_s9 }
 0x302   : > { %p16624_p9 = scmp.ne.s32.totalorder %s1539_s9, %s16623_s8  ;;  %p16631_p13 = scmp.lt.s32.totalorder %s16623_s8, %s16623_s8 }
 0x304   : > { %p16625_p10 = pnand %p16624_p9, %p15209_p3  ;;  %p16632_p0 = por %p16631_p13, %p16630_p12 }
 0x306   : > { %p16626_p11 = pneg %p16625_p10 }
 0x308   : > { %p16633_p1 = pnand %p16632_p0, %p16626_p11 }
 0x30a   : > { %16636 = shalt.err (!%p16633_p1)
}
 0x30b   : > { %s19437_s4 = sld [smem:[#allocation109_spill]] }
 0x30c   : > { %15066 = dma.hbm_to_vmem [thread:$0]  (%p15209_p3), %s19436_s2, 2048, %s1539_s9, [#allocation20], %s19428_s7, %s19428_s7, %s19427_s22  }
 0x311   : > { %s16637_s6 = scalar_lea.hbm %s19437_s4, 3072 }
 0x312   : > { %p16638_p4 = scmp.ne.s32.totalorder %s19437_s4, %s16637_s6  ;;  %p16643_p7 = scmp.lt.u32.totalorder %s16637_s6, %s19437_s4 }
 0x314   : > { %p16639_p5 = pnand %p16638_p4, %p15209_p3 }
 0x316   : > { %p16640_p6 = pneg %p16639_p5 }
 0x318   : > { %p16645_p8 = pnand %p16643_p7, %p16640_p6 }
 0x31a   : > { %16648 = shalt.err (!%p16645_p8)
}
 0x31b   : > { %s16649_s8 = scalar_lea.vmem %s17907_s5, 3072  ;;  %p16656_p12 = scmp.lt.s32.totalorder %s17907_s5, %s17907_s5 }
 0x31c   : > { %p16650_p9 = scmp.ne.s32.totalorder %s17907_s5, %s16649_s8  ;;  %p16657_p13 = scmp.lt.s32.totalorder %s16649_s8, %s16649_s8 }
 0x31e   : > { %p16651_p10 = pnand %p16650_p9, %p15209_p3  ;;  %p16658_p0 = por %p16657_p13, %p16656_p12 }
 0x320   : > { %p16652_p11 = pneg %p16651_p10 }
 0x322   : > { %p16659_p1 = pnand %p16658_p0, %p16652_p11 }
 0x324   : > { %16662 = shalt.err (!%p16659_p1)
}
 0x325   : > { %s19438_s9 = sld [smem:[#allocation111_spill]]  ;;  %s17211_s10 = smov [#allocation27]  }
 0x326   : > { %15070 = dma.hbm_to_vmem [thread:$0]  (%p15209_p3), %s19437_s4, 3072, %s17907_s5, [#allocation23], %s19428_s7, %s19428_s7, %s19427_s22  }
 0x327   : > { %s1594_s11 = sshll.u32 %s17211_s10, 4  ;;  %s17212_s6 = smov [#allocation30]   ;;  %s1595_s11 = int_to_ptr.vmem [resolvable:$true] %s1594_s11 }
 0x328   : > { %s1618_s2 = sshll.u32 %s17212_s6, 4  ;;  %s17940_s2 = int_to_ptr.vmem [resolvable:$true] %s1618_s2 }
 0x32b   : > { %s16663_s8 = scalar_lea.hbm %s19438_s9, 3072 }
 0x32c   : > { %p16664_p4 = scmp.ne.s32.totalorder %s19438_s9, %s16663_s8  ;;  %p16669_p7 = scmp.lt.u32.totalorder %s16663_s8, %s19438_s9 }
 0x32e   : > { %p16665_p5 = pnand %p16664_p4, %p15209_p3 }
 0x330   : > { %p16666_p6 = pneg %p16665_p5 }
 0x332   : > { %p16671_p8 = pnand %p16669_p7, %p16666_p6 }
 0x334   : > { %16674 = shalt.err (!%p16671_p8)
}
 0x335   : > { %s16675_s3 = scalar_lea.vmem %s1595_s11, 3072  ;;  %p16682_p12 = scmp.lt.s32.totalorder %s1595_s11, %s1595_s11 }
 0x336   : > { %p16676_p9 = scmp.ne.s32.totalorder %s1595_s11, %s16675_s3  ;;  %p16683_p13 = scmp.lt.s32.totalorder %s16675_s3, %s16675_s3 }
 0x338   : > { %p16677_p10 = pnand %p16676_p9, %p15209_p3  ;;  %p16684_p0 = por %p16683_p13, %p16682_p12 }
 0x33a   : > { %p16678_p11 = pneg %p16677_p10 }
 0x33c   : > { %p16685_p1 = pnand %p16684_p0, %p16678_p11 }
 0x33e   : > { %16688 = shalt.err (!%p16685_p1)
}
 0x33f   : > { %s19439_s5 = sld [smem:[#allocation112_spill]] }
 0x340   : > { %15074 = dma.hbm_to_vmem [thread:$0]  (%p15209_p3), %s19438_s9, 3072, %s1595_s11, [#allocation26], %s19428_s7, %s19428_s7, %s19427_s22  }
 0x345   : > { %s16689_s10 = scalar_lea.hbm %s19439_s5, 3072 }
 0x346   : > { %p16690_p4 = scmp.ne.s32.totalorder %s19439_s5, %s16689_s10  ;;  %p16695_p7 = scmp.lt.u32.totalorder %s16689_s10, %s19439_s5 }
 0x348   : > { %p16691_p5 = pnand %p16690_p4, %p15209_p3 }
 0x34a   : > { %p16692_p6 = pneg %p16691_p5 }
 0x34c   : > { %p16697_p8 = pnand %p16695_p7, %p16692_p6 }
 0x34e   : > { %16700 = shalt.err (!%p16697_p8)
}
 0x34f   : > { %s16701_s3 = scalar_lea.vmem %s17940_s2, 3072  ;;  %p16708_p12 = scmp.lt.s32.totalorder %s17940_s2, %s17940_s2 }
 0x350   : > { %p16702_p9 = scmp.ne.s32.totalorder %s17940_s2, %s16701_s3  ;;  %p16709_p13 = scmp.lt.s32.totalorder %s16701_s3, %s16701_s3 }
 0x352   : > { %p16703_p10 = pnand %p16702_p9, %p15209_p3  ;;  %p16710_p0 = por %p16709_p13, %p16708_p12 }
 0x354   : > { %p16704_p11 = pneg %p16703_p10 }
 0x356   : > { %p16711_p1 = pnand %p16710_p0, %p16704_p11 }
 0x358   : > { %16714 = shalt.err (!%p16711_p1)
}
 0x359   : > { %s19440_s11 = sld [smem:[#allocation113_spill]]  ;;  %s17213_s6 = smov [#allocation33]  }
 0x35a   : > { %15078 = dma.hbm_to_vmem [thread:$0]  (%p15209_p3), %s19439_s5, 3072, %s17940_s2, [#allocation29], %s19428_s7, %s19428_s7, %s19427_s22  }
 0x35b   : > { %s1642_s8 = sshll.u32 %s17213_s6, 4  ;;  %s17214_s10 = smov [#allocation36]   ;;  %s1643_s8 = int_to_ptr.vmem [resolvable:$true] %s1642_s8 }
 0x35c   : > { %s1666_s4 = sshll.u32 %s17214_s10, 4  ;;  %s17973_s4 = int_to_ptr.vmem [resolvable:$true] %s1666_s4 }
 0x35f   : > { %s16715_s3 = scalar_lea.hbm %s19440_s11, 3072 }
 0x360   : > { %p16716_p4 = scmp.ne.s32.totalorder %s19440_s11, %s16715_s3  ;;  %p16721_p7 = scmp.lt.u32.totalorder %s16715_s3, %s19440_s11 }
 0x362   : > { %p16717_p5 = pnand %p16716_p4, %p15209_p3 }
 0x364   : > { %p16718_p6 = pneg %p16717_p5 }
 0x366   : > { %p16723_p8 = pnand %p16721_p7, %p16718_p6 }
 0x368   : > { %16726 = shalt.err (!%p16723_p8)
}
 0x369   : > { %s16727_s9 = scalar_lea.vmem %s1643_s8, 3072  ;;  %p16734_p12 = scmp.lt.s32.totalorder %s1643_s8, %s1643_s8 }
 0x36a   : > { %p16728_p9 = scmp.ne.s32.totalorder %s1643_s8, %s16727_s9  ;;  %p16735_p13 = scmp.lt.s32.totalorder %s16727_s9, %s16727_s9 }
 0x36c   : > { %p16729_p10 = pnand %p16728_p9, %p15209_p3  ;;  %p16736_p0 = por %p16735_p13, %p16734_p12 }
 0x36e   : > { %p16730_p11 = pneg %p16729_p10 }
 0x370   : > { %p16737_p1 = pnand %p16736_p0, %p16730_p11 }
 0x372   : > { %16740 = shalt.err (!%p16737_p1)
}
 0x373   : > { %s19441_s2 = sld [smem:[#allocation114_spill]] }
 0x374   : > { %15082 = dma.hbm_to_vmem [thread:$0]  (%p15209_p3), %s19440_s11, 3072, %s1643_s8, [#allocation32], %s19428_s7, %s19428_s7, %s19427_s22  }
 0x379   : > { %s16741_s6 = scalar_lea.hbm %s19441_s2, 3072 }
 0x37a   : > { %p16742_p4 = scmp.ne.s32.totalorder %s19441_s2, %s16741_s6  ;;  %p16747_p7 = scmp.lt.u32.totalorder %s16741_s6, %s19441_s2 }
 0x37c   : > { %p16743_p5 = pnand %p16742_p4, %p15209_p3 }
 0x37e   : > { %p16744_p6 = pneg %p16743_p5 }
 0x380   : > { %p16749_p8 = pnand %p16747_p7, %p16744_p6 }
 0x382   : > { %16752 = shalt.err (!%p16749_p8)
}
 0x383   : > { %s16753_s9 = scalar_lea.vmem %s17973_s4, 3072  ;;  %p16760_p12 = scmp.lt.s32.totalorder %s17973_s4, %s17973_s4 }
 0x384   : > { %p16754_p9 = scmp.ne.s32.totalorder %s17973_s4, %s16753_s9  ;;  %p16761_p13 = scmp.lt.s32.totalorder %s16753_s9, %s16753_s9 }
 0x386   : > { %p16755_p10 = pnand %p16754_p9, %p15209_p3  ;;  %p16762_p0 = por %p16761_p13, %p16760_p12 }
 0x388   : > { %p16756_p11 = pneg %p16755_p10 }
 0x38a   : > { %p16763_p1 = pnand %p16762_p0, %p16756_p11 }
 0x38c   : > { %16766 = shalt.err (!%p16763_p1)
}
 0x38d   : > { %s19442_s8 = sld [smem:[#allocation116_spill]]  ;;  %s17215_s10 = smov [#allocation39]  }
 0x38e   : > { %15086 = dma.hbm_to_vmem [thread:$0]  (%p15209_p3), %s19441_s2, 3072, %s17973_s4, [#allocation35], %s19428_s7, %s19428_s7, %s19427_s22  }
 0x38f   : > { %s1693_s3 = sshll.u32 %s17215_s10, 4  ;;  %s17216_s6 = smov [#allocation42]   ;;  %s1694_s3 = int_to_ptr.vmem [resolvable:$true] %s1693_s3 }
 0x390   : > { %s1719_s5 = sshll.u32 %s17216_s6, 4  ;;  %s18006_s5 = int_to_ptr.vmem [resolvable:$true] %s1719_s5 }
 0x393   : > { %s16767_s9 = scalar_lea.hbm %s19442_s8, 64 }
 0x394   : > { %p16768_p4 = scmp.ne.s32.totalorder %s19442_s8, %s16767_s9  ;;  %p16773_p7 = scmp.lt.u32.totalorder %s16767_s9, %s19442_s8 }
 0x396   : > { %p16769_p5 = pnand %p16768_p4, %p15209_p3 }
 0x398   : > { %p16770_p6 = pneg %p16769_p5 }
 0x39a   : > { %p16775_p8 = pnand %p16773_p7, %p16770_p6 }
 0x39c   : > { %16778 = shalt.err (!%p16775_p8)
}
 0x39d   : > { %s16779_s11 = scalar_lea.vmem %s1694_s3, 64  ;;  %p16786_p12 = scmp.lt.s32.totalorder %s1694_s3, %s1694_s3 }
 0x39e   : > { %p16780_p9 = scmp.ne.s32.totalorder %s1694_s3, %s16779_s11  ;;  %p16787_p13 = scmp.lt.s32.totalorder %s16779_s11, %s16779_s11 }
 0x3a0   : > { %p16781_p10 = pnand %p16780_p9, %p15209_p3  ;;  %p16788_p0 = por %p16787_p13, %p16786_p12 }
 0x3a2   : > { %p16782_p11 = pneg %p16781_p10 }
 0x3a4   : > { %p16789_p1 = pnand %p16788_p0, %p16782_p11 }
 0x3a6   : > { %16792 = shalt.err (!%p16789_p1)
}
 0x3a7   : > { %s19443_s4 = smov 2   ;;  %s19444_s10 = smov 32  }
 0x3a8   : > { %s19445_s6 = sld [smem:[#allocation118_spill]] }
 0x3a9   : > { %15090 = dma.hbm_to_vmem [thread:$0]  (%p15209_p3), %s19442_s8, 64, %s1694_s3, [#allocation38], %s19444_s10, %s19444_s10, %s19443_s4  }
 0x3ae   : > { %s16793_s9 = scalar_lea.hbm %s19445_s6, 1536 }
 0x3af   : > { %p16794_p4 = scmp.ne.s32.totalorder %s19445_s6, %s16793_s9  ;;  %p16799_p7 = scmp.lt.u32.totalorder %s16793_s9, %s19445_s6 }
 0x3b1   : > { %p16795_p5 = pnand %p16794_p4, %p15209_p3 }
 0x3b3   : > { %p16796_p6 = pneg %p16795_p5 }
 0x3b5   : > { %p16801_p8 = pnand %p16799_p7, %p16796_p6 }
 0x3b7   : > { %16804 = shalt.err (!%p16801_p8)
}
 0x3b8   : > { %s16805_s11 = scalar_lea.vmem %s18006_s5, 1536  ;;  %p16812_p12 = scmp.lt.s32.totalorder %s18006_s5, %s18006_s5 }
 0x3b9   : > { %p16806_p9 = scmp.ne.s32.totalorder %s18006_s5, %s16805_s11  ;;  %p16813_p13 = scmp.lt.s32.totalorder %s16805_s11, %s16805_s11 }
 0x3bb   : > { %p16807_p10 = pnand %p16806_p9, %p15209_p3  ;;  %p16814_p0 = por %p16813_p13, %p16812_p12 }
 0x3bd   : > { %p16808_p11 = pneg %p16807_p10 }
 0x3bf   : > { %p16815_p1 = pnand %p16814_p0, %p16808_p11 }
 0x3c1   : > { %16818 = shalt.err (!%p16815_p1)
}
 0x3c2   : > { %s19446_s3 = sld [smem:[#allocation120_spill]]  ;;  %s17217_s4 = smov [#allocation45]  }
 0x3c3   : > { %15094 = dma.hbm_to_vmem [thread:$0]  (%p15209_p3), %s19445_s6, 1536, %s18006_s5, [#allocation41], %s19428_s7, %s19428_s7, %s19427_s22  }
 0x3c4   : > { %s1743_s10 = sshll.u32 %s17217_s4, 4  ;;  %s17218_s9 = smov [#allocation48]   ;;  %s1744_s10 = int_to_ptr.vmem [resolvable:$true] %s1743_s10 }
 0x3c5   : > { %s1767_s2 = sshll.u32 %s17218_s9, 4  ;;  %s18039_s2 = int_to_ptr.vmem [resolvable:$true] %s1767_s2 }
 0x3c8   : > { %s16819_s11 = scalar_lea.hbm %s19446_s3, 3072 }
 0x3c9   : > { %p16820_p4 = scmp.ne.s32.totalorder %s19446_s3, %s16819_s11  ;;  %p16825_p7 = scmp.lt.u32.totalorder %s16819_s11, %s19446_s3 }
 0x3cb   : > { %p16821_p5 = pnand %p16820_p4, %p15209_p3 }
 0x3cd   : > { %p16822_p6 = pneg %p16821_p5 }
 0x3cf   : > { %p16827_p8 = pnand %p16825_p7, %p16822_p6 }
 0x3d1   : > { %16830 = shalt.err (!%p16827_p8)
}
 0x3d2   : > { %s16831_s8 = scalar_lea.vmem %s1744_s10, 3072  ;;  %p16838_p12 = scmp.lt.s32.totalorder %s1744_s10, %s1744_s10 }
 0x3d3   : > { %p16832_p9 = scmp.ne.s32.totalorder %s1744_s10, %s16831_s8  ;;  %p16839_p13 = scmp.lt.s32.totalorder %s16831_s8, %s16831_s8 }
 0x3d5   : > { %p16833_p10 = pnand %p16832_p9, %p15209_p3  ;;  %p16840_p0 = por %p16839_p13, %p16838_p12 }
 0x3d7   : > { %p16834_p11 = pneg %p16833_p10 }
 0x3d9   : > { %p16841_p1 = pnand %p16840_p0, %p16834_p11 }
 0x3db   : > { %16844 = shalt.err (!%p16841_p1)
}
 0x3dc   : > { %s19447_s5 = sld [smem:[#allocation122_spill]] }
 0x3dd   : > { %15098 = dma.hbm_to_vmem [thread:$0]  (%p15209_p3), %s19446_s3, 3072, %s1744_s10, [#allocation44], %s19428_s7, %s19428_s7, %s19427_s22  }
 0x3e2   : > { %s16845_s4 = scalar_lea.hbm %s19447_s5, 3072 }
 0x3e3   : > { %p16846_p4 = scmp.ne.s32.totalorder %s19447_s5, %s16845_s4  ;;  %p16851_p7 = scmp.lt.u32.totalorder %s16845_s4, %s19447_s5 }
 0x3e5   : > { %p16847_p5 = pnand %p16846_p4, %p15209_p3 }
 0x3e7   : > { %p16848_p6 = pneg %p16847_p5 }
 0x3e9   : > { %p16853_p8 = pnand %p16851_p7, %p16848_p6 }
 0x3eb   : > { %16856 = shalt.err (!%p16853_p8)
}
 0x3ec   : > { %s16857_s8 = scalar_lea.vmem %s18039_s2, 3072  ;;  %p16864_p12 = scmp.lt.s32.totalorder %s18039_s2, %s18039_s2 }
 0x3ed   : > { %p16858_p9 = scmp.ne.s32.totalorder %s18039_s2, %s16857_s8  ;;  %p16865_p13 = scmp.lt.s32.totalorder %s16857_s8, %s16857_s8 }
 0x3ef   : > { %p16859_p10 = pnand %p16858_p9, %p15209_p3  ;;  %p16866_p0 = por %p16865_p13, %p16864_p12 }
 0x3f1   : > { %p16860_p11 = pneg %p16859_p10 }
 0x3f3   : > { %p16867_p1 = pnand %p16866_p0, %p16860_p11 }
 0x3f5   : > { %16870 = shalt.err (!%p16867_p1)
}
 0x3f6   : > { %s19448_s10 = sld [smem:[#allocation127_spill]]  ;;  %s17219_s9 = smov [#allocation51]  }
 0x3f7   : > { %15102 = dma.hbm_to_vmem [thread:$0]  (%p15209_p3), %s19447_s5, 3072, %s18039_s2, [#allocation47], %s19428_s7, %s19428_s7, %s19427_s22  }
 0x3f8   : > { %s1800_s11 = sshll.u32 %s17219_s9, 4  ;;  %s1801_s11 = int_to_ptr.vmem [resolvable:$true] %s1800_s11 }
 0x3fc   : > { %s16871_s4 = scalar_lea.hbm %s19448_s10, 32 }
 0x3fd   : > { %p16872_p4 = scmp.ne.s32.totalorder %s19448_s10, %s16871_s4  ;;  %p16877_p7 = scmp.lt.u32.totalorder %s16871_s4, %s19448_s10 }
 0x3ff   : > { %p16873_p5 = pnand %p16872_p4, %p15209_p3 }
 0x401   : > { %p16874_p6 = pneg %p16873_p5 }
 0x403   : > { %p16879_p8 = pnand %p16877_p7, %p16874_p6 }
 0x405   : > { %16882 = shalt.err (!%p16879_p8)
}
 0x406   : > { %s16883_s8 = scalar_lea.vmem %s1801_s11, 32  ;;  %p16890_p12 = scmp.lt.s32.totalorder %s1801_s11, %s1801_s11 }
 0x407   : > { %p16884_p9 = scmp.ne.s32.totalorder %s1801_s11, %s16883_s8  ;;  %p16891_p13 = scmp.lt.s32.totalorder %s16883_s8, %s16883_s8 }
 0x409   : > { %p16885_p10 = pnand %p16884_p9, %p15209_p3  ;;  %p16892_p0 = por %p16891_p13, %p16890_p12 }
 0x40b   : > { %p16886_p11 = pneg %p16885_p10 }
 0x40d   : > { %p16893_p1 = pnand %p16892_p0, %p16886_p11 }
 0x40f   : > { %16896 = shalt.err (!%p16893_p1)
}
 0x410   : > { %s17220_s2 = smov 16   ;;  %s19449_s9 = sld [smem:[#allocation129_spill]] }
 0x411   : > { %s17221_s4 = smov 1   ;;  %s17222_s3 = smov [#allocation54]  }
 0x412   : > { %15106 = dma.hbm_to_vmem [thread:$0]  (%p15209_p3), %s19448_s10, 32, %s1801_s11, [#allocation50], %s17220_s2, %s17220_s2, %s17221_s4  }
 0x413   : > { %s1826_s5 = sshll.u32 %s17222_s3, 4  ;;  %s17223_s6 = smov [#allocation57]   ;;  %s1827_s5 = int_to_ptr.vmem [resolvable:$true] %s1826_s5 }
 0x414   : > { %s1852_s12 = sshll.u32 %s17223_s6, 4  ;;  %s1853_s12 = int_to_ptr.vmem [resolvable:$true] %s1852_s12 }
 0x416   : > { %s16897_s13 = scalar_lea.hbm %s19449_s9, 128 }
 0x417   : > { %p16898_p4 = scmp.ne.s32.totalorder %s19449_s9, %s16897_s13  ;;  %p16903_p7 = scmp.lt.u32.totalorder %s16897_s13, %s19449_s9 }
 0x419   : > { %p16899_p5 = pnand %p16898_p4, %p15209_p3 }
 0x41b   : > { %p16900_p6 = pneg %p16899_p5 }
 0x41d   : > { %p16905_p8 = pnand %p16903_p7, %p16900_p6 }
 0x41f   : > { %16908 = shalt.err (!%p16905_p8)
}
 0x420   : > { %s16909_s8 = scalar_lea.vmem %s1827_s5, 128  ;;  %p16916_p12 = scmp.lt.s32.totalorder %s1827_s5, %s1827_s5 }
 0x421   : > { %p16910_p9 = scmp.ne.s32.totalorder %s1827_s5, %s16909_s8  ;;  %p16917_p13 = scmp.lt.s32.totalorder %s16909_s8, %s16909_s8 }
 0x423   : > { %p16911_p10 = pnand %p16910_p9, %p15209_p3  ;;  %p16918_p0 = por %p16917_p13, %p16916_p12 }
 0x425   : > { %p16912_p11 = pneg %p16911_p10 }
 0x427   : > { %p16919_p1 = pnand %p16918_p0, %p16912_p11 }
 0x429   : > { %16922 = shalt.err (!%p16919_p1)
}
 0x42a   : > { %s19450_s13 = sld [smem:[#allocation131_spill]] }
 0x42b   : > { %15110 = dma.hbm_to_vmem [thread:$0]  (%p15209_p3), %s19449_s9, 128, %s1827_s5, [#allocation53], %s19428_s7, %s19428_s7, %s19427_s22  }
 0x430   : > { %s16923_s6 = scalar_lea.hbm %s19450_s13, 2048 }
 0x431   : > { %p16924_p4 = scmp.ne.s32.totalorder %s19450_s13, %s16923_s6  ;;  %p16929_p7 = scmp.lt.u32.totalorder %s16923_s6, %s19450_s13 }
 0x433   : > { %p16925_p5 = pnand %p16924_p4, %p15209_p3 }
 0x435   : > { %p16926_p6 = pneg %p16925_p5 }
 0x437   : > { %p16931_p8 = pnand %p16929_p7, %p16926_p6 }
 0x439   : > { %16934 = shalt.err (!%p16931_p8)
}
 0x43a   : > { %s16935_s3 = scalar_lea.vmem %s1853_s12, 2048  ;;  %p16942_p12 = scmp.lt.s32.totalorder %s1853_s12, %s1853_s12 }
 0x43b   : > { %p16936_p9 = scmp.ne.s32.totalorder %s1853_s12, %s16935_s3  ;;  %p16943_p13 = scmp.lt.s32.totalorder %s16935_s3, %s16935_s3 }
 0x43d   : > { %p16937_p10 = pnand %p16936_p9, %p15209_p3  ;;  %p16944_p0 = por %p16943_p13, %p16942_p12 }
 0x43f   : > { %p16938_p11 = pneg %p16937_p10 }
 0x441   : > { %p16945_p1 = pnand %p16944_p0, %p16938_p11 }
 0x443   : > { %16948 = shalt.err (!%p16945_p1)
}
 0x444   : > { %s19451_s5 = sld [smem:[#allocation133_spill]]  ;;  %s17224_s11 = smov [#allocation60]  }
 0x445   : > { %15114 = dma.hbm_to_vmem [thread:$0]  (%p15209_p3), %s19450_s13, 2048, %s1853_s12, [#allocation56], %s19428_s7, %s19428_s7, %s19427_s22  }
 0x446   : > { %s1876_s2 = sshll.u32 %s17224_s11, 4  ;;  %s17225_s4 = smov [#allocation63]   ;;  %s1877_s2 = int_to_ptr.vmem [resolvable:$true] %s1876_s2 }
 0x447   : > { %s1900_s8 = sshll.u32 %s17225_s4, 4  ;;  %s1901_s8 = int_to_ptr.vmem [resolvable:$true] %s1900_s8 }
 0x44a   : > { %s16949_s6 = scalar_lea.hbm %s19451_s5, 2048 }
 0x44b   : > { %p16950_p4 = scmp.ne.s32.totalorder %s19451_s5, %s16949_s6  ;;  %p16955_p7 = scmp.lt.u32.totalorder %s16949_s6, %s19451_s5 }
 0x44d   : > { %p16951_p5 = pnand %p16950_p4, %p15209_p3 }
 0x44f   : > { %p16952_p6 = pneg %p16951_p5 }
 0x451   : > { %p16957_p8 = pnand %p16955_p7, %p16952_p6 }
 0x453   : > { %16960 = shalt.err (!%p16957_p8)
}
 0x454   : > { %s16961_s3 = scalar_lea.vmem %s1877_s2, 2048  ;;  %p16968_p12 = scmp.lt.s32.totalorder %s1877_s2, %s1877_s2 }
 0x455   : > { %p16962_p9 = scmp.ne.s32.totalorder %s1877_s2, %s16961_s3  ;;  %p16969_p13 = scmp.lt.s32.totalorder %s16961_s3, %s16961_s3 }
 0x457   : > { %p16963_p10 = pnand %p16962_p9, %p15209_p3  ;;  %p16970_p0 = por %p16969_p13, %p16968_p12 }
 0x459   : > { %p16964_p11 = pneg %p16963_p10 }
 0x45b   : > { %p16971_p1 = pnand %p16970_p0, %p16964_p11 }
 0x45d   : > { %16974 = shalt.err (!%p16971_p1)
}
 0x45e   : > { %15118 = dma.hbm_to_vmem [thread:$0]  (%p15209_p3), %s19451_s5, 2048, %s1877_s2, [#allocation59], %s19428_s7, %s19428_s7, %s19427_s22  }
 0x45f   : > { %s16975_s12 = scalar_lea.hbm %s17507_s17, 2048 }
 0x460   : > { %p16976_p4 = scmp.ne.s32.totalorder %s17507_s17, %s16975_s12  ;;  %p16981_p7 = scmp.lt.u32.totalorder %s16975_s12, %s17507_s17 }
 0x462   : > { %p16977_p5 = pnand %p16976_p4, %p15209_p3 }
 0x464   : > { %p16978_p6 = pneg %p16977_p5 }
 0x466   : > { %p16983_p8 = pnand %p16981_p7, %p16978_p6 }
 0x468   : > { %16986 = shalt.err (!%p16983_p8)
}
 0x469   : > { %s16987_s11 = scalar_lea.vmem %s1901_s8, 2048  ;;  %p16994_p12 = scmp.lt.s32.totalorder %s1901_s8, %s1901_s8 }
 0x46a   : > { %p16988_p9 = scmp.ne.s32.totalorder %s1901_s8, %s16987_s11  ;;  %p16995_p13 = scmp.lt.s32.totalorder %s16987_s11, %s16987_s11 }
 0x46c   : > { %p16989_p10 = pnand %p16988_p9, %p15209_p3  ;;  %p16996_p0 = por %p16995_p13, %p16994_p12 }
 0x46e   : > { %p16990_p11 = pneg %p16989_p10 }
 0x470   : > { %p16997_p1 = pnand %p16996_p0, %p16990_p11 }
 0x472   : > { %17000 = shalt.err (!%p16997_p1)
}
 0x473   : > { %15122 = dma.hbm_to_vmem [thread:$0]  (%p15209_p3), %s17507_s17, 2048, %s1901_s8, [#allocation62], %s19428_s7, %s19428_s7, %s19427_s22  }
 0x474   : > { %s17226_s2 = smov [#allocation64]   ;;  %s17001_s6 = scalar_lea.hbm %s17512_s14, 16 }
 0x475   : > { %s1914_s4 = sshll.u32 %s17226_s2, 4  ;;  %p17002_p4 = scmp.ne.s32.totalorder %s17512_s14, %s17001_s6  ;;  %s1915_s4 = int_to_ptr.vmem [resolvable:$true] %s1914_s4 }
 0x476   : > { %p17007_p7 = scmp.lt.u32.totalorder %s17001_s6, %s17512_s14 }
 0x477   : > { %p17003_p5 = pnand %p17002_p4, %p15209_p3 }
 0x479   : > { %p17004_p6 = pneg %p17003_p5 }
 0x47b   : > { %p17009_p8 = pnand %p17007_p7, %p17004_p6 }
 0x47d   : > { %17012 = shalt.err (!%p17009_p8)
}
 0x47e   : > { %s17013_s3 = scalar_lea.vmem %s1915_s4, 16  ;;  %s17019_s12 = scalar_lea.vmem %s1915_s4, 32 }
 0x47f   : > { %p17014_p9 = scmp.ne.s32.totalorder %s1915_s4, %s17013_s3  ;;  %p17020_p12 = scmp.lt.s32.totalorder %s1915_s4, %s1915_s4 }
 0x480   : > { %p17021_p13 = scmp.lt.s32.totalorder %s17019_s12, %s17013_s3 }
 0x481   : > { %p17015_p10 = pnand %p17014_p9, %p15209_p3 }
 0x482   : > { %p17022_p0 = por %p17021_p13, %p17020_p12 }
 0x483   : > { %p17016_p11 = pneg %p17015_p10 }
 0x485   : > { %p17023_p1 = pnand %p17022_p0, %p17016_p11 }
 0x487   : > { %17026 = shalt.err (!%p17023_p1)
}
 0x488   : > { %15124 = dma.hbm_to_vmem [thread:$0]  (%p15209_p3), %s17512_s14, 16, %s1915_s4, [#allocation65]  }
 0x489 PF: > { %1935 = sbr.rel (%p17529_p2) target bundleno = 13634 (0x3542), region = 244  ;;  %p15251_p4 = scmp.eq.s32.totalorder (!%p17529_p2), %s17525_s28, 0 }
 0x490   : > { %17032 = dma.done.wait (%p15251_p4), [#allocation3], 16  }
 0x491   : > { %17034 = vsyncadd (%p15251_p4), [#allocation3], 4294967280 }
 0x492   : > { %17036 = dma.done.wait (%p15251_p4), [#allocation5], 3088  }
 0x493   : > { %17038 = vsyncadd (%p15251_p4), [#allocation5], 4294964208 }
 0x494   : > { %17040 = dma.done.wait (%p15251_p4), [#allocation8], 6144  }
 0x495   : > { %17042 = vsyncadd (%p15251_p4), [#allocation8], 4294961152 }
 0x496   : > { %17044 = dma.done.wait (%p15251_p4), [#allocation11], 3088  }
 0x497   : > { %17046 = vsyncadd (%p15251_p4), [#allocation11], 4294964208 }
 0x498   : > { %17048 = dma.done.wait (%p15251_p4), [#allocation14], 3088  }
 0x499   : > { %17050 = vsyncadd (%p15251_p4), [#allocation14], 4294964208 }
 0x49a   : > { %17052 = dma.done.wait (%p15251_p4), [#allocation17], 5120  }
 0x49b   : > { %17054 = vsyncadd (%p15251_p4), [#allocation17], 4294962176 }
 0x49c   : > { %17056 = dma.done.wait (%p15251_p4), [#allocation20], 4096  }
 0x49d   : > { %17058 = vsyncadd (%p15251_p4), [#allocation20], 4294963200 }
 0x49e   : > { %17060 = dma.done.wait (%p15251_p4), [#allocation23], 6144  }
 0x49f   : > { %17062 = vsyncadd (%p15251_p4), [#allocation23], 4294961152 }
 0x4a0   : > { %17064 = dma.done.wait (%p15251_p4), [#allocation26], 3088  }
 0x4a1   : > { %17066 = vsyncadd (%p15251_p4), [#allocation26], 4294964208 }
 0x4a2   : > { %17068 = dma.done.wait (%p15251_p4), [#allocation29], 3088  }
 0x4a3   : > { %17070 = vsyncadd (%p15251_p4), [#allocation29], 4294964208 }
 0x4a4   : > { %17072 = dma.done.wait (%p15251_p4), [#allocation32], 3088  }
 0x4a5   : > { %17074 = vsyncadd (%p15251_p4), [#allocation32], 4294964208 }
 0x4a6   : > { %17076 = dma.done.wait (%p15251_p4), [#allocation35], 3088  }
 0x4a7   : > { %17078 = vsyncadd (%p15251_p4), [#allocation35], 4294964208 }
 0x4a8   : > { %17080 = dma.done.wait (%p15251_p4), [#allocation38], 80  }
 0x4a9   : > { %17082 = vsyncadd (%p15251_p4), [#allocation38], 4294967216 }
 0x4aa   : > { %17084 = dma.done.wait (%p15251_p4), [#allocation41], 1664  }
 0x4ab   : > { %17086 = vsyncadd (%p15251_p4), [#allocation41], 4294965632 }
 0x4ac   : > { %17088 = dma.done.wait (%p15251_p4), [#allocation44], 3088  }
 0x4ad   : > { %17090 = vsyncadd (%p15251_p4), [#allocation44], 4294964208 }
 0x4ae   : > { %17092 = dma.done.wait (%p15251_p4), [#allocation47], 3088  }
 0x4af   : > { %17094 = vsyncadd (%p15251_p4), [#allocation47], 4294964208 }
 0x4b0   : > { %17096 = dma.done.wait (%p15251_p4), [#allocation50], 48  }
 0x4b1   : > { %17098 = vsyncadd (%p15251_p4), [#allocation50], 4294967248 }
 0x4b2   : > { %17100 = dma.done.wait (%p15251_p4), [#allocation53], 192  }
 0x4b3   : > { %17102 = vsyncadd (%p15251_p4), [#allocation53], 4294967104 }
 0x4b4   : > { %17104 = dma.done.wait (%p15251_p4), [#allocation56], 2304  }
 0x4b5   : > { %17106 = vsyncadd (%p15251_p4), [#allocation56], 4294964992 }
 0x4b6   : > { %17108 = dma.done.wait (%p15251_p4), [#allocation59], 2064  }
 0x4b7   : > { %17110 = vsyncadd (%p15251_p4), [#allocation59], 4294965232 }
 0x4b8   : > { %17112 = dma.done.wait (%p15251_p4), [#allocation62], 2064  }
 0x4b9   : > { %17114 = vsyncadd (%p15251_p4), [#allocation62], 4294965232 }
 0x4ba   : > { %17116 = dma.done.wait (%p15251_p4), [#allocation65], 16  }
 0x4bb   : > { %17118 = vsyncadd (%p15251_p4), [#allocation65], 4294967280  ;;  %s19452_s1 = sld [smem:[#allocation88_spill]]  ;;  %p2229_p2 = scmp.lt.s32.totalorder %s17525_s28, 1  ;;  %v17227_v0 = vmov 0.0   ;;  %vm17228_vm0 = vmmov 0  }
 0x4bc   : > { %13457 = vmatprep.subr.bf16.mxu0 %v17227_v0  ;;  %13459 = vmatprep.mubr.msk.bf16.mxu0 %vm17228_vm0, %v17227_v0  ;;  %v15407_v4 = vld [vmem:[#allocation55] sm:$0xff]   ;;  %vm2259_vm1 = vcmask 130048   ;;  %v15408_v5 = vld [vmem:[#allocation42 + $0x20] sm:$0xff]   ;;  %v15409_v6 = vld [vmem:[#allocation42 + $0x28] sm:$0xff]   ;;  %vm2337_vm2 = vcmask 523264   ;;  %s19453_s8 = sld [smem:[#allocation102_spill]] }
 0x4bd   : > { %s19467_s28 = smov (!%p2229_p2, %s17525_s28), 1  ;;  %13463 = vmatprep.subr.bf16.mxu1 %v17227_v0  ;;  %13471 = vmatprep.mubr.msk.bf16.mxu1 %vm17228_vm0, %v17227_v0  ;;  %v15413_v7 = vld [vmem:[#allocation42] sm:$0xff]   ;;  %v15410_v8 = vld [vmem:[#allocation42 + $0x30] sm:$0xff]   ;;  %v15414_v9 = vld [vmem:[#allocation42 + $0x8] sm:$0xff]   ;;  %vm3340_vm3 = vcmask 1043456   ;;  %vm3336_vm4 = vcmask 64512  }
 0x4be   : > { %s12777_s22 = sshll.u32 %s19467_s28, 4  ;;  %13464 = vmatpush3.bf16.msra.mxu1 %v15413_v7  ;;  %v15415_v10 = vld [vmem:[#allocation42 + $0x10] sm:$0xff]   ;;  %v15411_v11 = vld [vmem:[#allocation42 + $0x38] sm:$0xff]   ;;  %v15417_v14 = vld [vmem:[#allocation42 + $0x40] sm:$0xff]   ;;  %s19454_s11 = sld [smem:[#allocation108_spill]]  ;;  %vm4483_vm5 = vcmask 1041408  }
 0x4bf   : > { %13465 = vmatprep.subr.bf16.mxu1 %v17227_v0  ;;  %v15412_v12 = vld [vmem:[#allocation55 + $0x8] sm:$0xff]   ;;  %v15418_v15 = vld [vmem:[#allocation42 + $0x48] sm:$0xff]   ;;  %v15419_v16 = vld [vmem:[#allocation42 + $0x50] sm:$0xff]   ;;  %s19455_s2 = sld [smem:[#allocation104_spill]]  ;;  %vm4479_vm6 = vcmask 31744   ;;  %s19456_s4 = sld [smem:[#allocation115_spill]] }
 0x4c0   : > { %v15416_v13 = vld [vmem:[#allocation42 + $0x18] sm:$0xff]   ;;  %v15421_v32 = vld [vmem:[#allocation45 + $0x40] sm:$0xff]   ;;  %v15422_v33 = vld [vmem:[#allocation45 + $0x48] sm:$0xff]   ;;  %s19457_s6 = sld [smem:[#allocation106_spill]]  ;;  %vm5626_vm7 = vcmask 1040384   ;;  %vm5622_vm8 = vcmask 15360  }
 0x4c1   : > { %s2233_s7 = scalar_lea.vmem %s19452_s1, %s12777_s22  ;;  %v15420_v17 = vld [vmem:[#allocation42 + $0x58] sm:$0xff]   ;;  %v15425_v36 = vld [vmem:[#allocation45 + $0x60] sm:$0xff]   ;;  %v15426_v37 = vld [vmem:[#allocation45 + $0x68] sm:$0xff]   ;;  %s19458_s3 = sld [smem:[#allocation90_spill]] }
 0x4c2   : > { %v2240_v1 = vld [vmem:[%s2233_s7] sm:$0xff]  ;;  %v2241_v2 = vld [vmem:[%s2233_s7 + $0x8] sm:$0xff]  ;;  %13466 = vmatpush3.bf16.msra.mxu1 %v15414_v9  ;;  %v15423_v34 = vld [vmem:[#allocation45 + $0x50] sm:$0xff]   ;;  %s19459_s12 = sld [smem:[#allocation124_spill]]  ;;  %s19460_s1 = sld [smem:[#allocation89_spill]] }
 0x4c3   : > { %v2242_v3 = vpack.c.bf16 %v2241_v2, %v2240_v1  ;;  %13467 = vmatprep.subr.bf16.mxu1 %v17227_v0  ;;  %v15424_v35 = vld [vmem:[#allocation45 + $0x58] sm:$0xff]   ;;  %v15427_v38 = vld [vmem:[#allocation45 + $0x70] sm:$0xff]   ;;  %v15429_v58 = vld [vmem:[#allocation45] sm:$0xff]   ;;  %s19461_s7 = sld [smem:[#allocation125_spill]] }
 0x4c4   : > { %v15428_v39 = vld [vmem:[#allocation45 + $0x78] sm:$0xff]   ;;  %v15430_v60 = vld [vmem:[#allocation45 + $0x8] sm:$0xff]   ;;  %v15431_v61 = vld [vmem:[#allocation45 + $0x10] sm:$0xff]  }
 0x4c5   : > { %13458 = vmatpush3.bf16.msra.mxu0 %v2242_v3  ;;  %v12101_v47 = vld [vmem:[#allocation43] ss:$0 sm:$0xff]  ;;  %v15927_v59 = vld [vmem:[#allocation55] sm:$0xff]   ;;  %v15433_v63 = vld [vmem:[#allocation45 + $0x20] sm:$0xff]  }
 0x4c6   : > { %13475 = vmatprep.subr.bf16.mxu0 %v17227_v0  ;;  %13468 = vmatpush3.bf16.msra.mxu1 %v15415_v10  ;;  %v15432_v62 = vld [vmem:[#allocation45 + $0x18] sm:$0xff]   ;;  %v15434_v1 = vld [vmem:[#allocation45 + $0x28] sm:$0xff]   ;;  %v15435_v2 = vld [vmem:[#allocation45 + $0x30] sm:$0xff]  }
 0x4c7   : > { %13469 = vmatprep.subr.bf16.mxu1 %v17227_v0  ;;  %v15440_v7 = vld [vmem:[#allocation45 + $0x98] sm:$0xff]  }
 0x4c8   : > { %13460 = vmatmul.mubr.msk.bf16.vlgmr.msra.gmra.mrb[0].mxu0 %vm2259_vm1, %v15407_v4  ;;  %v15437_v4 = vld [vmem:[#allocation45 + $0x80] sm:$0xff]  }
 0x4c9   : > { %13476 = vmatpush3.bf16.msra.mxu0 %v15408_v5  ;;  %13483 = vmatprep.mubr.msk.bf16.mxu0 %vm17228_vm0, %v17227_v0  ;;  %v15438_v5 = vld [vmem:[#allocation45 + $0x88] sm:$0xff]  }
 0x4ca   : > { %13477 = vmatprep.subr.bf16.mxu0 %v17227_v0  ;;  %13470 = vmatpush3.bf16.msra.mxu1 %v15416_v13 }
 0x4cb   : > { %13505 = vmatprep.subr.bf16.mxu1 %v17227_v0 }
 0x4cd   : > { %13478 = vmatpush3.bf16.msra.mxu0 %v15409_v6  ;;  %v15439_v6 = vld [vmem:[#allocation45 + $0x90] sm:$0xff]  }
 0x4ce   : > { %13479 = vmatprep.subr.bf16.mxu0 %v17227_v0 }
 0x4d1   : > { %13480 = vmatpush3.bf16.msra.mxu0 %v15410_v8  ;;  %v15441_v8 = vld [vmem:[#allocation45 + $0xa0] sm:$0xff]  }
 0x4d2   : > { %13481 = vmatprep.subr.bf16.mxu0 %v17227_v0 }
 0x4d5   : > { %13482 = vmatpush3.bf16.msra.mxu0 %v15411_v11 }
 0x4d6   : > { %13487 = vmatprep.subr.bf16.mxu0 %v17227_v0 }
 0x4d8   : > { %13484 = vmatmul.mubr.msk.bf16.vlgmr.msra.gmra.mrb[4].mxu0 %vm2337_vm2, %v2242_v3 }
 0x4d9   : > { %13488 = vmatpush3.bf16.msra.mxu0 %v2242_v3  ;;  %13489 = vmatprep.mubr.msk.bf16.mxu0 %vm17228_vm0, %v17227_v0  ;;  %v15436_v3 = vld [vmem:[#allocation45 + $0x38] sm:$0xff]  }
 0x4da   : > { %13493 = vmatprep.subr.bf16.mxu0 %v17227_v0 }
 0x4e0   : > { %13490 = vmatmul.mubr.msk.bf16.vlgmr.msra.gmra.mrb[8].mxu0 %vm2259_vm1, %v15412_v12 }
 0x4e1   : > { %13501 = vmatprep.mubr.msk.bf16.mxu0 %vm17228_vm0, %v17227_v0  ;;  %13494 = vmatpush3.bf16.msra.mxu0 %v15417_v14 }
 0x4e2   : > { %13495 = vmatprep.subr.bf16.mxu0 %v17227_v0 }
 0x4e5   : > { %13496 = vmatpush3.bf16.msra.mxu0 %v15418_v15 }
 0x4e6   : > { %13497 = vmatprep.subr.bf16.mxu0 %v17227_v0 }
 0x4e9   : > { %13498 = vmatpush3.bf16.msra.mxu0 %v15419_v16 }
 0x4ea   : > { %13499 = vmatprep.subr.bf16.mxu0 %v17227_v0 }
 0x4ed   : > { %13500 = vmatpush3.bf16.msra.mxu0 %v15420_v17 }
 0x4ee   : > { %13531 = vmatprep.subr.bf16.mxu0 %v17227_v0 }
 0x59b   : > { %v2297_v18 = vpop.f32.mrb[0].mxu0 }
 0x59c   : > { %v13461_v19 = vpop.f32.mrb[1].mxu0 }
 0x59d   : > { %v2300_v20 = vpop.f32.mrb[2].mxu0  ;;  %v15442_v19 = vld [vmem:[#allocation45 + $0xa8] sm:$0xff]  }
 0x59e   : > { %v2304_v21 = vpack.c.bf16 %v2300_v20, %v2297_v18  ;;  %v13462_v22 = vpop.f32.mrb[3].mxu0  ;;  %v15928_v18 = vld [vmem:[#allocation55 + $0x8] sm:$0xff]   ;;  %v15443_v20 = vld [vmem:[#allocation45 + $0xb0] sm:$0xff]  }
 0x5a0   : > { %13472 = vmatmul.mubr.msk.bf16.vlgmr.msra.gmra.mrb[0].mxu1 %vm2337_vm2, %v2304_v21  ;;  %v15444_v21 = vld [vmem:[#allocation45 + $0xb8] sm:$0xff]  }
 0x5a1   : > { %13507 = vmatprep.mubr.msk.bf16.mxu1 %vm17228_vm0, %v17227_v0 }
 0x5ab   : > { %v2443_v23 = vpop.f32.mrb[4].mxu0 }
 0x5ac   : > { %v13485_v24 = vpop.f32.mrb[5].mxu0 }
 0x5ad   : > { %v2446_v25 = vpop.f32.mrb[6].mxu0 }
 0x5ae   : > { %v13486_v26 = vpop.f32.mrb[7].mxu0 }
 0x5b3   : > { %v2495_v27 = vpop.f32.mrb[8].mxu0 }
 0x5b4   : > { %v13491_v28 = vpop.f32.mrb[9].mxu0 }
 0x5b5   : > { %v2498_v29 = vpop.f32.mrb[10].mxu0 }
 0x5b6   : > { %v2502_v30 = vpack.c.bf16 %v2498_v29, %v2495_v27  ;;  %v13492_v31 = vpop.f32.mrb[11].mxu0 }
 0x5b8   : > { %13502 = vmatmul.mubr.msk.bf16.vlgmr.msra.gmra.mrb[12].mxu0 %vm2337_vm2, %v2502_v30 }
 0x5b9   : > { %13547 = vmatprep.mubr.msk.bf16.mxu0 %vm17228_vm0, %v17227_v0  ;;  %13532 = vmatpush3.bf16.msra.mxu0 %v15421_v32 }
 0x5ba   : > { %13533 = vmatprep.subr.bf16.mxu0 %v17227_v0 }
 0x5bd   : > { %13534 = vmatpush3.bf16.msra.mxu0 %v15422_v33  ;;  %v15445_v33 = vld [vmem:[#allocation18] sm:$0xff]  }
 0x5be   : > { %13535 = vmatprep.subr.bf16.mxu0 %v17227_v0 }
 0x5c1   : > { %13536 = vmatpush3.bf16.msra.mxu0 %v15423_v34  ;;  %v15446_v34 = vld [vmem:[#allocation18 + $0x8] sm:$0xff]  }
 0x5c2   : > { %13537 = vmatprep.subr.bf16.mxu0 %v17227_v0 }
 0x5c5   : > { %13538 = vmatpush3.bf16.msra.mxu0 %v15424_v35  ;;  %v15448_v35 = vld [vmem:[#allocation18 + $0x10] sm:$0xff]  }
 0x5c6   : > { %13539 = vmatprep.subr.bf16.mxu0 %v17227_v0 }
 0x5c9   : > { %13540 = vmatpush3.bf16.msra.mxu0 %v15425_v36  ;;  %v15450_v36 = vld [vmem:[#allocation18 + $0x18] sm:$0xff]  }
 0x5ca   : > { %13541 = vmatprep.subr.bf16.mxu0 %v17227_v0 }
 0x5cd   : > { %13542 = vmatpush3.bf16.msra.mxu0 %v15426_v37  ;;  %v15452_v37 = vld [vmem:[#allocation18 + $0x20] sm:$0xff]  }
 0x5ce   : > { %13543 = vmatprep.subr.bf16.mxu0 %v17227_v0 }
 0x5d1   : > { %13544 = vmatpush3.bf16.msra.mxu0 %v15427_v38  ;;  %v15454_v38 = vld [vmem:[#allocation18 + $0x28] sm:$0xff]  }
 0x5d2   : > { %13545 = vmatprep.subr.bf16.mxu0 %v17227_v0 }
 0x5d5   : > { %13546 = vmatpush3.bf16.msra.mxu0 %v15428_v39  ;;  %v15456_v39 = vld [vmem:[#allocation18 + $0x30] sm:$0xff]  }
 0x5d6   : > { %13557 = vmatprep.subr.bf16.mxu0 %v17227_v0 }
 0x673   : > { %v2375_v40 = vpop.f32.mrb[0].mxu1 }
 0x674   : > { %v2444_v41 = vadd.f32 %v2443_v23, %v2375_v40  ;;  %v13473_v42 = vpop.f32.mrb[1].mxu1 }
 0x675   : > { %v2378_v43 = vpop.f32.mrb[2].mxu1 }
 0x676   : > { %v2447_v44 = vadd.f32 %v2446_v25, %v2378_v43  ;;  %v13474_v45 = vpop.f32.mrb[3].mxu1 }
 0x68b   : > { %v2573_v46 = vpop.f32.mrb[12].mxu0 }
 0x68c   : > { %v2580_v48 = vadd.f32 %v2573_v46, %v2444_v41  ;;  %v13503_v49 = vpop.f32.mrb[13].mxu0  ;;  %v12128_v41 = vld [vmem:[#allocation46] ss:$0 sm:$0xff] }
 0x68d   : > { %v2576_v50 = vpop.f32.mrb[14].mxu0 }
 0x68e   : > { %v2589_v51 = vadd.f32 %v12101_v47, %v2580_v48  ;;  %v2581_v52 = vadd.f32 %v2576_v50, %v2447_v44  ;;  %v13504_v53 = vpop.f32.mrb[15].mxu0 }
 0x68f   : > { %v3055_v53 = vld [vmem:[#allocation40 + $0x4] sm:$0xf] }
 0x690   : > { %v2590_v54 = vadd.f32 %v12101_v47, %v2581_v52  ;;  %v2591_v55 = vmax.f32 %v2589_v51, 0.0  ;;  %v3009_v52 = vld [vmem:[#allocation40] sm:$0xf] }
 0x692   : > { %v2592_v56 = vmax.f32 %v2590_v54, 0.0  ;;  %v15447_v54 = vld [vmem:[#allocation18 + $0x40] sm:$0xff]  }
 0x694   : > { %v2593_v57 = vpack.c.bf16 %v2592_v56, %v2591_v55  ;;  %v15449_v55 = vld [vmem:[#allocation18 + $0x48] sm:$0xff]   ;;  %v15451_v56 = vld [vmem:[#allocation18 + $0x50] sm:$0xff]  }
 0x696   : > { %13506 = vmatpush3.bf16.msra.mxu1 %v2593_v57  ;;  %13548 = vmatmul.mubr.bf16.vlgmr.msra.gmra.mrb[16].mxu0 %v2593_v57 }
 0x697   : > { %13511 = vmatprep.subr.bf16.mxu1 %v17227_v0  ;;  %13573 = vmatprep.mubr.msk.bf16.mxu0 %vm17228_vm0, %v17227_v0 }
 0x698   : > { %13558 = vmatpush3.bf16.msra.mxu0 %v15437_v4 }
 0x699   : > { %13508 = vmatmul.mubr.msk.bf16.vlgmr.msra.gmra.mrb[4].mxu1 %vm2259_vm1, %v15927_v59  ;;  %13559 = vmatprep.subr.bf16.mxu0 %v17227_v0  ;;  %v15457_v59 = vld [vmem:[#allocation18 + $0x68] sm:$0xff]  }
 0x69a   : > { %13512 = vmatpush3.bf16.msra.mxu1 %v15429_v58  ;;  %13527 = vmatprep.mubr.msk.bf16.mxu1 %vm17228_vm0, %v17227_v0  ;;  %v15455_v58 = vld [vmem:[#allocation18 + $0x60] sm:$0xff]  }
 0x69b   : > { %13513 = vmatprep.subr.bf16.mxu1 %v17227_v0 }
 0x69c   : > { %13560 = vmatpush3.bf16.msra.mxu0 %v15438_v5 }
 0x69d   : > { %13561 = vmatprep.subr.bf16.mxu0 %v17227_v0 }
 0x69e   : > { %13514 = vmatpush3.bf16.msra.mxu1 %v15430_v60  ;;  %v15458_v60 = vld [vmem:[#allocation18 + $0x38] sm:$0xff]  }
 0x69f   : > { %13515 = vmatprep.subr.bf16.mxu1 %v17227_v0 }
 0x6a0   : > { %13562 = vmatpush3.bf16.msra.mxu0 %v15439_v6  ;;  %v15462_v6 = vld [vmem:[#allocation22 + $0x48] sm:$0xff]  }
 0x6a1   : > { %13563 = vmatprep.subr.bf16.mxu0 %v17227_v0 }
 0x6a2   : > { %13516 = vmatpush3.bf16.msra.mxu1 %v15431_v61  ;;  %v15459_v61 = vld [vmem:[#allocation18 + $0x70] sm:$0xff]  }
 0x6a3   : > { %13517 = vmatprep.subr.bf16.mxu1 %v17227_v0 }
 0x6a4   : > { %13564 = vmatpush3.bf16.msra.mxu0 %v15440_v7 }
 0x6a5   : > { %13565 = vmatprep.subr.bf16.mxu0 %v17227_v0 }
 0x6a6   : > { %13518 = vmatpush3.bf16.msra.mxu1 %v15432_v62  ;;  %v15460_v62 = vld [vmem:[#allocation18 + $0x78] sm:$0xff]  }
 0x6a7   : > { %13519 = vmatprep.subr.bf16.mxu1 %v17227_v0 }
 0x6a8   : > { %13566 = vmatpush3.bf16.msra.mxu0 %v15441_v8  ;;  %v15463_v8 = vld [vmem:[#allocation22 + $0x50] sm:$0xff]  }
 0x6a9   : > { %13567 = vmatprep.subr.bf16.mxu0 %v17227_v0 }
 0x6aa   : > { %13520 = vmatpush3.bf16.msra.mxu1 %v15433_v63 }
 0x6ab   : > { %13521 = vmatprep.subr.bf16.mxu1 %v17227_v0 }
 0x6ac   : > { %13568 = vmatpush3.bf16.msra.mxu0 %v15442_v19 }
 0x6ad   : > { %13569 = vmatprep.subr.bf16.mxu0 %v17227_v0 }
 0x6ae   : > { %13522 = vmatpush3.bf16.msra.mxu1 %v15434_v1  ;;  %v15461_v1 = vld [vmem:[#allocation22 + $0x40] sm:$0xff]  }
 0x6af   : > { %13523 = vmatprep.subr.bf16.mxu1 %v17227_v0 }
 0x6b0   : > { %13570 = vmatpush3.bf16.msra.mxu0 %v15443_v20 }
 0x6b1   : > { %13571 = vmatprep.subr.bf16.mxu0 %v17227_v0 }
 0x6b2   : > { %13524 = vmatpush3.bf16.msra.mxu1 %v15435_v2 }
 0x6b3   : > { %13525 = vmatprep.subr.bf16.mxu1 %v17227_v0 }
 0x6b4   : > { %13572 = vmatpush3.bf16.msra.mxu0 %v15444_v21 }
 0x6b5   : > { %13609 = vmatprep.subr.bf16.mxu0 %v17227_v0 }
 0x6b6   : > { %13526 = vmatpush3.bf16.msra.mxu1 %v15436_v3 }
 0x6b7   : > { %13551 = vmatprep.subr.bf16.mxu1 %v17227_v0 }
 0x769   : > { %v2840_v9 = vpop.f32.mrb[16].mxu0 }
 0x76a   : > { %v13549_v10 = vpop.f32.mrb[17].mxu0 }
 0x76b   : > { %v2843_v11 = vpop.f32.mrb[18].mxu0 }
 0x76c   : > { %v2645_v12 = vpop.f32.mrb[4].mxu1  ;;  %v13550_v13 = vpop.f32.mrb[19].mxu0 }
 0x76d   : > { %v13509_v14 = vpop.f32.mrb[5].mxu1  ;;  %v15464_v13 = vld [vmem:[#allocation22 + $0x58] sm:$0xff]  }
 0x76e   : > { %v2648_v15 = vpop.f32.mrb[6].mxu1  ;;  %v15465_v14 = vld [vmem:[#allocation22 + $0x60] sm:$0xff]  }
 0x76f   : > { %v2652_v16 = vpack.c.bf16 %v2648_v15, %v2645_v12  ;;  %v13510_v17 = vpop.f32.mrb[7].mxu1  ;;  %v15466_v15 = vld [vmem:[#allocation22 + $0x68] sm:$0xff]  }
 0x770   : > { %v15468_v17 = vld [vmem:[#allocation22 + $0x78] sm:$0xff]  }
 0x771   : > { %13528 = vmatmul.mubr.bf16.vlgmr.msra.gmra.mrb[8].mxu1 %v2652_v16  ;;  %v15467_v16 = vld [vmem:[#allocation22 + $0x70] sm:$0xff]  }
 0x772   : > { %13552 = vmatpush3.bf16.msra.mxu1 %v2593_v57  ;;  %13553 = vmatprep.mubr.msk.bf16.mxu1 %vm17228_vm0, %v17227_v0  ;;  %v15453_v57 = vld [vmem:[#allocation18 + $0x58] sm:$0xff]  }
 0x773   : > { %13577 = vmatprep.subr.bf16.mxu1 %v17227_v0 }
 0x779   : > { %13554 = vmatmul.mubr.msk.bf16.vlgmr.msra.gmra.mrb[12].mxu1 %vm2259_vm1, %v15928_v18 }
 0x77a   : > { %13579 = vmatprep.mubr.msk.bf16.mxu1 %vm17228_vm0, %v17227_v0 }
 0x844   : > { %v2751_v22 = vpop.f32.mrb[8].mxu1 }
 0x845   : > { %v2841_v23 = vadd.f32 %v2840_v9, %v2751_v22  ;;  %v13529_v24 = vpop.f32.mrb[9].mxu1 }
 0x846   : > { %v2754_v25 = vpop.f32.mrb[10].mxu1 }
 0x847   : > { %v2844_v26 = vadd.f32 %v2843_v11, %v2754_v25  ;;  %v13530_v27 = vpop.f32.mrb[11].mxu1 }
 0x84c   : > { %v2881_v28 = vpop.f32.mrb[12].mxu1 }
 0x84d   : > { %v13555_v29 = vpop.f32.mrb[13].mxu1 }
 0x84e   : > { %v2884_v30 = vpop.f32.mrb[14].mxu1 }
 0x84f   : > { %v2888_v31 = vpack.c.bf16 %v2884_v30, %v2881_v28  ;;  %v13556_v32 = vpop.f32.mrb[15].mxu1 }
 0x850   : > { %v15469_v32 = vld [vmem:[#allocation22] sm:$0xff]  }
 0x851   : > { %13574 = vmatmul.mubr.bf16.vlgmr.msra.gmra.mrb[20].mxu0 %v2888_v31  ;;  %v18358_v31 = vld [vmem:[#allocation54] sm:$0xf] }
 0x852   : > { %13625 = vmatprep.mubr.msk.bf16.mxu0 %vm17228_vm0, %v17227_v0  ;;  %13610 = vmatpush3.bf16.msra.mxu0 %v15445_v33  ;;  %v15470_v33 = vld [vmem:[#allocation22 + $0x8] sm:$0xff]  }
 0x853   : > { %13611 = vmatprep.subr.bf16.mxu0 %v17227_v0 }
 0x856   : > { %13612 = vmatpush3.bf16.msra.mxu0 %v15446_v34  ;;  %v15471_v34 = vld [vmem:[#allocation22 + $0x10] sm:$0xff]  }
 0x857   : > { %13613 = vmatprep.subr.bf16.mxu0 %v17227_v0 }
 0x85a   : > { %13614 = vmatpush3.bf16.msra.mxu0 %v15448_v35  ;;  %v15472_v35 = vld [vmem:[#allocation22 + $0x18] sm:$0xff]  }
 0x85b   : > { %13615 = vmatprep.subr.bf16.mxu0 %v17227_v0 }
 0x85e   : > { %13616 = vmatpush3.bf16.msra.mxu0 %v15450_v36  ;;  %v15473_v36 = vld [vmem:[#allocation22 + $0x20] sm:$0xff]  }
 0x85f   : > { %13617 = vmatprep.subr.bf16.mxu0 %v17227_v0 }
 0x862   : > { %13618 = vmatpush3.bf16.msra.mxu0 %v15452_v37  ;;  %v15474_v37 = vld [vmem:[#allocation22 + $0x28] sm:$0xff]  }
 0x863   : > { %13619 = vmatprep.subr.bf16.mxu0 %v17227_v0 }
 0x866   : > { %13620 = vmatpush3.bf16.msra.mxu0 %v15454_v38  ;;  %v15475_v38 = vld [vmem:[#allocation22 + $0x30] sm:$0xff]  }
 0x867   : > { %13621 = vmatprep.subr.bf16.mxu0 %v17227_v0 }
 0x86a   : > { %13622 = vmatpush3.bf16.msra.mxu0 %v15456_v39  ;;  %v15476_v39 = vld [vmem:[#allocation22 + $0x38] sm:$0xff]  }
 0x86b   : > { %13623 = vmatprep.subr.bf16.mxu0 %v17227_v0 }
 0x86e   : > { %13624 = vmatpush3.bf16.msra.mxu0 %v15458_v60 }
 0x86f   : > { %13655 = vmatprep.subr.bf16.mxu0 %v17227_v0 }
 0x924   : > { %v2988_v40 = vpop.f32.mrb[20].mxu0 }
 0x925   : > { %v2995_v42 = vadd.f32 %v2988_v40, %v2841_v23  ;;  %v13575_v43 = vpop.f32.mrb[21].mxu0  ;;  %v12147_v23 = vld [vmem:[%s19453_s8] ss:$0 sm:$0xff]  ;;  %v15477_v40 = vld [vmem:[#allocation22 + $0x80] sm:$0xff]   ;;  %s19462_s8 = sld [smem:[#allocation126_spill]] }
 0x926   : > { %v2991_v44 = vpop.f32.mrb[22].mxu0  ;;  %v15480_v43 = vld [vmem:[#allocation22 + $0x98] sm:$0xff]  }
 0x927   : > { %v3004_v45 = vadd.f32 %v12128_v41, %v2995_v42  ;;  %v2996_v46 = vadd.f32 %v2991_v44, %v2844_v26  ;;  %v13576_v47 = vpop.f32.mrb[23].mxu0  ;;  %v15479_v42 = vld [vmem:[#allocation22 + $0x90] sm:$0xff]   ;;  %v15481_v44 = vld [vmem:[#allocation22 + $0xa0] sm:$0xff]  }
 0x929   : > { %v3005_v48 = vadd.f32 %v12128_v41, %v2996_v46  ;;  %v3006_v49 = vmax.f32 %v3004_v45, 0.0  ;;  %v15478_v41 = vld [vmem:[#allocation22 + $0x88] sm:$0xff]  }
 0x92b   : > { %v3007_v50 = vmax.f32 %v3005_v48, 0.0 }
 0x92d   : > { %v18323_v51 = vpack.c.bf16 %v3007_v50, %v3006_v49 }
 0x92f   : > { %13578 = vmatpush3.bf16.msra.mxu1 %v18323_v51 }
 0x930   : > { %13583 = vmatprep.subr.bf16.mxu1 %v17227_v0 }
 0x932   : > { %13580 = vmatmul.mubr.msk.bf16.vlgmr.msra.gmra.mrb[16].mxu1 %vm2259_vm1, %v3009_v52 }
 0x933   : > { %13584 = vmatpush3.bf16.msra.mxu1 %v18323_v51  ;;  %13585 = vmatprep.mubr.msk.bf16.mxu1 %vm17228_vm0, %v17227_v0 }
 0x934   : > { %13589 = vmatprep.subr.bf16.mxu1 %v17227_v0 }
 0x93a   : > { %13586 = vmatmul.mubr.msk.bf16.vlgmr.msra.gmra.mrb[20].mxu1 %vm2259_vm1, %v3055_v53 }
 0x93b   : > { %13590 = vmatpush3.bf16.msra.mxu1 %v15447_v54  ;;  %13605 = vmatprep.mubr.msk.bf16.mxu1 %vm17228_vm0, %v17227_v0 }
 0x93c   : > { %13591 = vmatprep.subr.bf16.mxu1 %v17227_v0 }
 0x93f   : > { %13592 = vmatpush3.bf16.msra.mxu1 %v15449_v55  ;;  %v18383_v55 = vld [vmem:[#allocation54 + $0x4] sm:$0xf] }
 0x940   : > { %13593 = vmatprep.subr.bf16.mxu1 %v17227_v0 }
 0x943   : > { %13594 = vmatpush3.bf16.msra.mxu1 %v15451_v56  ;;  %v15482_v56 = vld [vmem:[#allocation22 + $0xa8] sm:$0xff]  }
 0x944   : > { %13595 = vmatprep.subr.bf16.mxu1 %v17227_v0 }
 0x947   : > { %13596 = vmatpush3.bf16.msra.mxu1 %v15453_v57  ;;  %v15483_v57 = vld [vmem:[#allocation22 + $0xb0] sm:$0xff]  }
 0x948   : > { %13597 = vmatprep.subr.bf16.mxu1 %v17227_v0 }
 0x94b   : > { %13598 = vmatpush3.bf16.msra.mxu1 %v15455_v58  ;;  %v15484_v58 = vld [vmem:[#allocation22 + $0xb8] sm:$0xff]  }
 0x94c   : > { %13599 = vmatprep.subr.bf16.mxu1 %v17227_v0 }
 0x94f   : > { %13600 = vmatpush3.bf16.msra.mxu1 %v15457_v59 }
 0x950   : > { %13601 = vmatprep.subr.bf16.mxu1 %v17227_v0 }
 0x953   : > { %13602 = vmatpush3.bf16.msra.mxu1 %v15459_v61 }
 0x954   : > { %13603 = vmatprep.subr.bf16.mxu1 %v17227_v0 }
 0x957   : > { %13604 = vmatpush3.bf16.msra.mxu1 %v15460_v62 }
 0x958   : > { %13629 = vmatprep.subr.bf16.mxu1 %v17227_v0 }
 0xa05   : > { %v3047_v63 = vpop.f32.mrb[16].mxu1 }
 0xa06   : > { %v3053_v2 = vpack.c.bf16 %v3047_v63, %v3047_v63  ;;  %v13581_v3 = vpop.f32.mrb[17].mxu1 }
 0xa07   : > { %v3050_v4 = vpop.f32.mrb[18].mxu1 }
 0xa08   : > { %v13582_v5 = vpop.f32.mrb[19].mxu1  ;;  %13626 = vmatmul.mubr.bf16.vlgmr.msra.gmra.mrb[24].mxu0 %v3053_v2  ;;  %v15485_v2 = vld [vmem:[#allocation24 + $0x40] sm:$0xff]  }
 0xa09   : > { %13656 = vmatpush3.bf16.msra.mxu0 %v15461_v1  ;;  %13671 = vmatprep.mubr.msk.bf16.mxu0 %vm17228_vm0, %v17227_v0 }
 0xa0a   : > { %13657 = vmatprep.subr.bf16.mxu0 %v17227_v0 }
 0xa0d   : > { %v3093_v7 = vpop.f32.mrb[20].mxu1  ;;  %13658 = vmatpush3.bf16.msra.mxu0 %v15462_v6 }
 0xa0e   : > { %v3099_v9 = vpack.c.bf16 %v3093_v7, %v3093_v7  ;;  %v13587_v10 = vpop.f32.mrb[21].mxu1  ;;  %13659 = vmatprep.subr.bf16.mxu0 %v17227_v0  ;;  %v15486_v7 = vld [vmem:[#allocation24 + $0x48] sm:$0xff]  }
 0xa0f   : > { %v3096_v11 = vpop.f32.mrb[22].mxu1  ;;  %v15489_v10 = vld [vmem:[#allocation24 + $0x60] sm:$0xff]  }
 0xa10   : > { %v13588_v12 = vpop.f32.mrb[23].mxu1  ;;  %13606 = vmatmul.mubr.bf16.vlgmr.msra.gmra.mrb[24].mxu1 %v3099_v9  ;;  %v15488_v9 = vld [vmem:[#allocation24 + $0x58] sm:$0xff]   ;;  %v15490_v11 = vld [vmem:[#allocation24 + $0x68] sm:$0xff]  }
 0xa11   : > { %13660 = vmatpush3.bf16.msra.mxu0 %v15463_v8  ;;  %13631 = vmatprep.mubr.msk.bf16.mxu1 %vm17228_vm0, %v17227_v0  ;;  %v15487_v8 = vld [vmem:[#allocation24 + $0x50] sm:$0xff]  }
 0xa12   : > { %13661 = vmatprep.subr.bf16.mxu0 %v17227_v0  ;;  %v15491_v12 = vld [vmem:[#allocation24 + $0x70] sm:$0xff]  }
 0xa15   : > { %13662 = vmatpush3.bf16.msra.mxu0 %v15464_v13  ;;  %v15492_v13 = vld [vmem:[#allocation24 + $0x78] sm:$0xff]  }
 0xa16   : > { %13663 = vmatprep.subr.bf16.mxu0 %v17227_v0 }
 0xa19   : > { %13664 = vmatpush3.bf16.msra.mxu0 %v15465_v14 }
 0xa1a   : > { %13665 = vmatprep.subr.bf16.mxu0 %v17227_v0 }
 0xa1d   : > { %13666 = vmatpush3.bf16.msra.mxu0 %v15466_v15  ;;  %v12174_v15 = vld [vmem:[%s19454_s11] ss:$0 sm:$0xff]  ;;  %s19463_s11 = sld [smem:[#allocation96_spill]] }
 0xa1e   : > { %13667 = vmatprep.subr.bf16.mxu0 %v17227_v0 }
 0xa21   : > { %13668 = vmatpush3.bf16.msra.mxu0 %v15467_v16 }
 0xa22   : > { %13669 = vmatprep.subr.bf16.mxu0 %v17227_v0 }
 0xa25   : > { %13670 = vmatpush3.bf16.msra.mxu0 %v15468_v17 }
 0xa26   : > { %13681 = vmatprep.subr.bf16.mxu0 %v17227_v0 }
 0xadb   : > { %v3303_v18 = vpop.f32.mrb[24].mxu0 }
 0xadc   : > { %v13627_v19 = vpop.f32.mrb[25].mxu0 }
 0xadd   : > { %v3306_v20 = vpop.f32.mrb[26].mxu0 }
 0xade   : > { %v13628_v21 = vpop.f32.mrb[27].mxu0 }
 0xae3   : > { %v3215_v22 = vpop.f32.mrb[24].mxu1 }
 0xae4   : > { %v3304_v24 = vadd.f32 %v3303_v18, %v3215_v22  ;;  %v13607_v25 = vpop.f32.mrb[25].mxu1 }
 0xae5   : > { %v3218_v26 = vpop.f32.mrb[26].mxu1  ;;  %v15494_v25 = vld [vmem:[#allocation24 + $0x8] sm:$0xff]  }
 0xae6   : > { %v3316_v27 = vadd.f32 %v12147_v23, %v3304_v24  ;;  %v13608_v28 = vpop.f32.mrb[27].mxu1  ;;  %v15493_v24 = vld [vmem:[#allocation24] sm:$0xff]   ;;  %v15495_v26 = vld [vmem:[#allocation24 + $0x10] sm:$0xff]  }
 0xae7   : > { %v15497_v28 = vld [vmem:[#allocation24 + $0x20] sm:$0xff]  }
 0xae8   : > { %v3317_v29 = vpack.c.bf16 %v3316_v27, %v3316_v27  ;;  %v15496_v27 = vld [vmem:[#allocation24 + $0x18] sm:$0xff]  }
 0xaea   : > { %13672 = vmatmul.mubr.bf16.vlgmr.msra.gmra.mrb[28].mxu0 %v3317_v29  ;;  %v3342_v30 = vsel %vm3340_vm3, %v3317_v29, 0  ;;  %v15498_v29 = vld [vmem:[#allocation24 + $0x28] sm:$0xff]  }
 0xaeb   : > { %13630 = vmatpush3.bf16.msra.mxu1 %v3342_v30  ;;  %13697 = vmatprep.mubr.msk.bf16.mxu0 %vm17228_vm0, %v17227_v0 }
 0xaec   : > { %13635 = vmatprep.subr.bf16.mxu1 %v17227_v0  ;;  %13682 = vmatpush3.bf16.msra.mxu0 %v15477_v40 }
 0xaed   : > { %13683 = vmatprep.subr.bf16.mxu0 %v17227_v0 }
 0xaee   : > { %13632 = vmatmul.mubr.msk.bf16.vlgmr.msra.gmra.mrb[28].mxu1 %vm3336_vm4, %v18358_v31 }
 0xaef   : > { %13636 = vmatpush3.bf16.msra.mxu1 %v15469_v32  ;;  %13651 = vmatprep.mubr.msk.bf16.mxu1 %vm17228_vm0, %v17227_v0 }
 0xaf0   : > { %13637 = vmatprep.subr.bf16.mxu1 %v17227_v0  ;;  %13684 = vmatpush3.bf16.msra.mxu0 %v15478_v41  ;;  %v15501_v41 = vld [vmem:[#allocation24 + $0x80] sm:$0xff]  }
 0xaf1   : > { %13685 = vmatprep.subr.bf16.mxu0 %v17227_v0 }
 0xaf3   : > { %13638 = vmatpush3.bf16.msra.mxu1 %v15470_v33 }
 0xaf4   : > { %13639 = vmatprep.subr.bf16.mxu1 %v17227_v0  ;;  %13686 = vmatpush3.bf16.msra.mxu0 %v15479_v42  ;;  %v15502_v42 = vld [vmem:[#allocation24 + $0x88] sm:$0xff]  }
 0xaf5   : > { %13687 = vmatprep.subr.bf16.mxu0 %v17227_v0 }
 0xaf7   : > { %13640 = vmatpush3.bf16.msra.mxu1 %v15471_v34 }
 0xaf8   : > { %13641 = vmatprep.subr.bf16.mxu1 %v17227_v0  ;;  %13688 = vmatpush3.bf16.msra.mxu0 %v15480_v43  ;;  %v15503_v43 = vld [vmem:[#allocation24 + $0x90] sm:$0xff]  }
 0xaf9   : > { %13689 = vmatprep.subr.bf16.mxu0 %v17227_v0 }
 0xafb   : > { %13642 = vmatpush3.bf16.msra.mxu1 %v15472_v35 }
 0xafc   : > { %13643 = vmatprep.subr.bf16.mxu1 %v17227_v0  ;;  %13690 = vmatpush3.bf16.msra.mxu0 %v15481_v44  ;;  %v15504_v44 = vld [vmem:[#allocation24 + $0x98] sm:$0xff]  }
 0xafd   : > { %13691 = vmatprep.subr.bf16.mxu0 %v17227_v0 }
 0xaff   : > { %13644 = vmatpush3.bf16.msra.mxu1 %v15473_v36 }
 0xb00   : > { %13645 = vmatprep.subr.bf16.mxu1 %v17227_v0  ;;  %13692 = vmatpush3.bf16.msra.mxu0 %v15482_v56 }
 0xb01   : > { %13693 = vmatprep.subr.bf16.mxu0 %v17227_v0 }
 0xb03   : > { %13646 = vmatpush3.bf16.msra.mxu1 %v15474_v37 }
 0xb04   : > { %13647 = vmatprep.subr.bf16.mxu1 %v17227_v0  ;;  %13694 = vmatpush3.bf16.msra.mxu0 %v15483_v57 }
 0xb05   : > { %13695 = vmatprep.subr.bf16.mxu0 %v17227_v0 }
 0xb07   : > { %13648 = vmatpush3.bf16.msra.mxu1 %v15475_v38 }
 0xb08   : > { %13649 = vmatprep.subr.bf16.mxu1 %v17227_v0  ;;  %13696 = vmatpush3.bf16.msra.mxu0 %v15484_v58 }
 0xb09   : > { %13727 = vmatprep.subr.bf16.mxu0 %v17227_v0 }
 0xb0b   : > { %13650 = vmatpush3.bf16.msra.mxu1 %v15476_v39 }
 0xb0c   : > { %13675 = vmatprep.subr.bf16.mxu1 %v17227_v0 }
 0xbbd   : > { %v3571_v45 = vpop.f32.mrb[28].mxu0 }
 0xbbe   : > { %v13673_v46 = vpop.f32.mrb[29].mxu0 }
 0xbbf   : > { %v3574_v47 = vpop.f32.mrb[30].mxu0  ;;  %v15506_v46 = vld [vmem:[#allocation24 + $0xa8] sm:$0xff]  }
 0xbc0   : > { %v13674_v48 = vpop.f32.mrb[31].mxu0  ;;  %v15507_v47 = vld [vmem:[#allocation24 + $0xb0] sm:$0xff]  }
 0xbc1   : > { %v3378_v49 = vpop.f32.mrb[28].mxu1  ;;  %v15508_v48 = vld [vmem:[#allocation24 + $0xb8] sm:$0xff]  }
 0xbc2   : > { %v3384_v50 = vpack.c.bf16 %v3378_v49, %v3378_v49  ;;  %v13633_v52 = vpop.f32.mrb[29].mxu1 }
 0xbc3   : > { %v3381_v53 = vpop.f32.mrb[30].mxu1 }
 0xbc4   : > { %v13634_v54 = vpop.f32.mrb[31].mxu1  ;;  %13652 = vmatmul.mubr.bf16.vlgmr.msra.gmra.mrb[32].mxu1 %v3384_v50 }
 0xbc5   : > { %13676 = vmatpush3.bf16.msra.mxu1 %v3342_v30  ;;  %13677 = vmatprep.mubr.msk.bf16.mxu1 %vm17228_vm0, %v17227_v0  ;;  %v15499_v30 = vld [vmem:[#allocation24 + $0x30] sm:$0xff]  }
 0xbc6   : > { %13701 = vmatprep.subr.bf16.mxu1 %v17227_v0 }
 0xbcc   : > { %13678 = vmatmul.mubr.msk.bf16.vlgmr.msra.gmra.mrb[36].mxu1 %vm3336_vm4, %v18383_v55 }
 0xbcd   : > { %13703 = vmatprep.mubr.msk.bf16.mxu1 %vm17228_vm0, %v17227_v0 }
 0xc97   : > { %v3483_v59 = vpop.f32.mrb[32].mxu1 }
 0xc98   : > { %v3572_v60 = vadd.f32 %v3571_v45, %v3483_v59  ;;  %v13653_v61 = vpop.f32.mrb[33].mxu1  ;;  %v15505_v45 = vld [vmem:[#allocation24 + $0xa0] sm:$0xff]  }
 0xc99   : > { %v3486_v62 = vpop.f32.mrb[34].mxu1  ;;  %v15510_v61 = vld [vmem:[#allocation19 + $0x8] sm:$0xff]  }
 0xc9a   : > { %v13654_v63 = vpop.f32.mrb[35].mxu1  ;;  %v15512_v62 = vld [vmem:[#allocation19 + $0x10] sm:$0xff]  }
 0xc9b   : > { %v15514_v63 = vld [vmem:[#allocation19 + $0x18] sm:$0xff]  }
 0xc9f   : > { %v3616_v1 = vpop.f32.mrb[36].mxu1 }
 0xca0   : > { %v3622_v3 = vpack.c.bf16 %v3616_v1, %v3616_v1  ;;  %v13679_v4 = vpop.f32.mrb[37].mxu1  ;;  %v15516_v1 = vld [vmem:[#allocation19 + $0x20] sm:$0xff]  }
 0xca1   : > { %v3619_v5 = vpop.f32.mrb[38].mxu1 }
 0xca2   : > { %v13680_v6 = vpop.f32.mrb[39].mxu1  ;;  %13698 = vmatmul.mubr.bf16.vlgmr.msra.gmra.mrb[32].mxu0 %v3622_v3  ;;  %v15520_v3 = vld [vmem:[#allocation19 + $0x30] sm:$0xff]   ;;  %v12201_v5 = vld [vmem:[#allocation25] ss:$0 sm:$0xff] }
 0xca3   : > { %13728 = vmatpush3.bf16.msra.mxu0 %v15485_v2  ;;  %13743 = vmatprep.mubr.msk.bf16.mxu0 %vm17228_vm0, %v17227_v0  ;;  %v15518_v2 = vld [vmem:[#allocation19 + $0x28] sm:$0xff]  }
 0xca4   : > { %13729 = vmatprep.subr.bf16.mxu0 %v17227_v0 }
 0xca7   : > { %13730 = vmatpush3.bf16.msra.mxu0 %v15486_v7 }
 0xca8   : > { %13731 = vmatprep.subr.bf16.mxu0 %v17227_v0 }
 0xcab   : > { %13732 = vmatpush3.bf16.msra.mxu0 %v15487_v8 }
 0xcac   : > { %13733 = vmatprep.subr.bf16.mxu0 %v17227_v0 }
 0xcaf   : > { %13734 = vmatpush3.bf16.msra.mxu0 %v15488_v9 }
 0xcb0   : > { %13735 = vmatprep.subr.bf16.mxu0 %v17227_v0 }
 0xcb3   : > { %13736 = vmatpush3.bf16.msra.mxu0 %v15489_v10 }
 0xcb4   : > { %13737 = vmatprep.subr.bf16.mxu0 %v17227_v0 }
 0xcb7   : > { %13738 = vmatpush3.bf16.msra.mxu0 %v15490_v11 }
 0xcb8   : > { %13739 = vmatprep.subr.bf16.mxu0 %v17227_v0 }
 0xcbb   : > { %13740 = vmatpush3.bf16.msra.mxu0 %v15491_v12 }
 0xcbc   : > { %13741 = vmatprep.subr.bf16.mxu0 %v17227_v0 }
 0xcbf   : > { %13742 = vmatpush3.bf16.msra.mxu0 %v15492_v13 }
 0xcc0   : > { %13773 = vmatprep.subr.bf16.mxu0 %v17227_v0 }
 0xd75   : > { %v3722_v14 = vpop.f32.mrb[32].mxu0 }
 0xd76   : > { %v3728_v16 = vadd.f32 %v3722_v14, %v3572_v60  ;;  %v13699_v17 = vpop.f32.mrb[33].mxu0  ;;  %v15509_v60 = vld [vmem:[#allocation19] sm:$0xff]   ;;  %v4149_v14 = vld [vmem:[#allocation39] sm:$0x3] }
 0xd77   : > { %v3725_v18 = vpop.f32.mrb[34].mxu0  ;;  %v15513_v17 = vld [vmem:[#allocation19 + $0x48] sm:$0xff]  }
 0xd78   : > { %v3736_v19 = vadd.f32 %v12174_v15, %v3728_v16  ;;  %v13700_v20 = vpop.f32.mrb[35].mxu0  ;;  %v4198_v15 = vld [vmem:[#allocation39 + $0x2] sm:$0x3]  ;;  %v15511_v16 = vld [vmem:[#allocation19 + $0x40] sm:$0xff]   ;;  %v15515_v18 = vld [vmem:[#allocation19 + $0x50] sm:$0xff]  }
 0xd79   : > { %v15519_v20 = vld [vmem:[#allocation19 + $0x60] sm:$0xff]  }
 0xd7a   : > { %v3737_v21 = vmax.f32 %v3736_v19, 0.0  ;;  %v15517_v19 = vld [vmem:[#allocation19 + $0x58] sm:$0xff]  }
 0xd7c   : > { %v3738_v22 = vpack.c.bf16 %v3737_v21, %v3737_v21  ;;  %v15521_v21 = vld [vmem:[#allocation19 + $0x68] sm:$0xff]  }
 0xd7e   : > { %13744 = vmatmul.mubr.bf16.vlgmr.msra.gmra.mrb[36].mxu0 %v3738_v22  ;;  %v3757_v23 = vsel %vm3340_vm3, %v3738_v22, 0  ;;  %v15522_v22 = vld [vmem:[#allocation19 + $0x38] sm:$0xff]  }
 0xd7f   : > { %13702 = vmatpush3.bf16.msra.mxu1 %v3757_v23  ;;  %13775 = vmatprep.mubr.msk.bf16.mxu0 %vm17228_vm0, %v17227_v0 }
 0xd80   : > { %13707 = vmatprep.subr.bf16.mxu1 %v17227_v0 }
 0xd82   : > { %13704 = vmatmul.mubr.msk.bf16.vlgmr.msra.gmra.mrb[40].mxu1 %vm3336_vm4, %v18358_v31  ;;  %v15500_v31 = vld [vmem:[#allocation24 + $0x38] sm:$0xff]  }
 0xd83   : > { %13708 = vmatpush3.bf16.msra.mxu1 %v15493_v24  ;;  %13723 = vmatprep.mubr.msk.bf16.mxu1 %vm17228_vm0, %v17227_v0  ;;  %v15524_v24 = vld [vmem:[#allocation19 + $0x78] sm:$0xff]  }
 0xd84   : > { %13709 = vmatprep.subr.bf16.mxu1 %v17227_v0 }
 0xd87   : > { %13710 = vmatpush3.bf16.msra.mxu1 %v15494_v25 }
 0xd88   : > { %13711 = vmatprep.subr.bf16.mxu1 %v17227_v0 }
 0xd8b   : > { %13712 = vmatpush3.bf16.msra.mxu1 %v15495_v26 }
 0xd8c   : > { %13713 = vmatprep.subr.bf16.mxu1 %v17227_v0 }
 0xd8f   : > { %13714 = vmatpush3.bf16.msra.mxu1 %v15496_v27 }
 0xd90   : > { %13715 = vmatprep.subr.bf16.mxu1 %v17227_v0 }
 0xd93   : > { %13716 = vmatpush3.bf16.msra.mxu1 %v15497_v28 }
 0xd94   : > { %13717 = vmatprep.subr.bf16.mxu1 %v17227_v0 }
 0xd97   : > { %13718 = vmatpush3.bf16.msra.mxu1 %v15498_v29 }
 0xd98   : > { %13719 = vmatprep.subr.bf16.mxu1 %v17227_v0 }
 0xd9b   : > { %13720 = vmatpush3.bf16.msra.mxu1 %v15499_v30 }
 0xd9c   : > { %13721 = vmatprep.subr.bf16.mxu1 %v17227_v0 }
 0xd9f   : > { %13722 = vmatpush3.bf16.msra.mxu1 %v15500_v31 }
 0xda0   : > { %13747 = vmatprep.subr.bf16.mxu1 %v17227_v0 }
 0xe51   : > { %v3986_v32 = vpop.f32.mrb[36].mxu0 }
 0xe52   : > { %v13745_v33 = vpop.f32.mrb[37].mxu0 }
 0xe53   : > { %v3989_v34 = vpop.f32.mrb[38].mxu0 }
 0xe54   : > { %v13746_v35 = vpop.f32.mrb[39].mxu0 }
 0xe55   : > { %v3793_v36 = vpop.f32.mrb[40].mxu1  ;;  %v15533_v35 = vld [vmem:[#allocation27] sm:$0xff]  }
 0xe56   : > { %v3799_v37 = vpack.c.bf16 %v3793_v36, %v3793_v36  ;;  %v13705_v38 = vpop.f32.mrb[41].mxu1  ;;  %v15534_v36 = vld [vmem:[#allocation27 + $0x8] sm:$0xff]  }
 0xe57   : > { %v3796_v39 = vpop.f32.mrb[42].mxu1  ;;  %v15536_v38 = vld [vmem:[#allocation27 + $0x18] sm:$0xff]  }
 0xe58   : > { %v13706_v40 = vpop.f32.mrb[43].mxu1  ;;  %13724 = vmatmul.mubr.bf16.vlgmr.msra.gmra.mrb[44].mxu1 %v3799_v37  ;;  %v15535_v37 = vld [vmem:[#allocation27 + $0x10] sm:$0xff]   ;;  %v15537_v39 = vld [vmem:[#allocation27 + $0x20] sm:$0xff]  }
 0xe59   : > { %13748 = vmatpush3.bf16.msra.mxu1 %v3757_v23  ;;  %13749 = vmatprep.mubr.msk.bf16.mxu1 %vm17228_vm0, %v17227_v0  ;;  %v15523_v23 = vld [vmem:[#allocation19 + $0x70] sm:$0xff]  }
 0xe5a   : > { %13753 = vmatprep.subr.bf16.mxu1 %v17227_v0  ;;  %v15538_v40 = vld [vmem:[#allocation27 + $0x28] sm:$0xff]  }
 0xe60   : > { %13750 = vmatmul.mubr.msk.bf16.vlgmr.msra.gmra.mrb[48].mxu1 %vm3336_vm4, %v18383_v55 }
 0xe61   : > { %13754 = vmatpush3.bf16.msra.mxu1 %v15501_v41  ;;  %13769 = vmatprep.mubr.msk.bf16.mxu1 %vm17228_vm0, %v17227_v0  ;;  %v15539_v41 = vld [vmem:[#allocation27 + $0x30] sm:$0xff]  }
 0xe62   : > { %13755 = vmatprep.subr.bf16.mxu1 %v17227_v0 }
 0xe65   : > { %13756 = vmatpush3.bf16.msra.mxu1 %v15502_v42  ;;  %v15540_v42 = vld [vmem:[#allocation27 + $0x38] sm:$0xff]  }
 0xe66   : > { %13757 = vmatprep.subr.bf16.mxu1 %v17227_v0 }
 0xe69   : > { %13758 = vmatpush3.bf16.msra.mxu1 %v15503_v43 }
 0xe6a   : > { %13759 = vmatprep.subr.bf16.mxu1 %v17227_v0 }
 0xe6d   : > { %13760 = vmatpush3.bf16.msra.mxu1 %v15504_v44 }
 0xe6e   : > { %13761 = vmatprep.subr.bf16.mxu1 %v17227_v0 }
 0xe71   : > { %13762 = vmatpush3.bf16.msra.mxu1 %v15505_v45 }
 0xe72   : > { %13763 = vmatprep.subr.bf16.mxu1 %v17227_v0 }
 0xe75   : > { %13764 = vmatpush3.bf16.msra.mxu1 %v15506_v46 }
 0xe76   : > { %13765 = vmatprep.subr.bf16.mxu1 %v17227_v0 }
 0xe79   : > { %13766 = vmatpush3.bf16.msra.mxu1 %v15507_v47 }
 0xe7a   : > { %13767 = vmatprep.subr.bf16.mxu1 %v17227_v0 }
 0xe7d   : > { %13768 = vmatpush3.bf16.msra.mxu1 %v15508_v48  ;;  %v12220_v48 = vld [vmem:[%s19455_s2] ss:$0 sm:$0xff]  ;;  %s19464_s2 = sld [smem:[#allocation98_spill]] }
 0xe7e   : > { %13805 = vmatprep.subr.bf16.mxu1 %v17227_v0 }
 0xf2b   : > { %v3898_v49 = vpop.f32.mrb[44].mxu1 }
 0xf2c   : > { %v3987_v50 = vadd.f32 %v3986_v32, %v3898_v49  ;;  %v13725_v52 = vpop.f32.mrb[45].mxu1 }
 0xf2d   : > { %v3901_v53 = vpop.f32.mrb[46].mxu1 }
 0xf2e   : > { %v13726_v54 = vpop.f32.mrb[47].mxu1 }
 0xf33   : > { %v4026_v55 = vpop.f32.mrb[48].mxu1 }
 0xf34   : > { %v4032_v56 = vpack.c.bf16 %v4026_v55, %v4026_v55  ;;  %v13751_v57 = vpop.f32.mrb[49].mxu1 }
 0xf35   : > { %v4029_v58 = vpop.f32.mrb[50].mxu1  ;;  %v18482_v57 = vld [vmem:[#allocation52] sm:$0x3] }
 0xf36   : > { %v13752_v59 = vpop.f32.mrb[51].mxu1  ;;  %13770 = vmatmul.mubr.bf16.vlgmr.msra.gmra.mrb[52].mxu1 %v4032_v56  ;;  %v15525_v58 = vld [vmem:[#allocation27 + $0x40] sm:$0xff]  }
 0xf37   : > { %13821 = vmatprep.mubr.msk.bf16.mxu1 %vm17228_vm0, %v17227_v0  ;;  %13806 = vmatpush3.bf16.msra.mxu1 %v15509_v60  ;;  %v15526_v59 = vld [vmem:[#allocation27 + $0x48] sm:$0xff]   ;;  %v15527_v60 = vld [vmem:[#allocation27 + $0x50] sm:$0xff]  }
 0xf38   : > { %13807 = vmatprep.subr.bf16.mxu1 %v17227_v0 }
 0xf3b   : > { %13808 = vmatpush3.bf16.msra.mxu1 %v15510_v61  ;;  %v15528_v61 = vld [vmem:[#allocation27 + $0x58] sm:$0xff]  }
 0xf3c   : > { %13809 = vmatprep.subr.bf16.mxu1 %v17227_v0 }
 0xf3f   : > { %13810 = vmatpush3.bf16.msra.mxu1 %v15512_v62  ;;  %v15529_v62 = vld [vmem:[#allocation27 + $0x60] sm:$0xff]  }
 0xf40   : > { %13811 = vmatprep.subr.bf16.mxu1 %v17227_v0 }
 0xf43   : > { %13812 = vmatpush3.bf16.msra.mxu1 %v15514_v63  ;;  %v15530_v63 = vld [vmem:[#allocation27 + $0x68] sm:$0xff]  }
 0xf44   : > { %13813 = vmatprep.subr.bf16.mxu1 %v17227_v0 }
 0xf47   : > { %13814 = vmatpush3.bf16.msra.mxu1 %v15516_v1  ;;  %v15531_v1 = vld [vmem:[#allocation27 + $0x70] sm:$0xff]  }
 0xf48   : > { %13815 = vmatprep.subr.bf16.mxu1 %v17227_v0 }
 0xf4b   : > { %13816 = vmatpush3.bf16.msra.mxu1 %v15518_v2  ;;  %v15532_v2 = vld [vmem:[#allocation27 + $0x78] sm:$0xff]  }
 0xf4c   : > { %13817 = vmatprep.subr.bf16.mxu1 %v17227_v0 }
 0xf4f   : > { %13818 = vmatpush3.bf16.msra.mxu1 %v15520_v3  ;;  %v15541_v3 = vld [vmem:[#allocation27 + $0x80] sm:$0xff]  }
 0xf50   : > { %13819 = vmatprep.subr.bf16.mxu1 %v17227_v0 }
 0xf53   : > { %13820 = vmatpush3.bf16.msra.mxu1 %v15522_v22  ;;  %v15548_v22 = vld [vmem:[#allocation27 + $0xb8] sm:$0xff]  }
 0xf54   : > { %13831 = vmatprep.subr.bf16.mxu1 %v17227_v0 }
0x1009   : > { %v4132_v4 = vpop.f32.mrb[52].mxu1 }
0x100a   : > { %v4138_v6 = vadd.f32 %v4132_v4, %v3987_v50  ;;  %v13771_v7 = vpop.f32.mrb[53].mxu1  ;;  %v15542_v4 = vld [vmem:[#allocation27 + $0x88] sm:$0xff]  }
0x100b   : > { %v4135_v8 = vpop.f32.mrb[54].mxu1  ;;  %v15545_v7 = vld [vmem:[#allocation27 + $0xa0] sm:$0xff]  }
0x100c   : > { %v4146_v9 = vadd.f32 %v12201_v5, %v4138_v6  ;;  %v13772_v10 = vpop.f32.mrb[55].mxu1  ;;  %v15543_v5 = vld [vmem:[#allocation27 + $0x90] sm:$0xff]   ;;  %v15544_v6 = vld [vmem:[#allocation27 + $0x98] sm:$0xff]  }
0x100e   : > { %v4147_v11 = vmax.f32 %v4146_v9, 0.0 }
0x1010   : > { %v18443_v12 = vpack.c.bf16 %v4147_v11, %v4147_v11 }
0x1012   : > { %v18447_v13 = vsel %vm3340_vm3, %v18443_v12, 0 }
0x1013   : > { %13774 = vmatpush3.bf16.msra.mxu0 %v18447_v13 }
0x1014   : > { %13779 = vmatprep.subr.bf16.mxu0 %v17227_v0 }
0x1016   : > { %13776 = vmatmul.mubr.msk.bf16.vlgmr.msra.gmra.mrb[40].mxu0 %vm3336_vm4, %v4149_v14 }
0x1017   : > { %13780 = vmatpush3.bf16.msra.mxu0 %v18447_v13  ;;  %13781 = vmatprep.mubr.msk.bf16.mxu0 %vm17228_vm0, %v17227_v0 }
0x1018   : > { %13785 = vmatprep.subr.bf16.mxu0 %v17227_v0 }
0x101e   : > { %13782 = vmatmul.mubr.msk.bf16.vlgmr.msra.gmra.mrb[44].mxu0 %vm3336_vm4, %v4198_v15  ;;  %v18507_v15 = vld [vmem:[#allocation52 + $0x2] sm:$0x3] }
0x101f   : > { %13786 = vmatpush3.bf16.msra.mxu0 %v15511_v16  ;;  %13801 = vmatprep.mubr.msk.bf16.mxu0 %vm17228_vm0, %v17227_v0 }
0x1020   : > { %13787 = vmatprep.subr.bf16.mxu0 %v17227_v0 }
0x1023   : > { %13788 = vmatpush3.bf16.msra.mxu0 %v15513_v17 }
0x1024   : > { %13789 = vmatprep.subr.bf16.mxu0 %v17227_v0 }
0x1027   : > { %13790 = vmatpush3.bf16.msra.mxu0 %v15515_v18 }
0x1028   : > { %13791 = vmatprep.subr.bf16.mxu0 %v17227_v0 }
0x102b   : > { %13792 = vmatpush3.bf16.msra.mxu0 %v15517_v19 }
0x102c   : > { %13793 = vmatprep.subr.bf16.mxu0 %v17227_v0 }
0x102f   : > { %13794 = vmatpush3.bf16.msra.mxu0 %v15519_v20  ;;  %v15546_v20 = vld [vmem:[#allocation27 + $0xa8] sm:$0xff]  }
0x1030   : > { %13795 = vmatprep.subr.bf16.mxu0 %v17227_v0 }
0x1033   : > { %13796 = vmatpush3.bf16.msra.mxu0 %v15521_v21  ;;  %v15547_v21 = vld [vmem:[#allocation27 + $0xb0] sm:$0xff]  }
0x1034   : > { %13797 = vmatprep.subr.bf16.mxu0 %v17227_v0 }
0x1037   : > { %13798 = vmatpush3.bf16.msra.mxu0 %v15523_v23 }
0x1038   : > { %13799 = vmatprep.subr.bf16.mxu0 %v17227_v0 }
0x103b   : > { %13800 = vmatpush3.bf16.msra.mxu0 %v15524_v24 }
0x103c   : > { %13825 = vmatprep.subr.bf16.mxu0 %v17227_v0 }
0x10e9   : > { %v4190_v25 = vpop.f32.mrb[40].mxu0 }
0x10ea   : > { %v4196_v26 = vpack.c.bf16 %v4190_v25, %v4190_v25  ;;  %v13777_v27 = vpop.f32.mrb[41].mxu0 }
0x10eb   : > { %v4193_v28 = vpop.f32.mrb[42].mxu0 }
0x10ec   : > { %v13778_v29 = vpop.f32.mrb[43].mxu0  ;;  %13822 = vmatmul.mubr.bf16.vlgmr.msra.gmra.mrb[56].mxu1 %v4196_v26 }
0x10ed   : > { %13847 = vmatprep.mubr.msk.bf16.mxu1 %vm17228_vm0, %v17227_v0  ;;  %13832 = vmatpush3.bf16.msra.mxu1 %v15533_v35  ;;  %v15549_v29 = vld [vmem:[#allocation30 + $0x40] sm:$0xff]   ;;  %v15551_v35 = vld [vmem:[#allocation30 + $0x50] sm:$0xff]  }
0x10ee   : > { %13833 = vmatprep.subr.bf16.mxu1 %v17227_v0 }
0x10f1   : > { %v4236_v30 = vpop.f32.mrb[44].mxu0  ;;  %13834 = vmatpush3.bf16.msra.mxu1 %v15534_v36  ;;  %v15552_v36 = vld [vmem:[#allocation30 + $0x58] sm:$0xff]  }
0x10f2   : > { %v4242_v31 = vpack.c.bf16 %v4236_v30, %v4236_v30  ;;  %v13783_v32 = vpop.f32.mrb[45].mxu0  ;;  %13835 = vmatprep.subr.bf16.mxu1 %v17227_v0 }
0x10f3   : > { %v4239_v33 = vpop.f32.mrb[46].mxu0 }
0x10f4   : > { %v13784_v34 = vpop.f32.mrb[47].mxu0  ;;  %13802 = vmatmul.mubr.bf16.vlgmr.msra.gmra.mrb[48].mxu0 %v4242_v31 }
0x10f5   : > { %13827 = vmatprep.mubr.msk.bf16.mxu0 %vm17228_vm0, %v17227_v0  ;;  %13836 = vmatpush3.bf16.msra.mxu1 %v15535_v37  ;;  %v15550_v34 = vld [vmem:[#allocation30 + $0x48] sm:$0xff]   ;;  %v15553_v37 = vld [vmem:[#allocation30 + $0x60] sm:$0xff]  }
0x10f6   : > { %13837 = vmatprep.subr.bf16.mxu1 %v17227_v0 }
0x10f9   : > { %13838 = vmatpush3.bf16.msra.mxu1 %v15536_v38  ;;  %v15554_v38 = vld [vmem:[#allocation30 + $0x68] sm:$0xff]  }
0x10fa   : > { %13839 = vmatprep.subr.bf16.mxu1 %v17227_v0 }
0x10fd   : > { %13840 = vmatpush3.bf16.msra.mxu1 %v15537_v39  ;;  %v15555_v39 = vld [vmem:[#allocation30 + $0x70] sm:$0xff]  }
0x10fe   : > { %13841 = vmatprep.subr.bf16.mxu1 %v17227_v0 }
0x1101   : > { %13842 = vmatpush3.bf16.msra.mxu1 %v15538_v40  ;;  %v15556_v40 = vld [vmem:[#allocation30 + $0x78] sm:$0xff]  }
0x1102   : > { %13843 = vmatprep.subr.bf16.mxu1 %v17227_v0 }
0x1105   : > { %13844 = vmatpush3.bf16.msra.mxu1 %v15539_v41 }
0x1106   : > { %13845 = vmatprep.subr.bf16.mxu1 %v17227_v0 }
0x1109   : > { %13846 = vmatpush3.bf16.msra.mxu1 %v15540_v42  ;;  %v12247_v42 = vld [vmem:[#allocation28] ss:$0 sm:$0xff] }
0x110a   : > { %13871 = vmatprep.subr.bf16.mxu1 %v17227_v0 }
0x11bf   : > { %v4446_v43 = vpop.f32.mrb[56].mxu1 }
0x11c0   : > { %v13823_v44 = vpop.f32.mrb[57].mxu1 }
0x11c1   : > { %v4449_v45 = vpop.f32.mrb[58].mxu1 }
0x11c2   : > { %v13824_v46 = vpop.f32.mrb[59].mxu1 }
0x11c7   : > { %v4358_v47 = vpop.f32.mrb[48].mxu0 }
0x11c8   : > { %v4447_v49 = vadd.f32 %v4446_v43, %v4358_v47  ;;  %v13803_v50 = vpop.f32.mrb[49].mxu0 }
0x11c9   : > { %v4361_v52 = vpop.f32.mrb[50].mxu0 }
0x11ca   : > { %v4459_v53 = vadd.f32 %v12220_v48, %v4447_v49  ;;  %v13804_v54 = vpop.f32.mrb[51].mxu0  ;;  %v15557_v52 = vld [vmem:[#allocation30] sm:$0xff]  }
0x11cb   : > { %v15559_v54 = vld [vmem:[#allocation30 + $0x10] sm:$0xff]  }
0x11cc   : > { %v4460_v55 = vpack.c.bf16 %v4459_v53, %v4459_v53  ;;  %v15558_v53 = vld [vmem:[#allocation30 + $0x8] sm:$0xff]  }
0x11ce   : > { %v4485_v56 = vsel %vm4483_vm5, %v4460_v55, 0 }
0x11cf   : > { %13826 = vmatpush3.bf16.msra.mxu0 %v4485_v56 }
0x11d0   : > { %13851 = vmatprep.subr.bf16.mxu0 %v17227_v0 }
0x11d2   : > { %13828 = vmatmul.mubr.msk.bf16.vlgmr.msra.gmra.mrb[52].mxu0 %vm4479_vm6, %v18482_v57 }
0x11d3   : > { %13852 = vmatpush3.bf16.msra.mxu0 %v15525_v58  ;;  %13867 = vmatprep.mubr.msk.bf16.mxu0 %vm17228_vm0, %v17227_v0  ;;  %v15563_v58 = vld [vmem:[#allocation30 + $0x30] sm:$0xff]  }
0x11d4   : > { %13853 = vmatprep.subr.bf16.mxu0 %v17227_v0 }
0x11d7   : > { %13854 = vmatpush3.bf16.msra.mxu0 %v15526_v59  ;;  %v15564_v59 = vld [vmem:[#allocation30 + $0x38] sm:$0xff]  }
0x11d8   : > { %13855 = vmatprep.subr.bf16.mxu0 %v17227_v0 }
0x11db   : > { %13856 = vmatpush3.bf16.msra.mxu0 %v15527_v60 }
0x11dc   : > { %13857 = vmatprep.subr.bf16.mxu0 %v17227_v0 }
0x11df   : > { %13858 = vmatpush3.bf16.msra.mxu0 %v15528_v61 }
0x11e0   : > { %13859 = vmatprep.subr.bf16.mxu0 %v17227_v0 }
0x11e3   : > { %13860 = vmatpush3.bf16.msra.mxu0 %v15529_v62 }
0x11e4   : > { %13861 = vmatprep.subr.bf16.mxu0 %v17227_v0 }
0x11e7   : > { %13862 = vmatpush3.bf16.msra.mxu0 %v15530_v63 }
0x11e8   : > { %13863 = vmatprep.subr.bf16.mxu0 %v17227_v0 }
0x11eb   : > { %13864 = vmatpush3.bf16.msra.mxu0 %v15531_v1 }
0x11ec   : > { %13865 = vmatprep.subr.bf16.mxu0 %v17227_v0 }
0x11ef   : > { %13866 = vmatpush3.bf16.msra.mxu0 %v15532_v2 }
0x11f0   : > { %13877 = vmatprep.subr.bf16.mxu0 %v17227_v0 }
0x11f2   : > { %13868 = vmatmul.mubr.bf16.vlgmr.msra.gmra.mrb[56].mxu0 %v4460_v55  ;;  %v15560_v55 = vld [vmem:[#allocation30 + $0x18] sm:$0xff]  }
0x11f3   : > { %13893 = vmatprep.mubr.msk.bf16.mxu0 %vm17228_vm0, %v17227_v0  ;;  %13878 = vmatpush3.bf16.msra.mxu0 %v15541_v3 }
0x11f4   : > { %13879 = vmatprep.subr.bf16.mxu0 %v17227_v0 }
0x11f7   : > { %13880 = vmatpush3.bf16.msra.mxu0 %v15542_v4 }
0x11f8   : > { %13881 = vmatprep.subr.bf16.mxu0 %v17227_v0 }
0x11fb   : > { %13882 = vmatpush3.bf16.msra.mxu0 %v15543_v5 }
0x11fc   : > { %13883 = vmatprep.subr.bf16.mxu0 %v17227_v0 }
0x11ff   : > { %13884 = vmatpush3.bf16.msra.mxu0 %v15544_v6  ;;  %v15565_v6 = vld [vmem:[#allocation30 + $0x80] sm:$0xff]  }
0x1200   : > { %13885 = vmatprep.subr.bf16.mxu0 %v17227_v0 }
0x1203   : > { %13886 = vmatpush3.bf16.msra.mxu0 %v15545_v7  ;;  %v15566_v7 = vld [vmem:[#allocation30 + $0x88] sm:$0xff]  }
0x1204   : > { %13887 = vmatprep.subr.bf16.mxu0 %v17227_v0 }
0x1207   : > { %13888 = vmatpush3.bf16.msra.mxu0 %v15546_v20 }
0x1208   : > { %13889 = vmatprep.subr.bf16.mxu0 %v17227_v0 }
0x120b   : > { %13890 = vmatpush3.bf16.msra.mxu0 %v15547_v21 }
0x120c   : > { %13891 = vmatprep.subr.bf16.mxu0 %v17227_v0 }
0x120f   : > { %13892 = vmatpush3.bf16.msra.mxu0 %v15548_v22 }
0x1210   : > { %13923 = vmatprep.subr.bf16.mxu0 %v17227_v0 }
0x12a5   : > { %v4521_v8 = vpop.f32.mrb[52].mxu0 }
0x12a6   : > { %v4527_v9 = vpack.c.bf16 %v4521_v8, %v4521_v8  ;;  %v13829_v10 = vpop.f32.mrb[53].mxu0  ;;  %v15567_v8 = vld [vmem:[#allocation30 + $0x90] sm:$0xff]  }
0x12a7   : > { %v4524_v11 = vpop.f32.mrb[54].mxu0  ;;  %v15569_v10 = vld [vmem:[#allocation30 + $0xa0] sm:$0xff]  }
0x12a8   : > { %v13830_v14 = vpop.f32.mrb[55].mxu0  ;;  %13848 = vmatmul.mubr.bf16.vlgmr.msra.gmra.mrb[60].mxu1 %v4527_v9  ;;  %v15568_v9 = vld [vmem:[#allocation30 + $0x98] sm:$0xff]   ;;  %v15570_v11 = vld [vmem:[#allocation30 + $0xa8] sm:$0xff]  }
0x12a9   : > { %13872 = vmatpush3.bf16.msra.mxu1 %v4485_v56  ;;  %13873 = vmatprep.mubr.msk.bf16.mxu1 %vm17228_vm0, %v17227_v0  ;;  %v15561_v56 = vld [vmem:[#allocation30 + $0x20] sm:$0xff]   ;;  %v15571_v14 = vld [vmem:[#allocation30 + $0xb0] sm:$0xff]  }
0x12aa   : > { %13897 = vmatprep.subr.bf16.mxu1 %v17227_v0 }
0x12b0   : > { %13874 = vmatmul.mubr.msk.bf16.vlgmr.msra.gmra.mrb[64].mxu1 %vm4479_vm6, %v18507_v15 }
0x12b1   : > { %13899 = vmatprep.mubr.msk.bf16.mxu1 %vm17228_vm0, %v17227_v0 }
0x12c5   : > { %v4714_v16 = vpop.f32.mrb[56].mxu0 }
0x12c6   : > { %v13869_v17 = vpop.f32.mrb[57].mxu0 }
0x12c7   : > { %v4717_v18 = vpop.f32.mrb[58].mxu0 }
0x12c8   : > { %v13870_v19 = vpop.f32.mrb[59].mxu0 }
0x137b   : > { %v4626_v23 = vpop.f32.mrb[60].mxu1 }
0x137c   : > { %v4715_v24 = vadd.f32 %v4714_v16, %v4626_v23  ;;  %v13849_v25 = vpop.f32.mrb[61].mxu1 }
0x137d   : > { %v4629_v26 = vpop.f32.mrb[62].mxu1 }
0x137e   : > { %v13850_v27 = vpop.f32.mrb[63].mxu1  ;;  %v15573_v26 = vld [vmem:[#allocation21] sm:$0xff]  }
0x137f   : > { %v15574_v27 = vld [vmem:[#allocation21 + $0x8] sm:$0xff]  }
0x1383   : > { %v4759_v28 = vpop.f32.mrb[64].mxu1 }
0x1384   : > { %v4765_v30 = vpack.c.bf16 %v4759_v28, %v4759_v28  ;;  %v13875_v31 = vpop.f32.mrb[65].mxu1  ;;  %v15576_v28 = vld [vmem:[#allocation21 + $0x10] sm:$0xff]  }
0x1385   : > { %v4762_v32 = vpop.f32.mrb[66].mxu1  ;;  %v15582_v31 = vld [vmem:[#allocation21 + $0x28] sm:$0xff]  }
0x1386   : > { %v13876_v33 = vpop.f32.mrb[67].mxu1  ;;  %13894 = vmatmul.mubr.bf16.vlgmr.msra.gmra.mrb[60].mxu0 %v4765_v30  ;;  %v15580_v30 = vld [vmem:[#allocation21 + $0x20] sm:$0xff]   ;;  %v15584_v32 = vld [vmem:[#allocation21 + $0x30] sm:$0xff]  }
0x1387   : > { %13924 = vmatpush3.bf16.msra.mxu0 %v15549_v29  ;;  %13939 = vmatprep.mubr.msk.bf16.mxu0 %vm17228_vm0, %v17227_v0  ;;  %v15578_v29 = vld [vmem:[#allocation21 + $0x18] sm:$0xff]  }
0x1388   : > { %13925 = vmatprep.subr.bf16.mxu0 %v17227_v0 }
0x138b   : > { %13926 = vmatpush3.bf16.msra.mxu0 %v15550_v34  ;;  %v12274_v34 = vld [vmem:[#allocation31] ss:$0 sm:$0xff] }
0x138c   : > { %13927 = vmatprep.subr.bf16.mxu0 %v17227_v0 }
0x138f   : > { %13928 = vmatpush3.bf16.msra.mxu0 %v15551_v35 }
0x1390   : > { %13929 = vmatprep.subr.bf16.mxu0 %v17227_v0 }
0x1393   : > { %13930 = vmatpush3.bf16.msra.mxu0 %v15552_v36 }
0x1394   : > { %13931 = vmatprep.subr.bf16.mxu0 %v17227_v0 }
0x1397   : > { %13932 = vmatpush3.bf16.msra.mxu0 %v15553_v37 }
0x1398   : > { %13933 = vmatprep.subr.bf16.mxu0 %v17227_v0 }
0x139b   : > { %13934 = vmatpush3.bf16.msra.mxu0 %v15554_v38 }
0x139c   : > { %13935 = vmatprep.subr.bf16.mxu0 %v17227_v0 }
0x139f   : > { %13936 = vmatpush3.bf16.msra.mxu0 %v15555_v39 }
0x13a0   : > { %13937 = vmatprep.subr.bf16.mxu0 %v17227_v0 }
0x13a3   : > { %13938 = vmatpush3.bf16.msra.mxu0 %v15556_v40 }
0x13a4   : > { %13969 = vmatprep.subr.bf16.mxu0 %v17227_v0 }
0x1459   : > { %v4865_v41 = vpop.f32.mrb[60].mxu0 }
0x145a   : > { %v4871_v43 = vadd.f32 %v4865_v41, %v4715_v24  ;;  %v13895_v44 = vpop.f32.mrb[61].mxu0 }
0x145b   : > { %v4868_v45 = vpop.f32.mrb[62].mxu0  ;;  %v12276_v44 = vld [vmem:[%s19456_s4 + $0x1] sm:$0x1] }
0x145c   : > { %v4879_v46 = vadd.f32 %v12247_v42, %v4871_v43  ;;  %v13896_v47 = vpop.f32.mrb[63].mxu0  ;;  %v5292_v43 = vld [vmem:[%s19456_s4] sm:$0x1]  ;;  %v15575_v45 = vld [vmem:[#allocation21 + $0x40] sm:$0xff]  }
0x145d   : > { %v15579_v47 = vld [vmem:[#allocation21 + $0x50] sm:$0xff]  }
0x145e   : > { %v4880_v48 = vmax.f32 %v4879_v46, 0.0  ;;  %v15577_v46 = vld [vmem:[#allocation21 + $0x48] sm:$0xff]  }
0x1460   : > { %v4881_v49 = vpack.c.bf16 %v4880_v48, %v4880_v48  ;;  %v15581_v48 = vld [vmem:[#allocation21 + $0x58] sm:$0xff]  }
0x1462   : > { %13940 = vmatmul.mubr.bf16.vlgmr.msra.gmra.mrb[64].mxu0 %v4881_v49  ;;  %v4900_v50 = vsel %vm4483_vm5, %v4881_v49, 0  ;;  %v15583_v49 = vld [vmem:[#allocation21 + $0x60] sm:$0xff]  }
0x1463   : > { %13898 = vmatpush3.bf16.msra.mxu1 %v4900_v50  ;;  %13971 = vmatprep.mubr.msk.bf16.mxu0 %vm17228_vm0, %v17227_v0 }
0x1464   : > { %13903 = vmatprep.subr.bf16.mxu1 %v17227_v0 }
0x1466   : > { %13900 = vmatmul.mubr.msk.bf16.vlgmr.msra.gmra.mrb[68].mxu1 %vm4479_vm6, %v18482_v57  ;;  %v15562_v57 = vld [vmem:[#allocation30 + $0x28] sm:$0xff]  }
0x1467   : > { %13904 = vmatpush3.bf16.msra.mxu1 %v15557_v52  ;;  %13919 = vmatprep.mubr.msk.bf16.mxu1 %vm17228_vm0, %v17227_v0  ;;  %v15586_v52 = vld [vmem:[#allocation21 + $0x38] sm:$0xff]  }
0x1468   : > { %13905 = vmatprep.subr.bf16.mxu1 %v17227_v0 }
0x146b   : > { %13906 = vmatpush3.bf16.msra.mxu1 %v15558_v53  ;;  %v15587_v53 = vld [vmem:[#allocation21 + $0x70] sm:$0xff]  }
0x146c   : > { %13907 = vmatprep.subr.bf16.mxu1 %v17227_v0 }
0x146f   : > { %13908 = vmatpush3.bf16.msra.mxu1 %v15559_v54  ;;  %v15588_v54 = vld [vmem:[#allocation21 + $0x78] sm:$0xff]  }
0x1470   : > { %13909 = vmatprep.subr.bf16.mxu1 %v17227_v0 }
0x1473   : > { %13910 = vmatpush3.bf16.msra.mxu1 %v15560_v55 }
0x1474   : > { %13911 = vmatprep.subr.bf16.mxu1 %v17227_v0 }
0x1477   : > { %13912 = vmatpush3.bf16.msra.mxu1 %v15561_v56 }
0x1478   : > { %13913 = vmatprep.subr.bf16.mxu1 %v17227_v0 }
0x147b   : > { %13914 = vmatpush3.bf16.msra.mxu1 %v15562_v57 }
0x147c   : > { %13915 = vmatprep.subr.bf16.mxu1 %v17227_v0 }
0x147f   : > { %13916 = vmatpush3.bf16.msra.mxu1 %v15563_v58 }
0x1480   : > { %13917 = vmatprep.subr.bf16.mxu1 %v17227_v0 }
0x1483   : > { %13918 = vmatpush3.bf16.msra.mxu1 %v15564_v59 }
0x1484   : > { %13943 = vmatprep.subr.bf16.mxu1 %v17227_v0 }
0x1535   : > { %v5129_v60 = vpop.f32.mrb[64].mxu0 }
0x1536   : > { %v13941_v61 = vpop.f32.mrb[65].mxu0 }
0x1537   : > { %v5132_v62 = vpop.f32.mrb[66].mxu0 }
0x1538   : > { %v13942_v63 = vpop.f32.mrb[67].mxu0 }
0x1539   : > { %v4936_v1 = vpop.f32.mrb[68].mxu1 }
0x153a   : > { %v4942_v2 = vpack.c.bf16 %v4936_v1, %v4936_v1  ;;  %v13901_v3 = vpop.f32.mrb[69].mxu1 }
0x153b   : > { %v4939_v4 = vpop.f32.mrb[70].mxu1  ;;  %v15598_v3 = vld [vmem:[#allocation33 + $0x8] sm:$0xff]  }
0x153c   : > { %v13902_v5 = vpop.f32.mrb[71].mxu1  ;;  %13920 = vmatmul.mubr.bf16.vlgmr.msra.gmra.mrb[72].mxu1 %v4942_v2  ;;  %v15597_v2 = vld [vmem:[#allocation33] sm:$0xff]   ;;  %v15599_v4 = vld [vmem:[#allocation33 + $0x10] sm:$0xff]  }
0x153d   : > { %13944 = vmatpush3.bf16.msra.mxu1 %v4900_v50  ;;  %13945 = vmatprep.mubr.msk.bf16.mxu1 %vm17228_vm0, %v17227_v0  ;;  %v15585_v50 = vld [vmem:[#allocation21 + $0x68] sm:$0xff]   ;;  %v15600_v5 = vld [vmem:[#allocation33 + $0x18] sm:$0xff]  }
0x153e   : > { %13949 = vmatprep.subr.bf16.mxu1 %v17227_v0 }
0x1544   : > { %13946 = vmatmul.mubr.msk.bf16.vlgmr.msra.gmra.mrb[76].mxu1 %vm4479_vm6, %v18507_v15  ;;  %v15572_v15 = vld [vmem:[#allocation30 + $0xb8] sm:$0xff]  }
0x1545   : > { %13950 = vmatpush3.bf16.msra.mxu1 %v15565_v6  ;;  %13965 = vmatprep.mubr.msk.bf16.mxu1 %vm17228_vm0, %v17227_v0  ;;  %v15601_v6 = vld [vmem:[#allocation33 + $0x20] sm:$0xff]  }
0x1546   : > { %13951 = vmatprep.subr.bf16.mxu1 %v17227_v0 }
0x1549   : > { %13952 = vmatpush3.bf16.msra.mxu1 %v15566_v7  ;;  %v15602_v7 = vld [vmem:[#allocation33 + $0x28] sm:$0xff]  }
0x154a   : > { %13953 = vmatprep.subr.bf16.mxu1 %v17227_v0 }
0x154d   : > { %13954 = vmatpush3.bf16.msra.mxu1 %v15567_v8  ;;  %v15603_v8 = vld [vmem:[#allocation33 + $0x30] sm:$0xff]  }
0x154e   : > { %13955 = vmatprep.subr.bf16.mxu1 %v17227_v0 }
0x1551   : > { %13956 = vmatpush3.bf16.msra.mxu1 %v15568_v9  ;;  %v15604_v9 = vld [vmem:[#allocation33 + $0x38] sm:$0xff]  }
0x1552   : > { %13957 = vmatprep.subr.bf16.mxu1 %v17227_v0 }
0x1555   : > { %13958 = vmatpush3.bf16.msra.mxu1 %v15569_v10 }
0x1556   : > { %13959 = vmatprep.subr.bf16.mxu1 %v17227_v0 }
0x1559   : > { %13960 = vmatpush3.bf16.msra.mxu1 %v15570_v11 }
0x155a   : > { %13961 = vmatprep.subr.bf16.mxu1 %v17227_v0 }
0x155d   : > { %13962 = vmatpush3.bf16.msra.mxu1 %v15571_v14 }
0x155e   : > { %13963 = vmatprep.subr.bf16.mxu1 %v17227_v0 }
0x1561   : > { %13964 = vmatpush3.bf16.msra.mxu1 %v15572_v15 }
0x1562   : > { %14001 = vmatprep.subr.bf16.mxu1 %v17227_v0 }
0x160f   : > { %v5041_v16 = vpop.f32.mrb[72].mxu1 }
0x1610   : > { %v5130_v17 = vadd.f32 %v5129_v60, %v5041_v16  ;;  %v13921_v18 = vpop.f32.mrb[73].mxu1 }
0x1611   : > { %v5044_v19 = vpop.f32.mrb[74].mxu1 }
0x1612   : > { %v13922_v20 = vpop.f32.mrb[75].mxu1 }
0x1617   : > { %v5169_v21 = vpop.f32.mrb[76].mxu1 }
0x1618   : > { %v5175_v22 = vpack.c.bf16 %v5169_v21, %v5169_v21  ;;  %v13947_v23 = vpop.f32.mrb[77].mxu1 }
0x1619   : > { %v5172_v24 = vpop.f32.mrb[78].mxu1 }
0x161a   : > { %v13948_v25 = vpop.f32.mrb[79].mxu1  ;;  %13966 = vmatmul.mubr.bf16.vlgmr.msra.gmra.mrb[80].mxu1 %v5175_v22 }
0x161b   : > { %14017 = vmatprep.mubr.msk.bf16.mxu1 %vm17228_vm0, %v17227_v0  ;;  %14002 = vmatpush3.bf16.msra.mxu1 %v15573_v26  ;;  %v18607_v25 = vld [vmem:[#allocation51] sm:$0x1]  ;;  %v15589_v26 = vld [vmem:[#allocation33 + $0x40] sm:$0xff]  }
0x161c   : > { %14003 = vmatprep.subr.bf16.mxu1 %v17227_v0 }
0x161f   : > { %14004 = vmatpush3.bf16.msra.mxu1 %v15574_v27  ;;  %v15590_v27 = vld [vmem:[#allocation33 + $0x48] sm:$0xff]  }
0x1620   : > { %14005 = vmatprep.subr.bf16.mxu1 %v17227_v0 }
0x1623   : > { %14006 = vmatpush3.bf16.msra.mxu1 %v15576_v28  ;;  %v15591_v28 = vld [vmem:[#allocation33 + $0x50] sm:$0xff]  }
0x1624   : > { %14007 = vmatprep.subr.bf16.mxu1 %v17227_v0 }
0x1627   : > { %14008 = vmatpush3.bf16.msra.mxu1 %v15578_v29  ;;  %v15592_v29 = vld [vmem:[#allocation33 + $0x58] sm:$0xff]  }
0x1628   : > { %14009 = vmatprep.subr.bf16.mxu1 %v17227_v0 }
0x162b   : > { %14010 = vmatpush3.bf16.msra.mxu1 %v15580_v30  ;;  %v15593_v30 = vld [vmem:[#allocation33 + $0x60] sm:$0xff]  }
0x162c   : > { %14011 = vmatprep.subr.bf16.mxu1 %v17227_v0 }
0x162f   : > { %14012 = vmatpush3.bf16.msra.mxu1 %v15582_v31  ;;  %v15594_v31 = vld [vmem:[#allocation33 + $0x68] sm:$0xff]  }
0x1630   : > { %14013 = vmatprep.subr.bf16.mxu1 %v17227_v0 }
0x1633   : > { %14014 = vmatpush3.bf16.msra.mxu1 %v15584_v32  ;;  %v15595_v32 = vld [vmem:[#allocation33 + $0x70] sm:$0xff]  }
0x1634   : > { %14015 = vmatprep.subr.bf16.mxu1 %v17227_v0 }
0x1637   : > { %14016 = vmatpush3.bf16.msra.mxu1 %v15586_v52  ;;  %v15610_v52 = vld [vmem:[#allocation33 + $0xa8] sm:$0xff]  }
0x1638   : > { %14027 = vmatprep.subr.bf16.mxu1 %v17227_v0 }
0x16ed   : > { %v5275_v33 = vpop.f32.mrb[80].mxu1 }
0x16ee   : > { %v5281_v35 = vadd.f32 %v5275_v33, %v5130_v17  ;;  %v13967_v36 = vpop.f32.mrb[81].mxu1  ;;  %v12294_v17 = vld [vmem:[%s19457_s6] ss:$0 sm:$0xff]  ;;  %v15596_v33 = vld [vmem:[#allocation33 + $0x78] sm:$0xff]   ;;  %s19465_s6 = sld [smem:[#allocation100_spill]] }
0x16ef   : > { %v5278_v37 = vpop.f32.mrb[82].mxu1  ;;  %v15607_v36 = vld [vmem:[#allocation33 + $0x90] sm:$0xff]  }
0x16f0   : > { %v5289_v38 = vadd.f32 %v12274_v34, %v5281_v35  ;;  %v13968_v39 = vpop.f32.mrb[83].mxu1  ;;  %v15605_v34 = vld [vmem:[#allocation33 + $0x80] sm:$0xff]   ;;  %v15606_v35 = vld [vmem:[#allocation33 + $0x88] sm:$0xff]   ;;  %v15608_v37 = vld [vmem:[#allocation33 + $0x98] sm:$0xff]  }
0x16f2   : > { %v5290_v40 = vmax.f32 %v5289_v38, 0.0  ;;  %v15609_v38 = vld [vmem:[#allocation33 + $0xa0] sm:$0xff]  }
0x16f4   : > { %v18566_v41 = vpack.c.bf16 %v5290_v40, %v5290_v40 }
0x16f6   : > { %v18570_v42 = vsel %vm4483_vm5, %v18566_v41, 0 }
0x16f7   : > { %13970 = vmatpush3.bf16.msra.mxu0 %v18570_v42 }
0x16f8   : > { %13975 = vmatprep.subr.bf16.mxu0 %v17227_v0 }
0x16fa   : > { %13972 = vmatmul.mubr.msk.bf16.vlgmr.msra.gmra.mrb[68].mxu0 %vm4479_vm6, %v5292_v43 }
0x16fb   : > { %13976 = vmatpush3.bf16.msra.mxu0 %v18570_v42  ;;  %13977 = vmatprep.mubr.msk.bf16.mxu0 %vm17228_vm0, %v17227_v0 }
0x16fc   : > { %13981 = vmatprep.subr.bf16.mxu0 %v17227_v0 }
0x1702   : > { %13978 = vmatmul.mubr.msk.bf16.vlgmr.msra.gmra.mrb[72].mxu0 %vm4479_vm6, %v12276_v44 }
0x1703   : > { %13982 = vmatpush3.bf16.msra.mxu0 %v15575_v45  ;;  %13997 = vmatprep.mubr.msk.bf16.mxu0 %vm17228_vm0, %v17227_v0 }
0x1704   : > { %13983 = vmatprep.subr.bf16.mxu0 %v17227_v0 }
0x1707   : > { %13984 = vmatpush3.bf16.msra.mxu0 %v15577_v46  ;;  %v18632_v46 = vld [vmem:[#allocation51 + $0x1] sm:$0x1] }
0x1708   : > { %13985 = vmatprep.subr.bf16.mxu0 %v17227_v0 }
0x170b   : > { %13986 = vmatpush3.bf16.msra.mxu0 %v15579_v47 }
0x170c   : > { %13987 = vmatprep.subr.bf16.mxu0 %v17227_v0 }
0x170f   : > { %13988 = vmatpush3.bf16.msra.mxu0 %v15581_v48 }
0x1710   : > { %13989 = vmatprep.subr.bf16.mxu0 %v17227_v0 }
0x1713   : > { %13990 = vmatpush3.bf16.msra.mxu0 %v15583_v49 }
0x1714   : > { %13991 = vmatprep.subr.bf16.mxu0 %v17227_v0 }
0x1717   : > { %13992 = vmatpush3.bf16.msra.mxu0 %v15585_v50 }
0x1718   : > { %13993 = vmatprep.subr.bf16.mxu0 %v17227_v0 }
0x171b   : > { %13994 = vmatpush3.bf16.msra.mxu0 %v15587_v53  ;;  %v15611_v53 = vld [vmem:[#allocation33 + $0xb0] sm:$0xff]  }
0x171c   : > { %13995 = vmatprep.subr.bf16.mxu0 %v17227_v0 }
0x171f   : > { %13996 = vmatpush3.bf16.msra.mxu0 %v15588_v54  ;;  %v15612_v54 = vld [vmem:[#allocation33 + $0xb8] sm:$0xff]  }
0x1720   : > { %14021 = vmatprep.subr.bf16.mxu0 %v17227_v0 }
0x17cd   : > { %v5333_v55 = vpop.f32.mrb[68].mxu0 }
0x17ce   : > { %v5339_v56 = vpack.c.bf16 %v5333_v55, %v5333_v55  ;;  %v13973_v57 = vpop.f32.mrb[69].mxu0 }
0x17cf   : > { %v5336_v58 = vpop.f32.mrb[70].mxu0 }
0x17d0   : > { %v13974_v59 = vpop.f32.mrb[71].mxu0  ;;  %14018 = vmatmul.mubr.bf16.vlgmr.msra.gmra.mrb[84].mxu1 %v5339_v56 }
0x17d1   : > { %14043 = vmatprep.mubr.msk.bf16.mxu1 %vm17228_vm0, %v17227_v0  ;;  %14028 = vmatpush3.bf16.msra.mxu1 %v15597_v2 }
0x17d2   : > { %14029 = vmatprep.subr.bf16.mxu1 %v17227_v0 }
0x17d5   : > { %v5379_v60 = vpop.f32.mrb[72].mxu0  ;;  %14030 = vmatpush3.bf16.msra.mxu1 %v15598_v3  ;;  %v15614_v3 = vld [vmem:[#allocation36 + $0x48] sm:$0xff]  }
0x17d6   : > { %v5385_v61 = vpack.c.bf16 %v5379_v60, %v5379_v60  ;;  %v13979_v62 = vpop.f32.mrb[73].mxu0  ;;  %14031 = vmatprep.subr.bf16.mxu1 %v17227_v0 }
0x17d7   : > { %v5382_v63 = vpop.f32.mrb[74].mxu0 }
0x17d8   : > { %v13980_v1 = vpop.f32.mrb[75].mxu0  ;;  %13998 = vmatmul.mubr.bf16.vlgmr.msra.gmra.mrb[76].mxu0 %v5385_v61  ;;  %v15613_v61 = vld [vmem:[#allocation36 + $0x40] sm:$0xff]  }
0x17d9   : > { %14023 = vmatprep.mubr.msk.bf16.mxu0 %vm17228_vm0, %v17227_v0  ;;  %14032 = vmatpush3.bf16.msra.mxu1 %v15599_v4  ;;  %v15615_v4 = vld [vmem:[#allocation36 + $0x50] sm:$0xff]  }
0x17da   : > { %14033 = vmatprep.subr.bf16.mxu1 %v17227_v0 }
0x17dd   : > { %14034 = vmatpush3.bf16.msra.mxu1 %v15600_v5  ;;  %v15616_v5 = vld [vmem:[#allocation36 + $0x58] sm:$0xff]  }
0x17de   : > { %14035 = vmatprep.subr.bf16.mxu1 %v17227_v0 }
0x17e1   : > { %14036 = vmatpush3.bf16.msra.mxu1 %v15601_v6  ;;  %v15617_v6 = vld [vmem:[#allocation36 + $0x60] sm:$0xff]  }
0x17e2   : > { %14037 = vmatprep.subr.bf16.mxu1 %v17227_v0 }
0x17e5   : > { %14038 = vmatpush3.bf16.msra.mxu1 %v15602_v7  ;;  %v15618_v7 = vld [vmem:[#allocation36 + $0x68] sm:$0xff]  }
0x17e6   : > { %14039 = vmatprep.subr.bf16.mxu1 %v17227_v0 }
0x17e9   : > { %14040 = vmatpush3.bf16.msra.mxu1 %v15603_v8  ;;  %v15619_v8 = vld [vmem:[#allocation36 + $0x70] sm:$0xff]  }
0x17ea   : > { %14041 = vmatprep.subr.bf16.mxu1 %v17227_v0 }
0x17ed   : > { %14042 = vmatpush3.bf16.msra.mxu1 %v15604_v9  ;;  %v15620_v9 = vld [vmem:[#allocation36 + $0x78] sm:$0xff]  }
0x17ee   : > { %14067 = vmatprep.subr.bf16.mxu1 %v17227_v0 }
0x18a3   : > { %v5589_v10 = vpop.f32.mrb[84].mxu1 }
0x18a4   : > { %v14019_v11 = vpop.f32.mrb[85].mxu1 }
0x18a5   : > { %v5592_v14 = vpop.f32.mrb[86].mxu1  ;;  %v12321_v11 = vld [vmem:[#allocation34] ss:$0 sm:$0xff] }
0x18a6   : > { %v14020_v15 = vpop.f32.mrb[87].mxu1 }
0x18ab   : > { %v5501_v16 = vpop.f32.mrb[76].mxu0 }
0x18ac   : > { %v5590_v18 = vadd.f32 %v5589_v10, %v5501_v16  ;;  %v13999_v19 = vpop.f32.mrb[77].mxu0 }
0x18ad   : > { %v5504_v20 = vpop.f32.mrb[78].mxu0 }
0x18ae   : > { %v5602_v21 = vadd.f32 %v12294_v17, %v5590_v18  ;;  %v14000_v22 = vpop.f32.mrb[79].mxu0 }
0x18af   : > { %v15621_v22 = vld [vmem:[#allocation36] sm:$0xff]  }
0x18b0   : > { %v5603_v23 = vpack.c.bf16 %v5602_v21, %v5602_v21 }
0x18b2   : > { %v5628_v24 = vsel %vm5626_vm7, %v5603_v23, 0 }
0x18b3   : > { %14022 = vmatpush3.bf16.msra.mxu0 %v5628_v24 }
0x18b4   : > { %14047 = vmatprep.subr.bf16.mxu0 %v17227_v0 }
0x18b6   : > { %14024 = vmatmul.mubr.msk.bf16.vlgmr.msra.gmra.mrb[80].mxu0 %vm5622_vm8, %v18607_v25 }
0x18b7   : > { %14048 = vmatpush3.bf16.msra.mxu0 %v15589_v26  ;;  %14063 = vmatprep.mubr.msk.bf16.mxu0 %vm17228_vm0, %v17227_v0  ;;  %v15624_v26 = vld [vmem:[#allocation36 + $0x18] sm:$0xff]  }
0x18b8   : > { %14049 = vmatprep.subr.bf16.mxu0 %v17227_v0 }
0x18bb   : > { %14050 = vmatpush3.bf16.msra.mxu0 %v15590_v27  ;;  %v15625_v27 = vld [vmem:[#allocation36 + $0x20] sm:$0xff]  }
0x18bc   : > { %14051 = vmatprep.subr.bf16.mxu0 %v17227_v0 }
0x18bf   : > { %14052 = vmatpush3.bf16.msra.mxu0 %v15591_v28  ;;  %v15627_v28 = vld [vmem:[#allocation36 + $0x30] sm:$0xff]  }
0x18c0   : > { %14053 = vmatprep.subr.bf16.mxu0 %v17227_v0 }
0x18c3   : > { %14054 = vmatpush3.bf16.msra.mxu0 %v15592_v29  ;;  %v15628_v29 = vld [vmem:[#allocation36 + $0x38] sm:$0xff]  }
0x18c4   : > { %14055 = vmatprep.subr.bf16.mxu0 %v17227_v0 }
0x18c7   : > { %14056 = vmatpush3.bf16.msra.mxu0 %v15593_v30 }
0x18c8   : > { %14057 = vmatprep.subr.bf16.mxu0 %v17227_v0 }
0x18cb   : > { %14058 = vmatpush3.bf16.msra.mxu0 %v15594_v31 }
0x18cc   : > { %14059 = vmatprep.subr.bf16.mxu0 %v17227_v0 }
0x18cf   : > { %14060 = vmatpush3.bf16.msra.mxu0 %v15595_v32 }
0x18d0   : > { %14061 = vmatprep.subr.bf16.mxu0 %v17227_v0 }
0x18d3   : > { %14062 = vmatpush3.bf16.msra.mxu0 %v15596_v33 }
0x18d4   : > { %14073 = vmatprep.subr.bf16.mxu0 %v17227_v0 }
0x18d6   : > { %14064 = vmatmul.mubr.bf16.vlgmr.msra.gmra.mrb[84].mxu0 %v5603_v23  ;;  %v15622_v23 = vld [vmem:[#allocation36 + $0x8] sm:$0xff]  }
0x18d7   : > { %14089 = vmatprep.mubr.msk.bf16.mxu0 %vm17228_vm0, %v17227_v0  ;;  %14074 = vmatpush3.bf16.msra.mxu0 %v15605_v34 }
0x18d8   : > { %14075 = vmatprep.subr.bf16.mxu0 %v17227_v0 }
0x18db   : > { %14076 = vmatpush3.bf16.msra.mxu0 %v15606_v35 }
0x18dc   : > { %14077 = vmatprep.subr.bf16.mxu0 %v17227_v0 }
0x18df   : > { %14078 = vmatpush3.bf16.msra.mxu0 %v15607_v36 }
0x18e0   : > { %14079 = vmatprep.subr.bf16.mxu0 %v17227_v0 }
0x18e3   : > { %14080 = vmatpush3.bf16.msra.mxu0 %v15608_v37 }
0x18e4   : > { %14081 = vmatprep.subr.bf16.mxu0 %v17227_v0 }
0x18e7   : > { %14082 = vmatpush3.bf16.msra.mxu0 %v15609_v38 }
0x18e8   : > { %14083 = vmatprep.subr.bf16.mxu0 %v17227_v0 }
0x18eb   : > { %14084 = vmatpush3.bf16.msra.mxu0 %v15610_v52  ;;  %v15641_v52 = vld [vmem:[#allocation57 + $0x10] sm:$0xff]  }
0x18ec   : > { %14085 = vmatprep.subr.bf16.mxu0 %v17227_v0 }
0x18ef   : > { %14086 = vmatpush3.bf16.msra.mxu0 %v15611_v53  ;;  %v15643_v53 = vld [vmem:[#allocation57 + $0x18] sm:$0xff]  }
0x18f0   : > { %14087 = vmatprep.subr.bf16.mxu0 %v17227_v0 }
0x18f3   : > { %14088 = vmatpush3.bf16.msra.mxu0 %v15612_v54  ;;  %v15645_v54 = vld [vmem:[#allocation57 + $0x20] sm:$0xff]  }
0x18f4   : > { %14119 = vmatprep.subr.bf16.mxu0 %v17227_v0 }
0x1989   : > { %v5664_v39 = vpop.f32.mrb[80].mxu0 }
0x198a   : > { %v5670_v40 = vpack.c.bf16 %v5664_v39, %v5664_v39  ;;  %v14025_v43 = vpop.f32.mrb[81].mxu0  ;;  %v15629_v39 = vld [vmem:[#allocation36 + $0x80] sm:$0xff]  }
0x198b   : > { %v5667_v44 = vpop.f32.mrb[82].mxu0  ;;  %v15631_v43 = vld [vmem:[#allocation36 + $0x90] sm:$0xff]  }
0x198c   : > { %v14026_v45 = vpop.f32.mrb[83].mxu0  ;;  %14044 = vmatmul.mubr.bf16.vlgmr.msra.gmra.mrb[88].mxu1 %v5670_v40  ;;  %v15630_v40 = vld [vmem:[#allocation36 + $0x88] sm:$0xff]   ;;  %v15632_v44 = vld [vmem:[#allocation36 + $0x98] sm:$0xff]  }
0x198d   : > { %14068 = vmatpush3.bf16.msra.mxu1 %v5628_v24  ;;  %14069 = vmatprep.mubr.msk.bf16.mxu1 %vm17228_vm0, %v17227_v0  ;;  %v15623_v24 = vld [vmem:[#allocation36 + $0x10] sm:$0xff]   ;;  %v15633_v45 = vld [vmem:[#allocation36 + $0xa0] sm:$0xff]  }
0x198e   : > { %14093 = vmatprep.subr.bf16.mxu1 %v17227_v0 }
0x1994   : > { %14070 = vmatmul.mubr.msk.bf16.vlgmr.msra.gmra.mrb[92].mxu1 %vm5622_vm8, %v18632_v46 }
0x1995   : > { %14095 = vmatprep.mubr.msk.bf16.mxu1 %vm17228_vm0, %v17227_v0 }
0x19a9   : > { %v5857_v47 = vpop.f32.mrb[84].mxu0 }
0x19aa   : > { %v14065_v48 = vpop.f32.mrb[85].mxu0 }
0x19ab   : > { %v5860_v49 = vpop.f32.mrb[86].mxu0  ;;  %v15636_v48 = vld [vmem:[#allocation36 + $0xb8] sm:$0xff]  }
0x19ac   : > { %v14066_v50 = vpop.f32.mrb[87].mxu0  ;;  %v15637_v49 = vld [vmem:[#allocation57] sm:$0xff]  }
0x19ad   : > { %v15639_v50 = vld [vmem:[#allocation57 + $0x8] sm:$0xff]  }
0x1a5f   : > { %v5769_v55 = vpop.f32.mrb[88].mxu1 }
0x1a60   : > { %v5858_v56 = vadd.f32 %v5857_v47, %v5769_v55  ;;  %v14045_v57 = vpop.f32.mrb[89].mxu1  ;;  %v15635_v47 = vld [vmem:[#allocation36 + $0xb0] sm:$0xff]   ;;  %v15647_v55 = vld [vmem:[#allocation57 + $0x28] sm:$0xff]  }
0x1a61   : > { %v5772_v58 = vpop.f32.mrb[90].mxu1 }
0x1a62   : > { %v14046_v59 = vpop.f32.mrb[91].mxu1 }
0x1a67   : > { %v5902_v60 = vpop.f32.mrb[92].mxu1 }
0x1a68   : > { %v5908_v62 = vpack.c.bf16 %v5902_v60, %v5902_v60  ;;  %v14071_v63 = vpop.f32.mrb[93].mxu1 }
0x1a69   : > { %v5905_v1 = vpop.f32.mrb[94].mxu1 }
0x1a6a   : > { %v14072_v2 = vpop.f32.mrb[95].mxu1  ;;  %14090 = vmatmul.mubr.bf16.vlgmr.msra.gmra.mrb[88].mxu0 %v5908_v62  ;;  %v15638_v62 = vld [vmem:[#allocation57 + $0x40] sm:$0xff]  }
0x1a6b   : > { %14120 = vmatpush3.bf16.msra.mxu0 %v15613_v61  ;;  %14135 = vmatprep.mubr.msk.bf16.mxu0 %vm17228_vm0, %v17227_v0 }
0x1a6c   : > { %14121 = vmatprep.subr.bf16.mxu0 %v17227_v0 }
0x1a6f   : > { %14122 = vmatpush3.bf16.msra.mxu0 %v15614_v3 }
0x1a70   : > { %14123 = vmatprep.subr.bf16.mxu0 %v17227_v0 }
0x1a73   : > { %14124 = vmatpush3.bf16.msra.mxu0 %v15615_v4  ;;  %v15640_v4 = vld [vmem:[#allocation57 + $0x48] sm:$0xff]  }
0x1a74   : > { %14125 = vmatprep.subr.bf16.mxu0 %v17227_v0 }
0x1a77   : > { %14126 = vmatpush3.bf16.msra.mxu0 %v15616_v5  ;;  %v15642_v5 = vld [vmem:[#allocation57 + $0x50] sm:$0xff]  }
0x1a78   : > { %14127 = vmatprep.subr.bf16.mxu0 %v17227_v0 }
0x1a7b   : > { %14128 = vmatpush3.bf16.msra.mxu0 %v15617_v6  ;;  %v15644_v6 = vld [vmem:[#allocation57 + $0x58] sm:$0xff]  }
0x1a7c   : > { %14129 = vmatprep.subr.bf16.mxu0 %v17227_v0 }
0x1a7f   : > { %14130 = vmatpush3.bf16.msra.mxu0 %v15618_v7  ;;  %v15646_v7 = vld [vmem:[#allocation57 + $0x60] sm:$0xff]  }
0x1a80   : > { %14131 = vmatprep.subr.bf16.mxu0 %v17227_v0 }
0x1a83   : > { %14132 = vmatpush3.bf16.msra.mxu0 %v15619_v8  ;;  %v15648_v8 = vld [vmem:[#allocation57 + $0x68] sm:$0xff]  }
0x1a84   : > { %14133 = vmatprep.subr.bf16.mxu0 %v17227_v0 }
0x1a87   : > { %14134 = vmatpush3.bf16.msra.mxu0 %v15620_v9  ;;  %v15649_v9 = vld [vmem:[#allocation57 + $0x30] sm:$0xff]  }
0x1a88   : > { %14165 = vmatprep.subr.bf16.mxu0 %v17227_v0 }
0x1b3d   : > { %v6008_v10 = vpop.f32.mrb[88].mxu0 }
0x1b3e   : > { %v6014_v14 = vadd.f32 %v6008_v10, %v5858_v56  ;;  %v14091_v15 = vpop.f32.mrb[89].mxu0  ;;  %v15650_v10 = vld [vmem:[#allocation57 + $0x70] sm:$0xff]  }
0x1b3f   : > { %v6011_v16 = vpop.f32.mrb[90].mxu0 }
0x1b40   : > { %v6022_v17 = vadd.f32 %v12321_v11, %v6014_v14  ;;  %v14092_v18 = vpop.f32.mrb[91].mxu0  ;;  %v15651_v11 = vld [vmem:[#allocation57 + $0x38] sm:$0xff]   ;;  %v12348_v16 = vld [vmem:[#allocation37] ss:$0 sm:$0xff] }
0x1b41   : > { %v15652_v14 = vld [vmem:[#allocation57 + $0x78] sm:$0xff]  }
0x1b42   : > { %v6023_v19 = vmax.f32 %v6022_v17, 0.0 }
0x1b44   : > { %v6024_v20 = vpack.c.bf16 %v6023_v19, %v6023_v19 }
0x1b46   : > { %14136 = vmatmul.mubr.bf16.vlgmr.msra.gmra.mrb[92].mxu0 %v6024_v20  ;;  %v6043_v21 = vsel %vm5626_vm7, %v6024_v20, 0 }
0x1b47   : > { %14094 = vmatpush3.bf16.msra.mxu1 %v6043_v21  ;;  %14181 = vmatprep.mubr.msk.bf16.mxu0 %vm17228_vm0, %v17227_v0 }
0x1b48   : > { %14099 = vmatprep.subr.bf16.mxu1 %v17227_v0  ;;  %14166 = vmatpush3.bf16.msra.mxu0 %v15637_v49  ;;  %v15657_v49 = vld [vmem:[%s19460_s1 + $0x60] sm:$0xff]  }
0x1b49   : > { %14167 = vmatprep.subr.bf16.mxu0 %v17227_v0 }
0x1b4a   : > { %14096 = vmatmul.mubr.msk.bf16.vlgmr.msra.gmra.mrb[96].mxu1 %vm5622_vm8, %v18607_v25  ;;  %v15626_v25 = vld [vmem:[#allocation36 + $0x28] sm:$0xff]  }
0x1b4b   : > { %14100 = vmatpush3.bf16.msra.mxu1 %v15621_v22  ;;  %14115 = vmatprep.mubr.msk.bf16.mxu1 %vm17228_vm0, %v17227_v0 }
0x1b4c   : > { %14101 = vmatprep.subr.bf16.mxu1 %v17227_v0  ;;  %14168 = vmatpush3.bf16.msra.mxu0 %v15639_v50  ;;  %v15658_v50 = vld [vmem:[%s19460_s1 + $0x68] sm:$0xff]  }
0x1b4d   : > { %14169 = vmatprep.subr.bf16.mxu0 %v17227_v0 }
0x1b4f   : > { %14102 = vmatpush3.bf16.msra.mxu1 %v15622_v23 }
0x1b50   : > { %14103 = vmatprep.subr.bf16.mxu1 %v17227_v0  ;;  %14170 = vmatpush3.bf16.msra.mxu0 %v15641_v52  ;;  %v15659_v52 = vld [vmem:[%s19460_s1 + $0x70] sm:$0xff]  }
0x1b51   : > { %14171 = vmatprep.subr.bf16.mxu0 %v17227_v0 }
0x1b53   : > { %14104 = vmatpush3.bf16.msra.mxu1 %v15623_v24  ;;  %v15661_v24 = vld [vmem:[%s19458_s3 + $0x40] sm:$0xff]  }
0x1b54   : > { %14105 = vmatprep.subr.bf16.mxu1 %v17227_v0  ;;  %14172 = vmatpush3.bf16.msra.mxu0 %v15643_v53  ;;  %v15660_v53 = vld [vmem:[%s19460_s1 + $0x78] sm:$0xff]  }
0x1b55   : > { %14173 = vmatprep.subr.bf16.mxu0 %v17227_v0 }
0x1b57   : > { %14106 = vmatpush3.bf16.msra.mxu1 %v15624_v26  ;;  %v15662_v26 = vld [vmem:[%s19458_s3 + $0x48] sm:$0xff]  }
0x1b58   : > { %14107 = vmatprep.subr.bf16.mxu1 %v17227_v0  ;;  %14174 = vmatpush3.bf16.msra.mxu0 %v15645_v54  ;;  %v15666_v54 = vld [vmem:[%s19458_s3 + $0x68] sm:$0xff]  }
0x1b59   : > { %14175 = vmatprep.subr.bf16.mxu0 %v17227_v0 }
0x1b5b   : > { %14108 = vmatpush3.bf16.msra.mxu1 %v15625_v27  ;;  %v15663_v27 = vld [vmem:[%s19458_s3 + $0x50] sm:$0xff]  }
0x1b5c   : > { %14109 = vmatprep.subr.bf16.mxu1 %v17227_v0  ;;  %14176 = vmatpush3.bf16.msra.mxu0 %v15647_v55  ;;  %v15667_v55 = vld [vmem:[%s19458_s3 + $0x70] sm:$0xff]  }
0x1b5d   : > { %14177 = vmatprep.subr.bf16.mxu0 %v17227_v0 }
0x1b5f   : > { %14110 = vmatpush3.bf16.msra.mxu1 %v15626_v25  ;;  %v15664_v25 = vld [vmem:[%s19458_s3 + $0x58] sm:$0xff]  }
0x1b60   : > { %14111 = vmatprep.subr.bf16.mxu1 %v17227_v0  ;;  %14178 = vmatpush3.bf16.msra.mxu0 %v15649_v9  ;;  %v15672_v9 = vld [vmem:[%s19460_s1 + $0x8] sm:$0xff]  }
0x1b61   : > { %14179 = vmatprep.subr.bf16.mxu0 %v17227_v0 }
0x1b63   : > { %14112 = vmatpush3.bf16.msra.mxu1 %v15627_v28  ;;  %v15665_v28 = vld [vmem:[%s19458_s3 + $0x60] sm:$0xff]  }
0x1b64   : > { %14113 = vmatprep.subr.bf16.mxu1 %v17227_v0  ;;  %14180 = vmatpush3.bf16.msra.mxu0 %v15651_v11  ;;  %v15674_v11 = vld [vmem:[%s19460_s1 + $0x10] sm:$0xff]  }
0x1b65   : > { %14205 = vmatprep.subr.bf16.mxu0 %v17227_v0 }
0x1b67   : > { %14114 = vmatpush3.bf16.msra.mxu1 %v15628_v29 }
0x1b68   : > { %14139 = vmatprep.subr.bf16.mxu1 %v17227_v0 }
0x1c19   : > { %v6272_v30 = vpop.f32.mrb[92].mxu0 }
0x1c1a   : > { %v14137_v31 = vpop.f32.mrb[93].mxu0 }
0x1c1b   : > { %v6275_v32 = vpop.f32.mrb[94].mxu0 }
0x1c1c   : > { %v14138_v33 = vpop.f32.mrb[95].mxu0 }
0x1c1d   : > { %v6079_v34 = vpop.f32.mrb[96].mxu1 }
0x1c1e   : > { %v6085_v35 = vpack.c.bf16 %v6079_v34, %v6079_v34  ;;  %v14097_v36 = vpop.f32.mrb[97].mxu1 }
0x1c1f   : > { %v6082_v37 = vpop.f32.mrb[98].mxu1 }
0x1c20   : > { %v14098_v38 = vpop.f32.mrb[99].mxu1  ;;  %14116 = vmatmul.mubr.bf16.vlgmr.msra.gmra.mrb[100].mxu1 %v6085_v35 }
0x1c21   : > { %14140 = vmatpush3.bf16.msra.mxu1 %v6043_v21  ;;  %14141 = vmatprep.mubr.msk.bf16.mxu1 %vm17228_vm0, %v17227_v0 }
0x1c22   : > { %14145 = vmatprep.subr.bf16.mxu1 %v17227_v0 }
0x1c28   : > { %14142 = vmatmul.mubr.msk.bf16.vlgmr.msra.gmra.mrb[104].mxu1 %vm5622_vm8, %v18632_v46  ;;  %v15634_v46 = vld [vmem:[#allocation36 + $0xa8] sm:$0xff]  }
0x1c29   : > { %14146 = vmatpush3.bf16.msra.mxu1 %v15629_v39  ;;  %14161 = vmatprep.mubr.msk.bf16.mxu1 %vm17228_vm0, %v17227_v0 }
0x1c2a   : > { %14147 = vmatprep.subr.bf16.mxu1 %v17227_v0 }
0x1c2d   : > { %14148 = vmatpush3.bf16.msra.mxu1 %v15630_v40  ;;  %v12365_v40 = vld [vmem:[%s19459_s12 + $0x2] sm:$0x3] }
0x1c2e   : > { %14149 = vmatprep.subr.bf16.mxu1 %v17227_v0 }
0x1c31   : > { %14150 = vmatpush3.bf16.msra.mxu1 %v15631_v43 }
0x1c32   : > { %14151 = vmatprep.subr.bf16.mxu1 %v17227_v0 }
0x1c35   : > { %14152 = vmatpush3.bf16.msra.mxu1 %v15632_v44  ;;  %v6646_v44 = vld [vmem:[%s19459_s12] sm:$0x3] }
0x1c36   : > { %14153 = vmatprep.subr.bf16.mxu1 %v17227_v0 }
0x1c39   : > { %14154 = vmatpush3.bf16.msra.mxu1 %v15633_v45  ;;  %v15653_v45 = vld [vmem:[%s19460_s1 + $0x40] sm:$0xff]  }
0x1c3a   : > { %14155 = vmatprep.subr.bf16.mxu1 %v17227_v0 }
0x1c3d   : > { %14156 = vmatpush3.bf16.msra.mxu1 %v15634_v46  ;;  %v15654_v46 = vld [vmem:[%s19460_s1 + $0x48] sm:$0xff]  }
0x1c3e   : > { %14157 = vmatprep.subr.bf16.mxu1 %v17227_v0 }
0x1c41   : > { %14158 = vmatpush3.bf16.msra.mxu1 %v15635_v47  ;;  %v15655_v47 = vld [vmem:[%s19460_s1 + $0x50] sm:$0xff]  }
0x1c42   : > { %14159 = vmatprep.subr.bf16.mxu1 %v17227_v0 }
0x1c45   : > { %14160 = vmatpush3.bf16.msra.mxu1 %v15636_v48  ;;  %v15656_v48 = vld [vmem:[%s19460_s1 + $0x58] sm:$0xff]  }
0x1c46   : > { %14185 = vmatprep.subr.bf16.mxu1 %v17227_v0 }
0x1cf3   : > { %v6184_v56 = vpop.f32.mrb[100].mxu1 }
0x1cf4   : > { %v6273_v57 = vadd.f32 %v6272_v30, %v6184_v56  ;;  %v14117_v58 = vpop.f32.mrb[101].mxu1  ;;  %v15668_v56 = vld [vmem:[%s19458_s3 + $0x78] sm:$0xff]  }
0x1cf5   : > { %v6187_v59 = vpop.f32.mrb[102].mxu1 }
0x1cf6   : > { %v14118_v60 = vpop.f32.mrb[103].mxu1 }
0x1cfb   : > { %v6312_v61 = vpop.f32.mrb[104].mxu1 }
0x1cfc   : > { %v6318_v63 = vpack.c.bf16 %v6312_v61, %v6312_v61  ;;  %v14143_v1 = vpop.f32.mrb[105].mxu1  ;;  %v12368_v61 = vld [vmem:[#allocation58] ss:$0 sm:$0xff] }
0x1cfd   : > { %v6315_v2 = vpop.f32.mrb[106].mxu1 }
0x1cfe   : > { %v14144_v3 = vpop.f32.mrb[107].mxu1  ;;  %14162 = vmatmul.mubr.bf16.vlgmr.msra.gmra.mrb[108].mxu1 %v6318_v63 }
0x1cff   : > { %14186 = vmatpush3.bf16.msra.mxu1 %v15638_v62  ;;  %14201 = vmatprep.mubr.msk.bf16.mxu1 %vm17228_vm0, %v17227_v0 }
0x1d00   : > { %14187 = vmatprep.subr.bf16.mxu1 %v17227_v0 }
0x1d03   : > { %14188 = vmatpush3.bf16.msra.mxu1 %v15640_v4 }
0x1d04   : > { %14189 = vmatprep.subr.bf16.mxu1 %v17227_v0 }
0x1d07   : > { %14190 = vmatpush3.bf16.msra.mxu1 %v15642_v5 }
0x1d08   : > { %14191 = vmatprep.subr.bf16.mxu1 %v17227_v0 }
0x1d0b   : > { %14192 = vmatpush3.bf16.msra.mxu1 %v15644_v6  ;;  %v15670_v6 = vld [vmem:[%s19460_s1] sm:$0xff]  }
0x1d0c   : > { %14193 = vmatprep.subr.bf16.mxu1 %v17227_v0 }
0x1d0f   : > { %14194 = vmatpush3.bf16.msra.mxu1 %v15646_v7  ;;  %v18761_v7 = vld [vmem:[#allocation52] sm:$0x3] }
0x1d10   : > { %14195 = vmatprep.subr.bf16.mxu1 %v17227_v0 }
0x1d13   : > { %14196 = vmatpush3.bf16.msra.mxu1 %v15648_v8  ;;  %v15669_v8 = vld [vmem:[%s19458_s3] sm:$0xff]  }
0x1d14   : > { %14197 = vmatprep.subr.bf16.mxu1 %v17227_v0 }
0x1d17   : > { %14198 = vmatpush3.bf16.msra.mxu1 %v15650_v10  ;;  %v15671_v10 = vld [vmem:[%s19458_s3 + $0x8] sm:$0xff]  }
0x1d18   : > { %14199 = vmatprep.subr.bf16.mxu1 %v17227_v0 }
0x1d1b   : > { %14200 = vmatpush3.bf16.msra.mxu1 %v15652_v14  ;;  %v15673_v14 = vld [vmem:[%s19458_s3 + $0x10] sm:$0xff]  }
0x1d1c   : > { %14237 = vmatprep.subr.bf16.mxu1 %v17227_v0 }
0x1dd1   : > { %v6418_v15 = vpop.f32.mrb[108].mxu1 }
0x1dd2   : > { %v6424_v17 = vadd.f32 %v6418_v15, %v6273_v57  ;;  %v14163_v18 = vpop.f32.mrb[109].mxu1  ;;  %v15676_v15 = vld [vmem:[%s19460_s1 + $0x18] sm:$0xff]  }
0x1dd3   : > { %v6421_v19 = vpop.f32.mrb[110].mxu1  ;;  %v15677_v18 = vld [vmem:[%s19458_s3 + $0x20] sm:$0xff]  }
0x1dd4   : > { %v6432_v20 = vadd.f32 %v12348_v16, %v6424_v17  ;;  %v14164_v21 = vpop.f32.mrb[111].mxu1  ;;  %v15675_v16 = vld [vmem:[%s19458_s3 + $0x18] sm:$0xff]   ;;  %v15678_v17 = vld [vmem:[%s19460_s1 + $0x20] sm:$0xff]   ;;  %v15680_v19 = vld [vmem:[%s19460_s1 + $0x28] sm:$0xff]  }
0x1dd5   : > { %v15679_v21 = vld [vmem:[%s19458_s3 + $0x28] sm:$0xff]  }
0x1dd6   : > { %v6433_v22 = vmax.f32 %v6432_v20, 0.0 }
0x1dd8   : > { %v6434_v23 = vpack.c.bf16 %v6433_v22, %v6433_v22 }
0x1dda   : > { %14182 = vmatmul.mubr.bf16.vlgmr.msra.gmra.mrb[96].mxu0 %v6434_v23  ;;  %14202 = vmatmul.mubr.bf16.vlgmr.msra.gmra.mrb[112].mxu1 %v6434_v23 }
0x1ddb   : > { %14207 = vmatprep.mubr.msk.bf16.mxu0 %vm17228_vm0, %v17227_v0  ;;  %14253 = vmatprep.mubr.msk.bf16.mxu1 %vm17228_vm0, %v17227_v0 }
0x1ddc   : > { %14238 = vmatpush3.bf16.msra.mxu1 %v15661_v24 }
0x1ddd   : > { %14239 = vmatprep.subr.bf16.mxu1 %v17227_v0 }
0x1de0   : > { %14240 = vmatpush3.bf16.msra.mxu1 %v15662_v26  ;;  %v15681_v26 = vld [vmem:[%s19458_s3 + $0x30] sm:$0xff]  }
0x1de1   : > { %14241 = vmatprep.subr.bf16.mxu1 %v17227_v0 }
0x1de4   : > { %14242 = vmatpush3.bf16.msra.mxu1 %v15663_v27  ;;  %v15682_v27 = vld [vmem:[%s19460_s1 + $0x30] sm:$0xff]  }
0x1de5   : > { %14243 = vmatprep.subr.bf16.mxu1 %v17227_v0 }
0x1de8   : > { %14244 = vmatpush3.bf16.msra.mxu1 %v15664_v25  ;;  %v15683_v25 = vld [vmem:[%s19458_s3 + $0x38] sm:$0xff]  }
0x1de9   : > { %14245 = vmatprep.subr.bf16.mxu1 %v17227_v0 }
0x1dec   : > { %14246 = vmatpush3.bf16.msra.mxu1 %v15665_v28  ;;  %v15684_v28 = vld [vmem:[%s19460_s1 + $0x38] sm:$0xff]  }
0x1ded   : > { %14247 = vmatprep.subr.bf16.mxu1 %v17227_v0 }
0x1df0   : > { %14248 = vmatpush3.bf16.msra.mxu1 %v15666_v54  ;;  %v15691_v54 = vld [vmem:[%s19460_s1 + $0x98] sm:$0xff]  }
0x1df1   : > { %14249 = vmatprep.subr.bf16.mxu1 %v17227_v0 }
0x1df4   : > { %14250 = vmatpush3.bf16.msra.mxu1 %v15667_v55  ;;  %v15694_v55 = vld [vmem:[%s19458_s3 + $0xa0] sm:$0xff]  }
0x1df5   : > { %14251 = vmatprep.subr.bf16.mxu1 %v17227_v0 }
0x1df8   : > { %14252 = vmatpush3.bf16.msra.mxu1 %v15668_v56  ;;  %v15693_v56 = vld [vmem:[%s19460_s1 + $0xa0] sm:$0xff]  }
0x1df9   : > { %14263 = vmatprep.subr.bf16.mxu1 %v17227_v0 }
0x1ead   : > { %v6533_v29 = vpop.f32.mrb[96].mxu0  ;;  %v6639_v30 = vpop.f32.mrb[112].mxu1 }
0x1eae   : > { %v6645_v31 = vpack.c.bf16 %v6639_v30, %v6639_v30  ;;  %v14183_v32 = vpop.f32.mrb[97].mxu0  ;;  %v14203_v33 = vpop.f32.mrb[113].mxu1  ;;  %v6539_v36 = vpack.c.bf16 %v6533_v29, %v6533_v29 }
0x1eaf   : > { %v6536_v34 = vpop.f32.mrb[98].mxu0  ;;  %v6642_v35 = vpop.f32.mrb[114].mxu1 }
0x1eb0   : > { %v6653_v37 = vsel %vm5626_vm7, %v6645_v31, 0  ;;  %v14184_v38 = vpop.f32.mrb[99].mxu0  ;;  %v14204_v39 = vpop.f32.mrb[115].mxu1  ;;  %v6699_v43 = vsel %vm5626_vm7, %v6539_v36, 0 }
0x1eb1   : > { %14206 = vmatpush3.bf16.msra.mxu0 %v6653_v37 }
0x1eb2   : > { %14211 = vmatprep.subr.bf16.mxu0 %v17227_v0 }
0x1eb4   : > { %14208 = vmatmul.mubr.msk.bf16.vlgmr.msra.gmra.mrb[100].mxu0 %vm5622_vm8, %v12365_v40 }
0x1eb5   : > { %14212 = vmatpush3.bf16.msra.mxu0 %v6699_v43  ;;  %14213 = vmatprep.mubr.msk.bf16.mxu0 %vm17228_vm0, %v17227_v0 }
0x1eb6   : > { %14217 = vmatprep.subr.bf16.mxu0 %v17227_v0 }
0x1ebc   : > { %14214 = vmatmul.mubr.msk.bf16.vlgmr.msra.gmra.mrb[104].mxu0 %vm5622_vm8, %v6646_v44 }
0x1ebd   : > { %14218 = vmatpush3.bf16.msra.mxu0 %v15653_v45  ;;  %14233 = vmatprep.mubr.msk.bf16.mxu0 %vm17228_vm0, %v17227_v0 }
0x1ebe   : > { %14219 = vmatprep.subr.bf16.mxu0 %v17227_v0 }
0x1ec1   : > { %14220 = vmatpush3.bf16.msra.mxu0 %v15654_v46  ;;  %v18813_v46 = vld [vmem:[#allocation52 + $0x2] sm:$0x3] }
0x1ec2   : > { %14221 = vmatprep.subr.bf16.mxu0 %v17227_v0 }
0x1ec5   : > { %14222 = vmatpush3.bf16.msra.mxu0 %v15655_v47  ;;  %v15685_v47 = vld [vmem:[%s19460_s1 + $0x80] sm:$0xff]  }
0x1ec6   : > { %14223 = vmatprep.subr.bf16.mxu0 %v17227_v0 }
0x1ec9   : > { %14224 = vmatpush3.bf16.msra.mxu0 %v15656_v48  ;;  %v15688_v48 = vld [vmem:[%s19458_s3 + $0x88] sm:$0xff]  }
0x1eca   : > { %14225 = vmatprep.subr.bf16.mxu0 %v17227_v0 }
0x1ecd   : > { %14226 = vmatpush3.bf16.msra.mxu0 %v15657_v49  ;;  %v15687_v49 = vld [vmem:[%s19460_s1 + $0x88] sm:$0xff]  }
0x1ece   : > { %14227 = vmatprep.subr.bf16.mxu0 %v17227_v0 }
0x1ed1   : > { %14228 = vmatpush3.bf16.msra.mxu0 %v15658_v50  ;;  %v15690_v50 = vld [vmem:[%s19458_s3 + $0x90] sm:$0xff]  }
0x1ed2   : > { %14229 = vmatprep.subr.bf16.mxu0 %v17227_v0 }
0x1ed5   : > { %14230 = vmatpush3.bf16.msra.mxu0 %v15659_v52  ;;  %v15689_v52 = vld [vmem:[%s19460_s1 + $0x90] sm:$0xff]  }
0x1ed6   : > { %14231 = vmatprep.subr.bf16.mxu0 %v17227_v0 }
0x1ed9   : > { %14232 = vmatpush3.bf16.msra.mxu0 %v15660_v53  ;;  %v15692_v53 = vld [vmem:[%s19458_s3 + $0x98] sm:$0xff]  }
0x1eda   : > { %14257 = vmatprep.subr.bf16.mxu0 %v17227_v0 }
0x1edc   : > { %14234 = vmatmul.mubr.bf16.vlgmr.msra.gmra.mrb[108].mxu0 %v18566_v41 }
0x1edd   : > { %14259 = vmatprep.mubr.msk.bf16.mxu0 %vm17228_vm0, %v17227_v0 }
0x1f87   : > { %v6689_v57 = vpop.f32.mrb[100].mxu0 }
0x1f88   : > { %v14209_v58 = vpop.f32.mrb[101].mxu0 }
0x1f89   : > { %v6692_v59 = vpop.f32.mrb[102].mxu0  ;;  %v15696_v58 = vld [vmem:[%s19458_s3 + $0xa8] sm:$0xff]  }
0x1f8a   : > { %v14210_v41 = vpop.f32.mrb[103].mxu0  ;;  %v15697_v59 = vld [vmem:[%s19460_s1 + $0xb0] sm:$0xff]  }
0x1f8b   : > { %v15698_v41 = vld [vmem:[%s19458_s3 + $0xb0] sm:$0xff]  }
0x1f8f   : > { %v6735_v60 = vpop.f32.mrb[104].mxu0 }
0x1f90   : > { %v6736_v62 = vadd.f32 %v6735_v60, %v6689_v57  ;;  %v14215_v63 = vpop.f32.mrb[105].mxu0  ;;  %v15695_v57 = vld [vmem:[%s19460_s1 + $0xa8] sm:$0xff]   ;;  %v15699_v60 = vld [vmem:[%s19460_s1 + $0xb8] sm:$0xff]  }
0x1f91   : > { %v6738_v1 = vpop.f32.mrb[106].mxu0 }
0x1f92   : > { %v6748_v2 = vadd.f32 %v12368_v61, %v6736_v62  ;;  %v14216_v3 = vpop.f32.mrb[107].mxu0  ;;  %v15700_v61 = vld [vmem:[%s19458_s3 + $0xb8] sm:$0xff]  }
0x1f94   : > { %v6749_v4 = vpack.c.bf16 %v6748_v2, %v6748_v2 }
0x1f96   : > { %14254 = vmatmul.mubr.bf16.vlgmr.msra.gmra.mrb[116].mxu1 %v6749_v4  ;;  %v18752_v5 = vsel %vm4483_vm5, %v6749_v4, 0 }
0x1f97   : > { %14264 = vmatpush3.bf16.msra.mxu1 %v18570_v42  ;;  %14258 = vmatpush3.bf16.msra.mxu0 %v18752_v5 }
0x1f98   : > { %14265 = vmatprep.mubr.msk.bf16.mxu1 %vm17228_vm0, %v17227_v0  ;;  %14289 = vmatprep.subr.bf16.mxu1 %v17227_v0 }
0x1f99   : > { %14269 = vmatprep.subr.bf16.mxu0 %v17227_v0 }
0x1f9a   : > { %14260 = vmatmul.mubr.msk.bf16.vlgmr.msra.gmra.mrb[112].mxu0 %vm4479_vm6, %v18761_v7 }
0x1f9b   : > { %14270 = vmatpush3.bf16.msra.mxu0 %v15670_v6  ;;  %14285 = vmatprep.mubr.msk.bf16.mxu0 %vm17228_vm0, %v17227_v0 }
0x1f9c   : > { %14271 = vmatprep.subr.bf16.mxu0 %v17227_v0 }
0x1f9e   : > { %14266 = vmatmul.mubr.msk.bf16.vlgmr.msra.gmra.mrb[120].mxu1 %vm4479_vm6, %v18761_v7 }
0x1f9f   : > { %14290 = vmatpush3.bf16.msra.mxu1 %v15669_v8  ;;  %14272 = vmatpush3.bf16.msra.mxu0 %v15672_v9 }
0x1fa0   : > { %14291 = vmatprep.subr.bf16.mxu1 %v17227_v0  ;;  %14273 = vmatprep.subr.bf16.mxu0 %v17227_v0 }
0x1fa1   : > { %14305 = vmatprep.mubr.msk.bf16.mxu1 %vm17228_vm0, %v17227_v0 }
0x1fa3   : > { %14292 = vmatpush3.bf16.msra.mxu1 %v15671_v10  ;;  %14274 = vmatpush3.bf16.msra.mxu0 %v15674_v11 }
0x1fa4   : > { %14293 = vmatprep.subr.bf16.mxu1 %v17227_v0  ;;  %14275 = vmatprep.subr.bf16.mxu0 %v17227_v0 }
0x1fa7   : > { %14294 = vmatpush3.bf16.msra.mxu1 %v15673_v14  ;;  %14276 = vmatpush3.bf16.msra.mxu0 %v15676_v15 }
0x1fa8   : > { %14295 = vmatprep.subr.bf16.mxu1 %v17227_v0  ;;  %14277 = vmatprep.subr.bf16.mxu0 %v17227_v0 }
0x1fab   : > { %14296 = vmatpush3.bf16.msra.mxu1 %v15675_v16  ;;  %14278 = vmatpush3.bf16.msra.mxu0 %v15678_v17 }
0x1fac   : > { %14297 = vmatprep.subr.bf16.mxu1 %v17227_v0  ;;  %14279 = vmatprep.subr.bf16.mxu0 %v17227_v0 }
0x1faf   : > { %v6866_v20 = vpop.f32.mrb[108].mxu0  ;;  %14298 = vmatpush3.bf16.msra.mxu1 %v15677_v18  ;;  %14280 = vmatpush3.bf16.msra.mxu0 %v15680_v19 }
0x1fb0   : > { %v14235_v22 = vpop.f32.mrb[109].mxu0  ;;  %14299 = vmatprep.subr.bf16.mxu1 %v17227_v0  ;;  %14281 = vmatprep.subr.bf16.mxu0 %v17227_v0 }
0x1fb1   : > { %v6869_v23 = vpop.f32.mrb[110].mxu0  ;;  %v15709_v22 = vld [vmem:[#allocation4] sm:$0xff]  }
0x1fb2   : > { %v14236_v24 = vpop.f32.mrb[111].mxu0  ;;  %v15710_v23 = vld [vmem:[#allocation4 + $0x8] sm:$0xff]  }
0x1fb3   : > { %14300 = vmatpush3.bf16.msra.mxu1 %v15679_v21  ;;  %14282 = vmatpush3.bf16.msra.mxu0 %v15682_v27  ;;  %v15711_v24 = vld [vmem:[#allocation4 + $0x10] sm:$0xff]   ;;  %v15713_v27 = vld [vmem:[#allocation4 + $0x20] sm:$0xff]  }
0x1fb4   : > { %14301 = vmatprep.subr.bf16.mxu1 %v17227_v0  ;;  %14283 = vmatprep.subr.bf16.mxu0 %v17227_v0 }
0x1fb7   : > { %14302 = vmatpush3.bf16.msra.mxu1 %v15681_v26  ;;  %14284 = vmatpush3.bf16.msra.mxu0 %v15684_v28  ;;  %v15712_v26 = vld [vmem:[#allocation4 + $0x18] sm:$0xff]   ;;  %v15715_v28 = vld [vmem:[#allocation4 + $0x30] sm:$0xff]  }
0x1fb8   : > { %14303 = vmatprep.subr.bf16.mxu1 %v17227_v0  ;;  %14309 = vmatprep.subr.bf16.mxu0 %v17227_v0 }
0x1fbb   : > { %14304 = vmatpush3.bf16.msra.mxu1 %v15683_v25  ;;  %v15714_v25 = vld [vmem:[#allocation4 + $0x28] sm:$0xff]  }
0x1fbc   : > { %14315 = vmatprep.subr.bf16.mxu1 %v17227_v0 }
0x2069   : > { %v6954_v29 = vpop.f32.mrb[116].mxu1 }
0x206a   : > { %v18802_v30 = vadd.f32 %v6954_v29, %v6866_v20  ;;  %v14255_v31 = vpop.f32.mrb[117].mxu1  ;;  %v15716_v29 = vld [vmem:[#allocation4 + $0x38] sm:$0xff]  }
0x206b   : > { %v6957_v32 = vpop.f32.mrb[118].mxu1 }
0x206c   : > { %v14256_v33 = vpop.f32.mrb[119].mxu1 }
0x206d   : > { %v6997_v34 = vpop.f32.mrb[112].mxu0 }
0x206e   : > { %v7003_v35 = vpack.c.bf16 %v6997_v34, %v6997_v34  ;;  %v14261_v36 = vpop.f32.mrb[113].mxu0 }
0x206f   : > { %v7000_v37 = vpop.f32.mrb[114].mxu0 }
0x2070   : > { %14306 = vmatmul.mubr.bf16.vlgmr.msra.gmra.mrb[124].mxu1 %v7003_v35  ;;  %v14262_v38 = vpop.f32.mrb[115].mxu0  ;;  %v12485_v37 = vld [vmem:[#allocation2] ss:$0 sm:$0xff] }
0x2071   : > { %14316 = vmatpush3.bf16.msra.mxu1 %v18570_v42  ;;  %v7054_v39 = vpop.f32.mrb[120].mxu1  ;;  %14317 = vmatprep.mubr.msk.bf16.mxu1 %vm17228_vm0, %v17227_v0  ;;  %v15686_v42 = vld [vmem:[%s19458_s3 + $0x80] sm:$0xff]  }
0x2072   : > { %v7060_v40 = vpack.c.bf16 %v7054_v39, %v7054_v39  ;;  %v14267_v43 = vpop.f32.mrb[121].mxu1  ;;  %14341 = vmatprep.subr.bf16.mxu1 %v17227_v0 }
0x2073   : > { %v7057_v44 = vpop.f32.mrb[122].mxu1 }
0x2074   : > { %v14268_v45 = vpop.f32.mrb[123].mxu1  ;;  %14286 = vmatmul.mubr.bf16.vlgmr.msra.gmra.mrb[116].mxu0 %v7060_v40 }
0x2075   : > { %14310 = vmatpush3.bf16.msra.mxu0 %v18752_v5  ;;  %14311 = vmatprep.mubr.msk.bf16.mxu0 %vm17228_vm0, %v17227_v0 }
0x2076   : > { %14321 = vmatprep.subr.bf16.mxu0 %v17227_v0 }
0x2078   : > { %14318 = vmatmul.mubr.msk.bf16.vlgmr.msra.gmra.mrb[128].mxu1 %vm4479_vm6, %v18813_v46 }
0x2079   : > { %14342 = vmatpush3.bf16.msra.mxu1 %v15686_v42  ;;  %14357 = vmatprep.mubr.msk.bf16.mxu1 %vm17228_vm0, %v17227_v0 }
0x207a   : > { %14343 = vmatprep.subr.bf16.mxu1 %v17227_v0 }
0x207c   : > { %14312 = vmatmul.mubr.msk.bf16.vlgmr.msra.gmra.mrb[120].mxu0 %vm4479_vm6, %v18813_v46 }
0x207d   : > { %14322 = vmatpush3.bf16.msra.mxu0 %v15685_v47  ;;  %14344 = vmatpush3.bf16.msra.mxu1 %v15688_v48  ;;  %v15701_v47 = vld [vmem:[#allocation4 + $0x40] sm:$0xff]   ;;  %v15702_v48 = vld [vmem:[#allocation4 + $0x48] sm:$0xff]  }
0x207e   : > { %14323 = vmatprep.subr.bf16.mxu0 %v17227_v0  ;;  %14345 = vmatprep.subr.bf16.mxu1 %v17227_v0 }
0x207f   : > { %14337 = vmatprep.mubr.msk.bf16.mxu0 %vm17228_vm0, %v17227_v0 }
0x2081   : > { %14324 = vmatpush3.bf16.msra.mxu0 %v15687_v49  ;;  %14346 = vmatpush3.bf16.msra.mxu1 %v15690_v50  ;;  %v15703_v49 = vld [vmem:[#allocation4 + $0x50] sm:$0xff]   ;;  %v15704_v50 = vld [vmem:[#allocation4 + $0x58] sm:$0xff]  }
0x2082   : > { %14325 = vmatprep.subr.bf16.mxu0 %v17227_v0  ;;  %14347 = vmatprep.subr.bf16.mxu1 %v17227_v0 }
0x2085   : > { %14326 = vmatpush3.bf16.msra.mxu0 %v15689_v52  ;;  %14348 = vmatpush3.bf16.msra.mxu1 %v15692_v53  ;;  %v15705_v52 = vld [vmem:[#allocation4 + $0x60] sm:$0xff]   ;;  %v15707_v53 = vld [vmem:[#allocation4 + $0x70] sm:$0xff]  }
0x2086   : > { %14327 = vmatprep.subr.bf16.mxu0 %v17227_v0  ;;  %14349 = vmatprep.subr.bf16.mxu1 %v17227_v0 }
0x2089   : > { %14328 = vmatpush3.bf16.msra.mxu0 %v15691_v54  ;;  %14350 = vmatpush3.bf16.msra.mxu1 %v15694_v55  ;;  %v15708_v54 = vld [vmem:[#allocation4 + $0x78] sm:$0xff]   ;;  %v15717_v55 = vld [vmem:[#allocation4 + $0x80] sm:$0xff]  }
0x208a   : > { %14329 = vmatprep.subr.bf16.mxu0 %v17227_v0  ;;  %14351 = vmatprep.subr.bf16.mxu1 %v17227_v0 }
0x208d   : > { %14330 = vmatpush3.bf16.msra.mxu0 %v15693_v56  ;;  %14352 = vmatpush3.bf16.msra.mxu1 %v15696_v58  ;;  %v15718_v56 = vld [vmem:[#allocation4 + $0x88] sm:$0xff]   ;;  %v15720_v58 = vld [vmem:[#allocation4 + $0x98] sm:$0xff]  }
0x208e   : > { %14331 = vmatprep.subr.bf16.mxu0 %v17227_v0  ;;  %14353 = vmatprep.subr.bf16.mxu1 %v17227_v0 }
0x2091   : > { %14332 = vmatpush3.bf16.msra.mxu0 %v15695_v57  ;;  %14354 = vmatpush3.bf16.msra.mxu1 %v15698_v41  ;;  %v15719_v57 = vld [vmem:[#allocation4 + $0x90] sm:$0xff]  }
0x2092   : > { %14333 = vmatprep.subr.bf16.mxu0 %v17227_v0  ;;  %14355 = vmatprep.subr.bf16.mxu1 %v17227_v0 }
0x2095   : > { %14334 = vmatpush3.bf16.msra.mxu0 %v15697_v59  ;;  %14356 = vmatpush3.bf16.msra.mxu1 %v15700_v61  ;;  %v15721_v59 = vld [vmem:[#allocation4 + $0xa0] sm:$0xff]  }
0x2096   : > { %14335 = vmatprep.subr.bf16.mxu0 %v17227_v0  ;;  %14367 = vmatprep.subr.bf16.mxu1 %v17227_v0 }
0x2099   : > { %14336 = vmatpush3.bf16.msra.mxu0 %v15699_v60 }
0x209a   : > { %14361 = vmatprep.subr.bf16.mxu0 %v17227_v0 }
0x2143   : > { %v7247_v62 = vpop.f32.mrb[124].mxu1 }
0x2144   : > { %v14307_v63 = vpop.f32.mrb[125].mxu1 }
0x2145   : > { %v7250_v1 = vpop.f32.mrb[126].mxu1 }
0x2146   : > { %v14308_v2 = vpop.f32.mrb[127].mxu1 }
0x2147   : > { %v7159_v3 = vpop.f32.mrb[116].mxu0 }
0x2148   : > { %v7248_v4 = vadd.f32 %v7247_v62, %v7159_v3  ;;  %v14287_v5 = vpop.f32.mrb[117].mxu0 }
0x2149   : > { %v7162_v6 = vpop.f32.mrb[118].mxu0  ;;  %v15722_v5 = vld [vmem:[#allocation4 + $0xa8] sm:$0xff]  }
0x214a   : > { %v7253_v8 = vadd.f32 %v7248_v4, %v18802_v30  ;;  %v14288_v9 = vpop.f32.mrb[119].mxu0  ;;  %v15723_v6 = vld [vmem:[#allocation4 + $0xb0] sm:$0xff]  }
0x214b   : > { %v7346_v10 = vpop.f32.mrb[128].mxu1  ;;  %v15727_v9 = vld [vmem:[#allocation60 + $0x8] sm:$0xff]  }
0x214c   : > { %v7352_v11 = vpack.c.bf16 %v7346_v10, %v7346_v10  ;;  %v14319_v14 = vpop.f32.mrb[129].mxu1  ;;  %v15729_v10 = vld [vmem:[#allocation60 + $0x10] sm:$0xff]  }
0x214d   : > { %v7349_v15 = vpop.f32.mrb[130].mxu1  ;;  %v15733_v14 = vld [vmem:[#allocation60 + $0x20] sm:$0xff]  }
0x214e   : > { %v14320_v16 = vpop.f32.mrb[131].mxu1  ;;  %14338 = vmatmul.mubr.bf16.vlgmr.msra.gmra.mrb[124].mxu0 %v7352_v11  ;;  %v15731_v11 = vld [vmem:[#allocation60 + $0x18] sm:$0xff]   ;;  %v15735_v15 = vld [vmem:[#allocation60 + $0x28] sm:$0xff]  }
0x214f   : > { %v7288_v17 = vpop.f32.mrb[120].mxu0  ;;  %14363 = vmatprep.mubr.msk.bf16.mxu0 %vm17228_vm0, %v17227_v0 }
0x2150   : > { %v7294_v18 = vpack.c.bf16 %v7288_v17, %v7288_v17  ;;  %v14313_v19 = vpop.f32.mrb[121].mxu0 }
0x2151   : > { %v7291_v20 = vpop.f32.mrb[122].mxu0 }
0x2152   : > { %v14314_v21 = vpop.f32.mrb[123].mxu0  ;;  %14358 = vmatmul.mubr.bf16.vlgmr.msra.gmra.mrb[132].mxu1 %v7294_v18 }
0x2153   : > { %14383 = vmatprep.mubr.msk.bf16.mxu1 %vm17228_vm0, %v17227_v0  ;;  %14368 = vmatpush3.bf16.msra.mxu1 %v15709_v22  ;;  %v15726_v22 = vld [vmem:[#allocation60 + $0x40] sm:$0xff]  }
0x2154   : > { %14369 = vmatprep.subr.bf16.mxu1 %v17227_v0 }
0x2157   : > { %14370 = vmatpush3.bf16.msra.mxu1 %v15710_v23 }
0x2158   : > { %14371 = vmatprep.subr.bf16.mxu1 %v17227_v0 }
0x215b   : > { %14372 = vmatpush3.bf16.msra.mxu1 %v15711_v24 }
0x215c   : > { %14373 = vmatprep.subr.bf16.mxu1 %v17227_v0 }
0x215f   : > { %14374 = vmatpush3.bf16.msra.mxu1 %v15712_v26 }
0x2160   : > { %14375 = vmatprep.subr.bf16.mxu1 %v17227_v0 }
0x2163   : > { %14376 = vmatpush3.bf16.msra.mxu1 %v15713_v27 }
0x2164   : > { %14377 = vmatprep.subr.bf16.mxu1 %v17227_v0 }
0x2167   : > { %14378 = vmatpush3.bf16.msra.mxu1 %v15714_v25  ;;  %v15728_v25 = vld [vmem:[#allocation60 + $0x48] sm:$0xff]  }
0x2168   : > { %14379 = vmatprep.subr.bf16.mxu1 %v17227_v0 }
0x216b   : > { %14380 = vmatpush3.bf16.msra.mxu1 %v15715_v28  ;;  %v15730_v28 = vld [vmem:[#allocation60 + $0x50] sm:$0xff]  }
0x216c   : > { %14381 = vmatprep.subr.bf16.mxu1 %v17227_v0 }
0x216f   : > { %14382 = vmatpush3.bf16.msra.mxu1 %v15716_v29  ;;  %v15732_v29 = vld [vmem:[#allocation60 + $0x58] sm:$0xff]  }
0x2170   : > { %14407 = vmatprep.subr.bf16.mxu1 %v17227_v0 }
0x2221   : > { %v7452_v30 = vpop.f32.mrb[124].mxu0 }
0x2222   : > { %v14339_v31 = vpop.f32.mrb[125].mxu0 }
0x2223   : > { %v7455_v32 = vpop.f32.mrb[126].mxu0  ;;  %v15736_v31 = vld [vmem:[#allocation60 + $0x68] sm:$0xff]  }
0x2224   : > { %v14340_v33 = vpop.f32.mrb[127].mxu0  ;;  %v15737_v32 = vld [vmem:[#allocation60 + $0x30] sm:$0xff]  }
0x2225   : > { %v7540_v34 = vpop.f32.mrb[132].mxu1  ;;  %v15738_v33 = vld [vmem:[#allocation60 + $0x70] sm:$0xff]  }
0x2226   : > { %v7541_v35 = vadd.f32 %v7540_v34, %v7452_v30  ;;  %v14359_v36 = vpop.f32.mrb[133].mxu1  ;;  %v15734_v30 = vld [vmem:[#allocation60 + $0x60] sm:$0xff]   ;;  %v15739_v34 = vld [vmem:[#allocation60 + $0x38] sm:$0xff]  }
0x2227   : > { %v7543_v38 = vpop.f32.mrb[134].mxu1 }
0x2228   : > { %v7546_v39 = vadd.f32 %v7541_v35, %v7253_v8  ;;  %v14360_v40 = vpop.f32.mrb[135].mxu1  ;;  %v15724_v8 = vld [vmem:[#allocation4 + $0xb8] sm:$0xff]  }
0x2229   : > { %v15740_v35 = vld [vmem:[#allocation60 + $0x78] sm:$0xff]  }
0x222a   : > { %v7554_v43 = vadd.f32 %v12485_v37, %v7546_v39  ;;  %v12512_v37 = vld [vmem:[#allocation6] ss:$0 sm:$0xff] }
0x222c   : > { %v7555_v44 = vmax.f32 %v7554_v43, 0.0 }
0x222e   : > { %v7556_v45 = vpack.c.bf16 %v7555_v44, %v7555_v44 }
0x2230   : > { %v7575_v42 = vsel %vm4483_vm5, %v7556_v45, 0 }
0x2231   : > { %14362 = vmatpush3.bf16.msra.mxu0 %v7575_v42 }
0x2232   : > { %14387 = vmatprep.subr.bf16.mxu0 %v17227_v0 }
0x2234   : > { %14364 = vmatmul.mubr.msk.bf16.vlgmr.msra.gmra.mrb[128].mxu0 %vm4479_vm6, %v18761_v7  ;;  %v15706_v7 = vld [vmem:[#allocation4 + $0x68] sm:$0xff]  }
0x2235   : > { %14388 = vmatpush3.bf16.msra.mxu0 %v15701_v47  ;;  %14403 = vmatprep.mubr.msk.bf16.mxu0 %vm17228_vm0, %v17227_v0  ;;  %v15749_v47 = vld [vmem:[#allocation9 + $0x40] sm:$0xff]  }
0x2236   : > { %14389 = vmatprep.subr.bf16.mxu0 %v17227_v0 }
0x2239   : > { %14390 = vmatpush3.bf16.msra.mxu0 %v15702_v48  ;;  %v15750_v48 = vld [vmem:[#allocation9 + $0x48] sm:$0xff]  }
0x223a   : > { %14391 = vmatprep.subr.bf16.mxu0 %v17227_v0 }
0x223d   : > { %14392 = vmatpush3.bf16.msra.mxu0 %v15703_v49  ;;  %v15751_v49 = vld [vmem:[#allocation9 + $0x50] sm:$0xff]  }
0x223e   : > { %14393 = vmatprep.subr.bf16.mxu0 %v17227_v0 }
0x2241   : > { %14394 = vmatpush3.bf16.msra.mxu0 %v15704_v50  ;;  %v15752_v50 = vld [vmem:[#allocation9 + $0x58] sm:$0xff]  }
0x2242   : > { %14395 = vmatprep.subr.bf16.mxu0 %v17227_v0 }
0x2245   : > { %14396 = vmatpush3.bf16.msra.mxu0 %v15705_v52 }
0x2246   : > { %14397 = vmatprep.subr.bf16.mxu0 %v17227_v0 }
0x2249   : > { %14398 = vmatpush3.bf16.msra.mxu0 %v15706_v7 }
0x224a   : > { %14399 = vmatprep.subr.bf16.mxu0 %v17227_v0 }
0x224d   : > { %14400 = vmatpush3.bf16.msra.mxu0 %v15707_v53 }
0x224e   : > { %14401 = vmatprep.subr.bf16.mxu0 %v17227_v0 }
0x2251   : > { %14402 = vmatpush3.bf16.msra.mxu0 %v15708_v54 }
0x2252   : > { %14413 = vmatprep.subr.bf16.mxu0 %v17227_v0 }
0x2254   : > { %14404 = vmatmul.mubr.bf16.vlgmr.msra.gmra.mrb[132].mxu0 %v7556_v45 }
0x2255   : > { %14429 = vmatprep.mubr.msk.bf16.mxu0 %vm17228_vm0, %v17227_v0  ;;  %14414 = vmatpush3.bf16.msra.mxu0 %v15717_v55 }
0x2256   : > { %14415 = vmatprep.subr.bf16.mxu0 %v17227_v0 }
0x2259   : > { %14416 = vmatpush3.bf16.msra.mxu0 %v15718_v56 }
0x225a   : > { %14417 = vmatprep.subr.bf16.mxu0 %v17227_v0 }
0x225d   : > { %14418 = vmatpush3.bf16.msra.mxu0 %v15719_v57 }
0x225e   : > { %14419 = vmatprep.subr.bf16.mxu0 %v17227_v0 }
0x2261   : > { %14420 = vmatpush3.bf16.msra.mxu0 %v15720_v58 }
0x2262   : > { %14421 = vmatprep.subr.bf16.mxu0 %v17227_v0 }
0x2265   : > { %14422 = vmatpush3.bf16.msra.mxu0 %v15721_v59 }
0x2266   : > { %14423 = vmatprep.subr.bf16.mxu0 %v17227_v0 }
0x2269   : > { %14424 = vmatpush3.bf16.msra.mxu0 %v15722_v5  ;;  %v15745_v5 = vld [vmem:[#allocation7 + $0x60] sm:$0xff]  }
0x226a   : > { %14425 = vmatprep.subr.bf16.mxu0 %v17227_v0 }
0x226d   : > { %14426 = vmatpush3.bf16.msra.mxu0 %v15723_v6  ;;  %v15746_v6 = vld [vmem:[#allocation7 + $0x68] sm:$0xff]  }
0x226e   : > { %14427 = vmatprep.subr.bf16.mxu0 %v17227_v0 }
0x2271   : > { %14428 = vmatpush3.bf16.msra.mxu0 %v15724_v8  ;;  %v15747_v8 = vld [vmem:[#allocation7 + $0x70] sm:$0xff]  }
0x2272   : > { %14453 = vmatprep.subr.bf16.mxu0 %v17227_v0 }
0x2307   : > { %v7611_v41 = vpop.f32.mrb[128].mxu0 }
0x2308   : > { %v7617_v60 = vpack.c.bf16 %v7611_v41, %v7611_v41  ;;  %v14365_v61 = vpop.f32.mrb[129].mxu0 }
0x2309   : > { %v7614_v62 = vpop.f32.mrb[130].mxu0  ;;  %v12529_v61 = vld [vmem:[%s19461_s7 + $0x4] sm:$0xf] }
0x230a   : > { %v14366_v63 = vpop.f32.mrb[131].mxu0  ;;  %14384 = vmatmul.mubr.bf16.vlgmr.msra.gmra.mrb[136].mxu1 %v7617_v60 }
0x230b   : > { %14408 = vmatpush3.bf16.msra.mxu1 %v7575_v42  ;;  %14409 = vmatprep.mubr.msk.bf16.mxu1 %vm17228_vm0, %v17227_v0  ;;  %v8178_v63 = vld [vmem:[%s19461_s7] sm:$0xf] }
0x230c   : > { %14433 = vmatprep.subr.bf16.mxu1 %v17227_v0 }
0x2312   : > { %14410 = vmatmul.mubr.msk.bf16.vlgmr.msra.gmra.mrb[140].mxu1 %vm4479_vm6, %v18813_v46  ;;  %v15725_v46 = vld [vmem:[#allocation60] sm:$0xff]  }
0x2313   : > { %14449 = vmatprep.mubr.msk.bf16.mxu1 %vm17228_vm0, %v17227_v0  ;;  %14434 = vmatpush3.bf16.msra.mxu1 %v15725_v46  ;;  %v15748_v46 = vld [vmem:[#allocation7 + $0x78] sm:$0xff]  }
0x2314   : > { %14435 = vmatprep.subr.bf16.mxu1 %v17227_v0 }
0x2317   : > { %14436 = vmatpush3.bf16.msra.mxu1 %v15727_v9  ;;  %v15753_v9 = vld [vmem:[#allocation9 + $0x60] sm:$0xff]  }
0x2318   : > { %14437 = vmatprep.subr.bf16.mxu1 %v17227_v0 }
0x231b   : > { %14438 = vmatpush3.bf16.msra.mxu1 %v15729_v10  ;;  %v15754_v10 = vld [vmem:[#allocation9 + $0x68] sm:$0xff]  }
0x231c   : > { %14439 = vmatprep.subr.bf16.mxu1 %v17227_v0 }
0x231f   : > { %14440 = vmatpush3.bf16.msra.mxu1 %v15731_v11  ;;  %v15755_v11 = vld [vmem:[#allocation9 + $0x70] sm:$0xff]  }
0x2320   : > { %14441 = vmatprep.subr.bf16.mxu1 %v17227_v0 }
0x2323   : > { %14442 = vmatpush3.bf16.msra.mxu1 %v15733_v14  ;;  %v15756_v14 = vld [vmem:[#allocation9 + $0x78] sm:$0xff]  }
0x2324   : > { %14443 = vmatprep.subr.bf16.mxu1 %v17227_v0 }
0x2327   : > { %v7804_v1 = vpop.f32.mrb[132].mxu0  ;;  %14444 = vmatpush3.bf16.msra.mxu1 %v15735_v15 }
0x2328   : > { %v14405_v2 = vpop.f32.mrb[133].mxu0  ;;  %14445 = vmatprep.subr.bf16.mxu1 %v17227_v0 }
0x2329   : > { %v7807_v3 = vpop.f32.mrb[134].mxu0  ;;  %v15742_v2 = vld [vmem:[#allocation7 + $0x48] sm:$0xff]  }
0x232a   : > { %v14406_v4 = vpop.f32.mrb[135].mxu0  ;;  %v15743_v3 = vld [vmem:[#allocation7 + $0x50] sm:$0xff]  }
0x232b   : > { %14446 = vmatpush3.bf16.msra.mxu1 %v15737_v32  ;;  %v15744_v4 = vld [vmem:[#allocation7 + $0x58] sm:$0xff]  }
0x232c   : > { %14447 = vmatprep.subr.bf16.mxu1 %v17227_v0  ;;  %v15765_v32 = vld [vmem:[#allocation7 + $0x18] sm:$0xff]  }
0x232f   : > { %14448 = vmatpush3.bf16.msra.mxu1 %v15739_v34  ;;  %v15767_v34 = vld [vmem:[#allocation7 + $0x20] sm:$0xff]  }
0x2330   : > { %14473 = vmatprep.subr.bf16.mxu1 %v17227_v0 }
0x23dd   : > { %v7716_v16 = vpop.f32.mrb[136].mxu1 }
0x23de   : > { %v7805_v17 = vadd.f32 %v7804_v1, %v7716_v16  ;;  %v14385_v18 = vpop.f32.mrb[137].mxu1  ;;  %v15741_v1 = vld [vmem:[#allocation7 + $0x40] sm:$0xff]  }
0x23df   : > { %v7719_v19 = vpop.f32.mrb[138].mxu1 }
0x23e0   : > { %v14386_v20 = vpop.f32.mrb[139].mxu1  ;;  %v12532_v19 = vld [vmem:[#allocation61] ss:$0 sm:$0xff] }
0x23e5   : > { %v7844_v21 = vpop.f32.mrb[140].mxu1 }
0x23e6   : > { %v7850_v23 = vpack.c.bf16 %v7844_v21, %v7844_v21  ;;  %v14411_v24 = vpop.f32.mrb[141].mxu1 }
0x23e7   : > { %v7847_v26 = vpop.f32.mrb[142].mxu1 }
0x23e8   : > { %v14412_v27 = vpop.f32.mrb[143].mxu1  ;;  %14430 = vmatmul.mubr.bf16.vlgmr.msra.gmra.mrb[136].mxu0 %v7850_v23  ;;  %v15759_v26 = vld [vmem:[#allocation7] sm:$0xff]  }
0x23e9   : > { %14454 = vmatpush3.bf16.msra.mxu0 %v15726_v22  ;;  %14469 = vmatprep.mubr.msk.bf16.mxu0 %vm17228_vm0, %v17227_v0 }
0x23ea   : > { %14455 = vmatprep.subr.bf16.mxu0 %v17227_v0 }
0x23ed   : > { %14456 = vmatpush3.bf16.msra.mxu0 %v15728_v25 }
0x23ee   : > { %14457 = vmatprep.subr.bf16.mxu0 %v17227_v0 }
0x23f1   : > { %14458 = vmatpush3.bf16.msra.mxu0 %v15730_v28  ;;  %v15761_v28 = vld [vmem:[#allocation7 + $0x8] sm:$0xff]  }
0x23f2   : > { %14459 = vmatprep.subr.bf16.mxu0 %v17227_v0 }
0x23f5   : > { %14460 = vmatpush3.bf16.msra.mxu0 %v15732_v29  ;;  %v18959_v29 = vld [vmem:[#allocation54] sm:$0xf] }
0x23f6   : > { %14461 = vmatprep.subr.bf16.mxu0 %v17227_v0 }
0x23f9   : > { %14462 = vmatpush3.bf16.msra.mxu0 %v15734_v30  ;;  %v15763_v30 = vld [vmem:[#allocation7 + $0x10] sm:$0xff]  }
0x23fa   : > { %14463 = vmatprep.subr.bf16.mxu0 %v17227_v0 }
0x23fd   : > { %14464 = vmatpush3.bf16.msra.mxu0 %v15736_v31  ;;  %v15757_v31 = vld [vmem:[#allocation9] sm:$0xff]  }
0x23fe   : > { %14465 = vmatprep.subr.bf16.mxu0 %v17227_v0 }
0x2401   : > { %14466 = vmatpush3.bf16.msra.mxu0 %v15738_v33  ;;  %v15758_v33 = vld [vmem:[#allocation9 + $0x8] sm:$0xff]  }
0x2402   : > { %14467 = vmatprep.subr.bf16.mxu0 %v17227_v0 }
0x2405   : > { %14468 = vmatpush3.bf16.msra.mxu0 %v15740_v35  ;;  %v15760_v35 = vld [vmem:[#allocation9 + $0x10] sm:$0xff]  }
0x2406   : > { %14505 = vmatprep.subr.bf16.mxu0 %v17227_v0 }
0x24bb   : > { %v7950_v36 = vpop.f32.mrb[136].mxu0 }
0x24bc   : > { %v7956_v38 = vadd.f32 %v7950_v36, %v7805_v17  ;;  %v14431_v39 = vpop.f32.mrb[137].mxu0  ;;  %v15762_v36 = vld [vmem:[#allocation9 + $0x18] sm:$0xff]  }
0x24bd   : > { %v7953_v40 = vpop.f32.mrb[138].mxu0 }
0x24be   : > { %v7964_v43 = vadd.f32 %v12512_v37, %v7956_v38  ;;  %v14432_v44 = vpop.f32.mrb[139].mxu0  ;;  %v15764_v38 = vld [vmem:[#allocation9 + $0x20] sm:$0xff]  }
0x24bf   : > { %v15766_v44 = vld [vmem:[#allocation9 + $0x28] sm:$0xff]  }
0x24c0   : > { %v7965_v45 = vmax.f32 %v7964_v43, 0.0 }
0x24c2   : > { %v7966_v42 = vpack.c.bf16 %v7965_v45, %v7965_v45  ;;  %v15768_v45 = vld [vmem:[#allocation9 + $0x30] sm:$0xff]  }
0x24c4   : > { %14450 = vmatmul.mubr.bf16.vlgmr.msra.gmra.mrb[144].mxu1 %v7966_v42  ;;  %14470 = vmatmul.mubr.bf16.vlgmr.msra.gmra.mrb[140].mxu0 %v7966_v42  ;;  %v15769_v42 = vld [vmem:[#allocation7 + $0x28] sm:$0xff]  }
0x24c5   : > { %14475 = vmatprep.mubr.msk.bf16.mxu1 %vm17228_vm0, %v17227_v0  ;;  %14521 = vmatprep.mubr.msk.bf16.mxu0 %vm17228_vm0, %v17227_v0 }
0x24c6   : > { %14506 = vmatpush3.bf16.msra.mxu0 %v15749_v47  ;;  %v15770_v47 = vld [vmem:[#allocation9 + $0x38] sm:$0xff]  }
0x24c7   : > { %14507 = vmatprep.subr.bf16.mxu0 %v17227_v0 }
0x24ca   : > { %14508 = vmatpush3.bf16.msra.mxu0 %v15750_v48  ;;  %v15771_v48 = vld [vmem:[#allocation7 + $0x30] sm:$0xff]  }
0x24cb   : > { %14509 = vmatprep.subr.bf16.mxu0 %v17227_v0 }
0x24ce   : > { %14510 = vmatpush3.bf16.msra.mxu0 %v15751_v49  ;;  %v15772_v49 = vld [vmem:[#allocation7 + $0x38] sm:$0xff]  }
0x24cf   : > { %14511 = vmatprep.subr.bf16.mxu0 %v17227_v0 }
0x24d2   : > { %14512 = vmatpush3.bf16.msra.mxu0 %v15752_v50 }
0x24d3   : > { %14513 = vmatprep.subr.bf16.mxu0 %v17227_v0 }
0x24d6   : > { %14514 = vmatpush3.bf16.msra.mxu0 %v15753_v9  ;;  %v15781_v9 = vld [vmem:[#allocation7 + $0xa0] sm:$0xff]  }
0x24d7   : > { %14515 = vmatprep.subr.bf16.mxu0 %v17227_v0 }
0x24da   : > { %14516 = vmatpush3.bf16.msra.mxu0 %v15754_v10  ;;  %v15782_v10 = vld [vmem:[#allocation9 + $0xa0] sm:$0xff]  }
0x24db   : > { %14517 = vmatprep.subr.bf16.mxu0 %v17227_v0 }
0x24de   : > { %14518 = vmatpush3.bf16.msra.mxu0 %v15755_v11  ;;  %v15783_v11 = vld [vmem:[#allocation7 + $0xa8] sm:$0xff]  }
0x24df   : > { %14519 = vmatprep.subr.bf16.mxu0 %v17227_v0 }
0x24e2   : > { %14520 = vmatpush3.bf16.msra.mxu0 %v15756_v14  ;;  %v15784_v14 = vld [vmem:[#allocation9 + $0xa8] sm:$0xff]  }
0x24e3   : > { %14537 = vmatprep.subr.bf16.mxu0 %v17227_v0 }
0x2597   : > { %v8065_v52 = vpop.f32.mrb[144].mxu1  ;;  %v8171_v7 = vpop.f32.mrb[140].mxu0 }
0x2598   : > { %v8177_v53 = vpack.c.bf16 %v8171_v7, %v8171_v7  ;;  %v14451_v54 = vpop.f32.mrb[145].mxu1  ;;  %v14471_v55 = vpop.f32.mrb[141].mxu0  ;;  %v8071_v58 = vpack.c.bf16 %v8065_v52, %v8065_v52 }
0x2599   : > { %v8068_v56 = vpop.f32.mrb[146].mxu1  ;;  %v8174_v57 = vpop.f32.mrb[142].mxu0 }
0x259a   : > { %v8185_v59 = vsel %vm4483_vm5, %v8177_v53, 0  ;;  %v14452_v41 = vpop.f32.mrb[147].mxu1  ;;  %v14472_v60 = vpop.f32.mrb[143].mxu0  ;;  %v8231_v62 = vsel %vm4483_vm5, %v8071_v58, 0 }
0x259b   : > { %14474 = vmatpush3.bf16.msra.mxu1 %v8185_v59 }
0x259c   : > { %14479 = vmatprep.subr.bf16.mxu1 %v17227_v0 }
0x259e   : > { %14476 = vmatmul.mubr.msk.bf16.vlgmr.msra.gmra.mrb[148].mxu1 %vm4479_vm6, %v12529_v61 }
0x259f   : > { %14480 = vmatpush3.bf16.msra.mxu1 %v8231_v62  ;;  %14481 = vmatprep.mubr.msk.bf16.mxu1 %vm17228_vm0, %v17227_v0  ;;  %v15774_v62 = vld [vmem:[#allocation9 + $0x80] sm:$0xff]  }
0x25a0   : > { %14485 = vmatprep.subr.bf16.mxu1 %v17227_v0 }
0x25a6   : > { %14482 = vmatmul.mubr.msk.bf16.vlgmr.msra.gmra.mrb[152].mxu1 %vm4479_vm6, %v8178_v63 }
0x25a7   : > { %14486 = vmatpush3.bf16.msra.mxu1 %v15741_v1  ;;  %14501 = vmatprep.mubr.msk.bf16.mxu1 %vm17228_vm0, %v17227_v0 }
0x25a8   : > { %14487 = vmatprep.subr.bf16.mxu1 %v17227_v0 }
0x25ab   : > { %14488 = vmatpush3.bf16.msra.mxu1 %v15742_v2  ;;  %v18992_v2 = vld [vmem:[#allocation54 + $0x4] sm:$0xf] }
0x25ac   : > { %14489 = vmatprep.subr.bf16.mxu1 %v17227_v0 }
0x25af   : > { %14490 = vmatpush3.bf16.msra.mxu1 %v15743_v3  ;;  %v15773_v3 = vld [vmem:[#allocation7 + $0x80] sm:$0xff]  }
0x25b0   : > { %14491 = vmatprep.subr.bf16.mxu1 %v17227_v0 }
0x25b3   : > { %14492 = vmatpush3.bf16.msra.mxu1 %v15744_v4  ;;  %v15778_v4 = vld [vmem:[#allocation9 + $0x90] sm:$0xff]  }
0x25b4   : > { %14493 = vmatprep.subr.bf16.mxu1 %v17227_v0 }
0x25b7   : > { %14494 = vmatpush3.bf16.msra.mxu1 %v15745_v5  ;;  %v15775_v5 = vld [vmem:[#allocation7 + $0x88] sm:$0xff]  }
0x25b8   : > { %14495 = vmatprep.subr.bf16.mxu1 %v17227_v0 }
0x25bb   : > { %14496 = vmatpush3.bf16.msra.mxu1 %v15746_v6  ;;  %v15777_v6 = vld [vmem:[#allocation7 + $0x90] sm:$0xff]  }
0x25bc   : > { %14497 = vmatprep.subr.bf16.mxu1 %v17227_v0 }
0x25bf   : > { %14498 = vmatpush3.bf16.msra.mxu1 %v15747_v8  ;;  %v15779_v8 = vld [vmem:[#allocation7 + $0x98] sm:$0xff]  }
0x25c0   : > { %14499 = vmatprep.subr.bf16.mxu1 %v17227_v0 }
0x25c3   : > { %14500 = vmatpush3.bf16.msra.mxu1 %v15748_v46  ;;  %v15780_v46 = vld [vmem:[#allocation9 + $0x98] sm:$0xff]  }
0x25c4   : > { %14525 = vmatprep.subr.bf16.mxu1 %v17227_v0 }
0x25c6   : > { %14502 = vmatmul.mubr.bf16.vlgmr.msra.gmra.mrb[156].mxu1 %v18443_v12 }
0x25c7   : > { %14527 = vmatprep.mubr.msk.bf16.mxu1 %vm17228_vm0, %v17227_v0 }
0x2671   : > { %v8221_v12 = vpop.f32.mrb[148].mxu1 }
0x2672   : > { %v14477_v15 = vpop.f32.mrb[149].mxu1 }
0x2673   : > { %v8224_v16 = vpop.f32.mrb[150].mxu1  ;;  %v15786_v15 = vld [vmem:[#allocation9 + $0xb0] sm:$0xff]  }
0x2674   : > { %v14478_v17 = vpop.f32.mrb[151].mxu1  ;;  %v15787_v16 = vld [vmem:[#allocation7 + $0xb8] sm:$0xff]  }
0x2675   : > { %v15788_v17 = vld [vmem:[#allocation9 + $0xb8] sm:$0xff]  }
0x2679   : > { %v8267_v18 = vpop.f32.mrb[152].mxu1 }
0x267a   : > { %v8268_v20 = vadd.f32 %v8267_v18, %v8221_v12  ;;  %v14483_v21 = vpop.f32.mrb[153].mxu1  ;;  %v15785_v12 = vld [vmem:[#allocation7 + $0xb0] sm:$0xff]  }
0x267b   : > { %v8270_v22 = vpop.f32.mrb[154].mxu1 }
0x267c   : > { %v8280_v23 = vadd.f32 %v12532_v19, %v8268_v20  ;;  %v14484_v24 = vpop.f32.mrb[155].mxu1 }
0x267e   : > { %v8281_v27 = vpack.c.bf16 %v8280_v23, %v8280_v23 }
0x2680   : > { %14522 = vmatmul.mubr.bf16.vlgmr.msra.gmra.mrb[144].mxu0 %v8281_v27  ;;  %v18952_v25 = vsel %vm3340_vm3, %v8281_v27, 0 }
0x2681   : > { %14526 = vmatpush3.bf16.msra.mxu1 %v18952_v25  ;;  %14538 = vmatpush3.bf16.msra.mxu0 %v15759_v26 }
0x2682   : > { %14531 = vmatprep.subr.bf16.mxu1 %v17227_v0  ;;  %14539 = vmatprep.subr.bf16.mxu0 %v17227_v0 }
0x2683   : > { %14553 = vmatprep.mubr.msk.bf16.mxu0 %vm17228_vm0, %v17227_v0 }
0x2684   : > { %14528 = vmatmul.mubr.msk.bf16.vlgmr.msra.gmra.mrb[160].mxu1 %vm3336_vm4, %v18959_v29 }
0x2685   : > { %14532 = vmatpush3.bf16.msra.mxu1 %v18447_v13  ;;  %14533 = vmatprep.mubr.msk.bf16.mxu1 %vm17228_vm0, %v17227_v0 }
0x2686   : > { %14557 = vmatprep.subr.bf16.mxu1 %v17227_v0  ;;  %14540 = vmatpush3.bf16.msra.mxu0 %v15761_v28 }
0x2687   : > { %14541 = vmatprep.subr.bf16.mxu0 %v17227_v0 }
0x268a   : > { %14542 = vmatpush3.bf16.msra.mxu0 %v15763_v30 }
0x268b   : > { %14543 = vmatprep.subr.bf16.mxu0 %v17227_v0 }
0x268c   : > { %14534 = vmatmul.mubr.msk.bf16.vlgmr.msra.gmra.mrb[164].mxu1 %vm3336_vm4, %v18959_v29 }
0x268d   : > { %14558 = vmatpush3.bf16.msra.mxu1 %v15757_v31  ;;  %14573 = vmatprep.mubr.msk.bf16.mxu1 %vm17228_vm0, %v17227_v0 }
0x268e   : > { %14559 = vmatprep.subr.bf16.mxu1 %v17227_v0  ;;  %14544 = vmatpush3.bf16.msra.mxu0 %v15765_v32 }
0x268f   : > { %14545 = vmatprep.subr.bf16.mxu0 %v17227_v0 }
0x2691   : > { %14560 = vmatpush3.bf16.msra.mxu1 %v15758_v33 }
0x2692   : > { %14561 = vmatprep.subr.bf16.mxu1 %v17227_v0  ;;  %14546 = vmatpush3.bf16.msra.mxu0 %v15767_v34 }
0x2693   : > { %14547 = vmatprep.subr.bf16.mxu0 %v17227_v0 }
0x2695   : > { %14562 = vmatpush3.bf16.msra.mxu1 %v15760_v35 }
0x2696   : > { %14563 = vmatprep.subr.bf16.mxu1 %v17227_v0  ;;  %14548 = vmatpush3.bf16.msra.mxu0 %v15769_v42  ;;  %v15802_v42 = vld [vmem:[#allocation12 + $0x28] sm:$0xff]  }
0x2697   : > { %14549 = vmatprep.subr.bf16.mxu0 %v17227_v0 }
0x2699   : > { %v8398_v37 = vpop.f32.mrb[156].mxu1  ;;  %14564 = vmatpush3.bf16.msra.mxu1 %v15762_v36 }
0x269a   : > { %v14503_v39 = vpop.f32.mrb[157].mxu1  ;;  %14565 = vmatprep.subr.bf16.mxu1 %v17227_v0  ;;  %14550 = vmatpush3.bf16.msra.mxu0 %v15771_v48  ;;  %v15804_v48 = vld [vmem:[#allocation12 + $0x38] sm:$0xff]  }
0x269b   : > { %v8401_v40 = vpop.f32.mrb[158].mxu1  ;;  %14551 = vmatprep.subr.bf16.mxu0 %v17227_v0  ;;  %v15797_v39 = vld [vmem:[#allocation12] sm:$0xff]  }
0x269c   : > { %v14504_v43 = vpop.f32.mrb[159].mxu1  ;;  %v15798_v40 = vld [vmem:[#allocation12 + $0x8] sm:$0xff]  }
0x269d   : > { %14566 = vmatpush3.bf16.msra.mxu1 %v15764_v38  ;;  %v15799_v43 = vld [vmem:[#allocation12 + $0x10] sm:$0xff]  }
0x269e   : > { %14567 = vmatprep.subr.bf16.mxu1 %v17227_v0  ;;  %14552 = vmatpush3.bf16.msra.mxu0 %v15772_v49 }
0x269f   : > { %14577 = vmatprep.subr.bf16.mxu0 %v17227_v0 }
0x26a1   : > { %14568 = vmatpush3.bf16.msra.mxu1 %v15766_v44  ;;  %v15800_v44 = vld [vmem:[#allocation12 + $0x18] sm:$0xff]  }
0x26a2   : > { %14569 = vmatprep.subr.bf16.mxu1 %v17227_v0 }
0x26a5   : > { %14570 = vmatpush3.bf16.msra.mxu1 %v15768_v45  ;;  %v15801_v45 = vld [vmem:[#allocation12 + $0x20] sm:$0xff]  }
0x26a6   : > { %14571 = vmatprep.subr.bf16.mxu1 %v17227_v0 }
0x26a9   : > { %14572 = vmatpush3.bf16.msra.mxu1 %v15770_v47  ;;  %v15803_v47 = vld [vmem:[#allocation12 + $0x30] sm:$0xff]  }
0x26aa   : > { %14583 = vmatprep.subr.bf16.mxu1 %v17227_v0 }
0x2753   : > { %v8486_v50 = vpop.f32.mrb[144].mxu0 }
0x2754   : > { %v18986_v52 = vadd.f32 %v8486_v50, %v8398_v37  ;;  %v14523_v7 = vpop.f32.mrb[145].mxu0 }
0x2755   : > { %v8489_v53 = vpop.f32.mrb[146].mxu0 }
0x2756   : > { %v14524_v54 = vpop.f32.mrb[147].mxu0 }
0x2757   : > { %v8529_v55 = vpop.f32.mrb[160].mxu1 }
0x2758   : > { %v8535_v56 = vpack.c.bf16 %v8529_v55, %v8529_v55  ;;  %v14529_v57 = vpop.f32.mrb[161].mxu1 }
0x2759   : > { %v8532_v58 = vpop.f32.mrb[162].mxu1 }
0x275a   : > { %v14530_v59 = vpop.f32.mrb[163].mxu1  ;;  %14574 = vmatmul.mubr.bf16.vlgmr.msra.gmra.mrb[168].mxu1 %v8535_v56  ;;  %v12585_v56 = vld [vmem:[#allocation10] ss:$0 sm:$0xff] }
0x275b   : > { %14584 = vmatpush3.bf16.msra.mxu1 %v18447_v13  ;;  %14585 = vmatprep.mubr.msk.bf16.mxu1 %vm17228_vm0, %v17227_v0  ;;  %v15776_v13 = vld [vmem:[#allocation9 + $0x88] sm:$0xff]  }
0x275c   : > { %14609 = vmatprep.subr.bf16.mxu1 %v17227_v0 }
0x275f   : > { %v8586_v41 = vpop.f32.mrb[164].mxu1 }
0x2760   : > { %v8592_v60 = vpack.c.bf16 %v8586_v41, %v8586_v41  ;;  %v14535_v61 = vpop.f32.mrb[165].mxu1 }
0x2761   : > { %v8589_v63 = vpop.f32.mrb[166].mxu1 }
0x2762   : > { %v14536_v1 = vpop.f32.mrb[167].mxu1  ;;  %14554 = vmatmul.mubr.bf16.vlgmr.msra.gmra.mrb[148].mxu0 %v8592_v60  ;;  %14586 = vmatmul.mubr.msk.bf16.vlgmr.msra.gmra.mrb[172].mxu1 %vm3336_vm4, %v18992_v2  ;;  %v15789_v63 = vld [vmem:[#allocation12 + $0x40] sm:$0xff]  }
0x2763   : > { %14578 = vmatpush3.bf16.msra.mxu0 %v18952_v25  ;;  %14579 = vmatprep.mubr.msk.bf16.mxu0 %vm17228_vm0, %v17227_v0  ;;  %v15790_v1 = vld [vmem:[#allocation12 + $0x48] sm:$0xff]  }
0x2764   : > { %14589 = vmatprep.subr.bf16.mxu0 %v17227_v0  ;;  %14610 = vmatpush3.bf16.msra.mxu1 %v15774_v62 }
0x2765   : > { %14611 = vmatprep.subr.bf16.mxu1 %v17227_v0  ;;  %14625 = vmatprep.mubr.msk.bf16.mxu1 %vm17228_vm0, %v17227_v0 }
0x2768   : > { %14612 = vmatpush3.bf16.msra.mxu1 %v15776_v13  ;;  %v15791_v13 = vld [vmem:[#allocation12 + $0x50] sm:$0xff]  }
0x2769   : > { %14613 = vmatprep.subr.bf16.mxu1 %v17227_v0 }
0x276a   : > { %14580 = vmatmul.mubr.msk.bf16.vlgmr.msra.gmra.mrb[152].mxu0 %vm3336_vm4, %v18992_v2 }
0x276b   : > { %14590 = vmatpush3.bf16.msra.mxu0 %v15773_v3  ;;  %14605 = vmatprep.mubr.msk.bf16.mxu0 %vm17228_vm0, %v17227_v0  ;;  %v15792_v3 = vld [vmem:[#allocation12 + $0x58] sm:$0xff]  }
0x276c   : > { %14591 = vmatprep.subr.bf16.mxu0 %v17227_v0  ;;  %14614 = vmatpush3.bf16.msra.mxu1 %v15778_v4  ;;  %v15793_v4 = vld [vmem:[#allocation12 + $0x60] sm:$0xff]  }
0x276d   : > { %14615 = vmatprep.subr.bf16.mxu1 %v17227_v0 }
0x276f   : > { %14592 = vmatpush3.bf16.msra.mxu0 %v15775_v5  ;;  %v15795_v5 = vld [vmem:[#allocation12 + $0x70] sm:$0xff]  }
0x2770   : > { %14593 = vmatprep.subr.bf16.mxu0 %v17227_v0  ;;  %14616 = vmatpush3.bf16.msra.mxu1 %v15780_v46  ;;  %v15806_v46 = vld [vmem:[#allocation12 + $0x88] sm:$0xff]  }
0x2771   : > { %14617 = vmatprep.subr.bf16.mxu1 %v17227_v0 }
0x2773   : > { %14594 = vmatpush3.bf16.msra.mxu0 %v15777_v6  ;;  %v15796_v6 = vld [vmem:[#allocation12 + $0x78] sm:$0xff]  }
0x2774   : > { %14595 = vmatprep.subr.bf16.mxu0 %v17227_v0  ;;  %14618 = vmatpush3.bf16.msra.mxu1 %v15782_v10  ;;  %v15808_v10 = vld [vmem:[#allocation12 + $0x98] sm:$0xff]  }
0x2775   : > { %14619 = vmatprep.subr.bf16.mxu1 %v17227_v0 }
0x2777   : > { %14596 = vmatpush3.bf16.msra.mxu0 %v15779_v8  ;;  %v15805_v8 = vld [vmem:[#allocation12 + $0x80] sm:$0xff]  }
0x2778   : > { %14597 = vmatprep.subr.bf16.mxu0 %v17227_v0  ;;  %14620 = vmatpush3.bf16.msra.mxu1 %v15784_v14 }
0x2779   : > { %14621 = vmatprep.subr.bf16.mxu1 %v17227_v0 }
0x277b   : > { %14598 = vmatpush3.bf16.msra.mxu0 %v15781_v9  ;;  %v15807_v9 = vld [vmem:[#allocation12 + $0x90] sm:$0xff]  }
0x277c   : > { %14599 = vmatprep.subr.bf16.mxu0 %v17227_v0  ;;  %14622 = vmatpush3.bf16.msra.mxu1 %v15786_v15 }
0x277d   : > { %14623 = vmatprep.subr.bf16.mxu1 %v17227_v0 }
0x277f   : > { %14600 = vmatpush3.bf16.msra.mxu0 %v15783_v11  ;;  %v15809_v11 = vld [vmem:[#allocation12 + $0xa0] sm:$0xff]  }
0x2780   : > { %14601 = vmatprep.subr.bf16.mxu0 %v17227_v0  ;;  %14624 = vmatpush3.bf16.msra.mxu1 %v15788_v17 }
0x2781   : > { %14635 = vmatprep.subr.bf16.mxu1 %v17227_v0 }
0x2783   : > { %14602 = vmatpush3.bf16.msra.mxu0 %v15785_v12 }
0x2784   : > { %14603 = vmatprep.subr.bf16.mxu0 %v17227_v0 }
0x2787   : > { %14604 = vmatpush3.bf16.msra.mxu0 %v15787_v16 }
0x2788   : > { %14629 = vmatprep.subr.bf16.mxu0 %v17227_v0 }
0x282d   : > { %v8779_v18 = vpop.f32.mrb[168].mxu1 }
0x282e   : > { %v14575_v19 = vpop.f32.mrb[169].mxu1 }
0x282f   : > { %v8782_v20 = vpop.f32.mrb[170].mxu1 }
0x2830   : > { %v14576_v21 = vpop.f32.mrb[171].mxu1 }
0x2835   : > { %v8691_v22 = vpop.f32.mrb[148].mxu0  ;;  %v8878_v23 = vpop.f32.mrb[172].mxu1 }
0x2836   : > { %v8780_v24 = vadd.f32 %v8779_v18, %v8691_v22  ;;  %v14555_v26 = vpop.f32.mrb[149].mxu0  ;;  %v8884_v27 = vpack.c.bf16 %v8878_v23, %v8878_v23  ;;  %v14587_v25 = vpop.f32.mrb[173].mxu1  ;;  %v15810_v22 = vld [vmem:[#allocation12 + $0xa8] sm:$0xff]   ;;  %v15811_v23 = vld [vmem:[#allocation12 + $0xb0] sm:$0xff]  }
0x2837   : > { %v8694_v28 = vpop.f32.mrb[150].mxu0  ;;  %v8881_v30 = vpop.f32.mrb[174].mxu1  ;;  %v15815_v26 = vld [vmem:[#allocation63 + $0x8] sm:$0xff]   ;;  %v15819_v25 = vld [vmem:[#allocation63 + $0x18] sm:$0xff]  }
0x2838   : > { %v8785_v31 = vadd.f32 %v8780_v24, %v18986_v52  ;;  %v14556_v32 = vpop.f32.mrb[151].mxu0  ;;  %v14588_v33 = vpop.f32.mrb[175].mxu1  ;;  %14606 = vmatmul.mubr.bf16.vlgmr.msra.gmra.mrb[156].mxu0 %v8884_v27  ;;  %v15812_v24 = vld [vmem:[#allocation12 + $0xb8] sm:$0xff]   ;;  %v15817_v27 = vld [vmem:[#allocation63 + $0x10] sm:$0xff]   ;;  %v15821_v28 = vld [vmem:[#allocation63 + $0x20] sm:$0xff]  }
0x2839   : > { %14631 = vmatprep.mubr.msk.bf16.mxu0 %vm17228_vm0, %v17227_v0  ;;  %v15823_v30 = vld [vmem:[#allocation63 + $0x28] sm:$0xff]  }
0x283d   : > { %v8820_v34 = vpop.f32.mrb[152].mxu0 }
0x283e   : > { %v8826_v35 = vpack.c.bf16 %v8820_v34, %v8820_v34  ;;  %v14581_v36 = vpop.f32.mrb[153].mxu0 }
0x283f   : > { %v8823_v37 = vpop.f32.mrb[154].mxu0 }
0x2840   : > { %v14582_v38 = vpop.f32.mrb[155].mxu0  ;;  %14626 = vmatmul.mubr.bf16.vlgmr.msra.gmra.mrb[176].mxu1 %v8826_v35  ;;  %v15814_v37 = vld [vmem:[#allocation63 + $0x40] sm:$0xff]  }
0x2841   : > { %14651 = vmatprep.mubr.msk.bf16.mxu1 %vm17228_vm0, %v17227_v0  ;;  %14636 = vmatpush3.bf16.msra.mxu1 %v15797_v39 }
0x2842   : > { %14637 = vmatprep.subr.bf16.mxu1 %v17227_v0 }
0x2845   : > { %14638 = vmatpush3.bf16.msra.mxu1 %v15798_v40 }
0x2846   : > { %14639 = vmatprep.subr.bf16.mxu1 %v17227_v0 }
0x2849   : > { %14640 = vmatpush3.bf16.msra.mxu1 %v15799_v43 }
0x284a   : > { %14641 = vmatprep.subr.bf16.mxu1 %v17227_v0 }
0x284d   : > { %14642 = vmatpush3.bf16.msra.mxu1 %v15800_v44  ;;  %v15816_v44 = vld [vmem:[#allocation63 + $0x48] sm:$0xff]  }
0x284e   : > { %14643 = vmatprep.subr.bf16.mxu1 %v17227_v0 }
0x2851   : > { %14644 = vmatpush3.bf16.msra.mxu1 %v15801_v45  ;;  %v15818_v45 = vld [vmem:[#allocation63 + $0x50] sm:$0xff]  }
0x2852   : > { %14645 = vmatprep.subr.bf16.mxu1 %v17227_v0 }
0x2855   : > { %14646 = vmatpush3.bf16.msra.mxu1 %v15802_v42  ;;  %v15820_v42 = vld [vmem:[#allocation63 + $0x58] sm:$0xff]  }
0x2856   : > { %14647 = vmatprep.subr.bf16.mxu1 %v17227_v0 }
0x2859   : > { %14648 = vmatpush3.bf16.msra.mxu1 %v15803_v47  ;;  %v15822_v47 = vld [vmem:[#allocation63 + $0x60] sm:$0xff]  }
0x285a   : > { %14649 = vmatprep.subr.bf16.mxu1 %v17227_v0 }
0x285d   : > { %14650 = vmatpush3.bf16.msra.mxu1 %v15804_v48  ;;  %v15824_v48 = vld [vmem:[#allocation63 + $0x68] sm:$0xff]  }
0x285e   : > { %14675 = vmatprep.subr.bf16.mxu1 %v17227_v0 }
0x290b   : > { %v8984_v49 = vpop.f32.mrb[156].mxu0 }
0x290c   : > { %v14607_v50 = vpop.f32.mrb[157].mxu0 }
0x290d   : > { %v8987_v52 = vpop.f32.mrb[158].mxu0  ;;  %v15826_v50 = vld [vmem:[#allocation63 + $0x70] sm:$0xff]  }
0x290e   : > { %v14608_v7 = vpop.f32.mrb[159].mxu0  ;;  %v15827_v52 = vld [vmem:[#allocation63 + $0x38] sm:$0xff]  }
0x290f   : > { %v15828_v7 = vld [vmem:[#allocation63 + $0x78] sm:$0xff]  }
0x2913   : > { %v9072_v53 = vpop.f32.mrb[176].mxu1 }
0x2914   : > { %v9073_v54 = vadd.f32 %v9072_v53, %v8984_v49  ;;  %v14627_v55 = vpop.f32.mrb[177].mxu1  ;;  %v15825_v49 = vld [vmem:[#allocation63 + $0x30] sm:$0xff]  }
0x2915   : > { %v9075_v57 = vpop.f32.mrb[178].mxu1 }
0x2916   : > { %v9078_v58 = vadd.f32 %v9073_v54, %v8785_v31  ;;  %v14628_v59 = vpop.f32.mrb[179].mxu1  ;;  %v12612_v54 = vld [vmem:[#allocation13] ss:$0 sm:$0xff] }
0x2918   : > { %v9086_v41 = vadd.f32 %v12585_v56, %v9078_v58 }
0x291a   : > { %v9087_v60 = vmax.f32 %v9086_v41, 0.0 }
0x291c   : > { %v9088_v61 = vpack.c.bf16 %v9087_v60, %v9087_v60 }
0x291e   : > { %v9107_v62 = vsel %vm3340_vm3, %v9088_v61, 0 }
0x291f   : > { %14630 = vmatpush3.bf16.msra.mxu0 %v9107_v62 }
0x2920   : > { %14655 = vmatprep.subr.bf16.mxu0 %v17227_v0 }
0x2922   : > { %14632 = vmatmul.mubr.msk.bf16.vlgmr.msra.gmra.mrb[160].mxu0 %vm3336_vm4, %v18959_v29  ;;  %v15794_v29 = vld [vmem:[#allocation12 + $0x68] sm:$0xff]  }
0x2923   : > { %14656 = vmatpush3.bf16.msra.mxu0 %v15789_v63  ;;  %14671 = vmatprep.mubr.msk.bf16.mxu0 %vm17228_vm0, %v17227_v0  ;;  %v15841_v63 = vld [vmem:[#allocation15 + $0x50] sm:$0xff]  }
0x2924   : > { %14657 = vmatprep.subr.bf16.mxu0 %v17227_v0 }
0x2927   : > { %14658 = vmatpush3.bf16.msra.mxu0 %v15790_v1  ;;  %v15842_v1 = vld [vmem:[#allocation15 + $0x58] sm:$0xff]  }
0x2928   : > { %14659 = vmatprep.subr.bf16.mxu0 %v17227_v0 }
0x292b   : > { %14660 = vmatpush3.bf16.msra.mxu0 %v15791_v13 }
0x292c   : > { %14661 = vmatprep.subr.bf16.mxu0 %v17227_v0 }
0x292f   : > { %14662 = vmatpush3.bf16.msra.mxu0 %v15792_v3 }
0x2930   : > { %14663 = vmatprep.subr.bf16.mxu0 %v17227_v0 }
0x2933   : > { %14664 = vmatpush3.bf16.msra.mxu0 %v15793_v4 }
0x2934   : > { %14665 = vmatprep.subr.bf16.mxu0 %v17227_v0 }
0x2937   : > { %14666 = vmatpush3.bf16.msra.mxu0 %v15794_v29 }
0x2938   : > { %14667 = vmatprep.subr.bf16.mxu0 %v17227_v0 }
0x293b   : > { %14668 = vmatpush3.bf16.msra.mxu0 %v15795_v5 }
0x293c   : > { %14669 = vmatprep.subr.bf16.mxu0 %v17227_v0 }
0x293f   : > { %14670 = vmatpush3.bf16.msra.mxu0 %v15796_v6 }
0x2940   : > { %14681 = vmatprep.subr.bf16.mxu0 %v17227_v0 }
0x2942   : > { %14672 = vmatmul.mubr.bf16.vlgmr.msra.gmra.mrb[164].mxu0 %v9088_v61  ;;  %v15839_v61 = vld [vmem:[#allocation15 + $0x40] sm:$0xff]  }
0x2943   : > { %14697 = vmatprep.mubr.msk.bf16.mxu0 %vm17228_vm0, %v17227_v0  ;;  %14682 = vmatpush3.bf16.msra.mxu0 %v15805_v8 }
0x2944   : > { %14683 = vmatprep.subr.bf16.mxu0 %v17227_v0 }
0x2947   : > { %14684 = vmatpush3.bf16.msra.mxu0 %v15806_v46 }
0x2948   : > { %14685 = vmatprep.subr.bf16.mxu0 %v17227_v0 }
0x294b   : > { %14686 = vmatpush3.bf16.msra.mxu0 %v15807_v9 }
0x294c   : > { %14687 = vmatprep.subr.bf16.mxu0 %v17227_v0 }
0x294f   : > { %14688 = vmatpush3.bf16.msra.mxu0 %v15808_v10 }
0x2950   : > { %14689 = vmatprep.subr.bf16.mxu0 %v17227_v0 }
0x2953   : > { %14690 = vmatpush3.bf16.msra.mxu0 %v15809_v11 }
0x2954   : > { %14691 = vmatprep.subr.bf16.mxu0 %v17227_v0 }
0x2957   : > { %14692 = vmatpush3.bf16.msra.mxu0 %v15810_v22  ;;  %v15837_v22 = vld [vmem:[%s19463_s11 + $0x70] sm:$0xff]  }
0x2958   : > { %14693 = vmatprep.subr.bf16.mxu0 %v17227_v0 }
0x295b   : > { %14694 = vmatpush3.bf16.msra.mxu0 %v15811_v23  ;;  %v15838_v23 = vld [vmem:[%s19463_s11 + $0x78] sm:$0xff]  }
0x295c   : > { %14695 = vmatprep.subr.bf16.mxu0 %v17227_v0 }
0x295f   : > { %14696 = vmatpush3.bf16.msra.mxu0 %v15812_v24  ;;  %v15843_v24 = vld [vmem:[#allocation15 + $0x60] sm:$0xff]  }
0x2960   : > { %14721 = vmatprep.subr.bf16.mxu0 %v17227_v0 }
0x29f5   : > { %v9143_v14 = vpop.f32.mrb[160].mxu0 }
0x29f6   : > { %v9149_v12 = vpack.c.bf16 %v9143_v14, %v9143_v14  ;;  %v14633_v15 = vpop.f32.mrb[161].mxu0  ;;  %v15829_v14 = vld [vmem:[%s19462_s8 + $0x8] sm:$0xff]  }
0x29f7   : > { %v9146_v16 = vpop.f32.mrb[162].mxu0  ;;  %v15830_v15 = vld [vmem:[%s19462_s8] sm:$0xff]  }
0x29f8   : > { %v14634_v17 = vpop.f32.mrb[163].mxu0  ;;  %14652 = vmatmul.mubr.bf16.vlgmr.msra.gmra.mrb[180].mxu1 %v9149_v12  ;;  %v15831_v16 = vld [vmem:[%s19463_s11 + $0x40] sm:$0xff]  }
0x29f9   : > { %14676 = vmatpush3.bf16.msra.mxu1 %v9107_v62  ;;  %14677 = vmatprep.mubr.msk.bf16.mxu1 %vm17228_vm0, %v17227_v0  ;;  %v15840_v62 = vld [vmem:[#allocation15 + $0x48] sm:$0xff]   ;;  %v15832_v17 = vld [vmem:[%s19463_s11 + $0x48] sm:$0xff]  }
0x29fa   : > { %14701 = vmatprep.subr.bf16.mxu1 %v17227_v0 }
0x2a00   : > { %14678 = vmatmul.mubr.msk.bf16.vlgmr.msra.gmra.mrb[184].mxu1 %vm3336_vm4, %v18992_v2  ;;  %v15813_v2 = vld [vmem:[#allocation63] sm:$0xff]  }
0x2a01   : > { %14717 = vmatprep.mubr.msk.bf16.mxu1 %vm17228_vm0, %v17227_v0  ;;  %14702 = vmatpush3.bf16.msra.mxu1 %v15813_v2  ;;  %v15844_v2 = vld [vmem:[#allocation15 + $0x68] sm:$0xff]  }
0x2a02   : > { %14703 = vmatprep.subr.bf16.mxu1 %v17227_v0 }
0x2a05   : > { %14704 = vmatpush3.bf16.msra.mxu1 %v15815_v26  ;;  %v15845_v26 = vld [vmem:[#allocation15 + $0x70] sm:$0xff]  }
0x2a06   : > { %14705 = vmatprep.subr.bf16.mxu1 %v17227_v0 }
0x2a09   : > { %14706 = vmatpush3.bf16.msra.mxu1 %v15817_v27  ;;  %v15846_v27 = vld [vmem:[#allocation15 + $0x78] sm:$0xff]  }
0x2a0a   : > { %14707 = vmatprep.subr.bf16.mxu1 %v17227_v0 }
0x2a0d   : > { %14708 = vmatpush3.bf16.msra.mxu1 %v15819_v25 }
0x2a0e   : > { %14709 = vmatprep.subr.bf16.mxu1 %v17227_v0 }
0x2a11   : > { %14710 = vmatpush3.bf16.msra.mxu1 %v15821_v28 }
0x2a12   : > { %14711 = vmatprep.subr.bf16.mxu1 %v17227_v0 }
0x2a15   : > { %v9336_v18 = vpop.f32.mrb[164].mxu0  ;;  %14712 = vmatpush3.bf16.msra.mxu1 %v15823_v30 }
0x2a16   : > { %v14673_v19 = vpop.f32.mrb[165].mxu0  ;;  %14713 = vmatprep.subr.bf16.mxu1 %v17227_v0 }
0x2a17   : > { %v9339_v20 = vpop.f32.mrb[166].mxu0  ;;  %v15834_v19 = vld [vmem:[%s19463_s11 + $0x58] sm:$0xff]  }
0x2a18   : > { %v14674_v21 = vpop.f32.mrb[167].mxu0  ;;  %v15835_v20 = vld [vmem:[%s19463_s11 + $0x60] sm:$0xff]  }
0x2a19   : > { %14714 = vmatpush3.bf16.msra.mxu1 %v15825_v49  ;;  %v15836_v21 = vld [vmem:[%s19463_s11 + $0x68] sm:$0xff]   ;;  %v15855_v49 = vld [vmem:[%s19463_s11 + $0x18] sm:$0xff]  }
0x2a1a   : > { %14715 = vmatprep.subr.bf16.mxu1 %v17227_v0 }
0x2a1d   : > { %14716 = vmatpush3.bf16.msra.mxu1 %v15827_v52  ;;  %v15850_v52 = vld [vmem:[#allocation15 + $0x10] sm:$0xff]  }
0x2a1e   : > { %14741 = vmatprep.subr.bf16.mxu1 %v17227_v0 }
0x2acb   : > { %v9248_v31 = vpop.f32.mrb[180].mxu1 }
0x2acc   : > { %v9337_v32 = vadd.f32 %v9336_v18, %v9248_v31  ;;  %v14653_v33 = vpop.f32.mrb[181].mxu1  ;;  %v15833_v18 = vld [vmem:[%s19463_s11 + $0x50] sm:$0xff]  }
0x2acd   : > { %v9251_v34 = vpop.f32.mrb[182].mxu1 }
0x2ace   : > { %v14654_v35 = vpop.f32.mrb[183].mxu1 }
0x2acf   : > { %v12635_v35 = vld [vmem:[#allocation64] ss:$0 sm:$0xff] }
0x2ad3   : > { %v9376_v36 = vpop.f32.mrb[184].mxu1 }
0x2ad4   : > { %v9382_v38 = vpack.c.bf16 %v9376_v36, %v9376_v36  ;;  %v14679_v39 = vpop.f32.mrb[185].mxu1 }
0x2ad5   : > { %v9379_v40 = vpop.f32.mrb[186].mxu1 }
0x2ad6   : > { %v14680_v43 = vpop.f32.mrb[187].mxu1  ;;  %14698 = vmatmul.mubr.bf16.vlgmr.msra.gmra.mrb[168].mxu0 %v9382_v38 }
0x2ad7   : > { %14722 = vmatpush3.bf16.msra.mxu0 %v15814_v37  ;;  %14737 = vmatprep.mubr.msk.bf16.mxu0 %vm17228_vm0, %v17227_v0  ;;  %v15849_v43 = vld [vmem:[%s19463_s11] sm:$0xff]  }
0x2ad8   : > { %14723 = vmatprep.subr.bf16.mxu0 %v17227_v0 }
0x2adb   : > { %14724 = vmatpush3.bf16.msra.mxu0 %v15816_v44 }
0x2adc   : > { %14725 = vmatprep.subr.bf16.mxu0 %v17227_v0 }
0x2adf   : > { %14726 = vmatpush3.bf16.msra.mxu0 %v15818_v45  ;;  %v15851_v45 = vld [vmem:[%s19463_s11 + $0x8] sm:$0xff]  }
0x2ae0   : > { %14727 = vmatprep.subr.bf16.mxu0 %v17227_v0 }
0x2ae3   : > { %14728 = vmatpush3.bf16.msra.mxu0 %v15820_v42  ;;  %v19137_v42 = vld [vmem:[#allocation55] sm:$0xff]  }
0x2ae4   : > { %14729 = vmatprep.subr.bf16.mxu0 %v17227_v0 }
0x2ae7   : > { %14730 = vmatpush3.bf16.msra.mxu0 %v15822_v47  ;;  %v15853_v47 = vld [vmem:[%s19463_s11 + $0x10] sm:$0xff]  }
0x2ae8   : > { %14731 = vmatprep.subr.bf16.mxu0 %v17227_v0 }
0x2aeb   : > { %14732 = vmatpush3.bf16.msra.mxu0 %v15824_v48  ;;  %v15847_v48 = vld [vmem:[#allocation15] sm:$0xff]  }
0x2aec   : > { %14733 = vmatprep.subr.bf16.mxu0 %v17227_v0 }
0x2aef   : > { %14734 = vmatpush3.bf16.msra.mxu0 %v15826_v50  ;;  %v15848_v50 = vld [vmem:[#allocation15 + $0x8] sm:$0xff]  }
0x2af0   : > { %14735 = vmatprep.subr.bf16.mxu0 %v17227_v0 }
0x2af3   : > { %14736 = vmatpush3.bf16.msra.mxu0 %v15828_v7  ;;  %v15852_v7 = vld [vmem:[#allocation15 + $0x18] sm:$0xff]  }
0x2af4   : > { %14773 = vmatprep.subr.bf16.mxu0 %v17227_v0 }
0x2ba9   : > { %v9482_v53 = vpop.f32.mrb[168].mxu0 }
0x2baa   : > { %v9488_v55 = vadd.f32 %v9482_v53, %v9337_v32  ;;  %v14699_v56 = vpop.f32.mrb[169].mxu0 }
0x2bab   : > { %v9485_v57 = vpop.f32.mrb[170].mxu0 }
0x2bac   : > { %v9496_v58 = vadd.f32 %v12612_v54, %v9488_v55  ;;  %v14700_v59 = vpop.f32.mrb[171].mxu0  ;;  %v15854_v55 = vld [vmem:[#allocation15 + $0x20] sm:$0xff]  }
0x2bad   : > { %v15857_v59 = vld [vmem:[%s19463_s11 + $0x20] sm:$0xff]  }
0x2bae   : > { %v9497_v41 = vmax.f32 %v9496_v58, 0.0  ;;  %v15856_v58 = vld [vmem:[#allocation15 + $0x28] sm:$0xff]  }
0x2bb0   : > { %v9498_v60 = vpack.c.bf16 %v9497_v41, %v9497_v41  ;;  %v15858_v41 = vld [vmem:[#allocation15 + $0x30] sm:$0xff]  }
0x2bb2   : > { %14718 = vmatmul.mubr.bf16.vlgmr.msra.gmra.mrb[188].mxu1 %v9498_v60  ;;  %14738 = vmatmul.mubr.bf16.vlgmr.msra.gmra.mrb[172].mxu0 %v9498_v60  ;;  %v15859_v60 = vld [vmem:[%s19463_s11 + $0x28] sm:$0xff]  }
0x2bb3   : > { %14743 = vmatprep.mubr.msk.bf16.mxu1 %vm17228_vm0, %v17227_v0  ;;  %14789 = vmatprep.mubr.msk.bf16.mxu0 %vm17228_vm0, %v17227_v0 }
0x2bb4   : > { %14774 = vmatpush3.bf16.msra.mxu0 %v15839_v61  ;;  %v15860_v61 = vld [vmem:[#allocation15 + $0x38] sm:$0xff]  }
0x2bb5   : > { %14775 = vmatprep.subr.bf16.mxu0 %v17227_v0 }
0x2bb8   : > { %14776 = vmatpush3.bf16.msra.mxu0 %v15840_v62  ;;  %v15861_v62 = vld [vmem:[%s19463_s11 + $0x30] sm:$0xff]  }
0x2bb9   : > { %14777 = vmatprep.subr.bf16.mxu0 %v17227_v0 }
0x2bbc   : > { %14778 = vmatpush3.bf16.msra.mxu0 %v15841_v63  ;;  %v15862_v63 = vld [vmem:[%s19463_s11 + $0x38] sm:$0xff]  }
0x2bbd   : > { %14779 = vmatprep.subr.bf16.mxu0 %v17227_v0 }
0x2bc0   : > { %14780 = vmatpush3.bf16.msra.mxu0 %v15842_v1 }
0x2bc1   : > { %14781 = vmatprep.subr.bf16.mxu0 %v17227_v0 }
0x2bc4   : > { %14782 = vmatpush3.bf16.msra.mxu0 %v15843_v24  ;;  %v15870_v24 = vld [vmem:[%s19463_s11 + $0xa0] sm:$0xff]  }
0x2bc5   : > { %14783 = vmatprep.subr.bf16.mxu0 %v17227_v0 }
0x2bc8   : > { %14784 = vmatpush3.bf16.msra.mxu0 %v15844_v2  ;;  %v15871_v2 = vld [vmem:[#allocation15 + $0x98] sm:$0xff]  }
0x2bc9   : > { %14785 = vmatprep.subr.bf16.mxu0 %v17227_v0 }
0x2bcc   : > { %14786 = vmatpush3.bf16.msra.mxu0 %v15845_v26  ;;  %v15872_v26 = vld [vmem:[%s19463_s11 + $0xa8] sm:$0xff]  }
0x2bcd   : > { %14787 = vmatprep.subr.bf16.mxu0 %v17227_v0 }
0x2bd0   : > { %14788 = vmatpush3.bf16.msra.mxu0 %v15846_v27  ;;  %v15873_v27 = vld [vmem:[#allocation15 + $0xa0] sm:$0xff]  }
0x2bd1   : > { %14805 = vmatprep.subr.bf16.mxu0 %v17227_v0 }
0x2c85   : > { %v9597_v13 = vpop.f32.mrb[188].mxu1  ;;  %v9703_v3 = vpop.f32.mrb[172].mxu0 }
0x2c86   : > { %v9709_v4 = vpack.c.bf16 %v9703_v3, %v9703_v3  ;;  %v14719_v29 = vpop.f32.mrb[189].mxu1  ;;  %v14739_v5 = vpop.f32.mrb[173].mxu0  ;;  %v9603_v46 = vpack.c.bf16 %v9597_v13, %v9597_v13 }
0x2c87   : > { %v9600_v6 = vpop.f32.mrb[190].mxu1  ;;  %v9706_v8 = vpop.f32.mrb[174].mxu0 }
0x2c88   : > { %v9724_v9 = vsel %vm3340_vm3, %v9709_v4, 0  ;;  %v14720_v10 = vpop.f32.mrb[191].mxu1  ;;  %v14740_v11 = vpop.f32.mrb[175].mxu0  ;;  %v9776_v12 = vsel %vm3340_vm3, %v9603_v46, 0 }
0x2c89   : > { %14742 = vmatpush3.bf16.msra.mxu1 %v9724_v9 }
0x2c8a   : > { %14747 = vmatprep.subr.bf16.mxu1 %v17227_v0 }
0x2c8c   : > { %14744 = vmatmul.mubr.msk.bf16.vlgmr.msra.gmra.mrb[192].mxu1 %vm3336_vm4, %v15829_v14 }
0x2c8d   : > { %14748 = vmatpush3.bf16.msra.mxu1 %v9776_v12  ;;  %14749 = vmatprep.mubr.msk.bf16.mxu1 %vm17228_vm0, %v17227_v0 }
0x2c8e   : > { %14753 = vmatprep.subr.bf16.mxu1 %v17227_v0 }
0x2c94   : > { %14750 = vmatmul.mubr.msk.bf16.vlgmr.msra.gmra.mrb[196].mxu1 %vm3336_vm4, %v15830_v15 }
0x2c95   : > { %14754 = vmatpush3.bf16.msra.mxu1 %v15831_v16  ;;  %14769 = vmatprep.mubr.msk.bf16.mxu1 %vm17228_vm0, %v17227_v0 }
0x2c96   : > { %14755 = vmatprep.subr.bf16.mxu1 %v17227_v0 }
0x2c99   : > { %14756 = vmatpush3.bf16.msra.mxu1 %v15832_v17  ;;  %v15865_v17 = vld [vmem:[#allocation15 + $0x80] sm:$0xff]  }
0x2c9a   : > { %14757 = vmatprep.subr.bf16.mxu1 %v17227_v0 }
0x2c9d   : > { %14758 = vmatpush3.bf16.msra.mxu1 %v15833_v18  ;;  %v19178_v18 = vld [vmem:[#allocation55 + $0x8] sm:$0xff]  }
0x2c9e   : > { %14759 = vmatprep.subr.bf16.mxu1 %v17227_v0 }
0x2ca1   : > { %14760 = vmatpush3.bf16.msra.mxu1 %v15834_v19  ;;  %v15863_v19 = vld [vmem:[%s19463_s11 + $0x80] sm:$0xff]  }
0x2ca2   : > { %14761 = vmatprep.subr.bf16.mxu1 %v17227_v0 }
0x2ca5   : > { %14762 = vmatpush3.bf16.msra.mxu1 %v15835_v20  ;;  %v15869_v20 = vld [vmem:[#allocation15 + $0x90] sm:$0xff]  }
0x2ca6   : > { %14763 = vmatprep.subr.bf16.mxu1 %v17227_v0 }
0x2ca9   : > { %14764 = vmatpush3.bf16.msra.mxu1 %v15836_v21  ;;  %v15864_v21 = vld [vmem:[%s19463_s11 + $0x88] sm:$0xff]  }
0x2caa   : > { %14765 = vmatprep.subr.bf16.mxu1 %v17227_v0 }
0x2cad   : > { %14766 = vmatpush3.bf16.msra.mxu1 %v15837_v22  ;;  %v15866_v22 = vld [vmem:[%s19463_s11 + $0x90] sm:$0xff]  }
0x2cae   : > { %14767 = vmatprep.subr.bf16.mxu1 %v17227_v0 }
0x2cb1   : > { %14768 = vmatpush3.bf16.msra.mxu1 %v15838_v23  ;;  %v15868_v23 = vld [vmem:[%s19463_s11 + $0x98] sm:$0xff]  }
0x2cb2   : > { %14793 = vmatprep.subr.bf16.mxu1 %v17227_v0 }
0x2cb4   : > { %14770 = vmatmul.mubr.bf16.vlgmr.msra.gmra.mrb[200].mxu1 %v18323_v51 }
0x2cb5   : > { %14795 = vmatprep.mubr.msk.bf16.mxu1 %vm17228_vm0, %v17227_v0 }
0x2d5f   : > { %v9760_v25 = vpop.f32.mrb[192].mxu1 }
0x2d60   : > { %v14745_v28 = vpop.f32.mrb[193].mxu1 }
0x2d61   : > { %v9763_v30 = vpop.f32.mrb[194].mxu1  ;;  %v15875_v28 = vld [vmem:[#allocation15 + $0xa8] sm:$0xff]  }
0x2d62   : > { %v14746_v31 = vpop.f32.mrb[195].mxu1 }
0x2d63   : > { %v15877_v31 = vld [vmem:[#allocation15 + $0xb0] sm:$0xff]  }
0x2d67   : > { %v9812_v32 = vpop.f32.mrb[196].mxu1 }
0x2d68   : > { %v9813_v33 = vadd.f32 %v9812_v32, %v9760_v25  ;;  %v14751_v34 = vpop.f32.mrb[197].mxu1  ;;  %v15874_v25 = vld [vmem:[%s19463_s11 + $0xb0] sm:$0xff]   ;;  %v15878_v32 = vld [vmem:[#allocation15 + $0xb8] sm:$0xff]  }
0x2d69   : > { %v9815_v36 = vpop.f32.mrb[198].mxu1 }
0x2d6a   : > { %v9816_v37 = vadd.f32 %v9815_v36, %v9763_v30  ;;  %v14752_v38 = vpop.f32.mrb[199].mxu1  ;;  %v9826_v39 = vadd.f32 %v12635_v35, %v9813_v33  ;;  %v15876_v30 = vld [vmem:[%s19463_s11 + $0xb8] sm:$0xff]  }
0x2d6c   : > { %v9827_v40 = vadd.f32 %v12635_v35, %v9816_v37 }
0x2d6e   : > { %v19128_v44 = vpack.c.bf16 %v9827_v40, %v9826_v39 }
0x2d70   : > { %14790 = vmatmul.mubr.bf16.vlgmr.msra.gmra.mrb[176].mxu0 %v19128_v44  ;;  %14794 = vmatpush3.bf16.msra.mxu1 %v19128_v44 }
0x2d71   : > { %14799 = vmatprep.subr.bf16.mxu1 %v17227_v0  ;;  %14806 = vmatpush3.bf16.msra.mxu0 %v15849_v43 }
0x2d72   : > { %14807 = vmatprep.subr.bf16.mxu0 %v17227_v0  ;;  %14821 = vmatprep.mubr.msk.bf16.mxu0 %vm17228_vm0, %v17227_v0 }
0x2d73   : > { %14796 = vmatmul.mubr.msk.bf16.vlgmr.msra.gmra.mrb[204].mxu1 %vm2259_vm1, %v19137_v42 }
0x2d74   : > { %14800 = vmatpush3.bf16.msra.mxu1 %v18323_v51  ;;  %14801 = vmatprep.mubr.msk.bf16.mxu1 %vm17228_vm0, %v17227_v0 }
0x2d75   : > { %14825 = vmatprep.subr.bf16.mxu1 %v17227_v0  ;;  %14808 = vmatpush3.bf16.msra.mxu0 %v15851_v45 }
0x2d76   : > { %14809 = vmatprep.subr.bf16.mxu0 %v17227_v0 }
0x2d79   : > { %14810 = vmatpush3.bf16.msra.mxu0 %v15853_v47 }
0x2d7a   : > { %14811 = vmatprep.subr.bf16.mxu0 %v17227_v0 }
0x2d7b   : > { %14802 = vmatmul.mubr.msk.bf16.vlgmr.msra.gmra.mrb[208].mxu1 %vm2259_vm1, %v19137_v42 }
0x2d7c   : > { %14826 = vmatpush3.bf16.msra.mxu1 %v15847_v48  ;;  %14841 = vmatprep.mubr.msk.bf16.mxu1 %vm17228_vm0, %v17227_v0 }
0x2d7d   : > { %14827 = vmatprep.subr.bf16.mxu1 %v17227_v0  ;;  %14812 = vmatpush3.bf16.msra.mxu0 %v15855_v49 }
0x2d7e   : > { %14813 = vmatprep.subr.bf16.mxu0 %v17227_v0 }
0x2d80   : > { %14828 = vmatpush3.bf16.msra.mxu1 %v15848_v50 }
0x2d81   : > { %14829 = vmatprep.subr.bf16.mxu1 %v17227_v0  ;;  %14814 = vmatpush3.bf16.msra.mxu0 %v15857_v59  ;;  %v15888_v59 = vld [vmem:[#allocation16 + $0x8] sm:$0xff]  }
0x2d82   : > { %14815 = vmatprep.subr.bf16.mxu0 %v17227_v0 }
0x2d84   : > { %14830 = vmatpush3.bf16.msra.mxu1 %v15850_v52 }
0x2d85   : > { %14831 = vmatprep.subr.bf16.mxu1 %v17227_v0  ;;  %14816 = vmatpush3.bf16.msra.mxu0 %v15859_v60  ;;  %v15890_v60 = vld [vmem:[#allocation16 + $0x18] sm:$0xff]  }
0x2d86   : > { %14817 = vmatprep.subr.bf16.mxu0 %v17227_v0 }
0x2d87   : > { %v9945_v53 = vpop.f32.mrb[200].mxu1 }
0x2d88   : > { %v14771_v54 = vpop.f32.mrb[201].mxu1  ;;  %14832 = vmatpush3.bf16.msra.mxu1 %v15852_v7 }
0x2d89   : > { %v9948_v56 = vpop.f32.mrb[202].mxu1  ;;  %14833 = vmatprep.subr.bf16.mxu1 %v17227_v0  ;;  %14818 = vmatpush3.bf16.msra.mxu0 %v15861_v62  ;;  %v15892_v62 = vld [vmem:[#allocation16 + $0x28] sm:$0xff]  }
0x2d8a   : > { %v14772_v57 = vpop.f32.mrb[203].mxu1  ;;  %14819 = vmatprep.subr.bf16.mxu0 %v17227_v0 }
0x2d8c   : > { %14834 = vmatpush3.bf16.msra.mxu1 %v15854_v55 }
0x2d8d   : > { %14835 = vmatprep.subr.bf16.mxu1 %v17227_v0  ;;  %14820 = vmatpush3.bf16.msra.mxu0 %v15862_v63  ;;  %v15893_v63 = vld [vmem:[#allocation16 + $0x30] sm:$0xff]  }
0x2d8e   : > { %14845 = vmatprep.subr.bf16.mxu0 %v17227_v0 }
0x2d90   : > { %14836 = vmatpush3.bf16.msra.mxu1 %v15856_v58  ;;  %v15887_v58 = vld [vmem:[#allocation16] sm:$0xff]  }
0x2d91   : > { %14837 = vmatprep.subr.bf16.mxu1 %v17227_v0 }
0x2d94   : > { %14838 = vmatpush3.bf16.msra.mxu1 %v15858_v41  ;;  %v15889_v41 = vld [vmem:[#allocation16 + $0x10] sm:$0xff]  }
0x2d95   : > { %14839 = vmatprep.subr.bf16.mxu1 %v17227_v0 }
0x2d98   : > { %14840 = vmatpush3.bf16.msra.mxu1 %v15860_v61  ;;  %v15891_v61 = vld [vmem:[#allocation16 + $0x20] sm:$0xff]  }
0x2d99   : > { %14851 = vmatprep.subr.bf16.mxu1 %v17227_v0 }
0x2e43   : > { %v10034_v1 = vpop.f32.mrb[176].mxu0 }
0x2e44   : > { %v19170_v13 = vadd.f32 %v10034_v1, %v9945_v53  ;;  %v14791_v3 = vpop.f32.mrb[177].mxu0 }
0x2e45   : > { %v10037_v4 = vpop.f32.mrb[178].mxu0 }
0x2e46   : > { %v19172_v29 = vadd.f32 %v10037_v4, %v9948_v56  ;;  %v14792_v5 = vpop.f32.mrb[179].mxu0  ;;  %v10075_v6 = vpop.f32.mrb[204].mxu1 }
0x2e47   : > { %v14797_v8 = vpop.f32.mrb[205].mxu1 }
0x2e48   : > { %v10078_v46 = vpop.f32.mrb[206].mxu1  ;;  %v12720_v8 = vld [vmem:[%s19464_s2] ss:$0 sm:$0xff]  ;;  %s2238_s2 = scalar_lea.vmem %s17517_s25, %s12777_s22 }
0x2e49   : > { %v10082_v9 = vpack.c.bf16 %v10078_v46, %v10075_v6  ;;  %v14798_v10 = vpop.f32.mrb[207].mxu1 }
0x2e4b   : > { %14842 = vmatmul.mubr.bf16.vlgmr.msra.gmra.mrb[212].mxu1 %v10082_v9 }
0x2e4c   : > { %14852 = vmatpush3.bf16.msra.mxu1 %v18323_v51  ;;  %14853 = vmatprep.mubr.msk.bf16.mxu1 %vm17228_vm0, %v17227_v0  ;;  %v15867_v51 = vld [vmem:[#allocation15 + $0x88] sm:$0xff]  }
0x2e4d   : > { %14877 = vmatprep.subr.bf16.mxu1 %v17227_v0 }
0x2e4e   : > { %v10133_v11 = vpop.f32.mrb[208].mxu1 }
0x2e4f   : > { %v14803_v14 = vpop.f32.mrb[209].mxu1 }
0x2e50   : > { %v10136_v12 = vpop.f32.mrb[210].mxu1 }
0x2e51   : > { %v10140_v15 = vpack.c.bf16 %v10136_v12, %v10133_v11  ;;  %v14804_v16 = vpop.f32.mrb[211].mxu1 }
0x2e53   : > { %14822 = vmatmul.mubr.bf16.vlgmr.msra.gmra.mrb[180].mxu0 %v10140_v15  ;;  %14854 = vmatmul.mubr.msk.bf16.vlgmr.msra.gmra.mrb[216].mxu1 %vm2259_vm1, %v19178_v18 }
0x2e54   : > { %14846 = vmatpush3.bf16.msra.mxu0 %v19128_v44  ;;  %14847 = vmatprep.mubr.msk.bf16.mxu0 %vm17228_vm0, %v17227_v0 }
0x2e55   : > { %14857 = vmatprep.subr.bf16.mxu0 %v17227_v0  ;;  %14878 = vmatpush3.bf16.msra.mxu1 %v15865_v17 }
0x2e56   : > { %14879 = vmatprep.subr.bf16.mxu1 %v17227_v0  ;;  %14893 = vmatprep.mubr.msk.bf16.mxu1 %vm17228_vm0, %v17227_v0 }
0x2e59   : > { %14880 = vmatpush3.bf16.msra.mxu1 %v15867_v51 }
0x2e5a   : > { %14881 = vmatprep.subr.bf16.mxu1 %v17227_v0 }
0x2e5b   : > { %14848 = vmatmul.mubr.msk.bf16.vlgmr.msra.gmra.mrb[184].mxu0 %vm2259_vm1, %v19178_v18 }
0x2e5c   : > { %14858 = vmatpush3.bf16.msra.mxu0 %v15863_v19  ;;  %14873 = vmatprep.mubr.msk.bf16.mxu0 %vm17228_vm0, %v17227_v0  ;;  %v15879_v19 = vld [vmem:[#allocation16 + $0x40] sm:$0xff]  }
0x2e5d   : > { %14859 = vmatprep.subr.bf16.mxu0 %v17227_v0  ;;  %14882 = vmatpush3.bf16.msra.mxu1 %v15869_v20  ;;  %v15880_v20 = vld [vmem:[#allocation16 + $0x48] sm:$0xff]  }
0x2e5e   : > { %14883 = vmatprep.subr.bf16.mxu1 %v17227_v0 }
0x2e60   : > { %14860 = vmatpush3.bf16.msra.mxu0 %v15864_v21  ;;  %v15881_v21 = vld [vmem:[#allocation16 + $0x50] sm:$0xff]  }
0x2e61   : > { %14861 = vmatprep.subr.bf16.mxu0 %v17227_v0  ;;  %14884 = vmatpush3.bf16.msra.mxu1 %v15871_v2  ;;  %v15885_v2 = vld [vmem:[#allocation16 + $0x70] sm:$0xff]  }
0x2e62   : > { %14885 = vmatprep.subr.bf16.mxu1 %v17227_v0 }
0x2e64   : > { %14862 = vmatpush3.bf16.msra.mxu0 %v15866_v22  ;;  %v15882_v22 = vld [vmem:[#allocation16 + $0x58] sm:$0xff]  }
0x2e65   : > { %14863 = vmatprep.subr.bf16.mxu0 %v17227_v0  ;;  %14886 = vmatpush3.bf16.msra.mxu1 %v15873_v27  ;;  %v15894_v27 = vld [vmem:[#allocation16 + $0x38] sm:$0xff]  }
0x2e66   : > { %14887 = vmatprep.subr.bf16.mxu1 %v17227_v0 }
0x2e68   : > { %14864 = vmatpush3.bf16.msra.mxu0 %v15868_v23  ;;  %v15883_v23 = vld [vmem:[#allocation16 + $0x60] sm:$0xff]  }
0x2e69   : > { %14865 = vmatprep.subr.bf16.mxu0 %v17227_v0  ;;  %14888 = vmatpush3.bf16.msra.mxu1 %v15875_v28  ;;  %v15896_v28 = vld [vmem:[#allocation16 + $0x88] sm:$0xff]  }
0x2e6a   : > { %14889 = vmatprep.subr.bf16.mxu1 %v17227_v0 }
0x2e6c   : > { %14866 = vmatpush3.bf16.msra.mxu0 %v15870_v24  ;;  %v15884_v24 = vld [vmem:[#allocation16 + $0x68] sm:$0xff]  }
0x2e6d   : > { %14867 = vmatprep.subr.bf16.mxu0 %v17227_v0  ;;  %14890 = vmatpush3.bf16.msra.mxu1 %v15877_v31  ;;  %v15898_v31 = vld [vmem:[#allocation16 + $0x98] sm:$0xff]  }
0x2e6e   : > { %14891 = vmatprep.subr.bf16.mxu1 %v17227_v0 }
0x2e70   : > { %14868 = vmatpush3.bf16.msra.mxu0 %v15872_v26  ;;  %v15886_v26 = vld [vmem:[#allocation16 + $0x78] sm:$0xff]  }
0x2e71   : > { %14869 = vmatprep.subr.bf16.mxu0 %v17227_v0  ;;  %14892 = vmatpush3.bf16.msra.mxu1 %v15878_v32  ;;  %v15899_v32 = vld [vmem:[#allocation16 + $0xa0] sm:$0xff]  }
0x2e72   : > { %14903 = vmatprep.subr.bf16.mxu1 %v17227_v0 }
0x2e74   : > { %14870 = vmatpush3.bf16.msra.mxu0 %v15874_v25  ;;  %v15895_v25 = vld [vmem:[#allocation16 + $0x80] sm:$0xff]  }
0x2e75   : > { %14871 = vmatprep.subr.bf16.mxu0 %v17227_v0 }
0x2e78   : > { %14872 = vmatpush3.bf16.msra.mxu0 %v15876_v30  ;;  %v15897_v30 = vld [vmem:[#allocation16 + $0x90] sm:$0xff]  }
0x2e79   : > { %14897 = vmatprep.subr.bf16.mxu0 %v17227_v0 }
0x2f1e   : > { %v10328_v33 = vpop.f32.mrb[212].mxu1 }
0x2f1f   : > { %v14843_v34 = vpop.f32.mrb[213].mxu1 }
0x2f20   : > { %v10331_v35 = vpop.f32.mrb[214].mxu1 }
0x2f21   : > { %v14844_v36 = vpop.f32.mrb[215].mxu1 }
0x2f26   : > { %v10239_v37 = vpop.f32.mrb[180].mxu0  ;;  %v10430_v38 = vpop.f32.mrb[216].mxu1 }
0x2f27   : > { %v10329_v39 = vadd.f32 %v10328_v33, %v10239_v37  ;;  %v14823_v40 = vpop.f32.mrb[181].mxu0  ;;  %v14855_v43 = vpop.f32.mrb[217].mxu1 }
0x2f28   : > { %v10242_v44 = vpop.f32.mrb[182].mxu0  ;;  %v10433_v45 = vpop.f32.mrb[218].mxu1 }
0x2f29   : > { %v10335_v47 = vadd.f32 %v10329_v39, %v19170_v13  ;;  %v10332_v48 = vadd.f32 %v10331_v35, %v10242_v44  ;;  %v14824_v49 = vpop.f32.mrb[183].mxu0  ;;  %v10437_v50 = vpack.c.bf16 %v10433_v45, %v10430_v38  ;;  %v14856_v52 = vpop.f32.mrb[219].mxu1  ;;  %v15900_v44 = vld [vmem:[#allocation16 + $0xa8] sm:$0xff]   ;;  %v15901_v45 = vld [vmem:[#allocation16 + $0xb0] sm:$0xff]  }
0x2f2b   : > { %v10336_v7 = vadd.f32 %v10332_v48, %v19172_v29  ;;  %14874 = vmatmul.mubr.bf16.vlgmr.msra.gmra.mrb[188].mxu0 %v10437_v50 }
0x2f2c   : > { %14899 = vmatprep.mubr.msk.bf16.mxu0 %vm17228_vm0, %v17227_v0 }
0x2f2e   : > { %v10371_v53 = vpop.f32.mrb[184].mxu0 }
0x2f2f   : > { %v14849_v54 = vpop.f32.mrb[185].mxu0 }
0x2f30   : > { %v10374_v55 = vpop.f32.mrb[186].mxu0 }
0x2f31   : > { %v10378_v56 = vpack.c.bf16 %v10374_v55, %v10371_v53  ;;  %v14850_v57 = vpop.f32.mrb[187].mxu0 }
0x2f32   : > { %v15903_v57 = vld [vmem:[#allocation48 + $0x40] sm:$0xff]  }
0x2f33   : > { %14894 = vmatmul.mubr.bf16.vlgmr.msra.gmra.mrb[220].mxu1 %v10378_v56 }
0x2f34   : > { %14919 = vmatprep.mubr.msk.bf16.mxu1 %vm17228_vm0, %v17227_v0  ;;  %14904 = vmatpush3.bf16.msra.mxu1 %v15887_v58 }
0x2f35   : > { %14905 = vmatprep.subr.bf16.mxu1 %v17227_v0 }
0x2f38   : > { %14906 = vmatpush3.bf16.msra.mxu1 %v15888_v59 }
0x2f39   : > { %14907 = vmatprep.subr.bf16.mxu1 %v17227_v0 }
0x2f3c   : > { %14908 = vmatpush3.bf16.msra.mxu1 %v15889_v41  ;;  %v15904_v41 = vld [vmem:[#allocation48 + $0x48] sm:$0xff]  }
0x2f3d   : > { %14909 = vmatprep.subr.bf16.mxu1 %v17227_v0 }
0x2f40   : > { %14910 = vmatpush3.bf16.msra.mxu1 %v15890_v60  ;;  %v15905_v60 = vld [vmem:[#allocation48 + $0x50] sm:$0xff]  }
0x2f41   : > { %14911 = vmatprep.subr.bf16.mxu1 %v17227_v0 }
0x2f44   : > { %14912 = vmatpush3.bf16.msra.mxu1 %v15891_v61  ;;  %v15906_v61 = vld [vmem:[#allocation48 + $0x58] sm:$0xff]  }
0x2f45   : > { %14913 = vmatprep.subr.bf16.mxu1 %v17227_v0 }
0x2f48   : > { %14914 = vmatpush3.bf16.msra.mxu1 %v15892_v62  ;;  %v15907_v62 = vld [vmem:[#allocation48 + $0x60] sm:$0xff]  }
0x2f49   : > { %14915 = vmatprep.subr.bf16.mxu1 %v17227_v0 }
0x2f4c   : > { %14916 = vmatpush3.bf16.msra.mxu1 %v15893_v63  ;;  %v15908_v63 = vld [vmem:[#allocation48 + $0x68] sm:$0xff]  }
0x2f4d   : > { %14917 = vmatprep.subr.bf16.mxu1 %v17227_v0 }
0x2f50   : > { %14918 = vmatpush3.bf16.msra.mxu1 %v15894_v27 }
0x2f51   : > { %14943 = vmatprep.subr.bf16.mxu1 %v17227_v0 }
0x2ffe   : > { %v10537_v1 = vpop.f32.mrb[188].mxu0 }
0x2fff   : > { %v14875_v13 = vpop.f32.mrb[189].mxu0 }
0x3000   : > { %v10540_v3 = vpop.f32.mrb[190].mxu0  ;;  %v15910_v13 = vld [vmem:[#allocation48 + $0x78] sm:$0xff]  }
0x3001   : > { %v14876_v4 = vpop.f32.mrb[191].mxu0 }
0x3002   : > { %v12747_v4 = vld [vmem:[%s19465_s6] ss:$0 sm:$0xff] }
0x3006   : > { %v10626_v29 = vpop.f32.mrb[220].mxu1 }
0x3007   : > { %v10627_v5 = vadd.f32 %v10626_v29, %v10537_v1  ;;  %v14895_v6 = vpop.f32.mrb[221].mxu1  ;;  %v15909_v1 = vld [vmem:[#allocation48 + $0x70] sm:$0xff]  }
0x3008   : > { %v10629_v46 = vpop.f32.mrb[222].mxu1 }
0x3009   : > { %v10633_v9 = vadd.f32 %v10627_v5, %v10335_v47  ;;  %v10630_v10 = vadd.f32 %v10629_v46, %v10540_v3  ;;  %v14896_v11 = vpop.f32.mrb[223].mxu1  ;;  %v15902_v47 = vld [vmem:[#allocation16 + $0xb8] sm:$0xff]  }
0x300b   : > { %v10642_v14 = vadd.f32 %v12720_v8, %v10633_v9  ;;  %v10634_v12 = vadd.f32 %v10630_v10, %v10336_v7 }
0x300d   : > { %v10643_v15 = vadd.f32 %v12720_v8, %v10634_v12  ;;  %v10644_v16 = vmax.f32 %v10642_v14, 0.0 }
0x300f   : > { %v10645_v17 = vmax.f32 %v10643_v15, 0.0  ;;  %v15911_v15 = vld [vmem:[#allocation48] sm:$0xff]  }
0x3011   : > { %v10646_v51 = vpack.c.bf16 %v10645_v17, %v10644_v16  ;;  %v15912_v16 = vld [vmem:[#allocation48 + $0x8] sm:$0xff]   ;;  %v15913_v17 = vld [vmem:[#allocation48 + $0x10] sm:$0xff]  }
0x3013   : > { %14898 = vmatpush3.bf16.msra.mxu0 %v10646_v51 }
0x3014   : > { %14923 = vmatprep.subr.bf16.mxu0 %v17227_v0 }
0x3016   : > { %14900 = vmatmul.mubr.msk.bf16.vlgmr.msra.gmra.mrb[192].mxu0 %vm2259_vm1, %v19137_v42 }
0x3017   : > { %14924 = vmatpush3.bf16.msra.mxu0 %v15879_v19  ;;  %14939 = vmatprep.mubr.msk.bf16.mxu0 %vm17228_vm0, %v17227_v0  ;;  %v15915_v19 = vld [vmem:[#allocation48 + $0x20] sm:$0xff]  }
0x3018   : > { %14925 = vmatprep.subr.bf16.mxu0 %v17227_v0 }
0x301b   : > { %14926 = vmatpush3.bf16.msra.mxu0 %v15880_v20  ;;  %v15917_v20 = vld [vmem:[#allocation48 + $0x30] sm:$0xff]  }
0x301c   : > { %14927 = vmatprep.subr.bf16.mxu0 %v17227_v0 }
0x301f   : > { %14928 = vmatpush3.bf16.msra.mxu0 %v15881_v21  ;;  %v15918_v21 = vld [vmem:[#allocation48 + $0x38] sm:$0xff]  }
0x3020   : > { %14929 = vmatprep.subr.bf16.mxu0 %v17227_v0 }
0x3023   : > { %14930 = vmatpush3.bf16.msra.mxu0 %v15882_v22 }
0x3024   : > { %14931 = vmatprep.subr.bf16.mxu0 %v17227_v0 }
0x3027   : > { %14932 = vmatpush3.bf16.msra.mxu0 %v15883_v23 }
0x3028   : > { %14933 = vmatprep.subr.bf16.mxu0 %v17227_v0 }
0x302b   : > { %14934 = vmatpush3.bf16.msra.mxu0 %v15884_v24 }
0x302c   : > { %14935 = vmatprep.subr.bf16.mxu0 %v17227_v0 }
0x302f   : > { %14936 = vmatpush3.bf16.msra.mxu0 %v15885_v2 }
0x3030   : > { %14937 = vmatprep.subr.bf16.mxu0 %v17227_v0 }
0x3033   : > { %14938 = vmatpush3.bf16.msra.mxu0 %v15886_v26 }
0x3034   : > { %14949 = vmatprep.subr.bf16.mxu0 %v17227_v0 }
0x3036   : > { %14940 = vmatmul.mubr.bf16.vlgmr.msra.gmra.mrb[196].mxu0 %v10646_v51 }
0x3037   : > { %14965 = vmatprep.mubr.msk.bf16.mxu0 %vm17228_vm0, %v17227_v0  ;;  %14950 = vmatpush3.bf16.msra.mxu0 %v15895_v25 }
0x3038   : > { %14951 = vmatprep.subr.bf16.mxu0 %v17227_v0 }
0x303b   : > { %14952 = vmatpush3.bf16.msra.mxu0 %v15896_v28 }
0x303c   : > { %14953 = vmatprep.subr.bf16.mxu0 %v17227_v0 }
0x303f   : > { %14954 = vmatpush3.bf16.msra.mxu0 %v15897_v30 }
0x3040   : > { %14955 = vmatprep.subr.bf16.mxu0 %v17227_v0 }
0x3043   : > { %14956 = vmatpush3.bf16.msra.mxu0 %v15898_v31  ;;  %v15919_v31 = vld [vmem:[#allocation48 + $0x80] sm:$0xff]  }
0x3044   : > { %14957 = vmatprep.subr.bf16.mxu0 %v17227_v0 }
0x3047   : > { %14958 = vmatpush3.bf16.msra.mxu0 %v15899_v32  ;;  %v15920_v32 = vld [vmem:[#allocation48 + $0x88] sm:$0xff]  }
0x3048   : > { %14959 = vmatprep.subr.bf16.mxu0 %v17227_v0 }
0x304b   : > { %14960 = vmatpush3.bf16.msra.mxu0 %v15900_v44 }
0x304c   : > { %14961 = vmatprep.subr.bf16.mxu0 %v17227_v0 }
0x304f   : > { %14962 = vmatpush3.bf16.msra.mxu0 %v15901_v45 }
0x3050   : > { %14963 = vmatprep.subr.bf16.mxu0 %v17227_v0 }
0x3053   : > { %14964 = vmatpush3.bf16.msra.mxu0 %v15902_v47 }
0x3054   : > { %14995 = vmatprep.subr.bf16.mxu0 %v17227_v0 }
0x30e9   : > { %v10698_v33 = vpop.f32.mrb[192].mxu0 }
0x30ea   : > { %v14901_v34 = vpop.f32.mrb[193].mxu0 }
0x30eb   : > { %v10701_v35 = vpop.f32.mrb[194].mxu0  ;;  %v15922_v34 = vld [vmem:[#allocation48 + $0x98] sm:$0xff]  }
0x30ec   : > { %v10705_v36 = vpack.c.bf16 %v10701_v35, %v10698_v33  ;;  %v14902_v37 = vpop.f32.mrb[195].mxu0  ;;  %v15921_v33 = vld [vmem:[#allocation48 + $0x90] sm:$0xff]   ;;  %v15923_v35 = vld [vmem:[#allocation48 + $0xa0] sm:$0xff]  }
0x30ed   : > { %v15926_v37 = vld [vmem:[#allocation48 + $0xb8] sm:$0xff]  }
0x30ee   : > { %14920 = vmatmul.mubr.bf16.vlgmr.msra.gmra.mrb[224].mxu1 %v10705_v36  ;;  %v15925_v36 = vld [vmem:[#allocation48 + $0xb0] sm:$0xff]  }
0x30ef   : > { %14944 = vmatpush3.bf16.msra.mxu1 %v10646_v51  ;;  %14945 = vmatprep.mubr.msk.bf16.mxu1 %vm17228_vm0, %v17227_v0  ;;  %v15914_v51 = vld [vmem:[#allocation48 + $0x18] sm:$0xff]  }
0x30f0   : > { %14969 = vmatprep.subr.bf16.mxu1 %v17227_v0 }
0x30f6   : > { %14946 = vmatmul.mubr.msk.bf16.vlgmr.msra.gmra.mrb[228].mxu1 %vm2259_vm1, %v19178_v18 }
0x30f7   : > { %14971 = vmatprep.mubr.msk.bf16.mxu1 %vm17228_vm0, %v17227_v0 }
0x3109   : > { %v10893_v38 = vpop.f32.mrb[196].mxu0 }
0x310a   : > { %v14941_v39 = vpop.f32.mrb[197].mxu0 }
0x310b   : > { %v10896_v40 = vpop.f32.mrb[198].mxu0 }
0x310c   : > { %v14942_v43 = vpop.f32.mrb[199].mxu0 }
0x31c1   : > { %v10804_v48 = vpop.f32.mrb[224].mxu1 }
0x31c2   : > { %v10894_v49 = vadd.f32 %v10893_v38, %v10804_v48  ;;  %v14921_v50 = vpop.f32.mrb[225].mxu1 }
0x31c3   : > { %v10807_v52 = vpop.f32.mrb[226].mxu1 }
0x31c4   : > { %v10897_v7 = vadd.f32 %v10896_v40, %v10807_v52  ;;  %v14922_v53 = vpop.f32.mrb[227].mxu1 }
0x31c5   : > { %v12774_v53 = vld [vmem:[#allocation49] ss:$0 sm:$0xff] }
0x31c9   : > { %v10934_v54 = vpop.f32.mrb[228].mxu1 }
0x31ca   : > { %v14947_v55 = vpop.f32.mrb[229].mxu1 }
0x31cb   : > { %v10937_v56 = vpop.f32.mrb[230].mxu1 }
0x31cc   : > { %v10941_v58 = vpack.c.bf16 %v10937_v56, %v10934_v54  ;;  %v14948_v59 = vpop.f32.mrb[231].mxu1 }
0x31ce   : > { %14966 = vmatmul.mubr.bf16.vlgmr.msra.gmra.mrb[200].mxu0 %v10941_v58 }
0x31cf   : > { %14996 = vmatpush3.bf16.msra.mxu0 %v15903_v57  ;;  %15011 = vmatprep.mubr.msk.bf16.mxu0 %vm17228_vm0, %v17227_v0 }
0x31d0   : > { %14997 = vmatprep.subr.bf16.mxu0 %v17227_v0 }
0x31d3   : > { %14998 = vmatpush3.bf16.msra.mxu0 %v15904_v41 }
0x31d4   : > { %14999 = vmatprep.subr.bf16.mxu0 %v17227_v0 }
0x31d7   : > { %15000 = vmatpush3.bf16.msra.mxu0 %v15905_v60 }
0x31d8   : > { %15001 = vmatprep.subr.bf16.mxu0 %v17227_v0 }
0x31db   : > { %15002 = vmatpush3.bf16.msra.mxu0 %v15906_v61 }
0x31dc   : > { %15003 = vmatprep.subr.bf16.mxu0 %v17227_v0 }
0x31df   : > { %15004 = vmatpush3.bf16.msra.mxu0 %v15907_v62 }
0x31e0   : > { %15005 = vmatprep.subr.bf16.mxu0 %v17227_v0 }
0x31e3   : > { %15006 = vmatpush3.bf16.msra.mxu0 %v15908_v63 }
0x31e4   : > { %15007 = vmatprep.subr.bf16.mxu0 %v17227_v0 }
0x31e7   : > { %15008 = vmatpush3.bf16.msra.mxu0 %v15909_v1 }
0x31e8   : > { %15009 = vmatprep.subr.bf16.mxu0 %v17227_v0 }
0x31eb   : > { %15010 = vmatpush3.bf16.msra.mxu0 %v15910_v13 }
0x32a1   : > { %v11041_v3 = vpop.f32.mrb[200].mxu0 }
0x32a2   : > { %v11048_v29 = vadd.f32 %v11041_v3, %v10894_v49  ;;  %v14967_v5 = vpop.f32.mrb[201].mxu0 }
0x32a3   : > { %v11044_v6 = vpop.f32.mrb[202].mxu0 }
0x32a4   : > { %v11057_v8 = vadd.f32 %v12747_v4, %v11048_v29  ;;  %v11049_v46 = vadd.f32 %v11044_v6, %v10897_v7  ;;  %v14968_v9 = vpop.f32.mrb[203].mxu0 }
0x32a6   : > { %v11058_v10 = vadd.f32 %v12747_v4, %v11049_v46  ;;  %v11059_v11 = vmax.f32 %v11057_v8, 0.0 }
0x32a8   : > { %v11060_v14 = vmax.f32 %v11058_v10, 0.0 }
0x32aa   : > { %v11061_v12 = vpack.c.bf16 %v11060_v14, %v11059_v11 }
0x32ac   : > { %14970 = vmatpush3.bf16.msra.mxu1 %v11061_v12  ;;  %15012 = vmatmul.mubr.bf16.vlgmr.msra.gmra.mrb[204].mxu0 %v11061_v12 }
0x32ad   : > { %14975 = vmatprep.subr.bf16.mxu1 %v17227_v0 }
0x32af   : > { %14972 = vmatmul.mubr.msk.bf16.vlgmr.msra.gmra.mrb[232].mxu1 %vm2259_vm1, %v19137_v42  ;;  %v15916_v42 = vld [vmem:[#allocation48 + $0x28] sm:$0xff]  }
0x32b0   : > { %14976 = vmatpush3.bf16.msra.mxu1 %v15911_v15  ;;  %14991 = vmatprep.mubr.msk.bf16.mxu1 %vm17228_vm0, %v17227_v0 }
0x32b1   : > { %14977 = vmatprep.subr.bf16.mxu1 %v17227_v0 }
0x32b4   : > { %14978 = vmatpush3.bf16.msra.mxu1 %v15912_v16 }
0x32b5   : > { %14979 = vmatprep.subr.bf16.mxu1 %v17227_v0 }
0x32b8   : > { %14980 = vmatpush3.bf16.msra.mxu1 %v15913_v17 }
0x32b9   : > { %14981 = vmatprep.subr.bf16.mxu1 %v17227_v0 }
0x32bc   : > { %14982 = vmatpush3.bf16.msra.mxu1 %v15914_v51 }
0x32bd   : > { %14983 = vmatprep.subr.bf16.mxu1 %v17227_v0 }
0x32c0   : > { %14984 = vmatpush3.bf16.msra.mxu1 %v15915_v19 }
0x32c1   : > { %14985 = vmatprep.subr.bf16.mxu1 %v17227_v0 }
0x32c4   : > { %14986 = vmatpush3.bf16.msra.mxu1 %v15916_v42 }
0x32c5   : > { %14987 = vmatprep.subr.bf16.mxu1 %v17227_v0 }
0x32c8   : > { %14988 = vmatpush3.bf16.msra.mxu1 %v15917_v20 }
0x32c9   : > { %14989 = vmatprep.subr.bf16.mxu1 %v17227_v0 }
0x32cc   : > { %14990 = vmatpush3.bf16.msra.mxu1 %v15918_v21 }
0x32cd   : > { %15015 = vmatprep.subr.bf16.mxu1 %v17227_v0 }
0x337f   : > { %v11308_v22 = vpop.f32.mrb[204].mxu0 }
0x3380   : > { %v15013_v23 = vpop.f32.mrb[205].mxu0 }
0x3381   : > { %v11311_v24 = vpop.f32.mrb[206].mxu0 }
0x3382   : > { %v11113_v2 = vpop.f32.mrb[232].mxu1  ;;  %v15014_v26 = vpop.f32.mrb[207].mxu0 }
0x3383   : > { %v14973_v27 = vpop.f32.mrb[233].mxu1 }
0x3384   : > { %v11116_v25 = vpop.f32.mrb[234].mxu1 }
0x3385   : > { %v11120_v28 = vpack.c.bf16 %v11116_v25, %v11113_v2  ;;  %v14974_v30 = vpop.f32.mrb[235].mxu1 }
0x3387   : > { %14992 = vmatmul.mubr.bf16.vlgmr.msra.gmra.mrb[236].mxu1 %v11120_v28 }
0x3388   : > { %15016 = vmatpush3.bf16.msra.mxu1 %v11061_v12  ;;  %15017 = vmatprep.mubr.msk.bf16.mxu1 %vm17228_vm0, %v17227_v0 }
0x3389   : > { %15021 = vmatprep.subr.bf16.mxu1 %v17227_v0 }
0x338f   : > { %15018 = vmatmul.mubr.msk.bf16.vlgmr.msra.gmra.mrb[240].mxu1 %vm2259_vm1, %v19178_v18  ;;  %v15924_v18 = vld [vmem:[#allocation48 + $0xa8] sm:$0xff]  }
0x3390   : > { %15022 = vmatpush3.bf16.msra.mxu1 %v15919_v31  ;;  %15037 = vmatprep.mubr.msk.bf16.mxu1 %vm17228_vm0, %v17227_v0 }
0x3391   : > { %15023 = vmatprep.subr.bf16.mxu1 %v17227_v0 }
0x3394   : > { %15024 = vmatpush3.bf16.msra.mxu1 %v15920_v32 }
0x3395   : > { %15025 = vmatprep.subr.bf16.mxu1 %v17227_v0 }
0x3398   : > { %15026 = vmatpush3.bf16.msra.mxu1 %v15921_v33 }
0x3399   : > { %15027 = vmatprep.subr.bf16.mxu1 %v17227_v0 }
0x339c   : > { %15028 = vmatpush3.bf16.msra.mxu1 %v15922_v34 }
0x339d   : > { %15029 = vmatprep.subr.bf16.mxu1 %v17227_v0 }
0x33a0   : > { %15030 = vmatpush3.bf16.msra.mxu1 %v15923_v35 }
0x33a1   : > { %15031 = vmatprep.subr.bf16.mxu1 %v17227_v0 }
0x33a4   : > { %15032 = vmatpush3.bf16.msra.mxu1 %v15924_v18 }
0x33a5   : > { %15033 = vmatprep.subr.bf16.mxu1 %v17227_v0 }
0x33a8   : > { %15034 = vmatpush3.bf16.msra.mxu1 %v15925_v36 }
0x33a9   : > { %15035 = vmatprep.subr.bf16.mxu1 %v17227_v0 }
0x33ac   : > { %15036 = vmatpush3.bf16.msra.mxu1 %v15926_v37 }
0x345a   : > { %v11219_v38 = vpop.f32.mrb[236].mxu1 }
0x345b   : > { %v11309_v39 = vadd.f32 %v11308_v22, %v11219_v38  ;;  %v14993_v40 = vpop.f32.mrb[237].mxu1 }
0x345c   : > { %v11222_v43 = vpop.f32.mrb[238].mxu1 }
0x345d   : > { %v11312_v44 = vadd.f32 %v11311_v24, %v11222_v43  ;;  %v14994_v45 = vpop.f32.mrb[239].mxu1 }
0x3462   : > { %v11349_v47 = vpop.f32.mrb[240].mxu1 }
0x3463   : > { %v15019_v48 = vpop.f32.mrb[241].mxu1 }
0x3464   : > { %v11352_v49 = vpop.f32.mrb[242].mxu1 }
0x3465   : > { %v11356_v50 = vpack.c.bf16 %v11352_v49, %v11349_v47  ;;  %v15020_v52 = vpop.f32.mrb[243].mxu1 }
0x3467   : > { %15038 = vmatmul.mubr.bf16.vlgmr.msra.gmra.mrb[244].mxu1 %v11356_v50 }
0x353a   : > { %v11456_v7 = vpop.f32.mrb[244].mxu1 }
0x353b   : > { %v11463_v54 = vadd.f32 %v11456_v7, %v11309_v39  ;;  %v15039_v0 = vpop.f32.mrb[245].mxu1 }
0x353c   : > { %v11459_v55 = vpop.f32.mrb[246].mxu1 }
0x353d   : > { %v11472_v56 = vadd.f32 %v12774_v53, %v11463_v54  ;;  %v11464_v57 = vadd.f32 %v11459_v55, %v11312_v44  ;;  %v15040_v58 = vpop.f32.mrb[247].mxu1 }
0x353f   : > { %11474 = vst [vmem:[%s2238_s2] sm:$0xff] %v11472_v56  ;;  %v11473_v59 = vadd.f32 %v12774_v53, %v11464_v57 }
0x3541   : > { %11475 = vst [vmem:[%s2238_s2 + $0x8] sm:$0xff] %v11473_v59 }
0x3542 PF: > { %s145_s0 = sadd.s32 1, %s17121_s0  }
0x3543   : > { %p142_p3 = scmp.ge.s32.totalorder %s145_s0, 4  }
0x3545   :  { %144 = sbr.rel (!%p142_p3) target bundleno = 127 (0x7f), region = 551 }
0x354c   :  { %11497 = vsyncpa [#allocation3], 1 }
0x354d   :  { %11499 = vsyncpa [#allocation3 + $0x1], 1 }
0x354e   :  { %11500 = vsyncpa [#allocation5], 1 }
0x354f   :  { %11501 = vsyncpa [#allocation8], 1 }
0x3550   :  { %11502 = vsyncpa [#allocation11], 1 }
0x3551   :  { %11503 = vsyncpa [#allocation14], 1 }
0x3552   :  { %11504 = vsyncpa [#allocation17], 1 }
0x3553   :  { %11505 = vsyncpa [#allocation20], 1 }
0x3554   :  { %11506 = vsyncpa [#allocation23], 1 }
0x3555   :  { %11507 = vsyncpa [#allocation26], 1 }
0x3556   :  { %11508 = vsyncpa [#allocation29], 1 }
0x3557   :  { %11509 = vsyncpa [#allocation32], 1 }
0x3558   :  { %11510 = vsyncpa [#allocation35], 1 }
0x3559   :  { %11511 = vsyncpa [#allocation38], 1 }
0x355a   :  { %11512 = vsyncpa [#allocation41], 1 }
0x355b   :  { %11513 = vsyncpa [#allocation44], 1 }
0x355c   :  { %11514 = vsyncpa [#allocation47], 1 }
0x355d   :  { %11515 = vsyncpa [#allocation50], 1 }
0x355e   :  { %11516 = vsyncpa [#allocation53], 1 }
0x355f   :  { %11517 = vsyncpa [#allocation56], 1 }
0x3560   :  { %11518 = vsyncpa [#allocation59], 1 }
0x3561   :  { %11519 = vsyncpa [#allocation62], 1 }
0x3562   :  { %11520 = vsyncpa [#allocation65], 1 }

</bundles_post_ra>
